<compile_context>
chip_gen: v7x
topology: tpu7x:2x2x1
jax: 0.10.0
libtpu: 0.0.40
codegen_flags: <defaults>
</compile_context>

<pallas_src>
import functools

import jax
import jax.numpy as jnp
from jax import lax
from jax.experimental import pallas as pl
from jax.experimental.pallas import tpu as pltpu

_CP = 128          # lane-dense channel padding for all conv outputs


@functools.lru_cache(maxsize=None)
def _vmem_limit_bytes():
    """Generation-aware VMEM budget (v7x: 64 MiB/TC; v5e/v6e: 128 MiB)."""
    try:
        cap = int(pltpu.get_tpu_info().vmem_capacity_bytes)
    except Exception:
        cap = 64 * 1024 * 1024
    return max(32 * 1024 * 1024, min(cap * 3 // 4, 96 * 1024 * 1024))


def _choose_vt(v, cap=512, target=256):
    """Pick a voxel-tile size (multiple of 8, <= cap, near `target`) and the
    padded voxel count Vp (multiple of the tile)."""
    vp8 = ((v + 7) // 8) * 8
    if vp8 <= target:
        return vp8, vp8
    best = None
    for t in range(8, min(vp8, cap) + 1, 8):
        if vp8 % t == 0 and (best is None or abs(t - target) <= abs(best - target)):
            best = t
    if best is not None and best >= 64:
        return best, vp8
    vpt = -(-v // target) * target           # fallback: pad V to target tiles
    return target, vpt


def conv_matmul_bn_relu(patch, w, scale, bias, mask, *, residual=None,
                        n_extra=0, out_dtype=jnp.bfloat16):
    """Fused (V, K) @ (K, Cout [+ n_extra]) conv-as-matmul.

      y     = ReLU((patch @ w[:, :Cout] [+ residual]) * scale + bias) * mask
      extra = patch @ w[:, Cout:]          (raw bf16, e.g. the NiN branch)

    patch:    (N, V, K)             im2col'd conv input (any float dtype)
    w:        (K, Cout + n_extra)
    scale/bias: (Cout,)             inference-mode BN folded to an affine
    mask:     (N, V, 1)             active-site mask on the OUTPUT voxel set
    residual: (N, V, Cout) or None  added before the BN affine
    Returns y (N, V, Cout) [, extra (N, V, n_extra)].
    """
    N, V, K = patch.shape
    Ctot = w.shape[-1]
    Cout = Ctot - n_extra
    assert w.shape[0] == K and scale.shape[0] == Cout and bias.shape[0] == Cout

    Vt, Vp = _choose_vt(V)

    def padv(a):
        return a if Vp == V else jnp.pad(a, ((0, 0), (0, Vp - V), (0, 0)))

    patch = padv(patch).astype(jnp.bfloat16)
    mask = padv(mask).astype(jnp.bfloat16)
    wb = w.astype(jnp.bfloat16)
    s2 = scale.reshape(1, Cout).astype(jnp.float32)
    b2 = bias.reshape(1, Cout).astype(jnp.float32)
    has_res = residual is not None
    if has_res:
        residual = padv(residual).astype(jnp.bfloat16)

    def kernel(*refs):
        it = iter(refs)
        x_ref = next(it)
        w_ref = next(it)
        s_ref = next(it)
        b_ref = next(it)
        m_ref = next(it)
        r_ref = next(it) if has_res else None
        o_ref = next(it)
        e_ref = next(it) if n_extra else None

        # single MXU dot per tile; the f32 accumulator is tile-local
        acc = jnp.dot(x_ref[0], w_ref[...], preferred_element_type=jnp.float32)
        y = acc[:, :Cout] if n_extra else acc            # lane-aligned slice
        if has_res:
            y = y + r_ref[0].astype(jnp.float32)
        y = y * s_ref[...] + b_ref[...]
        y = jnp.maximum(y, 0.0) * m_ref[0].astype(jnp.float32)
        o_ref[0] = y.astype(o_ref.dtype)                 # lane-dense store
        if n_extra:
            e_ref[0] = acc[:, Cout:].astype(e_ref.dtype)

    in_specs = [pl.BlockSpec((1, Vt, K), lambda n, v: (n, v, 0)),
                pl.BlockSpec((K, Ctot), lambda n, v: (0, 0)),
                pl.BlockSpec((1, Cout), lambda n, v: (0, 0)),
                pl.BlockSpec((1, Cout), lambda n, v: (0, 0)),
                pl.BlockSpec((1, Vt, 1), lambda n, v: (n, v, 0))]
    args = [patch, wb, s2, b2, mask]
    if has_res:
        in_specs.append(pl.BlockSpec((1, Vt, Cout), lambda n, v: (n, v, 0)))
        args.append(residual)

    out_shapes = [jax.ShapeDtypeStruct((N, Vp, Cout), out_dtype)]
    out_specs = [pl.BlockSpec((1, Vt, Cout), lambda n, v: (n, v, 0))]
    if n_extra:
        out_shapes.append(jax.ShapeDtypeStruct((N, Vp, n_extra), jnp.bfloat16))
        out_specs.append(pl.BlockSpec((1, Vt, n_extra), lambda n, v: (n, v, 0)))

    flops = 2 * N * Vp * K * Ctot
    bytes_accessed = (patch.size * 2 + wb.size * 2 + mask.size * 2
                      + (residual.size * 2 if has_res else 0)
                      + N * Vp * Ctot * 2 + (s2.size + b2.size) * 4)
    cost = pl.CostEstimate(flops=flops, transcendentals=0,
                           bytes_accessed=bytes_accessed)

    outs = pl.pallas_call(
        kernel,
        out_shape=tuple(out_shapes) if n_extra else out_shapes[0],
        grid=(N, Vp // Vt),
        in_specs=in_specs,
        out_specs=tuple(out_specs) if n_extra else out_specs[0],
        compiler_params=pltpu.CompilerParams(
            dimension_semantics=("parallel", "parallel"),
            vmem_limit_bytes=_vmem_limit_bytes()),
        cost_estimate=cost,
    )(*args)

    if n_extra:
        y, e = outs
        return y[:, :V], e[:, :V]
    return outs[:, :V]


def _im2col(x, strides=(1, 1, 1), padding=0, ksize=3):
    """Channels-last im2col (plain-JAX glue, data movement only).

    x: (N, D, H, W, C) -> (N, Do*Ho*Wo, 27*C) with (dz, dy, dx) row-major tap
    order, matching w.reshape(27*C, Cout)."""
    if padding:
        p = padding
        x = jnp.pad(x, ((0, 0), (p, p), (p, p), (p, p), (0, 0)))
    N, D, H, W, C = x.shape
    sd, sh, sw = strides
    Do = (D - ksize) // sd + 1
    Ho = (H - ksize) // sh + 1
    Wo = (W - ksize) // sw + 1
    taps = []
    for dz in range(ksize):
        for dy in range(ksize):
            for dx in range(ksize):
                taps.append(lax.slice(
                    x,
                    (0, dz, dy, dx, 0),
                    (N, dz + sd * (Do - 1) + 1, dy + sh * (Ho - 1) + 1,
                     dx + sw * (Wo - 1) + 1, C),
                    (1, sd, sh, sw, 1)))
    patch = jnp.concatenate(taps, axis=-1)          # (N, Do, Ho, Wo, 27*C)
    return patch.reshape(N, Do * Ho * Wo, ksize ** 3 * C), (Do, Ho, Wo)


def scmb_forward(coords, feats, params, num_batches, spatial_in):
    """coords: (M, 4) int32 (z, y, x, batch); feats: (M, Cin) f32."""
    D, H, W = spatial_in
    N = num_batches
    Cin = feats.shape[1]

    # --- scn.InputLayer: densify sparse input + active-site mask (glue) ---
    z, y, xw, bidx = coords[:, 0], coords[:, 1], coords[:, 2], coords[:, 3]
    dense = jnp.zeros((N, D, H, W, Cin), jnp.float32).at[bidx, z, y, xw].set(feats)
    m0 = jnp.zeros((N, D, H, W, 1), jnp.float32).at[bidx, z, y, xw].set(1.0)
    m0f = m0.reshape(N, D * H * W, 1).astype(jnp.bfloat16)

    # --- SparseResNet pre-activation BN0+ReLU+mask, fused into the im2col
    #     pre-pack of conv1 (no standalone Pallas launch / HBM round trip) ---
    a1 = (jnp.maximum(dense * params['bn0_s'].reshape(1, 1, 1, 1, Cin)
                      + params['bn0_b'].reshape(1, 1, 1, 1, Cin), 0.0)
          * m0).astype(jnp.bfloat16)

    # --- branch A conv1 (submanifold Cin->128) fused with branch-B NiN ---
    # Combined weight: columns [:128] = conv1 taps (K = 27*Cin, zero-padded to
    # 128), columns [128:] = the 1x1 NiN weight placed on the center-tap rows.
    K1 = 27 * Cin
    K1p = ((K1 + 127) // 128) * 128
    p1, _ = _im2col(a1, strides=(1, 1, 1), padding=1)
    if K1p > K1:
        p1 = jnp.pad(p1, ((0, 0), (0, 0), (0, K1p - K1)))
    w1 = jnp.zeros((K1p, 2 * _CP), jnp.float32)
    w1 = w1.at[:K1, :_CP].set(params['w_sub1'].reshape(K1, _CP))
    center = 13 * Cin                                   # tap (dz,dy,dx)=(1,1,1)
    w1 = w1.at[center:center + Cin, _CP:].set(params['w_nin'].reshape(Cin, _CP))
    a3_flat, bB_flat = conv_matmul_bn_relu(
        p1, w1, params['bn1_s'], params['bn1_b'], m0f, n_extra=_CP)
    a3 = a3_flat.reshape(N, D, H, W, _CP)

    # --- branch A conv2 (128->128) + AddTable(NiN) + trailing BN2+ReLU+mask ---
    p2, _ = _im2col(a3, strides=(1, 1, 1), padding=1)
    r_flat = conv_matmul_bn_relu(
        p2, params['w_sub2'].reshape(27 * _CP, _CP),
        params['bn2_s'], params['bn2_b'], m0f, residual=bB_flat)
    r = r_flat.reshape(N, D, H, W, _CP)

    # --- scn.Convolution(128->64, 3x3x3, stride (2,1,1)) + BNReLU(64) ---
    # Cout padded 64->128 so the store is an unmasked lane-dense vst.
    m1 = lax.reduce_window(m0, 0.0, lax.max,
                           (1, 3, 3, 3, 1), (1, 2, 1, 1, 1), 'VALID')
    p3, (Do2, Ho2, Wo2) = _im2col(r, strides=(2, 1, 1), padding=0)
    C1 = params['w_c1'].shape[-1]                       # 64
    w3 = jnp.pad(params['w_c1'], ((0, 0), (0, 0), (0, _CP - C1)))
    s3 = jnp.pad(params['bn3_s'], (0, _CP - C1), constant_values=1.0)
    b3 = jnp.pad(params['bn3_b'], (0, _CP - C1))
    m1f = m1.reshape(N, Do2 * Ho2 * Wo2, 1).astype(jnp.bfloat16)
    c2_flat = conv_matmul_bn_relu(p3, w3.reshape(27 * _CP, _CP), s3, b3, m1f)
    # drop the zero padding channels before building the next patch (halves K)
    c2 = c2_flat.reshape(N, Do2, Ho2, Wo2, _CP)[..., :C1]

    # --- scn.Convolution(64->Cout, 3x3x3, stride 1) + BNReLU(Cout) ---
    m2 = lax.reduce_window(m1, 0.0, lax.max,
                           (1, 3, 3, 3, 1), (1, 1, 1, 1, 1), 'VALID')
    p4, (Do3, Ho3, Wo3) = _im2col(c2, strides=(1, 1, 1), padding=0)
    Cout = params['w_c2'].shape[-1]
    w4 = jnp.pad(params['w_c2'], ((0, 0), (0, 0), (0, _CP - Cout)))
    s4 = jnp.pad(params['bn4_s'], (0, _CP - Cout), constant_values=1.0)
    b4 = jnp.pad(params['bn4_b'], (0, _CP - Cout))
    m2f = m2.reshape(N, Do3 * Ho3 * Wo3, 1).astype(jnp.bfloat16)
    c4_flat = conv_matmul_bn_relu(p4, w4.reshape(27 * C1, _CP), s4, b4, m2f,
                                  out_dtype=jnp.float32)
    c4 = c4_flat.reshape(N, Do3, Ho3, Wo3, _CP)[..., :Cout]

    # --- scn.SparseToDense: dense NCDHW output ---
    return c4.transpose(0, 4, 1, 2, 3)


if __name__ == "__main__":
    N = 2
    Cin, Cout = 4, 8
    expected_out_spatial = (2, 8, 8)
    # Invert the sparse net's spatial arithmetic (the assert in SCMB.__init__):
    d2, h2, w2 = expected_out_spatial
    d1, h1, w1 = d2 + 2, h2 + 2, w2 + 2              # before the 64->Cout conv
    D, H, W = (d1 - 1) * 2 + 3, h1 + 2, w1 + 2       # input spatial = (9, 12, 12)

    key = jax.random.PRNGKey(0)
    ks = jax.random.split(key, 12)

    def bn_par(k, c):
        k1, k2 = jax.random.split(k)
        return (1.0 + 0.1 * jax.random.normal(k1, (c,), jnp.float32),
                0.1 * jax.random.normal(k2, (c,), jnp.float32))

    def conv_w(k, k3, cin, cout):
        return jax.random.normal(k, (k3, cin, cout), jnp.float32) / jnp.sqrt(
            float(k3 * cin))

    params = {}
    params['bn0_s'], params['bn0_b'] = bn_par(ks[0], Cin)
    params['w_sub1'] = conv_w(ks[1], 27, Cin, 128)
    params['bn1_s'], params['bn1_b'] = bn_par(ks[2], 128)
    params['w_sub2'] = conv_w(ks[3], 27, 128, 128)
    params['w_nin'] = conv_w(ks[4], 1, Cin, 128)
    params['bn2_s'], params['bn2_b'] = bn_par(ks[5], 128)
    params['w_c1'] = conv_w(ks[6], 27, 128, 64)
    params['bn3_s'], params['bn3_b'] = bn_par(ks[7], 64)
    params['w_c2'] = conv_w(ks[8], 27, 64, Cout)
    params['bn4_s'], params['bn4_b'] = bn_par(ks[9], Cout)

    # Sparse input: unique active voxels per batch element (scn.InputLayer mode=0)
    M_per = 300
    coords_list = []
    for b in range(N):
        kb = jax.random.fold_in(ks[10], b)
        flat = jax.random.permutation(kb, D * H * W)[:M_per]
        zc = (flat // (H * W)).astype(jnp.int32)
        yc = ((flat // W) % H).astype(jnp.int32)
        xc = (flat % W).astype(jnp.int32)
        bc = jnp.full((M_per,), b, jnp.int32)
        coords_list.append(jnp.stack([zc, yc, xc, bc], axis=1))
    coords = jnp.concatenate(coords_list, axis=0)            # (600, 4)
    feats = jax.random.normal(ks[11], (N * M_per, Cin), jnp.float32)

    fwd = jax.jit(scmb_forward, static_argnums=(3, 4))
    out = fwd(coords, feats, params, N, (D, H, W))
    out = jax.block_until_ready(out)
    assert out.shape == (N, Cout) + expected_out_spatial, out.shape
    assert bool(jnp.all(jnp.isfinite(out)))
    print("KERNEL_OK")
</pallas_src>

<mosaic_0001>
module attributes {stable_mosaic.version = 11 : i64} {
  func.func @kernel(%arg0: i32, %arg1: i32, %arg2: memref<1x216x128xbf16, #tpu.memory_space<vmem>>, %arg3: memref<128x256xbf16, #tpu.memory_space<vmem>>, %arg4: memref<1x128xf32, #tpu.memory_space<vmem>>, %arg5: memref<1x128xf32, #tpu.memory_space<vmem>>, %arg6: memref<1x216x1xbf16, #tpu.memory_space<vmem>>, %arg7: memref<1x216x128xbf16, #tpu.memory_space<vmem>>, %arg8: memref<1x216x128xbf16, #tpu.memory_space<vmem>>) attributes {dimension_semantics = [#tpu.dimension_semantics<parallel>, #tpu.dimension_semantics<parallel>], iteration_bounds = array<i64: 2, 6>, scalar_prefetch = 0 : i64, scratch_operands = 0 : i64, tpu.core_type = #tpu.core_type<tc>, window_params = [{transform_indices = @transform_0, window_bounds = array<i64: 1, 216, 128>}, {pipeline_mode = #tpu.pipeline_mode<synchronous>, transform_indices = @transform_1, window_bounds = array<i64: 128, 256>}, {pipeline_mode = #tpu.pipeline_mode<synchronous>, transform_indices = @transform_2, window_bounds = array<i64: 1, 128>}, {pipeline_mode = #tpu.pipeline_mode<synchronous>, transform_indices = @transform_3, window_bounds = array<i64: 1, 128>}, {transform_indices = @transform_4, window_bounds = array<i64: 1, 216, 1>}, {transform_indices = @transform_5, window_bounds = array<i64: 1, 216, 128>}, {transform_indices = @transform_6, window_bounds = array<i64: 1, 216, 128>}]} {
    %c0 = arith.constant 0 : index
    %c0_0 = arith.constant 0 : index
    %c0_1 = arith.constant 0 : index
    %0 = vector.load %arg2[%c0, %c0_0, %c0_1] : memref<1x216x128xbf16, #tpu.memory_space<vmem>>, vector<1x216x128xbf16>
    %1 = vector.shape_cast %0 : vector<1x216x128xbf16> to vector<216x128xbf16>
    %c0_2 = arith.constant 0 : index
    %c0_3 = arith.constant 0 : index
    %2 = vector.load %arg3[%c0_2, %c0_3] : memref<128x256xbf16, #tpu.memory_space<vmem>>, vector<128x256xbf16>
    %cst = arith.constant dense<0.000000e+00> : vector<216x256xf32>
    %3 = tpu.matmul %1, %2, %cst {dimension_numbers = #tpu.dot_dimension_numbers<[1], [0], [0], [1], [0, 0, 1, 1], [], []>} : vector<216x128xbf16>, vector<128x256xbf16>, vector<216x256xf32> -> vector<216x256xf32>
    %4 = vector.extract_strided_slice %3 {offsets = [0, 0], sizes = [216, 128], strides = [1, 1]} : vector<216x256xf32> to vector<216x128xf32>
    %c0_4 = arith.constant 0 : index
    %c0_5 = arith.constant 0 : index
    %5 = vector.load %arg4[%c0_4, %c0_5] : memref<1x128xf32, #tpu.memory_space<vmem>>, vector<1x128xf32>
    %6 = vector.broadcast %5 : vector<1x128xf32> to vector<216x128xf32>
    %7 = arith.mulf %4, %6 : vector<216x128xf32>
    %c0_6 = arith.constant 0 : index
    %c0_7 = arith.constant 0 : index
    %8 = vector.load %arg5[%c0_6, %c0_7] : memref<1x128xf32, #tpu.memory_space<vmem>>, vector<1x128xf32>
    %9 = vector.broadcast %8 : vector<1x128xf32> to vector<216x128xf32>
    %10 = arith.addf %7, %9 : vector<216x128xf32>
    %cst_8 = arith.constant 0.000000e+00 : f32
    %11 = vector.broadcast %cst_8 : f32 to vector<216x128xf32>
    %12 = arith.maximumf %10, %11 : vector<216x128xf32>
    %c0_9 = arith.constant 0 : index
    %c0_10 = arith.constant 0 : index
    %c0_11 = arith.constant 0 : index
    %13 = vector.load %arg6[%c0_9, %c0_10, %c0_11] : memref<1x216x1xbf16, #tpu.memory_space<vmem>>, vector<1x216x1xbf16>
    %14 = vector.shape_cast %13 : vector<1x216x1xbf16> to vector<216x1xbf16>
    %15 = arith.extf %14 : vector<216x1xbf16> to vector<216x1xf32>
    %16 = vector.broadcast %15 : vector<216x1xf32> to vector<216x128xf32>
    %17 = arith.mulf %12, %16 : vector<216x128xf32>
    %18 = arith.truncf %17 : vector<216x128xf32> to vector<216x128xbf16>
    %c0_12 = arith.constant 0 : index
    %c0_13 = arith.constant 0 : index
    %c0_14 = arith.constant 0 : index
    %19 = vector.load %arg7[%c0_12, %c0_13, %c0_14] : memref<1x216x128xbf16, #tpu.memory_space<vmem>>, vector<1x216x128xbf16>
    %20 = vector.shape_cast %19 : vector<1x216x128xbf16> to vector<216x128xbf16>
    %21 = vector.shape_cast %18 : vector<216x128xbf16> to vector<1x216x128xbf16>
    tpu.vector_store %arg7[%c0_12, %c0_13, %c0_14], %21 {strides = array<i32>} : memref<1x216x128xbf16, #tpu.memory_space<vmem>>, vector<1x216x128xbf16>,
    %22 = vector.extract_strided_slice %3 {offsets = [0, 128], sizes = [216, 128], strides = [1, 1]} : vector<216x256xf32> to vector<216x128xf32>
    %23 = arith.truncf %22 : vector<216x128xf32> to vector<216x128xbf16>
    %c0_15 = arith.constant 0 : index
    %c0_16 = arith.constant 0 : index
    %c0_17 = arith.constant 0 : index
    %24 = vector.load %arg8[%c0_15, %c0_16, %c0_17] : memref<1x216x128xbf16, #tpu.memory_space<vmem>>, vector<1x216x128xbf16>
    %25 = vector.shape_cast %24 : vector<1x216x128xbf16> to vector<216x128xbf16>
    %26 = vector.shape_cast %23 : vector<216x128xbf16> to vector<1x216x128xbf16>
    tpu.vector_store %arg8[%c0_15, %c0_16, %c0_17], %26 {strides = array<i32>} : memref<1x216x128xbf16, #tpu.memory_space<vmem>>, vector<1x216x128xbf16>,
    return
  }
  func.func @transform_0(%arg0: i32, %arg1: i32) -> (i32, i32, i32) {
    %c0_i32 = arith.constant 0 : i32
    %c0_i32_0 = arith.constant 0 : i32
    return %arg0, %arg1, %c0_i32 : i32, i32, i32
  }
  func.func @transform_1(%arg0: i32, %arg1: i32) -> (i32, i32) {
    %c0_i32 = arith.constant 0 : i32
    %c0_i32_0 = arith.constant 0 : i32
    %c0_i32_1 = arith.constant 0 : i32
    return %c0_i32, %c0_i32_0 : i32, i32
  }
  func.func @transform_2(%arg0: i32, %arg1: i32) -> (i32, i32) {
    %c0_i32 = arith.constant 0 : i32
    %c0_i32_0 = arith.constant 0 : i32
    %c0_i32_1 = arith.constant 0 : i32
    return %c0_i32, %c0_i32_0 : i32, i32
  }
  func.func @transform_3(%arg0: i32, %arg1: i32) -> (i32, i32) {
    %c0_i32 = arith.constant 0 : i32
    %c0_i32_0 = arith.constant 0 : i32
    %c0_i32_1 = arith.constant 0 : i32
    return %c0_i32, %c0_i32_0 : i32, i32
  }
  func.func @transform_4(%arg0: i32, %arg1: i32) -> (i32, i32, i32) {
    %c0_i32 = arith.constant 0 : i32
    %c0_i32_0 = arith.constant 0 : i32
    return %arg0, %arg1, %c0_i32 : i32, i32, i32
  }
  func.func @transform_5(%arg0: i32, %arg1: i32) -> (i32, i32, i32) {
    %c0_i32 = arith.constant 0 : i32
    %c0_i32_0 = arith.constant 0 : i32
    return %arg0, %arg1, %c0_i32 : i32, i32, i32
  }
  func.func @transform_6(%arg0: i32, %arg1: i32) -> (i32, i32, i32) {
    %c0_i32 = arith.constant 0 : i32
    %c0_i32_0 = arith.constant 0 : i32
    return %arg0, %arg1, %c0_i32 : i32, i32, i32
  }
}

module attributes {stable_mosaic.version = 11 : i64} {
  func.func @kernel(%arg0: i32, %arg1: i32, %arg2: memref<1x216x3456xbf16, #tpu.memory_space<vmem>>, %arg3: memref<3456x128xbf16, #tpu.memory_space<vmem>>, %arg4: memref<1x128xf32, #tpu.memory_space<vmem>>, %arg5: memref<1x128xf32, #tpu.memory_space<vmem>>, %arg6: memref<1x216x1xbf16, #tpu.memory_space<vmem>>, %arg7: memref<1x216x128xbf16, #tpu.memory_space<vmem>>, %arg8: memref<1x216x128xbf16, #tpu.memory_space<vmem>>) attributes {dimension_semantics = [#tpu.dimension_semantics<parallel>, #tpu.dimension_semantics<parallel>], iteration_bounds = array<i64: 2, 6>, scalar_prefetch = 0 : i64, scratch_operands = 0 : i64, tpu.core_type = #tpu.core_type<tc>, window_params = [{transform_indices = @transform_0, window_bounds = array<i64: 1, 216, 3456>}, {pipeline_mode = #tpu.pipeline_mode<synchronous>, transform_indices = @transform_1, window_bounds = array<i64: 3456, 128>}, {pipeline_mode = #tpu.pipeline_mode<synchronous>, transform_indices = @transform_2, window_bounds = array<i64: 1, 128>}, {pipeline_mode = #tpu.pipeline_mode<synchronous>, transform_indices = @transform_3, window_bounds = array<i64: 1, 128>}, {transform_indices = @transform_4, window_bounds = array<i64: 1, 216, 1>}, {transform_indices = @transform_5, window_bounds = array<i64: 1, 216, 128>}, {transform_indices = @transform_6, window_bounds = array<i64: 1, 216, 128>}]} {
    %c0 = arith.constant 0 : index
    %c0_0 = arith.constant 0 : index
    %c0_1 = arith.constant 0 : index
    %0 = vector.load %arg2[%c0, %c0_0, %c0_1] : memref<1x216x3456xbf16, #tpu.memory_space<vmem>>, vector<1x216x3456xbf16>
    %1 = vector.shape_cast %0 : vector<1x216x3456xbf16> to vector<216x3456xbf16>
    %c0_2 = arith.constant 0 : index
    %c0_3 = arith.constant 0 : index
    %2 = vector.load %arg3[%c0_2, %c0_3] : memref<3456x128xbf16, #tpu.memory_space<vmem>>, vector<3456x128xbf16>
    %cst = arith.constant dense<0.000000e+00> : vector<216x128xf32>
    %3 = tpu.matmul %1, %2, %cst {dimension_numbers = #tpu.dot_dimension_numbers<[1], [0], [0], [1], [0, 0, 1, 1], [], []>} : vector<216x3456xbf16>, vector<3456x128xbf16>, vector<216x128xf32> -> vector<216x128xf32>
    %c0_4 = arith.constant 0 : index
    %c0_5 = arith.constant 0 : index
    %c0_6 = arith.constant 0 : index
    %4 = vector.load %arg7[%c0_4, %c0_5, %c0_6] : memref<1x216x128xbf16, #tpu.memory_space<vmem>>, vector<1x216x128xbf16>
    %5 = vector.shape_cast %4 : vector<1x216x128xbf16> to vector<216x128xbf16>
    %6 = arith.extf %5 : vector<216x128xbf16> to vector<216x128xf32>
    %7 = arith.addf %3, %6 : vector<216x128xf32>
    %c0_7 = arith.constant 0 : index
    %c0_8 = arith.constant 0 : index
    %8 = vector.load %arg4[%c0_7, %c0_8] : memref<1x128xf32, #tpu.memory_space<vmem>>, vector<1x128xf32>
    %9 = vector.broadcast %8 : vector<1x128xf32> to vector<216x128xf32>
    %10 = arith.mulf %7, %9 : vector<216x128xf32>
    %c0_9 = arith.constant 0 : index
    %c0_10 = arith.constant 0 : index
    %11 = vector.load %arg5[%c0_9, %c0_10] : memref<1x128xf32, #tpu.memory_space<vmem>>, vector<1x128xf32>
    %12 = vector.broadcast %11 : vector<1x128xf32> to vector<216x128xf32>
    %13 = arith.addf %10, %12 : vector<216x128xf32>
    %cst_11 = arith.constant 0.000000e+00 : f32
    %14 = vector.broadcast %cst_11 : f32 to vector<216x128xf32>
    %15 = arith.maximumf %13, %14 : vector<216x128xf32>
    %c0_12 = arith.constant 0 : index
    %c0_13 = arith.constant 0 : index
    %c0_14 = arith.constant 0 : index
    %16 = vector.load %arg6[%c0_12, %c0_13, %c0_14] : memref<1x216x1xbf16, #tpu.memory_space<vmem>>, vector<1x216x1xbf16>
    %17 = vector.shape_cast %16 : vector<1x216x1xbf16> to vector<216x1xbf16>
    %18 = arith.extf %17 : vector<216x1xbf16> to vector<216x1xf32>
    %19 = vector.broadcast %18 : vector<216x1xf32> to vector<216x128xf32>
    %20 = arith.mulf %15, %19 : vector<216x128xf32>
    %21 = arith.truncf %20 : vector<216x128xf32> to vector<216x128xbf16>
    %c0_15 = arith.constant 0 : index
    %c0_16 = arith.constant 0 : index
    %c0_17 = arith.constant 0 : index
    %22 = vector.load %arg8[%c0_15, %c0_16, %c0_17] : memref<1x216x128xbf16, #tpu.memory_space<vmem>>, vector<1x216x128xbf16>
    %23 = vector.shape_cast %22 : vector<1x216x128xbf16> to vector<216x128xbf16>
    %24 = vector.shape_cast %21 : vector<216x128xbf16> to vector<1x216x128xbf16>
    tpu.vector_store %arg8[%c0_15, %c0_16, %c0_17], %24 {strides = array<i32>} : memref<1x216x128xbf16, #tpu.memory_space<vmem>>, vector<1x216x128xbf16>,
    return
  }
  func.func @transform_0(%arg0: i32, %arg1: i32) -> (i32, i32, i32) {
    %c0_i32 = arith.constant 0 : i32
    %c0_i32_0 = arith.constant 0 : i32
    return %arg0, %arg1, %c0_i32 : i32, i32, i32
  }
  func.func @transform_1(%arg0: i32, %arg1: i32) -> (i32, i32) {
    %c0_i32 = arith.constant 0 : i32
    %c0_i32_0 = arith.constant 0 : i32
    %c0_i32_1 = arith.constant 0 : i32
    return %c0_i32, %c0_i32_0 : i32, i32
  }
  func.func @transform_2(%arg0: i32, %arg1: i32) -> (i32, i32) {
    %c0_i32 = arith.constant 0 : i32
    %c0_i32_0 = arith.constant 0 : i32
    %c0_i32_1 = arith.constant 0 : i32
    return %c0_i32, %c0_i32_0 : i32, i32
  }
  func.func @transform_3(%arg0: i32, %arg1: i32) -> (i32, i32) {
    %c0_i32 = arith.constant 0 : i32
    %c0_i32_0 = arith.constant 0 : i32
    %c0_i32_1 = arith.constant 0 : i32
    return %c0_i32, %c0_i32_0 : i32, i32
  }
  func.func @transform_4(%arg0: i32, %arg1: i32) -> (i32, i32, i32) {
    %c0_i32 = arith.constant 0 : i32
    %c0_i32_0 = arith.constant 0 : i32
    return %arg0, %arg1, %c0_i32 : i32, i32, i32
  }
  func.func @transform_5(%arg0: i32, %arg1: i32) -> (i32, i32, i32) {
    %c0_i32 = arith.constant 0 : i32
    %c0_i32_0 = arith.constant 0 : i32
    return %arg0, %arg1, %c0_i32 : i32, i32, i32
  }
  func.func @transform_6(%arg0: i32, %arg1: i32) -> (i32, i32, i32) {
    %c0_i32 = arith.constant 0 : i32
    %c0_i32_0 = arith.constant 0 : i32
    return %arg0, %arg1, %c0_i32 : i32, i32, i32
  }
}

module attributes {stable_mosaic.version = 11 : i64} {
  func.func @kernel(%arg0: i32, %arg1: i32, %arg2: memref<1x200x3456xbf16, #tpu.memory_space<vmem>>, %arg3: memref<3456x128xbf16, #tpu.memory_space<vmem>>, %arg4: memref<1x128xf32, #tpu.memory_space<vmem>>, %arg5: memref<1x128xf32, #tpu.memory_space<vmem>>, %arg6: memref<1x200x1xbf16, #tpu.memory_space<vmem>>, %arg7: memref<1x200x128xbf16, #tpu.memory_space<vmem>>) attributes {dimension_semantics = [#tpu.dimension_semantics<parallel>, #tpu.dimension_semantics<parallel>], iteration_bounds = array<i64: 2, 2>, scalar_prefetch = 0 : i64, scratch_operands = 0 : i64, tpu.core_type = #tpu.core_type<tc>, window_params = [{transform_indices = @transform_0, window_bounds = array<i64: 1, 200, 3456>}, {pipeline_mode = #tpu.pipeline_mode<synchronous>, transform_indices = @transform_1, window_bounds = array<i64: 3456, 128>}, {pipeline_mode = #tpu.pipeline_mode<synchronous>, transform_indices = @transform_2, window_bounds = array<i64: 1, 128>}, {pipeline_mode = #tpu.pipeline_mode<synchronous>, transform_indices = @transform_3, window_bounds = array<i64: 1, 128>}, {transform_indices = @transform_4, window_bounds = array<i64: 1, 200, 1>}, {transform_indices = @transform_5, window_bounds = array<i64: 1, 200, 128>}]} {
    %c0 = arith.constant 0 : index
    %c0_0 = arith.constant 0 : index
    %c0_1 = arith.constant 0 : index
    %0 = vector.load %arg2[%c0, %c0_0, %c0_1] : memref<1x200x3456xbf16, #tpu.memory_space<vmem>>, vector<1x200x3456xbf16>
    %1 = vector.shape_cast %0 : vector<1x200x3456xbf16> to vector<200x3456xbf16>
    %c0_2 = arith.constant 0 : index
    %c0_3 = arith.constant 0 : index
    %2 = vector.load %arg3[%c0_2, %c0_3] : memref<3456x128xbf16, #tpu.memory_space<vmem>>, vector<3456x128xbf16>
    %cst = arith.constant dense<0.000000e+00> : vector<200x128xf32>
    %3 = tpu.matmul %1, %2, %cst {dimension_numbers = #tpu.dot_dimension_numbers<[1], [0], [0], [1], [0, 0, 1, 1], [], []>} : vector<200x3456xbf16>, vector<3456x128xbf16>, vector<200x128xf32> -> vector<200x128xf32>
    %c0_4 = arith.constant 0 : index
    %c0_5 = arith.constant 0 : index
    %4 = vector.load %arg4[%c0_4, %c0_5] : memref<1x128xf32, #tpu.memory_space<vmem>>, vector<1x128xf32>
    %5 = vector.broadcast %4 : vector<1x128xf32> to vector<200x128xf32>
    %6 = arith.mulf %3, %5 : vector<200x128xf32>
    %c0_6 = arith.constant 0 : index
    %c0_7 = arith.constant 0 : index
    %7 = vector.load %arg5[%c0_6, %c0_7] : memref<1x128xf32, #tpu.memory_space<vmem>>, vector<1x128xf32>
    %8 = vector.broadcast %7 : vector<1x128xf32> to vector<200x128xf32>
    %9 = arith.addf %6, %8 : vector<200x128xf32>
    %cst_8 = arith.constant 0.000000e+00 : f32
    %10 = vector.broadcast %cst_8 : f32 to vector<200x128xf32>
    %11 = arith.maximumf %9, %10 : vector<200x128xf32>
    %c0_9 = arith.constant 0 : index
    %c0_10 = arith.constant 0 : index
    %c0_11 = arith.constant 0 : index
    %12 = vector.load %arg6[%c0_9, %c0_10, %c0_11] : memref<1x200x1xbf16, #tpu.memory_space<vmem>>, vector<1x200x1xbf16>
    %13 = vector.shape_cast %12 : vector<1x200x1xbf16> to vector<200x1xbf16>
    %14 = arith.extf %13 : vector<200x1xbf16> to vector<200x1xf32>
    %15 = vector.broadcast %14 : vector<200x1xf32> to vector<200x128xf32>
    %16 = arith.mulf %11, %15 : vector<200x128xf32>
    %17 = arith.truncf %16 : vector<200x128xf32> to vector<200x128xbf16>
    %c0_12 = arith.constant 0 : index
    %c0_13 = arith.constant 0 : index
    %c0_14 = arith.constant 0 : index
    %18 = vector.load %arg7[%c0_12, %c0_13, %c0_14] : memref<1x200x128xbf16, #tpu.memory_space<vmem>>, vector<1x200x128xbf16>
    %19 = vector.shape_cast %18 : vector<1x200x128xbf16> to vector<200x128xbf16>
    %20 = vector.shape_cast %17 : vector<200x128xbf16> to vector<1x200x128xbf16>
    tpu.vector_store %arg7[%c0_12, %c0_13, %c0_14], %20 {strides = array<i32>} : memref<1x200x128xbf16, #tpu.memory_space<vmem>>, vector<1x200x128xbf16>,
    return
  }
  func.func @transform_0(%arg0: i32, %arg1: i32) -> (i32, i32, i32) {
    %c0_i32 = arith.constant 0 : i32
    %c0_i32_0 = arith.constant 0 : i32
    return %arg0, %arg1, %c0_i32 : i32, i32, i32
  }
  func.func @transform_1(%arg0: i32, %arg1: i32) -> (i32, i32) {
    %c0_i32 = arith.constant 0 : i32
    %c0_i32_0 = arith.constant 0 : i32
    %c0_i32_1 = arith.constant 0 : i32
    return %c0_i32, %c0_i32_0 : i32, i32
  }
  func.func @transform_2(%arg0: i32, %arg1: i32) -> (i32, i32) {
    %c0_i32 = arith.constant 0 : i32
    %c0_i32_0 = arith.constant 0 : i32
    %c0_i32_1 = arith.constant 0 : i32
    return %c0_i32, %c0_i32_0 : i32, i32
  }
  func.func @transform_3(%arg0: i32, %arg1: i32) -> (i32, i32) {
    %c0_i32 = arith.constant 0 : i32
    %c0_i32_0 = arith.constant 0 : i32
    %c0_i32_1 = arith.constant 0 : i32
    return %c0_i32, %c0_i32_0 : i32, i32
  }
  func.func @transform_4(%arg0: i32, %arg1: i32) -> (i32, i32, i32) {
    %c0_i32 = arith.constant 0 : i32
    %c0_i32_0 = arith.constant 0 : i32
    return %arg0, %arg1, %c0_i32 : i32, i32, i32
  }
  func.func @transform_5(%arg0: i32, %arg1: i32) -> (i32, i32, i32) {
    %c0_i32 = arith.constant 0 : i32
    %c0_i32_0 = arith.constant 0 : i32
    return %arg0, %arg1, %c0_i32 : i32, i32, i32
  }
}

module attributes {stable_mosaic.version = 11 : i64} {
  func.func @kernel(%arg0: i32, %arg1: i32, %arg2: memref<1x128x1728xbf16, #tpu.memory_space<vmem>>, %arg3: memref<1728x128xbf16, #tpu.memory_space<vmem>>, %arg4: memref<1x128xf32, #tpu.memory_space<vmem>>, %arg5: memref<1x128xf32, #tpu.memory_space<vmem>>, %arg6: memref<1x128x1xbf16, #tpu.memory_space<vmem>>, %arg7: memref<1x128x128xf32, #tpu.memory_space<vmem>>) attributes {dimension_semantics = [#tpu.dimension_semantics<parallel>, #tpu.dimension_semantics<parallel>], iteration_bounds = array<i64: 2, 1>, scalar_prefetch = 0 : i64, scratch_operands = 0 : i64, tpu.core_type = #tpu.core_type<tc>, window_params = [{transform_indices = @transform_0, window_bounds = array<i64: 1, 128, 1728>}, {pipeline_mode = #tpu.pipeline_mode<synchronous>, transform_indices = @transform_1, window_bounds = array<i64: 1728, 128>}, {pipeline_mode = #tpu.pipeline_mode<synchronous>, transform_indices = @transform_2, window_bounds = array<i64: 1, 128>}, {pipeline_mode = #tpu.pipeline_mode<synchronous>, transform_indices = @transform_3, window_bounds = array<i64: 1, 128>}, {transform_indices = @transform_4, window_bounds = array<i64: 1, 128, 1>}, {transform_indices = @transform_5, window_bounds = array<i64: 1, 128, 128>}]} {
    %c0 = arith.constant 0 : index
    %c0_0 = arith.constant 0 : index
    %c0_1 = arith.constant 0 : index
    %0 = vector.load %arg2[%c0, %c0_0, %c0_1] : memref<1x128x1728xbf16, #tpu.memory_space<vmem>>, vector<1x128x1728xbf16>
    %1 = vector.shape_cast %0 : vector<1x128x1728xbf16> to vector<128x1728xbf16>
    %c0_2 = arith.constant 0 : index
    %c0_3 = arith.constant 0 : index
    %2 = vector.load %arg3[%c0_2, %c0_3] : memref<1728x128xbf16, #tpu.memory_space<vmem>>, vector<1728x128xbf16>
    %cst = arith.constant dense<0.000000e+00> : vector<128x128xf32>
    %3 = tpu.matmul %1, %2, %cst {dimension_numbers = #tpu.dot_dimension_numbers<[1], [0], [0], [1], [0, 0, 1, 1], [], []>} : vector<128x1728xbf16>, vector<1728x128xbf16>, vector<128x128xf32> -> vector<128x128xf32>
    %c0_4 = arith.constant 0 : index
    %c0_5 = arith.constant 0 : index
    %4 = vector.load %arg4[%c0_4, %c0_5] : memref<1x128xf32, #tpu.memory_space<vmem>>, vector<1x128xf32>
    %5 = vector.broadcast %4 : vector<1x128xf32> to vector<128x128xf32>
    %6 = arith.mulf %3, %5 : vector<128x128xf32>
    %c0_6 = arith.constant 0 : index
    %c0_7 = arith.constant 0 : index
    %7 = vector.load %arg5[%c0_6, %c0_7] : memref<1x128xf32, #tpu.memory_space<vmem>>, vector<1x128xf32>
    %8 = vector.broadcast %7 : vector<1x128xf32> to vector<128x128xf32>
    %9 = arith.addf %6, %8 : vector<128x128xf32>
    %cst_8 = arith.constant 0.000000e+00 : f32
    %10 = vector.broadcast %cst_8 : f32 to vector<128x128xf32>
    %11 = arith.maximumf %9, %10 : vector<128x128xf32>
    %c0_9 = arith.constant 0 : index
    %c0_10 = arith.constant 0 : index
    %c0_11 = arith.constant 0 : index
    %12 = vector.load %arg6[%c0_9, %c0_10, %c0_11] : memref<1x128x1xbf16, #tpu.memory_space<vmem>>, vector<1x128x1xbf16>
    %13 = vector.shape_cast %12 : vector<1x128x1xbf16> to vector<128x1xbf16>
    %14 = arith.extf %13 : vector<128x1xbf16> to vector<128x1xf32>
    %15 = vector.broadcast %14 : vector<128x1xf32> to vector<128x128xf32>
    %16 = arith.mulf %11, %15 : vector<128x128xf32>
    %c0_12 = arith.constant 0 : index
    %c0_13 = arith.constant 0 : index
    %c0_14 = arith.constant 0 : index
    %17 = vector.load %arg7[%c0_12, %c0_13, %c0_14] : memref<1x128x128xf32, #tpu.memory_space<vmem>>, vector<1x128x128xf32>
    %18 = vector.shape_cast %17 : vector<1x128x128xf32> to vector<128x128xf32>
    %19 = vector.shape_cast %16 : vector<128x128xf32> to vector<1x128x128xf32>
    tpu.vector_store %arg7[%c0_12, %c0_13, %c0_14], %19 {strides = array<i32>} : memref<1x128x128xf32, #tpu.memory_space<vmem>>, vector<1x128x128xf32>,
    return
  }
  func.func @transform_0(%arg0: i32, %arg1: i32) -> (i32, i32, i32) {
    %c0_i32 = arith.constant 0 : i32
    %c0_i32_0 = arith.constant 0 : i32
    return %arg0, %arg1, %c0_i32 : i32, i32, i32
  }
  func.func @transform_1(%arg0: i32, %arg1: i32) -> (i32, i32) {
    %c0_i32 = arith.constant 0 : i32
    %c0_i32_0 = arith.constant 0 : i32
    %c0_i32_1 = arith.constant 0 : i32
    return %c0_i32, %c0_i32_0 : i32, i32
  }
  func.func @transform_2(%arg0: i32, %arg1: i32) -> (i32, i32) {
    %c0_i32 = arith.constant 0 : i32
    %c0_i32_0 = arith.constant 0 : i32
    %c0_i32_1 = arith.constant 0 : i32
    return %c0_i32, %c0_i32_0 : i32, i32
  }
  func.func @transform_3(%arg0: i32, %arg1: i32) -> (i32, i32) {
    %c0_i32 = arith.constant 0 : i32
    %c0_i32_0 = arith.constant 0 : i32
    %c0_i32_1 = arith.constant 0 : i32
    return %c0_i32, %c0_i32_0 : i32, i32
  }
  func.func @transform_4(%arg0: i32, %arg1: i32) -> (i32, i32, i32) {
    %c0_i32 = arith.constant 0 : i32
    %c0_i32_0 = arith.constant 0 : i32
    return %arg0, %arg1, %c0_i32 : i32, i32, i32
  }
  func.func @transform_5(%arg0: i32, %arg1: i32) -> (i32, i32, i32) {
    %c0_i32 = arith.constant 0 : i32
    %c0_i32_0 = arith.constant 0 : i32
    return %arg0, %arg1, %c0_i32 : i32, i32, i32
  }
}

</mosaic_0001>

<bundles_post_ra>
// kernel: scmb_forward.4
= control target key start
LH: loop header
LB: loop body
LE: loop exit
PB: predicated region body
PF: predicated region fallthrough
CT: control target
= control target key end

     0   :  { %s2077_s21 = smov 0   ;;  %s2079_s22 = smov 0   ;;  %s2359_s0 = inlined_call_operand.vmem [shape: bf16[2,1296,128], index: 0, kind: input, shape index: {}]   ;;  %s2360_s1 = inlined_call_operand.vmem [shape: bf16[128,256], index: 1, kind: input, shape index: {}]   ;;  %s2361_s2 = inlined_call_operand.vmem [shape: f32[1,128], index: 2, kind: input, shape index: {}]   ;;  %s2362_s3 = inlined_call_operand.vmem [shape: f32[1,128], index: 3, kind: input, shape index: {}]   ;;  %s2363_s4 = inlined_call_operand.vmem [shape: bf16[2,1296,1], index: 4, kind: input, shape index: {}]   ;;  %s2364_s5 = inlined_call_operand.vmem [shape: bf16[2,1296,128], index: 5, kind: output, shape index: {0}]   ;;  %s2365_s6 = inlined_call_operand.vmem [shape: bf16[2,1296,128], index: 6, kind: output, shape index: {1}]  }
   0x1   :  { %s2081_s23 = smov 0   ;;  %s2083_s24 = smov 0  }
   0x2   :  { %s2085_s25 = smov 0  }
   0x3 LB: > { %s26_s26 = sadd.s32 1, %s2031_s23  ;;  %s29_s27 = sadd.s32 1, %s2035_s24  ;;  %s2039_s25 = sphi %s2085_s25, %s17_s25   ;;  %s2035_s24 = sphi %s2083_s24, %s2369_s24   ;;  %s2031_s23 = sphi %s2081_s23, %s2368_s23   ;;  %s2027_s22 = sphi %s2079_s22, %s2367_s22   ;;  %s2023_s21 = sphi %s2077_s21, %s2366_s21  }
   0x4   : > { %p27_p0 = scmp.ge.s32.totalorder %s26_s26, 6  ;;  %p1473_p1 = scmp.ge.s32.totalorder %s2039_s25, 1 }
   0x5   : > { %p255_p2 = scmp.lt.s32.totalorder %s2039_s25, 13 }
   0x6   : > { %s2371_s26 = smov (%p27_p0, %s26_s26), 0  ;;  %s2373_s27 = smov (!%p27_p0, %s29_s27), %s2035_s24 }
   0x7   : > { %p256_p3 = pnand %p1473_p1, %p255_p2  ;;  %p31_p4 = scmp.ge.s32.totalorder %s2373_s27, 2 }
   0x8   : > { %v1963_v0 = vld [vmem:[%s2360_s1 + $0x4] ss:$8 sps:$4 sm:$0xff] (!%p256_p3)   ;;  %s311_s30 = smul.u32 (!%p256_p3), 27, %s2023_s21  ;;  %v1965_v1 = vld [vmem:[%s2360_s1] ss:$8 sps:$4 sm:$0xff] (!%p256_p3)   ;;  %v2041_v2 = vmov (!%p256_p3), 0  }
   0x9   : > { %s2375_s27 = smov (%p31_p4, %s2373_s27), 0  ;;  %259 = sbr.rel (%p256_p3) target bundleno = 316 (0x13c), region = 40 }
   0xa   : > { %589 = vmatprep.mubr.bf16.mxu0 (!%p256_p3), %v2041_v2  ;;  %659 = vmatprep.mubr.bf16.mxu1 (!%p256_p3), %v2041_v2  ;;  %p312_p5 = scmp.lt.s32.totalorder (!%p256_p3), %s2027_s22, 1  ;;  %v1966_v3 = vld [vmem:[%s2360_s1 + $0x14] ss:$8 sps:$4 sm:$0xff] (!%p256_p3)   ;;  %p314_p6 = scmp.lt.s32.totalorder (!%p256_p3), %s311_s30, 161  ;;  %v1968_v4 = vld [vmem:[%s2360_s1 + $0x10] ss:$8 sps:$4 sm:$0xff] (!%p256_p3)  }
   0xb   : > { %557 = vmatprep.subr.bf16.mxu0 (!%p256_p3), %v1963_v0  ;;  %1838 = vmatprep.subr.bf16.mxu1 (!%p256_p3), %v1963_v0  ;;  %v1969_v5 = vld [vmem:[%s2360_s1 + $0x24] ss:$8 sps:$4 sm:$0xff] (!%p256_p3)   ;;  %v1971_v6 = vld [vmem:[%s2360_s1 + $0x20] ss:$8 sps:$4 sm:$0xff] (!%p256_p3)   ;;  %v1972_v7 = vld [vmem:[%s2360_s1 + $0x34] ss:$8 sps:$4 sm:$0xff] (!%p256_p3)  }
   0xc   : > { %558 = vmatpush1.bf16.msra.mxu0 (!%p256_p3), %v1965_v1  ;;  %1846 = vmatpush1.bf16.msra.mxu1 (!%p256_p3), %v1965_v1  ;;  %v1974_v8 = vld [vmem:[%s2360_s1 + $0x30] ss:$8 sps:$4 sm:$0xff] (!%p256_p3)   ;;  %v1975_v9 = vld [vmem:[%s2360_s1 + $0x44] ss:$8 sps:$4 sm:$0xff] (!%p256_p3)   ;;  %v1977_v10 = vld [vmem:[%s2360_s1 + $0x40] ss:$8 sps:$4 sm:$0xff] (!%p256_p3)  }
   0xd   : > { %559 = vmatprep.subr.bf16.mxu0 (!%p256_p3), %v1966_v3  ;;  %1839 = vmatprep.subr.bf16.mxu1 (!%p256_p3), %v1966_v3  ;;  %v1978_v11 = vld [vmem:[%s2360_s1 + $0x54] ss:$8 sps:$4 sm:$0xff] (!%p256_p3)   ;;  %v1980_v12 = vld [vmem:[%s2360_s1 + $0x50] ss:$8 sps:$4 sm:$0xff] (!%p256_p3)   ;;  %v1981_v13 = vld [vmem:[%s2360_s1 + $0x64] ss:$8 sps:$4 sm:$0xff] (!%p256_p3)  }
   0xe   : > { %1907 = vset.pattern.permute.xlu1 (!%p256_p3), %v2041_v2  ;;  %1896 = vset.pattern.permute.xlu0 (!%p256_p3), %v2041_v2  ;;  %v1983_v14 = vld [vmem:[%s2360_s1 + $0x60] ss:$8 sps:$4 sm:$0xff] (!%p256_p3)   ;;  %v1984_v15 = vld [vmem:[%s2360_s1 + $0x74] ss:$8 sps:$4 sm:$0xff] (!%p256_p3)   ;;  %v1986_v27 = vld [vmem:[%s2360_s1 + $0x70] ss:$8 sps:$4 sm:$0xff] (!%p256_p3)  }
  0x10   : > { %s2377_s22 = smov (!%p312_p5, %s2027_s22), 1  ;;  %s2379_s30 = smov (!%p314_p6, %s311_s30), 161  ;;  %560 = vmatpush1.bf16.msra.mxu0 %v1968_v4  ;;  %1847 = vmatpush1.bf16.msra.mxu1 %v1968_v4 }
  0x11   : > { %s1854_s15 = smul.u32 162, %s2377_s22  ;;  %561 = vmatprep.subr.bf16.mxu0 %v1969_v5  ;;  %1840 = vmatprep.subr.bf16.mxu1 %v1969_v5 }
  0x13   : > { %s317_s18 = sadd.s32 %s1854_s15, %s2379_s30 }
  0x14   : > { %s2135_s21 = sshll.u32 %s317_s18, 2  ;;  %562 = vmatpush1.bf16.msra.mxu0 %v1971_v6  ;;  %1848 = vmatpush1.bf16.msra.mxu1 %v1971_v6 }
  0x15   : > { %s2141_s29 = scalar_lea.vmem %s2359_s0, %s2135_s21  ;;  %563 = vmatprep.subr.bf16.mxu0 %v1972_v7  ;;  %1841 = vmatprep.subr.bf16.mxu1 %v1972_v7  ;;  %s2165_s20 = scalar_lea.vmem %s2363_s4, %s2135_s21 }
  0x16   : > { %v1803_v16 = vld [vmem:[%s2165_s20 + $0x10] sm:$0xff]   ;;  %v1804_v17 = vld [vmem:[%s2165_s20 + $0x18] sm:$0xff]   ;;  %v1621_v22 = vld [vmem:[%s2165_s20] sm:$0xff]   ;;  %s2248_s15 = scalar_lea.vmem %s2365_s6, %s2135_s21  ;;  %s2260_s18 = scalar_lea.vmem %s2364_s5, %s2135_s21 }
  0x17   : > { %v1630_v18 = vunpack.c.l.bf16 %v1803_v16  ;;  %v1631_v19 = vunpack.c.h.bf16 %v1803_v16  ;;  %v1634_v20 = vunpack.c.l.bf16 %v1804_v17  ;;  %v1635_v21 = vunpack.c.h.bf16 %v1804_v17  ;;  %v1802_v23 = vld [vmem:[%s2165_s20 + $0x8] sm:$0xff]   ;;  %v1805_v35 = vld [vmem:[%s2165_s20 + $0x20] sm:$0xff]   ;;  %v1988_v37 = vld [vmem:[%s2141_s29 + $0x38] sm:$0xff]  }
  0x18   : > { %564 = vmatpush1.bf16.msra.mxu0 %v1974_v8  ;;  %1849 = vmatpush1.bf16.msra.mxu1 %v1974_v8  ;;  %v1622_v24 = vunpack.c.l.bf16 %v1621_v22  ;;  %v1623_v25 = vunpack.c.h.bf16 %v1621_v22  ;;  %v1806_v26 = vld [vmem:[%s2165_s20 + $0x28] sm:$0xff]   ;;  %v1626_v30 = vunpack.c.l.bf16 %v1802_v23  ;;  %v1627_v31 = vunpack.c.h.bf16 %v1802_v23  ;;  %v1987_v36 = vld [vmem:[%s2141_s29] sm:$0xff]   ;;  %v1808_v38 = vld [vmem:[%s2165_s20 + $0x38] sm:$0xff]  }
  0x19   : > { %565 = vmatprep.subr.bf16.mxu0 %v1975_v9  ;;  %1842 = vmatprep.subr.bf16.mxu1 %v1975_v9  ;;  %v1908_v28 = vpack.i.bf16 %v1631_v19, %v1630_v18  ;;  %v1913_v32 = vpack.i.bf16 %v1635_v21, %v1634_v20  ;;  %v1642_v33 = vunpack.c.l.bf16 %v1806_v26  ;;  %v1643_v34 = vunpack.c.h.bf16 %v1806_v26  ;;  %v1807_v45 = vld [vmem:[%s2165_s20 + $0x30] sm:$0xff]   ;;  %v1810_v46 = vld [vmem:[%s2165_s20 + $0x48] sm:$0xff]   ;;  %v1809_v51 = vld [vmem:[%s2165_s20 + $0x40] sm:$0xff]  }
  0x1a   : > { %v1897_v29 = vpack.i.bf16 %v1623_v25, %v1622_v24  ;;  %v1902_v39 = vpack.i.bf16 %v1627_v31, %v1626_v30  ;;  %v1638_v40 = vunpack.c.l.bf16 %v1805_v35  ;;  %v1639_v41 = vunpack.c.h.bf16 %v1805_v35  ;;  %v1989_v54 = vld [vmem:[%s2141_s29 + $0x8] sm:$0xff]   ;;  %v1990_v55 = vld [vmem:[%s2141_s29 + $0x40] sm:$0xff]   ;;  %v1812_v56 = vld [vmem:[%s2165_s20 + $0x58] sm:$0xff]  }
  0x1b   : > { %1909 = vperm.xlu1 %1907, %v1908_v28   ;;  %v1923_v42 = vpack.i.bf16 %v1643_v34, %v1642_v33  ;;  %v1650_v43 = vunpack.c.l.bf16 %v1808_v38  ;;  %v1651_v44 = vunpack.c.h.bf16 %v1808_v38  ;;  %v1646_v48 = vunpack.c.l.bf16 %v1807_v45  ;;  %v1811_v61 = vld [vmem:[%s2165_s20 + $0x50] sm:$0xff]   ;;  %v1813_v5 = vld [vmem:[%s2165_s20 + $0x60] sm:$0xff]   ;;  %v1992_v7 = vld [vmem:[%s2141_s29 + $0x48] sm:$0xff]  }
  0x1c   : > { %566 = vmatpush1.bf16.msra.mxu0 %v1977_v10  ;;  %1850 = vmatpush1.bf16.msra.mxu1 %v1977_v10  ;;  %v1918_v47 = vpack.i.bf16 %v1639_v41, %v1638_v40  ;;  %v1647_v49 = vunpack.c.h.bf16 %v1807_v45  ;;  %v1658_v52 = vunpack.c.l.bf16 %v1810_v46  ;;  %v1659_v53 = vunpack.c.h.bf16 %v1810_v46  ;;  %v1991_v6 = vld [vmem:[%s2141_s29 + $0x10] sm:$0xff]   ;;  %v849_v8 = vld [vmem:[%s2165_s20 + $0x68] sm:$0xf]  ;;  %v1995_v16 = vld [vmem:[%s2141_s29 + $0x20] sm:$0xff]  }
  0x1d   : > { %567 = vmatprep.subr.bf16.mxu0 %v1978_v11  ;;  %1843 = vmatprep.subr.bf16.mxu1 %v1978_v11  ;;  %v1933_v50 = vpack.i.bf16 %v1651_v44, %v1650_v43  ;;  %v1654_v58 = vunpack.c.l.bf16 %v1809_v51  ;;  %v1655_v59 = vunpack.c.h.bf16 %v1809_v51  ;;  %v1666_v62 = vunpack.c.l.bf16 %v1812_v56  ;;  %v1996_v17 = vld [vmem:[%s2141_s29 + $0x58] sm:$0xff]   ;;  %v1997_v18 = vld [vmem:[%s2141_s29 + $0x28] sm:$0xff]   ;;  %v1998_v19 = vld [vmem:[%s2141_s29 + $0x60] sm:$0xff]  }
  0x1e   : > { %1898 = vperm.xlu0 %1896, %v1897_v29   ;;  %v1928_v57 = vpack.i.bf16 %v1647_v49, %v1646_v48  ;;  %v1943_v60 = vpack.i.bf16 %v1659_v53, %v1658_v52  ;;  %v1667_v63 = vunpack.c.h.bf16 %v1812_v56  ;;  %v1662_v1 = vunpack.c.l.bf16 %v1811_v61  ;;  %v1999_v20 = vld [vmem:[%s2141_s29 + $0x30] sm:$0xff]   ;;  %v2000_v21 = vld [vmem:[%s2141_s29 + $0x68] ss:$0 sps:$4 sm:$0xff]   ;;  %v2229_v28 = vld [vmem:[%s2361_s2] ss:$0 sm:$0xff] }
  0x1f   : > { %1914 = vperm.xlu1 %1907, %v1913_v32   ;;  %v1938_v0 = vpack.i.bf16 %v1655_v59, %v1654_v58  ;;  %v1663_v3 = vunpack.c.h.bf16 %v1811_v61  ;;  %v1670_v10 = vunpack.c.l.bf16 %v1813_v5  ;;  %v1671_v11 = vunpack.c.h.bf16 %v1813_v5  ;;  %v2236_v31 = vld [vmem:[%s2362_s3] ss:$0 sm:$0xff] }
  0x20   : > { %568 = vmatpush1.bf16.msra.mxu0 %v1980_v12  ;;  %1851 = vmatpush1.bf16.msra.mxu1 %v1980_v12  ;;  %v1953_v4 = vpack.i.bf16 %v1667_v63, %v1666_v62  ;;  %v876_v12 = vunpack.c.l.bf16 %v849_v8 }
  0x21   : > { %569 = vmatprep.subr.bf16.mxu0 %v1981_v13  ;;  %1844 = vmatprep.subr.bf16.mxu1 %v1981_v13  ;;  %v1948_v9 = vpack.i.bf16 %v1663_v3, %v1662_v1  ;;  %v1958_v13 = vpack.i.bf16 %v1671_v11, %v1670_v10 }
  0x22   : > { %1903 = vperm.xlu0 %1896, %v1902_v39  }
  0x23   : > { %1924 = vperm.xlu1 %1907, %v1923_v42  }
  0x24   : > { %570 = vmatpush1.bf16.msra.mxu0 %v1983_v14  ;;  %1852 = vmatpush1.bf16.msra.mxu1 %v1983_v14  ;;  %v1993_v14 = vld [vmem:[%s2141_s29 + $0x18] sm:$0xff]  }
  0x25   : > { %571 = vmatprep.subr.bf16.mxu0 %v1984_v15  ;;  %1845 = vmatprep.subr.bf16.mxu1 %v1984_v15  ;;  %v1994_v15 = vld [vmem:[%s2141_s29 + $0x50] sm:$0xff]  }
  0x26   : > { %1919 = vperm.xlu0 %1896, %v1918_v47  }
  0x27   : > { %1934 = vperm.xlu1 %1907, %v1933_v50  }
  0x28   : > { %572 = vmatpush1.bf16.msra.mxu0 %v1986_v27  ;;  %1853 = vmatpush1.bf16.msra.mxu1 %v1986_v27 }
  0x2a   : > { %1929 = vperm.xlu0 %1896, %v1928_v57  }
  0x2b   : > { %590 = vmatmul.mubr.bf16.vlgmr.msra.gmra.mrb[0].mxu0 %v1987_v36  ;;  %660 = vmatmul.mubr.bf16.vlgmr.msra.gmra.mrb[0].mxu1 %v1988_v37 }
  0x2c   : > { %599 = vmatprep.mubr.bf16.mxu0 %v2041_v2  ;;  %669 = vmatprep.mubr.bf16.mxu1 %v2041_v2 }
  0x2d   : > { %1944 = vperm.xlu1 %1907, %v1943_v60  }
  0x2e   : > { %1939 = vperm.xlu0 %1896, %v1938_v0  }
  0x31   : > { %1954 = vperm.xlu1 %1907, %v1953_v4  }
  0x32   : > { %1949 = vperm.xlu0 %1896, %v1948_v9  }
  0x33   : > { %600 = vmatmul.mubr.bf16.gmra.mrb[4].mxu0 %v1989_v54  ;;  %670 = vmatmul.mubr.bf16.gmra.mrb[4].mxu1 %v1990_v55 }
  0x34   : > { %609 = vmatprep.mubr.bf16.mxu0 %v2041_v2  ;;  %679 = vmatprep.mubr.bf16.mxu1 %v2041_v2 }
  0x35   : > { %1009 = vperm.xlu1 %1907, %v876_v12  }
  0x36   : > { %1959 = vperm.xlu0 %1896, %v1958_v13  }
  0x3b   : > { %610 = vmatmul.mubr.bf16.gmra.mrb[8].mxu0 %v1991_v6  ;;  %680 = vmatmul.mubr.bf16.gmra.mrb[8].mxu1 %v1992_v7 }
  0x3c   : > { %619 = vmatprep.mubr.bf16.mxu0 %v2041_v2  ;;  %689 = vmatprep.mubr.bf16.mxu1 %v2041_v2 }
  0x43   : > { %620 = vmatmul.mubr.bf16.gmra.mrb[12].mxu0 %v1993_v14  ;;  %690 = vmatmul.mubr.bf16.gmra.mrb[12].mxu1 %v1994_v15 }
  0x44   : > { %629 = vmatprep.mubr.bf16.mxu0 %v2041_v2  ;;  %699 = vmatprep.mubr.bf16.mxu1 %v2041_v2 }
  0x4b   : > { %630 = vmatmul.mubr.bf16.gmra.mrb[16].mxu0 %v1995_v16  ;;  %700 = vmatmul.mubr.bf16.gmra.mrb[16].mxu1 %v1996_v17 }
  0x4c   : > { %639 = vmatprep.mubr.bf16.mxu0 %v2041_v2  ;;  %709 = vmatprep.mubr.bf16.mxu1 %v2041_v2 }
  0x53   : > { %640 = vmatmul.mubr.bf16.gmra.mrb[20].mxu0 %v1997_v18  ;;  %710 = vmatmul.mubr.bf16.gmra.mrb[20].mxu1 %v1998_v19 }
  0x54   : > { %649 = vmatprep.mubr.bf16.mxu0 %v2041_v2  ;;  %719 = vmatprep.mubr.bf16.mxu1 %v2041_v2 }
  0x5b   : > { %650 = vmatmul.mubr.bf16.gmra.mrb[24].mxu0 %v1999_v20  ;;  %720 = vmatmul.mubr.bf16.gmra.mrb[24].mxu1 %v2000_v21 }
  0x9a   : > { %v2216_v22 = vpop.permute.xlu1 %1909 }
  0x9d   : > { %v1899_v23 = vpop.permute.xlu0 %1898 }
  0x9e   : > { %v2218_v24 = vpop.permute.xlu1 %1914  ;;  %v1901_v37 = vunpack.i.h.bf16 %v1899_v23  ;;  %v1900_v47 = vunpack.i.l.bf16 %v1899_v23 }
  0xa1   : > { %v2220_v25 = vpop.permute.xlu0 %1903 }
  0xa2   : > { %v2222_v26 = vpop.permute.xlu1 %1924  ;;  %v1906_v18 = vunpack.i.h.bf16 %v2220_v25  ;;  %v1905_v19 = vunpack.i.l.bf16 %v2220_v25  ;;  %v1911_v25 = vunpack.i.l.bf16 %v2216_v22 }
  0xa5   : > { %v2224_v27 = vpop.permute.xlu0 %1919 }
  0xa6   : > { %v1935_v2 = vpop.permute.xlu1 %1934 }
  0xa7   : > { %v1936_v40 = vunpack.i.l.bf16 %v1935_v2  ;;  %v1937_v50 = vunpack.i.h.bf16 %v1935_v2 }
  0xa9   : > { %v2231_v29 = vpop.permute.xlu0 %1929 }
  0xad   : > { %v1940_v58 = vpop.permute.xlu0 %1939 }
  0xae   : > { %v1941_v7 = vunpack.i.l.bf16 %v1940_v58 }
  0xfe   : > { %v591_v30 = vpop.f32.mrb[0].mxu0  ;;  %v661_v32 = vpop.f32.mrb[0].mxu1 }
  0xff   : > { %v735_v33 = vmul.f32 %v2229_v28, %v591_v30  ;;  %v749_v34 = vmul.f32 %v2229_v28, %v661_v32  ;;  %v593_v35 = vpop.f32.mrb[1].mxu0  ;;  %v663_v36 = vpop.f32.mrb[1].mxu1  ;;  %v1942_v30 = vunpack.i.h.bf16 %v1940_v58 }
 0x100   : > { %v595_v38 = vpop.f32.mrb[2].mxu0  ;;  %v665_v39 = vpop.f32.mrb[2].mxu1 }
 0x101   : > { %v769_v41 = vadd.f32 %v2236_v31, %v735_v33  ;;  %v783_v42 = vadd.f32 %v2236_v31, %v749_v34  ;;  %v736_v43 = vmul.f32 %v2229_v28, %v595_v38  ;;  %v750_v44 = vmul.f32 %v2229_v28, %v665_v39  ;;  %v597_v45 = vpop.f32.mrb[3].mxu0  ;;  %v667_v46 = vpop.f32.mrb[3].mxu1 }
 0x102   : > { %v1740_v48 = vpack.c.bf16 %v597_v45, %v593_v35  ;;  %v1775_v49 = vpack.c.bf16 %v667_v46, %v663_v36  ;;  %v1945_v32 = vpop.permute.xlu1 %1944  ;;  %v1912_v33 = vunpack.i.h.bf16 %v2216_v22 }
 0x103   : > { %v796_v51 = vmax.f32 %v769_v41, 0.0  ;;  %v810_v52 = vmax.f32 %v783_v42, 0.0  ;;  %v770_v53 = vadd.f32 %v2236_v31, %v736_v43  ;;  %v784_v54 = vadd.f32 %v2236_v31, %v750_v44 }
 0x104   : > { %1741 = vst [vmem:[%s2248_s15] sm:$0xff] %v1740_v48   ;;  %1832 = vst [vmem:[%s2248_s15 + $0x38] sm:$0xff] %v1775_v49   ;;  %v1947_v43 = vunpack.i.h.bf16 %v1945_v32  ;;  %v1946_v49 = vunpack.i.l.bf16 %v1945_v32 }
 0x105   : > { %v797_v55 = vmax.f32 %v770_v53, 0.0  ;;  %v811_v56 = vmax.f32 %v784_v54, 0.0  ;;  %v1026_v57 = vmul.f32 %v1936_v40, %v810_v52  ;;  %v1012_v59 = vmul.f32 %v1900_v47, %v796_v51 }
 0x106   : > { %v601_v60 = vpop.f32.mrb[4].mxu0  ;;  %v671_v61 = vpop.f32.mrb[4].mxu1 }
 0x107   : > { %v1013_v62 = vmul.f32 %v1901_v37, %v797_v55  ;;  %v1027_v63 = vmul.f32 %v1937_v50, %v811_v56  ;;  %v737_v0 = vmul.f32 %v2229_v28, %v601_v60  ;;  %v751_v1 = vmul.f32 %v2229_v28, %v671_v61  ;;  %v603_v3 = vpop.f32.mrb[5].mxu0  ;;  %v673_v4 = vpop.f32.mrb[5].mxu1 }
 0x108   : > { %v605_v5 = vpop.f32.mrb[6].mxu0  ;;  %v675_v6 = vpop.f32.mrb[6].mxu1 }
 0x109   : > { %v1675_v8 = vpack.c.bf16 %v1013_v62, %v1012_v59  ;;  %v1710_v9 = vpack.c.bf16 %v1027_v63, %v1026_v57  ;;  %v771_v10 = vadd.f32 %v2236_v31, %v737_v0  ;;  %v785_v11 = vadd.f32 %v2236_v31, %v751_v1  ;;  %v607_v12 = vpop.f32.mrb[7].mxu0  ;;  %v677_v13 = vpop.f32.mrb[7].mxu1 }
 0x10a   : > { %v738_v14 = vmul.f32 %v2229_v28, %v605_v5  ;;  %v752_v15 = vmul.f32 %v2229_v28, %v675_v6  ;;  %v1745_v16 = vpack.c.bf16 %v607_v12, %v603_v3  ;;  %v1780_v17 = vpack.c.bf16 %v677_v13, %v673_v4  ;;  %v1950_v3 = vpop.permute.xlu0 %1949 }
 0x10b   : > { %1676 = vst [vmem:[%s2260_s18] sm:$0xff] %v1675_v8   ;;  %1820 = vst [vmem:[%s2260_s18 + $0x38] sm:$0xff] %v1710_v9   ;;  %v812_v20 = vmax.f32 %v785_v11, 0.0  ;;  %v798_v21 = vmax.f32 %v771_v10, 0.0  ;;  %v1951_v13 = vunpack.i.l.bf16 %v1950_v3 }
 0x10c   : > { %v772_v23 = vadd.f32 %v2236_v31, %v738_v14  ;;  %v786_v2 = vadd.f32 %v2236_v31, %v752_v15  ;;  %1826 = vst [vmem:[%s2248_s15 + $0x8] sm:$0xff] %v1745_v16   ;;  %1833 = vst [vmem:[%s2248_s15 + $0x40] sm:$0xff] %v1780_v17  }
 0x10d   : > { %v1028_v36 = vmul.f32 %v1941_v7, %v812_v20  ;;  %v1014_v44 = vmul.f32 %v1905_v19, %v798_v21 }
 0x10e   : > { %v799_v34 = vmax.f32 %v772_v23, 0.0  ;;  %v813_v35 = vmax.f32 %v786_v2, 0.0  ;;  %v611_v37 = vpop.f32.mrb[8].mxu0  ;;  %v681_v38 = vpop.f32.mrb[8].mxu1 }
 0x10f   : > { %v739_v39 = vmul.f32 %v2229_v28, %v611_v37  ;;  %v753_v40 = vmul.f32 %v2229_v28, %v681_v38  ;;  %v613_v41 = vpop.f32.mrb[9].mxu0  ;;  %v683_v42 = vpop.f32.mrb[9].mxu1  ;;  %v1952_v37 = vunpack.i.h.bf16 %v1950_v3  ;;  %v1921_v3 = vunpack.i.l.bf16 %v2224_v27 }
 0x110   : > { %v1015_v45 = vmul.f32 %v1906_v18, %v799_v34  ;;  %v1029_v46 = vmul.f32 %v1942_v30, %v813_v35  ;;  %v615_v47 = vpop.f32.mrb[10].mxu0  ;;  %v685_v48 = vpop.f32.mrb[10].mxu1  ;;  %v1916_v34 = vunpack.i.l.bf16 %v2218_v24 }
 0x111   : > { %v773_v50 = vadd.f32 %v2236_v31, %v739_v39  ;;  %v787_v22 = vadd.f32 %v2236_v31, %v753_v40  ;;  %v740_v51 = vmul.f32 %v2229_v28, %v615_v47  ;;  %v754_v52 = vmul.f32 %v2229_v28, %v685_v48  ;;  %v617_v53 = vpop.f32.mrb[11].mxu0  ;;  %v687_v54 = vpop.f32.mrb[11].mxu1 }
 0x112   : > { %v1680_v55 = vpack.c.bf16 %v1015_v45, %v1014_v44  ;;  %v1715_v56 = vpack.c.bf16 %v1029_v46, %v1028_v36  ;;  %v1750_v57 = vpack.c.bf16 %v617_v53, %v613_v41  ;;  %v1785_v58 = vpack.c.bf16 %v687_v54, %v683_v42 }
 0x113   : > { %v800_v59 = vmax.f32 %v773_v50, 0.0  ;;  %v814_v60 = vmax.f32 %v787_v22, 0.0  ;;  %v774_v61 = vadd.f32 %v2236_v31, %v740_v51  ;;  %v788_v62 = vadd.f32 %v2236_v31, %v754_v52 }
 0x114   : > { %1814 = vst [vmem:[%s2260_s18 + $0x8] sm:$0xff] %v1680_v55   ;;  %1821 = vst [vmem:[%s2260_s18 + $0x40] sm:$0xff] %v1715_v56  }
 0x115   : > { %1827 = vst [vmem:[%s2248_s15 + $0x10] sm:$0xff] %v1750_v57   ;;  %1834 = vst [vmem:[%s2248_s15 + $0x48] sm:$0xff] %v1785_v58   ;;  %v801_v63 = vmax.f32 %v774_v61, 0.0  ;;  %v815_v0 = vmax.f32 %v788_v62, 0.0  ;;  %v1030_v1 = vmul.f32 %v1946_v49, %v814_v60  ;;  %v1016_v4 = vmul.f32 %v1911_v25, %v800_v59  ;;  %v1955_v61 = vpop.permute.xlu1 %1954 }
 0x116   : > { %v621_v5 = vpop.f32.mrb[12].mxu0  ;;  %v691_v6 = vpop.f32.mrb[12].mxu1 }
 0x117   : > { %v1017_v7 = vmul.f32 %v1912_v33, %v801_v63  ;;  %v1031_v8 = vmul.f32 %v1947_v43, %v815_v0  ;;  %v741_v9 = vmul.f32 %v2229_v28, %v621_v5  ;;  %v755_v10 = vmul.f32 %v2229_v28, %v691_v6  ;;  %v623_v11 = vpop.f32.mrb[13].mxu0  ;;  %v693_v12 = vpop.f32.mrb[13].mxu1 }
 0x118   : > { %v625_v14 = vpop.f32.mrb[14].mxu0  ;;  %v695_v15 = vpop.f32.mrb[14].mxu1  ;;  %v1917_v33 = vunpack.i.h.bf16 %v2218_v24  ;;  %v1922_v5 = vunpack.i.h.bf16 %v2224_v27  ;;  %v1957_v6 = vunpack.i.h.bf16 %v1955_v61 }
 0x119   : > { %v1685_v16 = vpack.c.bf16 %v1017_v7, %v1016_v4  ;;  %v1720_v17 = vpack.c.bf16 %v1031_v8, %v1030_v1  ;;  %v775_v18 = vadd.f32 %v2236_v31, %v741_v9  ;;  %v789_v19 = vadd.f32 %v2236_v31, %v755_v10  ;;  %v627_v20 = vpop.f32.mrb[15].mxu0  ;;  %v697_v21 = vpop.f32.mrb[15].mxu1 }
 0x11a   : > { %v742_v23 = vmul.f32 %v2229_v28, %v625_v14  ;;  %v756_v2 = vmul.f32 %v2229_v28, %v695_v15  ;;  %v1755_v30 = vpack.c.bf16 %v627_v20, %v623_v11  ;;  %v1790_v32 = vpack.c.bf16 %v697_v21, %v693_v12 }
 0x11b   : > { %1815 = vst [vmem:[%s2260_s18 + $0x10] sm:$0xff] %v1685_v16   ;;  %1822 = vst [vmem:[%s2260_s18 + $0x48] sm:$0xff] %v1720_v17   ;;  %v816_v35 = vmax.f32 %v789_v19, 0.0  ;;  %v802_v36 = vmax.f32 %v775_v18, 0.0  ;;  %v1956_v4 = vunpack.i.l.bf16 %v1955_v61 }
 0x11c   : > { %v776_v38 = vadd.f32 %v2236_v31, %v742_v23  ;;  %v790_v25 = vadd.f32 %v2236_v31, %v756_v2  ;;  %1828 = vst [vmem:[%s2248_s15 + $0x18] sm:$0xff] %v1755_v30   ;;  %1835 = vst [vmem:[%s2248_s15 + $0x50] sm:$0xff] %v1790_v32  }
 0x11d   : > { %v1032_v39 = vmul.f32 %v1951_v13, %v816_v35  ;;  %v1018_v47 = vmul.f32 %v1916_v34, %v802_v36 }
 0x11e   : > { %v803_v40 = vmax.f32 %v776_v38, 0.0  ;;  %v817_v41 = vmax.f32 %v790_v25, 0.0  ;;  %v631_v42 = vpop.f32.mrb[16].mxu0  ;;  %v701_v43 = vpop.f32.mrb[16].mxu1 }
 0x11f   : > { %v743_v44 = vmul.f32 %v2229_v28, %v631_v42  ;;  %v757_v24 = vmul.f32 %v2229_v28, %v701_v43  ;;  %v633_v45 = vpop.f32.mrb[17].mxu0  ;;  %v703_v46 = vpop.f32.mrb[17].mxu1  ;;  %v1926_v42 = vunpack.i.l.bf16 %v2222_v26 }
 0x120   : > { %v1019_v48 = vmul.f32 %v1917_v33, %v803_v40  ;;  %v1033_v49 = vmul.f32 %v1952_v37, %v817_v41  ;;  %v635_v50 = vpop.f32.mrb[18].mxu0  ;;  %v705_v22 = vpop.f32.mrb[18].mxu1  ;;  %v1927_v41 = vunpack.i.h.bf16 %v2222_v26 }
 0x121   : > { %v777_v51 = vadd.f32 %v2236_v31, %v743_v44  ;;  %v791_v52 = vadd.f32 %v2236_v31, %v757_v24  ;;  %v744_v53 = vmul.f32 %v2229_v28, %v635_v50  ;;  %v758_v54 = vmul.f32 %v2229_v28, %v705_v22  ;;  %v637_v55 = vpop.f32.mrb[19].mxu0  ;;  %v707_v56 = vpop.f32.mrb[19].mxu1 }
 0x122   : > { %v1690_v57 = vpack.c.bf16 %v1019_v48, %v1018_v47  ;;  %v1725_v58 = vpack.c.bf16 %v1033_v49, %v1032_v39  ;;  %v1760_v59 = vpack.c.bf16 %v637_v55, %v633_v45  ;;  %v1795_v60 = vpack.c.bf16 %v707_v56, %v703_v46  ;;  %v1960_v37 = vpop.permute.xlu0 %1959 }
 0x123   : > { %v804_v62 = vmax.f32 %v777_v51, 0.0  ;;  %v818_v63 = vmax.f32 %v791_v52, 0.0  ;;  %v778_v0 = vadd.f32 %v2236_v31, %v744_v53  ;;  %v792_v1 = vadd.f32 %v2236_v31, %v758_v54 }
 0x124   : > { %1816 = vst [vmem:[%s2260_s18 + $0x18] sm:$0xff] %v1690_v57   ;;  %1823 = vst [vmem:[%s2260_s18 + $0x50] sm:$0xff] %v1725_v58   ;;  %v1962_v43 = vunpack.i.h.bf16 %v1960_v37  ;;  %v1961_v44 = vunpack.i.l.bf16 %v1960_v37 }
 0x125   : > { %1829 = vst [vmem:[%s2248_s15 + $0x20] sm:$0xff] %v1760_v59   ;;  %1836 = vst [vmem:[%s2248_s15 + $0x58] sm:$0xff] %v1795_v60   ;;  %v805_v7 = vmax.f32 %v778_v0, 0.0  ;;  %v819_v8 = vmax.f32 %v792_v1, 0.0  ;;  %v1020_v9 = vmul.f32 %v1921_v3, %v804_v62  ;;  %v1034_v10 = vmul.f32 %v1956_v4, %v818_v63 }
 0x126   : > { %v641_v11 = vpop.f32.mrb[20].mxu0  ;;  %v711_v12 = vpop.f32.mrb[20].mxu1 }
 0x127   : > { %v1021_v13 = vmul.f32 %v1922_v5, %v805_v7  ;;  %v1035_v14 = vmul.f32 %v1957_v6, %v819_v8  ;;  %v745_v15 = vmul.f32 %v2229_v28, %v641_v11  ;;  %v759_v16 = vmul.f32 %v2229_v28, %v711_v12  ;;  %v643_v17 = vpop.f32.mrb[21].mxu0  ;;  %v713_v18 = vpop.f32.mrb[21].mxu1 }
 0x128   : > { %v645_v19 = vpop.f32.mrb[22].mxu0  ;;  %v715_v20 = vpop.f32.mrb[22].mxu1  ;;  %v1932_v6 = vunpack.i.h.bf16 %v2231_v29 }
 0x129   : > { %v1695_v27 = vpack.c.bf16 %v1021_v13, %v1020_v9  ;;  %v1730_v21 = vpack.c.bf16 %v1035_v14, %v1034_v10  ;;  %v779_v23 = vadd.f32 %v2236_v31, %v745_v15  ;;  %v793_v2 = vadd.f32 %v2236_v31, %v759_v16  ;;  %v647_v30 = vpop.f32.mrb[23].mxu0  ;;  %v717_v32 = vpop.f32.mrb[23].mxu1 }
 0x12a   : > { %v746_v33 = vmul.f32 %v2229_v28, %v645_v19  ;;  %v760_v34 = vmul.f32 %v2229_v28, %v715_v20  ;;  %v1765_v35 = vpack.c.bf16 %v647_v30, %v643_v17  ;;  %v1800_v36 = vpack.c.bf16 %v717_v32, %v713_v18  ;;  %v1010_v5 = vpop.permute.xlu1 %1009 }
 0x12b   : > { %1817 = vst [vmem:[%s2260_s18 + $0x20] sm:$0xff] %v1695_v27   ;;  %1824 = vst [vmem:[%s2260_s18 + $0x58] sm:$0xff] %v1730_v21   ;;  %v806_v38 = vmax.f32 %v779_v23, 0.0  ;;  %v820_v25 = vmax.f32 %v793_v2, 0.0 }
 0x12c   : > { %v780_v39 = vadd.f32 %v2236_v31, %v746_v33  ;;  %v794_v40 = vadd.f32 %v2236_v31, %v760_v34  ;;  %1830 = vst [vmem:[%s2248_s15 + $0x28] sm:$0xff] %v1765_v35   ;;  %1837 = vst [vmem:[%s2248_s15 + $0x60] sm:$0xff] %v1800_v36  }
 0x12d   : > { %v1022_v48 = vmul.f32 %v1926_v42, %v806_v38  ;;  %v1036_v52 = vmul.f32 %v1961_v44, %v820_v25 }
 0x12e   : > { %v807_v24 = vmax.f32 %v780_v39, 0.0  ;;  %v821_v45 = vmax.f32 %v794_v40, 0.0  ;;  %v651_v46 = vpop.f32.mrb[24].mxu0  ;;  %v721_v47 = vpop.f32.mrb[24].mxu1 }
 0x12f   : > { %v747_v49 = vmul.f32 %v2229_v28, %v651_v46  ;;  %v761_v50 = vmul.f32 %v2229_v28, %v721_v47  ;;  %v653_v22 = vpop.f32.mrb[25].mxu0  ;;  %v723_v51 = vpop.f32.mrb[25].mxu1 }
 0x130   : > { %v1023_v53 = vmul.f32 %v1927_v41, %v807_v24  ;;  %v1037_v54 = vmul.f32 %v1962_v43, %v821_v45  ;;  %v1619_v55 = vpack.c.bf16 %v723_v51, %v723_v51  ;;  %v655_v26 = vpop.f32.mrb[26].mxu0  ;;  %v725_v56 = vpop.f32.mrb[26].mxu1 }
 0x131   : > { %v781_v57 = vadd.f32 %v2236_v31, %v747_v49  ;;  %v795_v58 = vadd.f32 %v2236_v31, %v761_v50  ;;  %v748_v59 = vmul.f32 %v2229_v28, %v655_v26  ;;  %v657_v60 = vpop.f32.mrb[27].mxu0  ;;  %v726_v61 = vpop.f32.mrb[27].mxu1  ;;  %v1931_v28 = vunpack.i.l.bf16 %v2231_v29 }
 0x132   : > { %v1700_v62 = vpack.c.bf16 %v1023_v53, %v1022_v48  ;;  %v1735_v63 = vpack.c.bf16 %v1037_v54, %v1036_v52  ;;  %1310 = vst [vmem:[%s2248_s15 + $0x68] sm:$0xf] %v1619_v55  ;;  %v1770_v0 = vpack.c.bf16 %v657_v60, %v653_v22 }
 0x133   : > { %v808_v1 = vmax.f32 %v781_v57, 0.0  ;;  %v822_v3 = vmax.f32 %v795_v58, 0.0  ;;  %v782_v4 = vadd.f32 %v2236_v31, %v748_v59 }
 0x134   : > { %1818 = vst [vmem:[%s2260_s18 + $0x28] sm:$0xff] %v1700_v62   ;;  %1825 = vst [vmem:[%s2260_s18 + $0x60] sm:$0xff] %v1735_v63  }
 0x135   : > { %1831 = vst [vmem:[%s2248_s15 + $0x30] sm:$0xff] %v1770_v0   ;;  %v1038_v7 = vmul.f32 %v1010_v5, %v822_v3  ;;  %v809_v8 = vmax.f32 %v782_v4, 0.0  ;;  %v1024_v9 = vmul.f32 %v1931_v28, %v808_v1 }
 0x137   : > { %v1592_v10 = vpack.c.bf16 %v1038_v7, %v1038_v7  ;;  %v1025_v11 = vmul.f32 %v1932_v6, %v809_v8 }
 0x139   : > { %1174 = vst [vmem:[%s2260_s18 + $0x68] sm:$0xf] %v1592_v10  ;;  %v1705_v12 = vpack.c.bf16 %v1025_v11, %v1024_v9 }
 0x13b   : > { %1819 = vst [vmem:[%s2260_s18 + $0x30] sm:$0xff] %v1705_v12  }
 0x13c PF: > { %s17_s25 = sadd.s32 1, %s2039_s25   ;;  %s2366_s21 = smov %s2031_s23 }
 0x13d   : > { %p14_p7 = scmp.ge.s32.totalorder %s17_s25, 14   ;;  %s2367_s22 = smov %s2035_s24 }
 0x13e   : > { %s2368_s23 = smov %s2371_s26  ;;  %s2369_s24 = smov %s2375_s27 }
 0x13f   :  { %16 = sbr.rel (!%p14_p7) target bundleno = 3 (0x3), region = 85 }

// kernel: scmb_forward.5
= control target key start
LH: loop header
LB: loop body
LE: loop exit
PB: predicated region body
PF: predicated region fallthrough
CT: control target
= control target key end

     0   :  { %11 = vsyncpa [#allocation3], 0  ;;  %s12104_s0 = inlined_call_operand.hbm [shape: bf16[2,1296,3456], index: 0, kind: input, shape index: {}]   ;;  %s12105_s1 = inlined_call_operand.vmem [shape: bf16[3456,128], index: 1, kind: input, shape index: {}]   ;;  %s12106_s2 = inlined_call_operand.vmem [shape: f32[1,128], index: 2, kind: input, shape index: {}]   ;;  %s12107_s3 = inlined_call_operand.vmem [shape: f32[1,128], index: 3, kind: input, shape index: {}]   ;;  %s12108_s4 = inlined_call_operand.vmem [shape: bf16[2,1296,1], index: 4, kind: input, shape index: {}]   ;;  %s12109_s5 = inlined_call_operand.vmem [shape: bf16[2,1296,128], index: 5, kind: input, shape index: {}]   ;;  %s12110_s6 = inlined_call_operand.vmem [shape: bf16[2,1296,128], index: 6, kind: output, shape index: {}]  }
   0x1   :  { %13 = vsyncpa [#allocation3 + $0x1], 0  ;;  %s10273_s21 = smov 0   ;;  %s10275_s22 = smov 0  }
   0x2   :  { %s10277_s23 = smov 0   ;;  %s10279_s24 = smov 0  }
   0x3   :  { %s10281_s25 = smov 0   ;;  %s10283_s26 = smov 0  }
   0x4   :  { %s10285_s27 = smov 0   ;;  %s10287_s28 = smov 0  }
   0x5 LB: > { %s6994_s29 = sadd.s32 4294967295, %s10232_s28   ;;  %s28_s30 = sadd.s32 1, %s10224_s26  ;;  %s10232_s28 = sphi %s10287_s28, %s19_s28   ;;  %s10228_s27 = sphi %s10285_s27, %s12121_s27   ;;  %s10224_s26 = sphi %s10283_s26, %s12120_s26   ;;  %s10220_s25 = sphi %s10281_s25, %s12119_s25   ;;  %s10216_s24 = sphi %s10279_s24, %s12118_s24   ;;  %s10212_s23 = sphi %s10277_s23, %s12117_s23   ;;  %s10208_s22 = sphi %s10275_s22, %s12116_s22   ;;  %s10204_s21 = sphi %s10273_s21, %s12115_s21  }
   0x6   : > { %p29_p0 = scmp.ge.s32.totalorder %s28_s30, 6  ;;  %s31_s7 = sadd.s32 1, %s10228_s27 }
   0x7   : > { %s40_s8 = sadd.s32 1, %s10212_s23  ;;  %p47_p1 = scmp.ne.s32.totalorder %s10212_s23, %s10208_s22 }
   0x8   : > { %s12123_s30 = smov (%p29_p0, %s28_s30), 0  ;;  %s12125_s7 = smov (!%p29_p0, %s31_s7), %s10228_s27 }
   0x9   : > { %s36_s9 = ssub.s32 %s10224_s26, %s12123_s30  ;;  %p48_p2 = scmp.eq.s32.totalorder %s10232_s28, 0 }
   0xa   : > { %p33_p3 = scmp.ge.s32.totalorder %s12125_s7, 2  ;;  %p53_p4 = scmp.ne.s32.totalorder %s10208_s22, %s10204_s21 }
   0xb   : > { %p49_p5 = por %p48_p2, %p47_p1  ;;  %p54_p6 = scmp.eq.s32.totalorder %s6994_s29, 0 }
   0xc   : > { %s12127_s7 = smov (%p33_p3, %s12125_s7), 0  ;;  %p9237_p8 = scmp.lt.s32.totalorder %s10232_s28, 12 }
   0xd   : > { %p10326_p7 = por %p54_p6, %p53_p4  ;;  %s35_s11 = ssub.s32 %s10228_s27, %s12127_s7 }
   0xe   : > { %s37_s12 = sor.u32 %s36_s9, %s35_s11  ;;  %s233_s13 = sand.u32 1, %s10212_s23  }
   0xf   : > { %p38_p9 = scmp.eq.s32.totalorder %s37_s12, 0  ;;  %s9226_s14 = smul.u32 2916, %s233_s13 }
  0x10   : > { %p10334_p10 = pnand %p9237_p8, %p49_p5  ;;  %s9238_s17 = smul.u32 729, %s10224_s26 }
  0x11   : > { %s10339_s16 = scalar_select %p38_p9, %s10212_s23, %s40_s8  }
  0x12   : > { %s237_s18 = scalar_lea.vmem [#allocation2], %s9226_s14  ;;  %s9228_s20 = smul.u32 4374, %s10228_s27 }
  0x13   : > { %s247_s19 = sshll.u32 %s237_s18, 4  ;;  %s10352_s8 = scalar_lea.sflag [#allocation3], %s233_s13  ;;  %s10343_s19 = int_to_ptr.vmem [resolvable:$true] %s247_s19 }
  0x14   : > { %s244_s21 = sadd.s32 %s9238_s17, %s9228_s20  ;;  %p10138_p0 = pneg %p10334_p10 }
  0x15   : > { %s6998_s29 = sshll.u32 %s244_s21, 6  ;;  %s10141_s20 = scalar_lea.hbm %s12104_s0, 559872 }
  0x16   : > { %s10349_s12 = scalar_lea.hbm %s12104_s0, %s6998_s29 }
  0x17   : > { %s10136_s14 = scalar_lea.hbm %s10349_s12, 46656  ;;  %p10142_p3 = scmp.lt.u32.totalorder %s10349_s12, %s12104_s0 }
  0x18   : > { %p10137_p13 = scmp.ne.s32.totalorder %s10349_s12, %s10136_s14  ;;  %p10143_p4 = scmp.lt.u32.totalorder %s10141_s20, %s10136_s14 }
  0x19   : > { %p10145_p6 = scmp.lt.u32.totalorder %s10136_s14, %s10349_s12 }
  0x1a   : > { %p10139_p1 = pnand %p10138_p0, %p10137_p13  ;;  %p10144_p5 = por %p10143_p4, %p10142_p3 }
  0x1c   : > { %p10140_p2 = pneg %p10139_p1  ;;  %p10146_p8 = por %p10145_p6, %p10144_p5 }
  0x1e   : > { %p10147_p9 = pnand %p10146_p8, %p10140_p2 }
  0x20   : > { %10150 = shalt.err (!%p10147_p9)
}
  0x21   : > { %s10151_s13 = scalar_lea.vmem %s10343_s19, 46656  ;;  %s10234_s9 = smov [#allocation2]  }
  0x22   : > { %p10152_p13 = scmp.ne.s32.totalorder %s10343_s19, %s10151_s13  ;;  %s10156_s11 = sshll.u32 %s10234_s9, 4  ;;  %s10157_s11 = int_to_ptr.vmem [resolvable:$false] %s10156_s11 }
  0x23   : > { %s10158_s17 = scalar_lea.vmem %s10157_s11, 93312  ;;  %p10159_p12 = scmp.lt.s32.totalorder %s10343_s19, %s10157_s11 }
  0x24   : > { %p10154_p1 = pnand %p10152_p13, %p10138_p0  ;;  %p10160_p3 = scmp.lt.s32.totalorder %s10158_s17, %s10151_s13 }
  0x26   : > { %p10155_p11 = pneg %p10154_p1  ;;  %p10161_p4 = por %p10160_p3, %p10159_p12 }
  0x28   : > { %p10162_p5 = pnand %p10161_p4, %p10155_p11 }
  0x2a   : > { %10165 = shalt.err (!%p10162_p5)
}
  0x2b   : > { %s10235_s14 = smov 1728   ;;  %s10236_s18 = smov 108  }
  0x2c   : > { %9236 = dma.hbm_to_vmem [thread:$0]  (!%p10334_p10), %s10349_s12, 46656, %s10343_s19, %s10352_s8, %s10235_s14, %s10235_s14, %s10236_s18  }
  0x2d   : > { %p12113_p0 = scmp.lt.s32.totalorder %s10232_s28, 13  ;;  %p12114_p2 = scmp.ge.s32.totalorder %s10232_s28, 1 }
  0x2f   : > { %p282_p6 = pnand %p12114_p2, %p12113_p0 }
  0x30   : > { %s287_s20 = sand.u32 (!%p282_p6), 1, %s10208_s22  }
  0x31   : > { %285 = sbr.rel (%p282_p6) target bundleno = 1096 (0x448), region = 44  ;;  %s288_s29 = scalar_lea.sflag (!%p282_p6), [#allocation3], %s287_s20 }
  0x32   : > { %s9229_s21 = smul.u32 (!%p282_p6), 2916, %s287_s20 }
  0x34   : > { %s10385_s13 = scalar_lea.vmem (!%p282_p6), [#allocation2], %s9229_s21 }
  0x38   : > { %10199 = dma.done.wait (%p10326_p7), %s288_s29, 46656  }
  0x39   : > { %10201 = vsyncadd (%p10326_p7), %s288_s29, 4294920640  ;;  %v9373_v0 = vld [vmem:[%s12105_s1 + $0x40] sm:$0xff]   ;;  %v9377_v4 = vld [vmem:[%s12105_s1 + $0x48] sm:$0xff]   ;;  %p344_p7 = scmp.lt.s32.totalorder %s10220_s25, 1  ;;  %s343_s11 = smul.u32 27, %s10216_s24 }
  0x3a   : > { %v9374_v1 = vld [vmem:[%s12105_s1] sm:$0xff]   ;;  %7860 = vmatprep.subr.bf16.mxu0 %v9373_v0  ;;  %v9378_v5 = vld [vmem:[%s12105_s1 + $0x8] sm:$0xff]   ;;  %v9381_v8 = vld [vmem:[%s12105_s1 + $0x50] sm:$0xff]  }
  0x3b   : > { %v9375_v2 = vld [vmem:[%s12105_s1 + $0xc0] sm:$0xff]   ;;  %7861 = vmatpush3.bf16.msra.mxu0 %v9374_v1  ;;  %v9379_v6 = vld [vmem:[%s12105_s1 + $0xc8] sm:$0xff]   ;;  %v9382_v9 = vld [vmem:[%s12105_s1 + $0x10] sm:$0xff]   ;;  %s12129_s25 = smov (!%p344_p7, %s10220_s25), 1  ;;  %p346_p10 = scmp.lt.s32.totalorder %s343_s11, 161 }
  0x3c   : > { %v9376_v3 = vld [vmem:[%s12105_s1 + $0x80] sm:$0xff]   ;;  %7960 = vmatprep.subr.bf16.mxu1 %v9375_v2  ;;  %7862 = vmatprep.subr.bf16.mxu0 %v9377_v4  ;;  %v9380_v7 = vld [vmem:[%s12105_s1 + $0x88] sm:$0xff]   ;;  %v9383_v10 = vld [vmem:[%s12105_s1 + $0xd0] sm:$0xff]   ;;  %s9230_s15 = smul.u32 162, %s12129_s25 }
  0x3d   : > { %7961 = vmatpush3.bf16.msra.mxu1 %v9376_v3  ;;  %v9384_v11 = vld [vmem:[%s12105_s1 + $0x90] sm:$0xff]   ;;  %v9385_v12 = vld [vmem:[%s12105_s1 + $0x58] sm:$0xff]   ;;  %v9389_v16 = vld [vmem:[%s12105_s1 + $0x60] sm:$0xff]   ;;  %s12131_s11 = smov (!%p346_p10, %s343_s11), 161 }
  0x3e   : > { %7962 = vmatprep.subr.bf16.mxu1 %v9379_v6  ;;  %v9386_v13 = vld [vmem:[%s12105_s1 + $0x18] sm:$0xff]   ;;  %v9390_v17 = vld [vmem:[%s12105_s1 + $0x20] sm:$0xff]   ;;  %v9393_v20 = vld [vmem:[%s12105_s1 + $0x68] sm:$0xff]   ;;  %s349_s24 = sadd.s32 %s9230_s15, %s12131_s11 }
  0x3f   : > { %7863 = vmatpush3.bf16.msra.mxu0 %v9378_v5  ;;  %v9387_v14 = vld [vmem:[%s12105_s1 + $0xd8] sm:$0xff]   ;;  %v9391_v18 = vld [vmem:[%s12105_s1 + $0xe0] sm:$0xff]   ;;  %v9394_v21 = vld [vmem:[%s12105_s1 + $0x28] sm:$0xff]   ;;  %s10793_s19 = sshll.u32 %s349_s24, 2 }
  0x40   : > { %7864 = vmatprep.subr.bf16.mxu0 %v9381_v8  ;;  %v9388_v15 = vld [vmem:[%s12105_s1 + $0x98] sm:$0xff]   ;;  %v9392_v19 = vld [vmem:[%s12105_s1 + $0xa0] sm:$0xff]   ;;  %v9395_v22 = vld [vmem:[%s12105_s1 + $0xe8] sm:$0xff]   ;;  %s10800_s8 = scalar_lea.vmem %s12109_s5, %s10793_s19  ;;  %s11664_s20 = scalar_lea.vmem %s12108_s4, %s10793_s19 }
  0x41   : > { %7963 = vmatpush3.bf16.msra.mxu1 %v9380_v7  ;;  %v9396_v23 = vld [vmem:[%s12105_s1 + $0xa8] sm:$0xff]   ;;  %v9397_v24 = vld [vmem:[%s12105_s1 + $0x70] sm:$0xff]   ;;  %v9401_v28 = vld [vmem:[%s12105_s1 + $0x78] sm:$0xff]   ;;  %s11939_s24 = scalar_lea.vmem %s12110_s6, %s10793_s19 }
  0x42   : > { %7964 = vmatprep.subr.bf16.mxu1 %v9383_v10  ;;  %v9398_v25 = vld [vmem:[%s12105_s1 + $0x30] sm:$0xff]   ;;  %v9402_v29 = vld [vmem:[%s12105_s1 + $0x38] sm:$0xff]   ;;  %v9408_v34 = vld [vmem:[%s12105_s1 + $0x140] sm:$0xff]  }
  0x43   : > { %7865 = vmatpush3.bf16.msra.mxu0 %v9382_v9  ;;  %v9399_v26 = vld [vmem:[%s12105_s1 + $0xf0] sm:$0xff]   ;;  %v9403_v30 = vld [vmem:[%s12105_s1 + $0xf8] sm:$0xff]   ;;  %v9412_v37 = vld [vmem:[%s12105_s1 + $0x100] sm:$0xff]  }
  0x44   : > { %7866 = vmatprep.subr.bf16.mxu0 %v9385_v12  ;;  %v9400_v27 = vld [vmem:[%s12105_s1 + $0xb0] sm:$0xff]   ;;  %v9407_v33 = vld [vmem:[%s12105_s1 + $0xb8] sm:$0xff]   ;;  %v9419_v41 = vld [vmem:[%s12105_s1 + $0x148] sm:$0xff]  }
  0x45   : > { %7965 = vmatpush3.bf16.msra.mxu1 %v9384_v11  ;;  %v9404_v31 = vld [vmem:[%s10385_s13] ss:$108 sps:$4 sm:$0xff]   ;;  %v9406_v32 = vld [vmem:[%s10385_s13 + $0x4] ss:$108 sps:$4 sm:$0xff]   ;;  %v9409_v35 = vld [vmem:[%s10385_s13 + $0x8] ss:$108 sps:$4 sm:$0xff]  }
  0x46   : > { %7966 = vmatprep.subr.bf16.mxu1 %v9387_v14  ;;  %4429 = vmatprep.mubr.bf16.mxu0 %v9406_v32  ;;  %v9411_v36 = vld [vmem:[%s10385_s13 + $0xc] ss:$108 sps:$4 sm:$0xff]   ;;  %v9413_v38 = vld [vmem:[%s10385_s13 + $0xdc] ss:$108 sps:$4 sm:$0xff]   ;;  %v9416_v39 = vld [vmem:[%s10385_s13 + $0xe4] ss:$108 sps:$4 sm:$0xff]  }
  0x47   : > { %7867 = vmatpush3.bf16.msra.mxu0 %v9386_v13  ;;  %4573 = vmatprep.mubr.bf16.mxu1 %v9411_v36  ;;  %v9415_v40 = vld [vmem:[%s10385_s13 + $0xd8] ss:$108 sps:$4 sm:$0xff]   ;;  %v9420_v42 = vld [vmem:[%s10385_s13 + $0x1b4] ss:$108 sps:$4 sm:$0xff]   ;;  %v9424_v45 = vld [vmem:[%s10385_s13 + $0x1bc] ss:$108 sps:$4 sm:$0xff]  }
  0x48   : > { %7868 = vmatprep.subr.bf16.mxu0 %v9389_v16  ;;  %v9418_v43 = vld [vmem:[%s10385_s13 + $0xe0] ss:$108 sps:$4 sm:$0xff]   ;;  %v9423_v46 = vld [vmem:[%s10385_s13 + $0x1b0] ss:$108 sps:$4 sm:$0xff]   ;;  %v9426_v50 = vld [vmem:[%s10385_s13 + $0x1b8] ss:$108 sps:$4 sm:$0xff]  }
  0x49   : > { %7967 = vmatpush3.bf16.msra.mxu1 %v9388_v15  ;;  %v9422_v44 = vld [vmem:[%s12105_s1 + $0x108] sm:$0xff]   ;;  %v9433_v48 = vld [vmem:[%s12105_s1 + $0x150] sm:$0xff]   ;;  %v9447_v53 = vld [vmem:[%s12105_s1 + $0x158] sm:$0xff]  }
  0x4a   : > { %7968 = vmatprep.subr.bf16.mxu1 %v9391_v18  ;;  %v9427_v47 = vld [vmem:[%s10385_s13 + $0x28c] ss:$108 sps:$4 sm:$0xff]   ;;  %v9430_v51 = vld [vmem:[%s10385_s13 + $0x294] ss:$108 sps:$4 sm:$0xff]   ;;  %v9435_v55 = vld [vmem:[%s10385_s13 + $0x364] ss:$108 sps:$4 sm:$0xff]  }
  0x4b   : > { %7869 = vmatpush3.bf16.msra.mxu0 %v9390_v17  ;;  %v9434_v49 = vld [vmem:[%s12105_s1 + $0x110] sm:$0xff]   ;;  %v9448_v54 = vld [vmem:[%s12105_s1 + $0x118] sm:$0xff]   ;;  %v9458_v58 = vld [vmem:[%s12105_s1 + $0x160] sm:$0xff]  }
  0x4c   : > { %7870 = vmatprep.subr.bf16.mxu0 %v9393_v20  ;;  %v9429_v52 = vld [vmem:[%s10385_s13 + $0x288] ss:$108 sps:$4 sm:$0xff]   ;;  %v9432_v56 = vld [vmem:[%s10385_s13 + $0x290] ss:$108 sps:$4 sm:$0xff]   ;;  %v9438_v57 = vld [vmem:[%s10385_s13 + $0x36c] ss:$108 sps:$4 sm:$0xff]  }
  0x4d   : > { %7969 = vmatpush3.bf16.msra.mxu1 %v9392_v19  ;;  %v9437_v59 = vld [vmem:[%s10385_s13 + $0x360] ss:$108 sps:$4 sm:$0xff]   ;;  %v9441_v61 = vld [vmem:[%s10385_s13 + $0x43c] ss:$108 sps:$4 sm:$0xff]   ;;  %v9444_v1 = vld [vmem:[%s10385_s13 + $0x444] ss:$108 sps:$4 sm:$0xff]  }
  0x4e   : > { %7970 = vmatprep.subr.bf16.mxu1 %v9395_v22  ;;  %v9461_v60 = vld [vmem:[%s12105_s1 + $0x120] sm:$0xff]   ;;  %v9440_v0 = vld [vmem:[%s10385_s13 + $0x368] ss:$108 sps:$4 sm:$0xff]   ;;  %v9455_v11 = vld [vmem:[%s10385_s13 + $0x5ec] ss:$108 sps:$4 sm:$0xff]  }
  0x4f   : > { %7871 = vmatpush3.bf16.msra.mxu0 %v9394_v21  ;;  %v9463_v62 = vld [vmem:[%s12105_s1 + $0x1c0] sm:$0xff]   ;;  %v9471_v2 = vld [vmem:[%s12105_s1 + $0x168] sm:$0xff]   ;;  %v9487_v12 = vld [vmem:[%s12105_s1 + $0x170] sm:$0xff]  }
  0x50   : > { %7872 = vmatprep.subr.bf16.mxu0 %v9397_v24  ;;  %v9464_v63 = vld [vmem:[%s12105_s1 + $0x180] sm:$0xff]   ;;  %v9474_v4 = vld [vmem:[%s12105_s1 + $0x128] sm:$0xff]   ;;  %v9488_v13 = vld [vmem:[%s12105_s1 + $0x130] sm:$0xff]  }
  0x51   : > { %7971 = vmatpush3.bf16.msra.mxu1 %v9396_v23  ;;  %v9443_v3 = vld [vmem:[%s10385_s13 + $0x438] ss:$108 sps:$4 sm:$0xff]   ;;  %v9449_v5 = vld [vmem:[%s10385_s13 + $0x514] ss:$108 sps:$4 sm:$0xff]   ;;  %v9452_v9 = vld [vmem:[%s10385_s13 + $0x51c] ss:$108 sps:$4 sm:$0xff]  }
  0x52   : > { %7972 = vmatprep.subr.bf16.mxu1 %v9399_v26  ;;  %v9476_v6 = vld [vmem:[%s12105_s1 + $0x1c8] sm:$0xff]   ;;  %v9451_v10 = vld [vmem:[%s10385_s13 + $0x510] ss:$108 sps:$4 sm:$0xff]   ;;  %v9459_v17 = vld [vmem:[%s10385_s13 + $0x5f4] ss:$108 sps:$4 sm:$0xff]  }
  0x53   : > { %7873 = vmatpush3.bf16.msra.mxu0 %v9398_v25  ;;  %v9446_v7 = vld [vmem:[%s10385_s13 + $0x440] ss:$108 sps:$4 sm:$0xff]   ;;  %v9454_v15 = vld [vmem:[%s10385_s13 + $0x518] ss:$108 sps:$4 sm:$0xff]   ;;  %v9457_v20 = vld [vmem:[%s10385_s13 + $0x5e8] ss:$108 sps:$4 sm:$0xff]  }
  0x54   : > { %7874 = vmatprep.subr.bf16.mxu0 %v9401_v28  ;;  %v9479_v8 = vld [vmem:[%s12105_s1 + $0x188] sm:$0xff]   ;;  %v9489_v14 = vld [vmem:[%s12105_s1 + $0x1d0] sm:$0xff]   ;;  %v9497_v18 = vld [vmem:[%s12105_s1 + $0x1d8] sm:$0xff]  }
  0x55   : > { %7973 = vmatpush3.bf16.msra.mxu1 %v9400_v27  ;;  %v9492_v16 = vld [vmem:[%s12105_s1 + $0x190] sm:$0xff]   ;;  %v9500_v19 = vld [vmem:[%s12105_s1 + $0x198] sm:$0xff]   ;;  %v9506_v25 = vld [vmem:[%s12105_s1 + $0x1e0] sm:$0xff]  }
  0x56   : > { %7974 = vmatprep.subr.bf16.mxu1 %v9403_v30  ;;  %v9462_v21 = vld [vmem:[%s10385_s13 + $0x5f0] ss:$108 sps:$4 sm:$0xff]   ;;  %v9468_v23 = vld [vmem:[%s10385_s13 + $0x6cc] ss:$108 sps:$4 sm:$0xff]  }
  0x57   : > { %7875 = vmatpush3.bf16.msra.mxu0 %v9402_v29  ;;  %v9465_v22 = vld [vmem:[%s10385_s13 + $0x6c4] ss:$108 sps:$4 sm:$0xff]   ;;  %v9505_v24 = vld [vmem:[%s12105_s1 + $0x178] sm:$0xff]   ;;  %v9467_v28 = vld [vmem:[%s10385_s13 + $0x6c0] ss:$108 sps:$4 sm:$0xff]  }
  0x58   : > { %8060 = vmatprep.subr.bf16.mxu0 %v9408_v34  ;;  %v9507_v26 = vld [vmem:[%s12105_s1 + $0x138] sm:$0xff]   ;;  %v9508_v27 = vld [vmem:[%s12105_s1 + $0x1a0] sm:$0xff]   ;;  %v9509_v29 = vld [vmem:[%s12105_s1 + $0x1e8] sm:$0xff]  }
  0x59   : > { %7975 = vmatpush3.bf16.msra.mxu1 %v9407_v33  ;;  %v9472_v30 = vld [vmem:[%s10385_s13 + $0x79c] ss:$108 sps:$4 sm:$0xff]   ;;  %v9515_v32 = vld [vmem:[%s12105_s1 + $0x1f0] sm:$0xff]  }
  0x5a   : > { %4430 = vmatmul.mubr.bf16.vlgmr.msra.gmra.mrb[0].mxu0 %v9404_v31  ;;  %8160 = vmatprep.subr.bf16.mxu1 %v9463_v62  ;;  %v9511_v31 = vld [vmem:[%s12105_s1 + $0x1a8] sm:$0xff]   ;;  %v9517_v36 = vld [vmem:[%s12105_s1 + $0x1f8] sm:$0xff]  }
  0x5b   : > { %8061 = vmatpush3.bf16.msra.mxu0 %v9412_v37  ;;  %4437 = vmatprep.mubr.bf16.mxu0 %v9413_v38  ;;  %v9470_v33 = vld [vmem:[%s10385_s13 + $0x6c8] ss:$108 sps:$4 sm:$0xff]   ;;  %v9477_v34 = vld [vmem:[%s10385_s13 + $0x7a4] ss:$108 sps:$4 sm:$0xff]  }
  0x5c   : > { %4574 = vmatmul.mubr.bf16.vlgmr.msra.gmra.mrb[0].mxu1 %v9409_v35  ;;  %8062 = vmatprep.subr.bf16.mxu0 %v9419_v41  ;;  %v9516_v35 = vld [vmem:[%s12105_s1 + $0x1b0] sm:$0xff]   ;;  %v9522_v37 = vld [vmem:[%s12105_s1 + $0x240] sm:$0xff]  }
  0x5d   : > { %4581 = vmatprep.mubr.bf16.mxu1 %v9416_v39  ;;  %8161 = vmatpush3.bf16.msra.mxu1 %v9464_v63  ;;  %v9475_v38 = vld [vmem:[%s10385_s13 + $0x798] ss:$108 sps:$4 sm:$0xff]   ;;  %v9480_v41 = vld [vmem:[%s10385_s13 + $0x7a0] ss:$108 sps:$4 sm:$0xff]   ;;  %v9518_v62 = vld [vmem:[%s10385_s13 + $0x10] ss:$108 sps:$4 sm:$0xff]  }
  0x5e   : > { %8162 = vmatprep.subr.bf16.mxu1 %v9476_v6  ;;  %v9521_v39 = vld [vmem:[%s12105_s1 + $0x1b8] sm:$0xff]   ;;  %v9590_v6 = vld [vmem:[%s12105_s1 + $0x2c8] sm:$0xff]  }
  0x5f   : > { %8063 = vmatpush3.bf16.msra.mxu0 %v9422_v44  ;;  %v9490_v44 = vld [vmem:[%s10385_s13 + $0x94c] ss:$108 sps:$4 sm:$0xff]  }
  0x60   : > { %8064 = vmatprep.subr.bf16.mxu0 %v9433_v48  ;;  %v9498_v48 = vld [vmem:[%s10385_s13 + $0xa24] ss:$108 sps:$4 sm:$0xff]  }
  0x61   : > { %8163 = vmatpush3.bf16.msra.mxu1 %v9479_v8  ;;  %v9523_v63 = vld [vmem:[%s10385_s13 + $0x18] ss:$108 sps:$4 sm:$0xff]   ;;  %v9547_v8 = vld [vmem:[%s12105_s1 + $0x250] sm:$0xff]  }
  0x62   : > { %4438 = vmatmul.mubr.bf16.gmra.mrb[4].mxu0 %v9415_v40  ;;  %8164 = vmatprep.subr.bf16.mxu1 %v9489_v14  ;;  %v9481_v40 = vld [vmem:[%s10385_s13 + $0x874] ss:$108 sps:$4 sm:$0xff]   ;;  %v9532_v14 = vld [vmem:[%s10385_s13 + $0xf0] ss:$108 sps:$4 sm:$0xff]  }
  0x63   : > { %4445 = vmatprep.mubr.bf16.mxu0 %v9420_v42  ;;  %8065 = vmatpush3.bf16.msra.mxu0 %v9434_v49  ;;  %v9484_v42 = vld [vmem:[%s10385_s13 + $0x87c] ss:$108 sps:$4 sm:$0xff]  }
  0x64   : > { %4582 = vmatmul.mubr.bf16.gmra.mrb[4].mxu1 %v9418_v43  ;;  %8066 = vmatprep.subr.bf16.mxu0 %v9447_v53  ;;  %v9483_v43 = vld [vmem:[%s10385_s13 + $0x870] ss:$108 sps:$4 sm:$0xff]  }
  0x65   : > { %4589 = vmatprep.mubr.bf16.mxu1 %v9424_v45  ;;  %8165 = vmatpush3.bf16.msra.mxu1 %v9492_v16  ;;  %v9486_v45 = vld [vmem:[%s10385_s13 + $0x878] ss:$108 sps:$4 sm:$0xff]   ;;  %v9496_v49 = vld [vmem:[%s10385_s13 + $0x950] ss:$108 sps:$4 sm:$0xff]  }
  0x66   : > { %8166 = vmatprep.subr.bf16.mxu1 %v9497_v18  ;;  %v9562_v16 = vld [vmem:[%s12105_s1 + $0x218] sm:$0xff]  }
  0x67   : > { %8067 = vmatpush3.bf16.msra.mxu0 %v9448_v54  ;;  %v739_v54 = vld [vmem:[%s10385_s13 + $0xb00] sm:$0xff]  ;;  %v9611_v18 = vld [vmem:[%s12105_s1 + $0x2d8] sm:$0xff]  }
  0x68   : > { %8068 = vmatprep.subr.bf16.mxu0 %v9458_v58 }
  0x69   : > { %8167 = vmatpush3.bf16.msra.mxu1 %v9500_v19  ;;  %v9537_v19 = vld [vmem:[%s10385_s13 + $0x1c0] ss:$108 sps:$4 sm:$0xff]  }
  0x6a   : > { %4446 = vmatmul.mubr.bf16.gmra.mrb[8].mxu0 %v9423_v46  ;;  %8168 = vmatprep.subr.bf16.mxu1 %v9506_v25  ;;  %v9494_v46 = vld [vmem:[%s10385_s13 + $0x954] ss:$108 sps:$4 sm:$0xff]   ;;  %v9585_v25 = vld [vmem:[%s12105_s1 + $0x268] sm:$0xff]  }
  0x6b   : > { %4453 = vmatprep.mubr.bf16.mxu0 %v9427_v47  ;;  %8069 = vmatpush3.bf16.msra.mxu0 %v9461_v60  ;;  %v9493_v47 = vld [vmem:[%s10385_s13 + $0x948] ss:$108 sps:$4 sm:$0xff]   ;;  %v7356_v60 = vcombine.low %v739_v54, %v739_v54 }
  0x6c   : > { %4590 = vmatmul.mubr.bf16.gmra.mrb[8].mxu1 %v9426_v50  ;;  %8070 = vmatprep.subr.bf16.mxu0 %v9471_v2  ;;  %v9502_v50 = vld [vmem:[%s10385_s13 + $0xa2c] ss:$108 sps:$4 sm:$0xff]   ;;  %v9530_v2 = vld [vmem:[%s10385_s13 + $0xf4] ss:$108 sps:$4 sm:$0xff]  }
  0x6d   : > { %4597 = vmatprep.mubr.bf16.mxu1 %v9430_v51  ;;  %8169 = vmatpush3.bf16.msra.mxu1 %v9508_v27  ;;  %v738_v51 = vld [vmem:[%s10385_s13 + $0xaf8] sm:$0xff]  ;;  %v9544_v27 = vld [vmem:[%s10385_s13 + $0x2a4] ss:$108 sps:$4 sm:$0xff]  }
  0x6e   : > { %8170 = vmatprep.subr.bf16.mxu1 %v9509_v29  ;;  %v7355_v53 = vcombine.high %v738_v51, %v738_v51  ;;  %v7354_v58 = vcombine.low %v738_v51, %v738_v51  ;;  %v9622_v29 = vld [vmem:[%s12105_s1 + $0x2a0] sm:$0xff]  }
  0x6f   : > { %8071 = vmatpush3.bf16.msra.mxu0 %v9474_v4  ;;  %v9536_v4 = vld [vmem:[%s12105_s1 + $0x208] sm:$0xff]   ;;  %v9560_v51 = vld [vmem:[%s10385_s13 + $0x450] ss:$108 sps:$4 sm:$0xff]  }
  0x70   : > { %8072 = vmatprep.subr.bf16.mxu0 %v9487_v12  ;;  %v9561_v12 = vld [vmem:[%s12105_s1 + $0x258] sm:$0xff]  }
  0x71   : > { %8171 = vmatpush3.bf16.msra.mxu1 %v9511_v31  ;;  %v9543_v31 = vld [vmem:[%s10385_s13 + $0x298] ss:$108 sps:$4 sm:$0xff]  }
  0x72   : > { %4454 = vmatmul.mubr.bf16.gmra.mrb[12].mxu0 %v9429_v52  ;;  %8172 = vmatprep.subr.bf16.mxu1 %v9515_v32  ;;  %v9501_v52 = vld [vmem:[%s10385_s13 + $0xa20] ss:$108 sps:$4 sm:$0xff]  }
  0x73   : > { %4461 = vmatprep.mubr.bf16.mxu0 %v9435_v55  ;;  %8073 = vmatpush3.bf16.msra.mxu0 %v9488_v13  ;;  %v9504_v55 = vld [vmem:[%s10385_s13 + $0xa28] ss:$108 sps:$4 sm:$0xff]  }
  0x74   : > { %4598 = vmatmul.mubr.bf16.gmra.mrb[12].mxu1 %v9432_v56  ;;  %8074 = vmatprep.subr.bf16.mxu0 %v9505_v24  ;;  %v7357_v56 = vcombine.high %v739_v54, %v739_v54  ;;  %v9603_v13 = vld [vmem:[%s12105_s1 + $0x2d0] sm:$0xff]   ;;  %v9575_v24 = vld [vmem:[%s12105_s1 + $0x220] sm:$0xff]  }
  0x75   : > { %4605 = vmatprep.mubr.bf16.mxu1 %v9438_v57  ;;  %8173 = vmatpush3.bf16.msra.mxu1 %v9516_v35  ;;  %v9577_v57 = vld [vmem:[%s12105_s1 + $0x2c0] sm:$0xff]   ;;  %v9601_v32 = vld [vmem:[%s12105_s1 + $0x270] sm:$0xff]   ;;  %v9625_v35 = vld [vmem:[%s12105_s1 + $0x2a8] sm:$0xff]  }
  0x76   : > { %8174 = vmatprep.subr.bf16.mxu1 %v9517_v36  ;;  %v9546_v36 = vld [vmem:[%s10385_s13 + $0x2a0] ss:$108 sps:$4 sm:$0xff]   ;;  %v9569_v54 = vld [vmem:[%s10385_s13 + $0x5fc] ss:$108 sps:$4 sm:$0xff]  }
  0x77   : > { %8075 = vmatpush3.bf16.msra.mxu0 %v9507_v26  ;;  %v9620_v26 = vld [vmem:[%s12105_s1 + $0x2e0] sm:$0xff]  }
  0x78   : > { %8260 = vmatprep.subr.bf16.mxu0 %v9522_v37  ;;  %v9619_v37 = vld [vmem:[%s12105_s1 + $0x278] sm:$0xff]  }
  0x79   : > { %8175 = vmatpush3.bf16.msra.mxu1 %v9521_v39  ;;  %v9552_v39 = vld [vmem:[%s10385_s13 + $0x37c] ss:$108 sps:$4 sm:$0xff]  }
  0x7a   : > { %4462 = vmatmul.mubr.bf16.gmra.mrb[16].mxu0 %v9437_v59  ;;  %8360 = vmatprep.subr.bf16.mxu1 %v9577_v57  ;;  %v9520_v59 = vld [vmem:[%s10385_s13 + $0x14] ss:$108 sps:$4 sm:$0xff]   ;;  %v9571_v57 = vld [vmem:[%s10385_s13 + $0x5f8] ss:$108 sps:$4 sm:$0xff]  }
  0x7b   : > { %4469 = vmatprep.mubr.bf16.mxu0 %v9441_v61  ;;  %v9525_v61 = vld [vmem:[%s10385_s13 + $0x1c] ss:$108 sps:$4 sm:$0xff]  }
  0x7c   : > { %4606 = vmatmul.mubr.bf16.gmra.mrb[16].mxu1 %v9440_v0  ;;  %v9526_v0 = vld [vmem:[%s12105_s1 + $0x200] sm:$0xff]  }
  0x7d   : > { %4613 = vmatprep.mubr.bf16.mxu1 %v9444_v1  ;;  %v9527_v1 = vld [vmem:[%s10385_s13 + $0xec] ss:$108 sps:$4 sm:$0xff]  }
  0x82   : > { %4470 = vmatmul.mubr.bf16.gmra.mrb[20].mxu0 %v9443_v3  ;;  %v9533_v3 = vld [vmem:[%s12105_s1 + $0x248] sm:$0xff]  }
  0x83   : > { %4477 = vmatprep.mubr.bf16.mxu0 %v9449_v5  ;;  %v9578_v5 = vld [vmem:[%s12105_s1 + $0x280] sm:$0xff]  }
  0x84   : > { %4614 = vmatmul.mubr.bf16.gmra.mrb[20].mxu1 %v9446_v7  ;;  %v9529_v7 = vld [vmem:[%s10385_s13 + $0xe8] ss:$108 sps:$4 sm:$0xff]  }
  0x85   : > { %4621 = vmatprep.mubr.bf16.mxu1 %v9452_v9  ;;  %v9534_v9 = vld [vmem:[%s10385_s13 + $0x1c4] ss:$108 sps:$4 sm:$0xff]  }
  0x8a   : > { %4478 = vmatmul.mubr.bf16.gmra.mrb[24].mxu0 %v9451_v10  ;;  %v9548_v10 = vld [vmem:[%s12105_s1 + $0x210] sm:$0xff]  }
  0x8b   : > { %4485 = vmatprep.mubr.bf16.mxu0 %v9455_v11  ;;  %v9593_v11 = vld [vmem:[%s12105_s1 + $0x288] sm:$0xff]  }
  0x8c   : > { %4622 = vmatmul.mubr.bf16.gmra.mrb[24].mxu1 %v9454_v15  ;;  %v9538_v15 = vld [vmem:[%s10385_s13 + $0x1cc] ss:$108 sps:$4 sm:$0xff]  }
  0x8d   : > { %4629 = vmatprep.mubr.bf16.mxu1 %v9459_v17  ;;  %v9606_v17 = vld [vmem:[%s12105_s1 + $0x290] sm:$0xff]  }
  0x92   : > { %4486 = vmatmul.mubr.bf16.gmra.mrb[28].mxu0 %v9457_v20  ;;  %v9572_v20 = vld [vmem:[%s12105_s1 + $0x260] sm:$0xff]  }
  0x93   : > { %4493 = vmatprep.mubr.bf16.mxu0 %v9465_v22  ;;  %v9614_v22 = vld [vmem:[%s12105_s1 + $0x298] sm:$0xff]  }
  0x94   : > { %4630 = vmatmul.mubr.bf16.gmra.mrb[28].mxu1 %v9462_v21  ;;  %v9541_v21 = vld [vmem:[%s10385_s13 + $0x29c] ss:$108 sps:$4 sm:$0xff]  }
  0x95   : > { %4637 = vmatprep.mubr.bf16.mxu1 %v9468_v23  ;;  %v9540_v23 = vld [vmem:[%s10385_s13 + $0x1c8] ss:$108 sps:$4 sm:$0xff]  }
  0x9a   : > { %4494 = vmatmul.mubr.bf16.gmra.mrb[32].mxu0 %v9467_v28  ;;  %v9588_v28 = vld [vmem:[%s12105_s1 + $0x228] sm:$0xff]  }
  0x9b   : > { %4501 = vmatprep.mubr.bf16.mxu0 %v9472_v30  ;;  %v9623_v30 = vld [vmem:[%s12105_s1 + $0x2e8] sm:$0xff]  }
  0x9c   : > { %4638 = vmatmul.mubr.bf16.gmra.mrb[32].mxu1 %v9470_v33  ;;  %v9549_v33 = vld [vmem:[%s10385_s13 + $0x374] ss:$108 sps:$4 sm:$0xff]  }
  0x9d   : > { %4645 = vmatprep.mubr.bf16.mxu1 %v9477_v34  ;;  %v9602_v34 = vld [vmem:[%s12105_s1 + $0x230] sm:$0xff]  }
  0xa2   : > { %4502 = vmatmul.mubr.bf16.gmra.mrb[36].mxu0 %v9475_v38  ;;  %v9629_v38 = vld [vmem:[%s12105_s1 + $0x2f0] sm:$0xff]  }
  0xa3   : > { %4509 = vmatprep.mubr.bf16.mxu0 %v9481_v40  ;;  %v9621_v40 = vld [vmem:[%s12105_s1 + $0x238] sm:$0xff]  }
  0xa4   : > { %4646 = vmatmul.mubr.bf16.gmra.mrb[36].mxu1 %v9480_v41  ;;  %v9630_v41 = vld [vmem:[%s12105_s1 + $0x2b0] sm:$0xff]  }
  0xa5   : > { %4653 = vmatprep.mubr.bf16.mxu1 %v9484_v42  ;;  %v9631_v42 = vld [vmem:[%s12105_s1 + $0x2f8] sm:$0xff]  }
  0xaa   : > { %4510 = vmatmul.mubr.bf16.gmra.mrb[40].mxu0 %v9483_v43  ;;  %v9636_v43 = vld [vmem:[%s12105_s1 + $0x340] sm:$0xff]  }
  0xab   : > { %4517 = vmatprep.mubr.bf16.mxu0 %v9490_v44  ;;  %v9551_v44 = vld [vmem:[%s10385_s13 + $0x370] ss:$108 sps:$4 sm:$0xff]  }
  0xac   : > { %4654 = vmatmul.mubr.bf16.gmra.mrb[40].mxu1 %v9486_v45  ;;  %v9635_v45 = vld [vmem:[%s12105_s1 + $0x2b8] sm:$0xff]  }
  0xad   : > { %4661 = vmatprep.mubr.bf16.mxu1 %v9494_v46  ;;  %v9555_v46 = vld [vmem:[%s10385_s13 + $0x44c] ss:$108 sps:$4 sm:$0xff]  }
  0xb2   : > { %4518 = vmatmul.mubr.bf16.gmra.mrb[44].mxu0 %v9493_v47  ;;  %v9554_v47 = vld [vmem:[%s10385_s13 + $0x378] ss:$108 sps:$4 sm:$0xff]  }
  0xb3   : > { %4525 = vmatprep.mubr.bf16.mxu0 %v9498_v48  ;;  %v9558_v48 = vld [vmem:[%s10385_s13 + $0x454] ss:$108 sps:$4 sm:$0xff]  }
  0xb4   : > { %4662 = vmatmul.mubr.bf16.gmra.mrb[44].mxu1 %v9496_v49  ;;  %v9557_v49 = vld [vmem:[%s10385_s13 + $0x448] ss:$108 sps:$4 sm:$0xff]  }
  0xb5   : > { %4669 = vmatprep.mubr.bf16.mxu1 %v9502_v50  ;;  %v9563_v50 = vld [vmem:[%s10385_s13 + $0x524] ss:$108 sps:$4 sm:$0xff]  }
  0xba   : > { %4526 = vmatmul.mubr.bf16.gmra.mrb[48].mxu0 %v9501_v52  ;;  %v9566_v52 = vld [vmem:[%s10385_s13 + $0x52c] ss:$108 sps:$4 sm:$0xff]  }
  0xbb   : > { %4533 = vmatprep.mubr.bf16.mxu0 %v7355_v53  ;;  %v9565_v53 = vld [vmem:[%s10385_s13 + $0x520] ss:$108 sps:$4 sm:$0xff]  }
  0xbc   : > { %4670 = vmatmul.mubr.bf16.gmra.mrb[48].mxu1 %v9504_v55  ;;  %v9568_v55 = vld [vmem:[%s10385_s13 + $0x528] ss:$108 sps:$4 sm:$0xff]  }
  0xbd   : > { %4677 = vmatprep.mubr.bf16.mxu1 %v7357_v56  ;;  %v9573_v56 = vld [vmem:[%s10385_s13 + $0x604] ss:$108 sps:$4 sm:$0xff]  }
  0xc2   : > { %4534 = vmatmul.mubr.bf16.gmra.mrb[52].mxu0 %v7354_v58  ;;  %v9579_v58 = vld [vmem:[%s10385_s13 + $0x6d4] ss:$108 sps:$4 sm:$0xff]  }
  0xc3   : > { %4717 = vmatprep.mubr.bf16.mxu0 %v9520_v59  ;;  %v9691_v59 = vld [vmem:[%s12105_s1 + $0x3c0] sm:$0xff]  }
  0xc4   : > { %4678 = vmatmul.mubr.bf16.gmra.mrb[52].mxu1 %v7356_v60  ;;  %v9576_v60 = vld [vmem:[%s10385_s13 + $0x600] ss:$108 sps:$4 sm:$0xff]  }
  0xc5   : > { %4861 = vmatprep.mubr.bf16.mxu1 %v9525_v61  ;;  %v9582_v61 = vld [vmem:[%s10385_s13 + $0x6dc] ss:$108 sps:$4 sm:$0xff]  }
  0xca   : > { %4718 = vmatmul.mubr.bf16.vlgmr.msra.gmra.mrb[56].mxu0 %v9518_v62  ;;  %v9581_v62 = vld [vmem:[%s10385_s13 + $0x6d0] ss:$108 sps:$4 sm:$0xff]  }
  0xcb   : > { %8261 = vmatpush3.bf16.msra.mxu0 %v9526_v0  ;;  %4725 = vmatprep.mubr.bf16.mxu0 %v9527_v1  ;;  %v9584_v0 = vld [vmem:[%s10385_s13 + $0x6d8] ss:$108 sps:$4 sm:$0xff]   ;;  %v9591_v1 = vld [vmem:[%s10385_s13 + $0x7b4] ss:$108 sps:$4 sm:$0xff]  }
  0xcc   : > { %8262 = vmatprep.subr.bf16.mxu0 %v9533_v3  ;;  %4862 = vmatmul.mubr.bf16.vlgmr.msra.gmra.mrb[56].mxu1 %v9523_v63  ;;  %v9586_v63 = vld [vmem:[%s10385_s13 + $0x7ac] ss:$108 sps:$4 sm:$0xff]   ;;  %v9595_v3 = vld [vmem:[%s10385_s13 + $0x884] ss:$108 sps:$4 sm:$0xff]  }
  0xcd   : > { %4869 = vmatprep.mubr.bf16.mxu1 %v9530_v2  ;;  %8361 = vmatpush3.bf16.msra.mxu1 %v9578_v5  ;;  %v9589_v2 = vld [vmem:[%s10385_s13 + $0x7a8] ss:$108 sps:$4 sm:$0xff]   ;;  %v9598_v5 = vld [vmem:[%s10385_s13 + $0x88c] ss:$108 sps:$4 sm:$0xff]  }
  0xce   : > { %8362 = vmatprep.subr.bf16.mxu1 %v9590_v6  ;;  %v9597_v6 = vld [vmem:[%s10385_s13 + $0x880] ss:$108 sps:$4 sm:$0xff]  }
  0xcf   : > { %8263 = vmatpush3.bf16.msra.mxu0 %v9536_v4  ;;  %v9594_v4 = vld [vmem:[%s10385_s13 + $0x7b0] ss:$108 sps:$4 sm:$0xff]  }
  0xd0   : > { %8264 = vmatprep.subr.bf16.mxu0 %v9547_v8  ;;  %v9600_v8 = vld [vmem:[%s10385_s13 + $0x888] ss:$108 sps:$4 sm:$0xff]  }
  0xd1   : > { %8363 = vmatpush3.bf16.msra.mxu1 %v9593_v11  ;;  %v9612_v11 = vld [vmem:[%s10385_s13 + $0xa34] ss:$108 sps:$4 sm:$0xff]  }
  0xd2   : > { %4726 = vmatmul.mubr.bf16.gmra.mrb[60].mxu0 %v9529_v7  ;;  %8364 = vmatprep.subr.bf16.mxu1 %v9603_v13  ;;  %v9604_v7 = vld [vmem:[%s10385_s13 + $0x95c] ss:$108 sps:$4 sm:$0xff]  }
  0xd3   : > { %4733 = vmatprep.mubr.bf16.mxu0 %v9534_v9  ;;  %8265 = vmatpush3.bf16.msra.mxu0 %v9548_v10  ;;  %v9608_v9 = vld [vmem:[%s10385_s13 + $0x964] ss:$108 sps:$4 sm:$0xff]   ;;  %v9616_v13 = vld [vmem:[%s10385_s13 + $0xa3c] ss:$108 sps:$4 sm:$0xff]  }
  0xd4   : > { %8266 = vmatprep.subr.bf16.mxu0 %v9561_v12  ;;  %4870 = vmatmul.mubr.bf16.gmra.mrb[60].mxu1 %v9532_v14  ;;  %v9607_v10 = vld [vmem:[%s10385_s13 + $0x958] ss:$108 sps:$4 sm:$0xff]   ;;  %v9610_v12 = vld [vmem:[%s10385_s13 + $0x960] ss:$108 sps:$4 sm:$0xff]   ;;  %v9615_v14 = vld [vmem:[%s10385_s13 + $0xa30] ss:$108 sps:$4 sm:$0xff]  }
  0xd5   : > { %4877 = vmatprep.mubr.bf16.mxu1 %v9538_v15  ;;  %8365 = vmatpush3.bf16.msra.mxu1 %v9606_v17  ;;  %v740_v15 = vld [vmem:[%s10385_s13 + $0xb08] sm:$0xff]  ;;  %v741_v17 = vld [vmem:[%s10385_s13 + $0xb10] sm:$0xff] }
  0xd6   : > { %8366 = vmatprep.subr.bf16.mxu1 %v9611_v18  ;;  %v9618_v18 = vld [vmem:[%s10385_s13 + $0xa38] ss:$108 sps:$4 sm:$0xff]  }
  0xd7   : > { %8267 = vmatpush3.bf16.msra.mxu0 %v9562_v16  ;;  %v7359_v16 = vcombine.high %v740_v15, %v740_v15 }
  0xd8   : > { %8268 = vmatprep.subr.bf16.mxu0 %v9572_v20  ;;  %v7361_v20 = vcombine.high %v741_v17, %v741_v17 }
  0xd9   : > { %8367 = vmatpush3.bf16.msra.mxu1 %v9614_v22 }
  0xda   : > { %4734 = vmatmul.mubr.bf16.gmra.mrb[64].mxu0 %v9537_v19  ;;  %8368 = vmatprep.subr.bf16.mxu1 %v9620_v26  ;;  %v7656_v19 = vld [vmem:[%s10800_s8] sm:$0xff]  }
  0xdb   : > { %4741 = vmatprep.mubr.bf16.mxu0 %v9541_v21  ;;  %8269 = vmatpush3.bf16.msra.mxu0 %v9575_v24  ;;  %v7657_v22 = vunpack.c.l.bf16 %v7656_v19  ;;  %v7358_v24 = vcombine.low %v740_v15, %v740_v15 }
  0xdc   : > { %8270 = vmatprep.subr.bf16.mxu0 %v9585_v25  ;;  %4878 = vmatmul.mubr.bf16.gmra.mrb[64].mxu1 %v9540_v23  ;;  %v9634_v25 = vld [vmem:[%s10385_s13 + $0x24] ss:$108 sps:$4 sm:$0xff]  }
  0xdd   : > { %4885 = vmatprep.mubr.bf16.mxu1 %v9544_v27  ;;  %8369 = vmatpush3.bf16.msra.mxu1 %v9622_v29 }
  0xde   : > { %8370 = vmatprep.subr.bf16.mxu1 %v9623_v30 }
  0xdf   : > { %8271 = vmatpush3.bf16.msra.mxu0 %v9588_v28  ;;  %v7658_v28 = vunpack.c.h.bf16 %v7656_v19 }
  0xe0   : > { %8272 = vmatprep.subr.bf16.mxu0 %v9601_v32 }
  0xe1   : > { %8371 = vmatpush3.bf16.msra.mxu1 %v9625_v35  ;;  %v7824_v35 = vld [vmem:[%s10800_s8 + $0x8] sm:$0xff]  }
  0xe2   : > { %4742 = vmatmul.mubr.bf16.gmra.mrb[68].mxu0 %v9543_v31  ;;  %8372 = vmatprep.subr.bf16.mxu1 %v9629_v38  ;;  %v9639_v38 = vld [vmem:[%s10385_s13 + $0x2c] ss:$108 sps:$4 sm:$0xff]  }
  0xe3   : > { %4749 = vmatprep.mubr.bf16.mxu0 %v9549_v33  ;;  %8273 = vmatpush3.bf16.msra.mxu0 %v9602_v34  ;;  %v7360_v34 = vcombine.low %v741_v17, %v741_v17 }
  0xe4   : > { %8274 = vmatprep.subr.bf16.mxu0 %v9619_v37  ;;  %4886 = vmatmul.mubr.bf16.gmra.mrb[68].mxu1 %v9546_v36 }
  0xe5   : > { %4893 = vmatprep.mubr.bf16.mxu1 %v9552_v39  ;;  %8373 = vmatpush3.bf16.msra.mxu1 %v9630_v41 }
  0xe6   : > { %8374 = vmatprep.subr.bf16.mxu1 %v9631_v42 }
  0xe7   : > { %8275 = vmatpush3.bf16.msra.mxu0 %v9621_v40 }
  0xe8   : > { %8460 = vmatprep.subr.bf16.mxu0 %v9636_v43  ;;  %v9632_v43 = vld [vmem:[%s10385_s13 + $0x20] ss:$108 sps:$4 sm:$0xff]  }
  0xe9   : > { %8375 = vmatpush3.bf16.msra.mxu1 %v9635_v45  ;;  %v7661_v45 = vunpack.c.l.bf16 %v7824_v35 }
  0xea   : > { %4750 = vmatmul.mubr.bf16.gmra.mrb[72].mxu0 %v9551_v44  ;;  %8560 = vmatprep.subr.bf16.mxu1 %v9691_v59 }
  0xeb   : > { %4757 = vmatprep.mubr.bf16.mxu0 %v9555_v46  ;;  %v9640_v46 = vld [vmem:[%s12105_s1 + $0x300] sm:$0xff]  }
  0xec   : > { %4894 = vmatmul.mubr.bf16.gmra.mrb[72].mxu1 %v9554_v47  ;;  %v9641_v47 = vld [vmem:[%s10385_s13 + $0xfc] ss:$108 sps:$4 sm:$0xff]  }
  0xed   : > { %4901 = vmatprep.mubr.bf16.mxu1 %v9558_v48 }
  0xf2   : > { %4758 = vmatmul.mubr.bf16.gmra.mrb[76].mxu0 %v9557_v49 }
  0xf3   : > { %4765 = vmatprep.mubr.bf16.mxu0 %v9563_v50 }
  0xf4   : > { %4902 = vmatmul.mubr.bf16.gmra.mrb[76].mxu1 %v9560_v51 }
  0xf5   : > { %4909 = vmatprep.mubr.bf16.mxu1 %v9566_v52  ;;  %v7662_v52 = vunpack.c.h.bf16 %v7824_v35 }
  0xfa   : > { %4766 = vmatmul.mubr.bf16.gmra.mrb[80].mxu0 %v9565_v53  ;;  %v9637_v53 = vld [vmem:[%s10385_s13 + $0x28] ss:$108 sps:$4 sm:$0xff]  }
  0xfb   : > { %4773 = vmatprep.mubr.bf16.mxu0 %v9569_v54 }
  0xfc   : > { %4910 = vmatmul.mubr.bf16.gmra.mrb[80].mxu1 %v9568_v55 }
  0xfd   : > { %4917 = vmatprep.mubr.bf16.mxu1 %v9573_v56  ;;  %v7825_v56 = vld [vmem:[%s10800_s8 + $0x10] sm:$0xff]  }
  0xfe   : > { %v7666_v19 = vunpack.c.h.bf16 %v7825_v56 }
 0x102   : > { %4774 = vmatmul.mubr.bf16.gmra.mrb[84].mxu0 %v9571_v57  ;;  %v9644_v57 = vld [vmem:[%s10385_s13 + $0x104] ss:$108 sps:$4 sm:$0xff]  }
 0x103   : > { %4781 = vmatprep.mubr.bf16.mxu0 %v9579_v58  ;;  %v9647_v58 = vld [vmem:[%s12105_s1 + $0x348] sm:$0xff]  }
 0x104   : > { %4918 = vmatmul.mubr.bf16.gmra.mrb[84].mxu1 %v9576_v60 }
 0x105   : > { %4925 = vmatprep.mubr.bf16.mxu1 %v9582_v61 }
 0x10a   : > { %4782 = vmatmul.mubr.bf16.gmra.mrb[88].mxu0 %v9581_v62  ;;  %v9650_v62 = vld [vmem:[%s12105_s1 + $0x308] sm:$0xff]  }
 0x10b   : > { %4789 = vmatprep.mubr.bf16.mxu0 %v9586_v63 }
 0x10c   : > { %4926 = vmatmul.mubr.bf16.gmra.mrb[88].mxu1 %v9584_v0 }
 0x10d   : > { %4933 = vmatprep.mubr.bf16.mxu1 %v9591_v1  ;;  %v9692_v1 = vld [vmem:[%s12105_s1 + $0x380] sm:$0xff]  }
 0x112   : > { %4790 = vmatmul.mubr.bf16.gmra.mrb[92].mxu0 %v9589_v2 }
 0x113   : > { %4797 = vmatprep.mubr.bf16.mxu0 %v9595_v3 }
 0x114   : > { %4934 = vmatmul.mubr.bf16.gmra.mrb[92].mxu1 %v9594_v4  ;;  %v9704_v4 = vld [vmem:[%s12105_s1 + $0x3c8] sm:$0xff]  }
 0x115   : > { %4941 = vmatprep.mubr.bf16.mxu1 %v9598_v5 }
 0x11a   : > { %4798 = vmatmul.mubr.bf16.gmra.mrb[96].mxu0 %v9597_v6 }
 0x11b   : > { %4805 = vmatprep.mubr.bf16.mxu0 %v9604_v7  ;;  %v9643_v7 = vld [vmem:[%s10385_s13 + $0xf8] ss:$108 sps:$4 sm:$0xff]  }
 0x11c   : > { %4942 = vmatmul.mubr.bf16.gmra.mrb[96].mxu1 %v9600_v8  ;;  %v9661_v8 = vld [vmem:[%s12105_s1 + $0x350] sm:$0xff]  }
 0x11d   : > { %4949 = vmatprep.mubr.bf16.mxu1 %v9608_v9  ;;  %v9707_v9 = vld [vmem:[%s12105_s1 + $0x388] sm:$0xff]  }
 0x122   : > { %4806 = vmatmul.mubr.bf16.gmra.mrb[100].mxu0 %v9607_v10 }
 0x123   : > { %4813 = vmatprep.mubr.bf16.mxu0 %v9612_v11  ;;  %v7665_v11 = vunpack.c.l.bf16 %v7825_v56  ;;  %v9734_v56 = vld [vmem:[%s12105_s1 + $0x3e0] sm:$0xff]  }
 0x124   : > { %4950 = vmatmul.mubr.bf16.gmra.mrb[100].mxu1 %v9610_v12  ;;  %v9648_v12 = vld [vmem:[%s10385_s13 + $0x1d4] ss:$108 sps:$4 sm:$0xff]  }
 0x125   : > { %4957 = vmatprep.mubr.bf16.mxu1 %v9616_v13  ;;  %v9662_v13 = vld [vmem:[%s12105_s1 + $0x310] sm:$0xff]  }
 0x12a   : > { %4814 = vmatmul.mubr.bf16.gmra.mrb[104].mxu0 %v9615_v14 }
 0x12b   : > { %4821 = vmatprep.mubr.bf16.mxu0 %v7359_v16  ;;  %v9675_v16 = vld [vmem:[%s12105_s1 + $0x358] sm:$0xff]  }
 0x12c   : > { %4958 = vmatmul.mubr.bf16.gmra.mrb[104].mxu1 %v9618_v18 }
 0x12d   : > { %v7876_v21 = vpop.f32.mrb[0].mxu0  ;;  %4965 = vmatprep.mubr.bf16.mxu1 %v7361_v20  ;;  %v9646_v20 = vld [vmem:[%s10385_s13 + $0x100] ss:$108 sps:$4 sm:$0xff]  }
 0x12e   : > { %v7877_v23 = vpop.f32.mrb[1].mxu0 }
 0x12f   : > { %v7878_v26 = vadd.f32 %v7877_v23, %v7876_v21  ;;  %v7879_v27 = vpop.f32.mrb[2].mxu0  ;;  %v7976_v29 = vpop.f32.mrb[0].mxu1  ;;  %v7826_v23 = vld [vmem:[%s10800_s8 + $0x18] sm:$0xff]  }
 0x130   : > { %v7880_v30 = vpop.f32.mrb[3].mxu0  ;;  %v7977_v33 = vpop.f32.mrb[1].mxu1 }
 0x131   : > { %v4432_v31 = vadd.f32 %v7878_v26, %v7657_v22  ;;  %v7881_v32 = vadd.f32 %v7880_v30, %v7879_v27  ;;  %v7978_v36 = vadd.f32 %v7977_v33, %v7976_v29  ;;  %v7979_v37 = vpop.f32.mrb[2].mxu1  ;;  %v9676_v29 = vld [vmem:[%s12105_s1 + $0x318] sm:$0xff]   ;;  %v9720_v33 = vld [vmem:[%s12105_s1 + $0x390] sm:$0xff]  }
 0x132   : > { %4822 = vmatmul.mubr.bf16.gmra.mrb[108].mxu0 %v7358_v24  ;;  %v7980_v40 = vpop.f32.mrb[3].mxu1  ;;  %v9652_v24 = vld [vmem:[%s10385_s13 + $0x1dc] ss:$108 sps:$4 sm:$0xff]  }
 0x133   : > { %v4435_v39 = vadd.f32 %v7881_v32, %v7658_v28  ;;  %5005 = vmatprep.mubr.bf16.mxu0 %v9634_v25  ;;  %v10808_v41 = vadd.f32 %v7978_v36, %v4432_v31  ;;  %v7981_v42 = vadd.f32 %v7980_v40, %v7979_v37  ;;  %v9717_v25 = vld [vmem:[%s12105_s1 + $0x3d0] sm:$0xff]   ;;  %v9686_v32 = vld [vmem:[%s12105_s1 + $0x360] sm:$0xff]   ;;  %v9725_v36 = vld [vmem:[%s12105_s1 + $0x3d8] sm:$0xff]  }
 0x134   : > { %4966 = vmatmul.mubr.bf16.gmra.mrb[108].mxu1 %v7360_v34  ;;  %v9728_v40 = vld [vmem:[%s12105_s1 + $0x398] sm:$0xff]  }
 0x135   : > { %v7882_v44 = vpop.f32.mrb[4].mxu0  ;;  %v10815_v48 = vadd.f32 %v7981_v42, %v4435_v39  ;;  %5149 = vmatprep.mubr.bf16.mxu1 %v9639_v38  ;;  %v9651_v39 = vld [vmem:[%s10385_s13 + $0x1d0] ss:$108 sps:$4 sm:$0xff]  }
 0x136   : > { %v7883_v49 = vpop.f32.mrb[5].mxu0 }
 0x137   : > { %v7884_v50 = vadd.f32 %v7883_v49, %v7882_v44  ;;  %v7885_v51 = vpop.f32.mrb[6].mxu0  ;;  %v7982_v54 = vpop.f32.mrb[4].mxu1  ;;  %v9655_v44 = vld [vmem:[%s10385_s13 + $0x2ac] ss:$108 sps:$4 sm:$0xff]  }
 0x138   : > { %v7886_v55 = vpop.f32.mrb[7].mxu0  ;;  %v7983_v61 = vpop.f32.mrb[5].mxu1 }
 0x139   : > { %v4440_v59 = vadd.f32 %v7884_v50, %v7661_v45  ;;  %v7887_v60 = vadd.f32 %v7886_v55, %v7885_v51  ;;  %v7984_v63 = vadd.f32 %v7983_v61, %v7982_v54  ;;  %v7985_v0 = vpop.f32.mrb[6].mxu1  ;;  %v9689_v45 = vld [vmem:[%s12105_s1 + $0x320] sm:$0xff]   ;;  %v7670_v51 = vunpack.c.h.bf16 %v7826_v23  ;;  %v9699_v55 = vld [vmem:[%s12105_s1 + $0x368] sm:$0xff]  }
 0x13a   : > { %5006 = vmatmul.mubr.bf16.vlgmr.msra.gmra.mrb[112].mxu0 %v9632_v43  ;;  %v7986_v3 = vpop.f32.mrb[7].mxu1  ;;  %v7669_v43 = vunpack.c.l.bf16 %v7826_v23  ;;  %v9658_v61 = vld [vmem:[%s10385_s13 + $0x2b4] ss:$108 sps:$4 sm:$0xff]  }
 0x13b   : > { %v4443_v2 = vadd.f32 %v7887_v60, %v7662_v52  ;;  %8461 = vmatpush3.bf16.msra.mxu0 %v9640_v46  ;;  %5013 = vmatprep.mubr.bf16.mxu0 %v9641_v47  ;;  %v10832_v5 = vadd.f32 %v7984_v63, %v4440_v59  ;;  %v7987_v6 = vadd.f32 %v7986_v3, %v7985_v0  ;;  %v9654_v52 = vld [vmem:[%s10385_s13 + $0x1d8] ss:$108 sps:$4 sm:$0xff]  }
 0x13c   : > { %8462 = vmatprep.subr.bf16.mxu0 %v9647_v58  ;;  %5150 = vmatmul.mubr.bf16.vlgmr.msra.gmra.mrb[112].mxu1 %v9637_v53  ;;  %v7827_v60 = vld [vmem:[%s10800_s8 + $0x20] sm:$0xff]  }
 0x13d   : > { %v7888_v10 = vpop.f32.mrb[8].mxu0  ;;  %v10845_v14 = vadd.f32 %v7987_v6, %v4443_v2  ;;  %5157 = vmatprep.mubr.bf16.mxu1 %v9644_v57  ;;  %8561 = vmatpush3.bf16.msra.mxu1 %v9692_v1  ;;  %v9715_v1 = vld [vmem:[%s12105_s1 + $0x370] sm:$0xff]   ;;  %v9736_v2 = vld [vmem:[%s12105_s1 + $0x3a0] sm:$0xff]   ;;  %v9737_v6 = vld [vmem:[%s12105_s1 + $0x3e8] sm:$0xff]  }
 0x13e   : > { %v7889_v15 = vpop.f32.mrb[9].mxu0  ;;  %8562 = vmatprep.subr.bf16.mxu1 %v9704_v4 }
 0x13f   : > { %v7890_v17 = vadd.f32 %v7889_v15, %v7888_v10  ;;  %v7891_v18 = vpop.f32.mrb[10].mxu0  ;;  %8463 = vmatpush3.bf16.msra.mxu0 %v9650_v62  ;;  %v7988_v21 = vpop.f32.mrb[8].mxu1  ;;  %v9702_v62 = vld [vmem:[%s12105_s1 + $0x328] sm:$0xff]   ;;  %v9716_v15 = vld [vmem:[%s12105_s1 + $0x330] sm:$0xff]  }
 0x140   : > { %v7892_v22 = vpop.f32.mrb[11].mxu0  ;;  %8464 = vmatprep.subr.bf16.mxu0 %v9661_v8  ;;  %v7989_v28 = vpop.f32.mrb[9].mxu1  ;;  %v9739_v10 = vld [vmem:[%s12105_s1 + $0x3a8] sm:$0xff]  }
 0x141   : > { %v4448_v26 = vadd.f32 %v7890_v17, %v7665_v11  ;;  %v7893_v27 = vadd.f32 %v7892_v22, %v7891_v18  ;;  %v7990_v30 = vadd.f32 %v7989_v28, %v7988_v21  ;;  %v7991_v31 = vpop.f32.mrb[10].mxu1  ;;  %8563 = vmatpush3.bf16.msra.mxu1 %v9707_v9  ;;  %v9657_v9 = vld [vmem:[%s10385_s13 + $0x2a8] ss:$108 sps:$4 sm:$0xff]   ;;  %v9660_v21 = vld [vmem:[%s10385_s13 + $0x2b0] ss:$108 sps:$4 sm:$0xff]  }
 0x142   : > { %5014 = vmatmul.mubr.bf16.gmra.mrb[116].mxu0 %v9643_v7  ;;  %v7992_v35 = vpop.f32.mrb[11].mxu1  ;;  %8564 = vmatprep.subr.bf16.mxu1 %v9717_v25  ;;  %v9666_v25 = vld [vmem:[%s10385_s13 + $0x38c] ss:$108 sps:$4 sm:$0xff]  }
 0x143   : > { %v4451_v34 = vadd.f32 %v7893_v27, %v7666_v19  ;;  %5021 = vmatprep.mubr.bf16.mxu0 %v9648_v12  ;;  %8465 = vmatpush3.bf16.msra.mxu0 %v9662_v13  ;;  %v10868_v37 = vadd.f32 %v7990_v30, %v4448_v26  ;;  %v7993_v38 = vadd.f32 %v7992_v35, %v7991_v31  ;;  %v7673_v12 = vunpack.c.l.bf16 %v7827_v60  ;;  %v9663_v13 = vld [vmem:[%s10385_s13 + $0x384] ss:$108 sps:$4 sm:$0xff]   ;;  %v9733_v26 = vld [vmem:[%s12105_s1 + $0x378] sm:$0xff]  }
 0x144   : > { %8466 = vmatprep.subr.bf16.mxu0 %v9675_v16  ;;  %5158 = vmatmul.mubr.bf16.gmra.mrb[116].mxu1 %v9646_v20  ;;  %v7674_v20 = vunpack.c.h.bf16 %v7827_v60  ;;  %v9743_v27 = vld [vmem:[%s12105_s1 + $0x3f0] sm:$0xff]   ;;  %v9735_v31 = vld [vmem:[%s12105_s1 + $0x338] sm:$0xff]  }
 0x145   : > { %v7894_v42 = vpop.f32.mrb[12].mxu0  ;;  %v10878_v46 = vadd.f32 %v7993_v38, %v4451_v34  ;;  %5165 = vmatprep.mubr.bf16.mxu1 %v9652_v24  ;;  %8565 = vmatpush3.bf16.msra.mxu1 %v9720_v33  ;;  %v7828_v24 = vld [vmem:[%s10800_s8 + $0x28] sm:$0xff]   ;;  %v9745_v35 = vld [vmem:[%s12105_s1 + $0x3f8] sm:$0xff]  }
 0x146   : > { %v7895_v47 = vpop.f32.mrb[13].mxu0  ;;  %8566 = vmatprep.subr.bf16.mxu1 %v9725_v36 }
 0x147   : > { %v7896_v49 = vadd.f32 %v7895_v47, %v7894_v42  ;;  %v7897_v50 = vpop.f32.mrb[14].mxu0  ;;  %8467 = vmatpush3.bf16.msra.mxu0 %v9676_v29  ;;  %v7994_v53 = vpop.f32.mrb[12].mxu1  ;;  %v9669_v47 = vld [vmem:[%s10385_s13 + $0x45c] ss:$108 sps:$4 sm:$0xff]  }
 0x148   : > { %v7898_v54 = vpop.f32.mrb[15].mxu0  ;;  %8468 = vmatprep.subr.bf16.mxu0 %v9686_v32  ;;  %v7995_v59 = vpop.f32.mrb[13].mxu1  ;;  %v9744_v32 = vld [vmem:[%s12105_s1 + $0x3b0] sm:$0xff]  }
 0x149   : > { %v4456_v57 = vadd.f32 %v7896_v49, %v7669_v43  ;;  %v7899_v58 = vadd.f32 %v7898_v54, %v7897_v50  ;;  %v7996_v63 = vadd.f32 %v7995_v59, %v7994_v53  ;;  %v7997_v0 = vpop.f32.mrb[14].mxu1  ;;  %8567 = vmatpush3.bf16.msra.mxu1 %v9728_v40  ;;  %v9665_v43 = vld [vmem:[%s10385_s13 + $0x380] ss:$108 sps:$4 sm:$0xff]   ;;  %v9749_v49 = vld [vmem:[%s12105_s1 + $0x3b8] sm:$0xff]   ;;  %v7678_v54 = vunpack.c.h.bf16 %v7828_v24 }
 0x14a   : > { %5022 = vmatmul.mubr.bf16.gmra.mrb[120].mxu0 %v9651_v39  ;;  %v7998_v4 = vpop.f32.mrb[15].mxu1  ;;  %8568 = vmatprep.subr.bf16.mxu1 %v9734_v56  ;;  %v9750_v39 = vld [vmem:[%s12105_s1 + $0x440] sm:$0xff]  }
 0x14b   : > { %v4459_v3 = vadd.f32 %v7899_v58, %v7670_v51  ;;  %5029 = vmatprep.mubr.bf16.mxu0 %v9655_v44  ;;  %8469 = vmatpush3.bf16.msra.mxu0 %v9689_v45  ;;  %v10901_v7 = vadd.f32 %v7996_v63, %v4456_v57  ;;  %v7999_v8 = vadd.f32 %v7998_v4, %v7997_v0  ;;  %v7677_v45 = vunpack.c.l.bf16 %v7828_v24  ;;  %v9668_v57 = vld [vmem:[%s10385_s13 + $0x388] ss:$108 sps:$4 sm:$0xff]   ;;  %v9672_v0 = vld [vmem:[%s10385_s13 + $0x464] ss:$108 sps:$4 sm:$0xff]  }
 0x14c   : > { %8470 = vmatprep.subr.bf16.mxu0 %v9699_v55  ;;  %5166 = vmatmul.mubr.bf16.gmra.mrb[120].mxu1 %v9654_v52  ;;  %v7830_v24 = vld [vmem:[%s10800_s8 + $0x38] sm:$0xff]  }
 0x14d   : > { %v7900_v11 = vpop.f32.mrb[16].mxu0  ;;  %v10911_v16 = vadd.f32 %v7999_v8, %v4459_v3  ;;  %5173 = vmatprep.mubr.bf16.mxu1 %v9658_v61  ;;  %8569 = vmatpush3.bf16.msra.mxu1 %v9736_v2  ;;  %v7829_v61 = vld [vmem:[%s10800_s8 + $0x30] sm:$0xff]  }
 0x14e   : > { %v7901_v17 = vpop.f32.mrb[17].mxu0  ;;  %8570 = vmatprep.subr.bf16.mxu1 %v9737_v6  ;;  %v9671_v6 = vld [vmem:[%s10385_s13 + $0x458] ss:$108 sps:$4 sm:$0xff]  }
 0x14f   : > { %v7902_v18 = vadd.f32 %v7901_v17, %v7900_v11  ;;  %v7903_v19 = vpop.f32.mrb[18].mxu0  ;;  %8471 = vmatpush3.bf16.msra.mxu0 %v9702_v62  ;;  %v8000_v22 = vpop.f32.mrb[16].mxu1  ;;  %v7682_v17 = vunpack.c.h.bf16 %v7829_v61 }
 0x150   : > { %v7904_v23 = vpop.f32.mrb[19].mxu0  ;;  %8472 = vmatprep.subr.bf16.mxu0 %v9715_v1  ;;  %v8001_v30 = vpop.f32.mrb[17].mxu1 }
 0x151   : > { %v4464_v28 = vadd.f32 %v7902_v18, %v7673_v12  ;;  %v7905_v29 = vadd.f32 %v7904_v23, %v7903_v19  ;;  %v8002_v33 = vadd.f32 %v8001_v30, %v8000_v22  ;;  %v8003_v34 = vpop.f32.mrb[18].mxu1  ;;  %8571 = vmatpush3.bf16.msra.mxu1 %v9739_v10  ;;  %v9677_v10 = vld [vmem:[%s10385_s13 + $0x534] ss:$108 sps:$4 sm:$0xff]  }
 0x152   : > { %5030 = vmatmul.mubr.bf16.gmra.mrb[124].mxu0 %v9657_v9  ;;  %v8004_v38 = vpop.f32.mrb[19].mxu1  ;;  %8572 = vmatprep.subr.bf16.mxu1 %v9743_v27  ;;  %v7681_v9 = vunpack.c.l.bf16 %v7829_v61  ;;  %v9680_v27 = vld [vmem:[%s10385_s13 + $0x53c] ss:$108 sps:$4 sm:$0xff]  }
 0x153   : > { %v4467_v36 = vadd.f32 %v7905_v29, %v7674_v20  ;;  %5037 = vmatprep.mubr.bf16.mxu0 %v9663_v13  ;;  %8473 = vmatpush3.bf16.msra.mxu0 %v9716_v15  ;;  %v10934_v40 = vadd.f32 %v8002_v33, %v4464_v28  ;;  %v8005_v42 = vadd.f32 %v8004_v38, %v8003_v34  ;;  %v9674_v20 = vld [vmem:[%s10385_s13 + $0x460] ss:$108 sps:$4 sm:$0xff]   ;;  %v7685_v34 = vunpack.c.l.bf16 %v7830_v24 }
 0x154   : > { %8474 = vmatprep.subr.bf16.mxu0 %v9733_v26  ;;  %5174 = vmatmul.mubr.bf16.gmra.mrb[124].mxu1 %v9660_v21 }
 0x155   : > { %v7906_v44 = vpop.f32.mrb[20].mxu0  ;;  %v10941_v50 = vadd.f32 %v8005_v42, %v4467_v36  ;;  %5181 = vmatprep.mubr.bf16.mxu1 %v9666_v25  ;;  %8573 = vmatpush3.bf16.msra.mxu1 %v9744_v32  ;;  %v9679_v32 = vld [vmem:[%s10385_s13 + $0x530] ss:$108 sps:$4 sm:$0xff]  }
 0x156   : > { %v7907_v51 = vpop.f32.mrb[21].mxu0  ;;  %8574 = vmatprep.subr.bf16.mxu1 %v9745_v35  ;;  %v9683_v35 = vld [vmem:[%s10385_s13 + $0x60c] ss:$108 sps:$4 sm:$0xff]   ;;  %v9805_v36 = vld [vmem:[%s12105_s1 + $0x4c0] sm:$0xff]  }
 0x157   : > { %v7908_v52 = vadd.f32 %v7907_v51, %v7906_v44  ;;  %v7909_v53 = vpop.f32.mrb[22].mxu0  ;;  %8475 = vmatpush3.bf16.msra.mxu0 %v9735_v31  ;;  %v8006_v55 = vpop.f32.mrb[20].mxu1  ;;  %v7686_v44 = vunpack.c.h.bf16 %v7830_v24 }
 0x158   : > { %v7910_v56 = vpop.f32.mrb[23].mxu0  ;;  %8660 = vmatprep.subr.bf16.mxu0 %v9750_v39  ;;  %v8007_v60 = vpop.f32.mrb[21].mxu1 }
 0x159   : > { %v4472_v58 = vadd.f32 %v7908_v52, %v7677_v45  ;;  %v7911_v59 = vadd.f32 %v7910_v56, %v7909_v53  ;;  %v8008_v62 = vadd.f32 %v8007_v60, %v8006_v55  ;;  %v8009_v63 = vpop.f32.mrb[22].mxu1  ;;  %8575 = vmatpush3.bf16.msra.mxu1 %v9749_v49  ;;  %v9682_v49 = vld [vmem:[%s10385_s13 + $0x538] ss:$108 sps:$4 sm:$0xff]  }
 0x15a   : > { %5038 = vmatmul.mubr.bf16.gmra.mrb[128].mxu0 %v9665_v43  ;;  %v8010_v2 = vpop.f32.mrb[23].mxu1  ;;  %8760 = vmatprep.subr.bf16.mxu1 %v9805_v36 }
 0x15b   : > { %v4475_v1 = vadd.f32 %v7911_v59, %v7678_v54  ;;  %5045 = vmatprep.mubr.bf16.mxu0 %v9669_v47  ;;  %v10946_v3 = vadd.f32 %v8008_v62, %v4472_v58  ;;  %v8011_v4 = vadd.f32 %v8010_v2, %v8009_v63  ;;  %v7831_v54 = vld [vmem:[%s10800_s8 + $0x40] sm:$0xff]   ;;  %v9685_v62 = vld [vmem:[%s10385_s13 + $0x608] ss:$108 sps:$4 sm:$0xff]  }
 0x15c   : > { %5182 = vmatmul.mubr.bf16.gmra.mrb[128].mxu1 %v9668_v57  ;;  %v9687_v57 = vld [vmem:[%s10385_s13 + $0x614] ss:$108 sps:$4 sm:$0xff]  }
 0x15d   : > { %v7912_v8 = vpop.f32.mrb[24].mxu0  ;;  %v10950_v11 = vadd.f32 %v8011_v4, %v4475_v1  ;;  %5189 = vmatprep.mubr.bf16.mxu1 %v9672_v0  ;;  %v7689_v0 = vunpack.c.l.bf16 %v7831_v54  ;;  %v9693_v1 = vld [vmem:[%s10385_s13 + $0x6e4] ss:$108 sps:$4 sm:$0xff]  }
 0x15e   : > { %v7913_v12 = vpop.f32.mrb[25].mxu0 }
 0x15f   : > { %v7914_v13 = vadd.f32 %v7913_v12, %v7912_v8  ;;  %v7915_v15 = vpop.f32.mrb[26].mxu0  ;;  %v8012_v18 = vpop.f32.mrb[24].mxu1 }
 0x160   : > { %v7916_v19 = vpop.f32.mrb[27].mxu0  ;;  %v8013_v23 = vpop.f32.mrb[25].mxu1 }
 0x161   : > { %v4480_v21 = vadd.f32 %v7914_v13, %v7681_v9  ;;  %v7917_v22 = vadd.f32 %v7916_v19, %v7915_v15  ;;  %v8014_v25 = vadd.f32 %v8013_v23, %v8012_v18  ;;  %v8015_v26 = vpop.f32.mrb[26].mxu1  ;;  %v7690_v9 = vunpack.c.h.bf16 %v7831_v54  ;;  %v9690_v13 = vld [vmem:[%s10385_s13 + $0x610] ss:$108 sps:$4 sm:$0xff]   ;;  %v7832_v19 = vld [vmem:[%s10800_s8 + $0x48] sm:$0xff]  }
 0x162   : > { %5046 = vmatmul.mubr.bf16.gmra.mrb[132].mxu0 %v9671_v6  ;;  %v8016_v29 = vpop.f32.mrb[27].mxu1  ;;  %v7694_v36 = vunpack.c.h.bf16 %v7832_v19 }
 0x163   : > { %v4483_v28 = vadd.f32 %v7917_v22, %v7682_v17  ;;  %5053 = vmatprep.mubr.bf16.mxu0 %v9677_v10  ;;  %v10955_v30 = vadd.f32 %v8014_v25, %v4480_v21  ;;  %v8017_v31 = vadd.f32 %v8016_v29, %v8015_v26  ;;  %v9696_v22 = vld [vmem:[%s10385_s13 + $0x6ec] ss:$108 sps:$4 sm:$0xff]   ;;  %v7693_v29 = vunpack.c.l.bf16 %v7832_v19 }
 0x164   : > { %5190 = vmatmul.mubr.bf16.gmra.mrb[132].mxu1 %v9674_v20 }
 0x165   : > { %v7918_v33 = vpop.f32.mrb[28].mxu0  ;;  %v10962_v38 = vadd.f32 %v8017_v31, %v4483_v28  ;;  %5197 = vmatprep.mubr.bf16.mxu1 %v9680_v27  ;;  %v9695_v27 = vld [vmem:[%s10385_s13 + $0x6e0] ss:$108 sps:$4 sm:$0xff]   ;;  %v9700_v31 = vld [vmem:[%s10385_s13 + $0x7bc] ss:$108 sps:$4 sm:$0xff]  }
 0x166   : > { %v7919_v39 = vpop.f32.mrb[29].mxu0 }
 0x167   : > { %v7920_v42 = vadd.f32 %v7919_v39, %v7918_v33  ;;  %v7921_v43 = vpop.f32.mrb[30].mxu0  ;;  %v8018_v45 = vpop.f32.mrb[28].mxu1 }
 0x168   : > { %v7922_v47 = vpop.f32.mrb[31].mxu0  ;;  %v8019_v53 = vpop.f32.mrb[29].mxu1 }
 0x169   : > { %v4488_v51 = vadd.f32 %v7920_v42, %v7685_v34  ;;  %v7923_v52 = vadd.f32 %v7922_v47, %v7921_v43  ;;  %v8020_v55 = vadd.f32 %v8019_v53, %v8018_v45  ;;  %v8021_v56 = vpop.f32.mrb[30].mxu1  ;;  %v9698_v43 = vld [vmem:[%s10385_s13 + $0x6e8] ss:$108 sps:$4 sm:$0xff]   ;;  %v9705_v53 = vld [vmem:[%s10385_s13 + $0x7c4] ss:$108 sps:$4 sm:$0xff]  }
 0x16a   : > { %5054 = vmatmul.mubr.bf16.gmra.mrb[136].mxu0 %v9679_v32  ;;  %v8022_v59 = vpop.f32.mrb[31].mxu1 }
 0x16b   : > { %v4491_v58 = vadd.f32 %v7923_v52, %v7686_v44  ;;  %5061 = vmatprep.mubr.bf16.mxu0 %v9683_v35  ;;  %v10967_v60 = vadd.f32 %v8020_v55, %v4488_v51  ;;  %v8023_v61 = vadd.f32 %v8022_v59, %v8021_v56 }
 0x16c   : > { %5198 = vmatmul.mubr.bf16.gmra.mrb[136].mxu1 %v9682_v49  ;;  %v7833_v49 = vld [vmem:[%s10800_s8 + $0x50] sm:$0xff]  }
 0x16d   : > { %v7924_v63 = vpop.f32.mrb[32].mxu0  ;;  %v10971_v2 = vadd.f32 %v8023_v61, %v4491_v58  ;;  %5205 = vmatprep.mubr.bf16.mxu1 %v9687_v57  ;;  %v9703_v58 = vld [vmem:[%s10385_s13 + $0x7b8] ss:$108 sps:$4 sm:$0xff]   ;;  %v7697_v61 = vunpack.c.l.bf16 %v7833_v49 }
 0x16e   : > { %v7925_v4 = vpop.f32.mrb[33].mxu0 }
 0x16f   : > { %v7926_v6 = vadd.f32 %v7925_v4, %v7924_v63  ;;  %v7927_v8 = vpop.f32.mrb[34].mxu0  ;;  %v8024_v10 = vpop.f32.mrb[32].mxu1 }
 0x170   : > { %v7928_v12 = vpop.f32.mrb[35].mxu0  ;;  %v8025_v18 = vpop.f32.mrb[33].mxu1 }
 0x171   : > { %v4496_v15 = vadd.f32 %v7926_v6, %v7689_v0  ;;  %v7929_v17 = vadd.f32 %v7928_v12, %v7927_v8  ;;  %v8026_v20 = vadd.f32 %v8025_v18, %v8024_v10  ;;  %v8027_v21 = vpop.f32.mrb[34].mxu1  ;;  %v7698_v6 = vunpack.c.h.bf16 %v7833_v49  ;;  %v7835_v49 = vld [vmem:[%s10800_s8 + $0x60] sm:$0xff]  }
 0x172   : > { %5062 = vmatmul.mubr.bf16.gmra.mrb[140].mxu0 %v9685_v62  ;;  %v8028_v24 = vpop.f32.mrb[35].mxu1  ;;  %v9709_v62 = vld [vmem:[%s10385_s13 + $0x894] ss:$108 sps:$4 sm:$0xff]  }
 0x173   : > { %v4499_v23 = vadd.f32 %v7929_v17, %v7690_v9  ;;  %5069 = vmatprep.mubr.bf16.mxu0 %v9693_v1  ;;  %v10976_v25 = vadd.f32 %v8026_v20, %v4496_v15  ;;  %v8029_v26 = vadd.f32 %v8028_v24, %v8027_v21  ;;  %v9708_v15 = vld [vmem:[%s10385_s13 + $0x7c0] ss:$108 sps:$4 sm:$0xff]   ;;  %v7834_v17 = vld [vmem:[%s10800_s8 + $0x58] sm:$0xff]  }
 0x174   : > { %5206 = vmatmul.mubr.bf16.gmra.mrb[140].mxu1 %v9690_v13  ;;  %v9712_v20 = vld [vmem:[%s10385_s13 + $0x89c] ss:$108 sps:$4 sm:$0xff]  }
 0x175   : > { %v7930_v28 = vpop.f32.mrb[36].mxu0  ;;  %v10980_v32 = vadd.f32 %v8029_v26, %v4499_v23  ;;  %5213 = vmatprep.mubr.bf16.mxu1 %v9696_v22  ;;  %v9711_v26 = vld [vmem:[%s10385_s13 + $0x890] ss:$108 sps:$4 sm:$0xff]  }
 0x176   : > { %v7931_v33 = vpop.f32.mrb[37].mxu0 }
 0x177   : > { %v7932_v34 = vadd.f32 %v7931_v33, %v7930_v28  ;;  %v7933_v35 = vpop.f32.mrb[38].mxu0  ;;  %v8030_v39 = vpop.f32.mrb[36].mxu1  ;;  %v7701_v28 = vunpack.c.l.bf16 %v7834_v17 }
 0x178   : > { %v7934_v42 = vpop.f32.mrb[39].mxu0  ;;  %v8031_v47 = vpop.f32.mrb[37].mxu1 }
 0x179   : > { %v4504_v44 = vadd.f32 %v7932_v34, %v7693_v29  ;;  %v7935_v45 = vadd.f32 %v7934_v42, %v7933_v35  ;;  %v8032_v51 = vadd.f32 %v8031_v47, %v8030_v39  ;;  %v8033_v52 = vpop.f32.mrb[38].mxu1  ;;  %v9718_v29 = vld [vmem:[%s10385_s13 + $0x96c] ss:$108 sps:$4 sm:$0xff]  }
 0x17a   : > { %5070 = vmatmul.mubr.bf16.gmra.mrb[144].mxu0 %v9695_v27  ;;  %v8034_v55 = vpop.f32.mrb[39].mxu1 }
 0x17b   : > { %v4507_v54 = vadd.f32 %v7935_v45, %v7694_v36  ;;  %5077 = vmatprep.mubr.bf16.mxu0 %v9700_v31  ;;  %v10985_v56 = vadd.f32 %v8032_v51, %v4504_v44  ;;  %v8035_v57 = vadd.f32 %v8034_v55, %v8033_v52  ;;  %v7702_v36 = vunpack.c.h.bf16 %v7834_v17  ;;  %v9730_v17 = vld [vmem:[%s10385_s13 + $0xa4c] ss:$108 sps:$4 sm:$0xff]  }
 0x17c   : > { %5214 = vmatmul.mubr.bf16.gmra.mrb[144].mxu1 %v9698_v43  ;;  %v9714_v43 = vld [vmem:[%s10385_s13 + $0x898] ss:$108 sps:$4 sm:$0xff]  }
 0x17d   : > { %v7936_v59 = vpop.f32.mrb[40].mxu0  ;;  %v10989_v63 = vadd.f32 %v8035_v57, %v4507_v54  ;;  %5221 = vmatprep.mubr.bf16.mxu1 %v9705_v53  ;;  %v9722_v53 = vld [vmem:[%s10385_s13 + $0x974] ss:$108 sps:$4 sm:$0xff]  }
 0x17e   : > { %v7937_v0 = vpop.f32.mrb[41].mxu0 }
 0x17f   : > { %v7938_v1 = vadd.f32 %v7937_v0, %v7936_v59  ;;  %v7939_v4 = vpop.f32.mrb[42].mxu0  ;;  %v8036_v8 = vpop.f32.mrb[40].mxu1 }
 0x180   : > { %v7940_v9 = vpop.f32.mrb[43].mxu0  ;;  %v8037_v13 = vpop.f32.mrb[41].mxu1 }
 0x181   : > { %v4512_v10 = vadd.f32 %v7938_v1, %v7697_v61  ;;  %v7941_v12 = vadd.f32 %v7940_v9, %v7939_v4  ;;  %v8038_v18 = vadd.f32 %v8037_v13, %v8036_v8  ;;  %v8039_v19 = vpop.f32.mrb[42].mxu1  ;;  %v7705_v61 = vunpack.c.l.bf16 %v7835_v49  ;;  %v9724_v9 = vld [vmem:[%s10385_s13 + $0x970] ss:$108 sps:$4 sm:$0xff]  }
 0x182   : > { %5078 = vmatmul.mubr.bf16.gmra.mrb[148].mxu0 %v9703_v58  ;;  %v8040_v22 = vpop.f32.mrb[43].mxu1  ;;  %v7706_v8 = vunpack.c.h.bf16 %v7835_v49 }
 0x183   : > { %v4515_v21 = vadd.f32 %v7941_v12, %v7698_v6  ;;  %5085 = vmatprep.mubr.bf16.mxu0 %v9709_v62  ;;  %v10994_v23 = vadd.f32 %v8038_v18, %v4512_v10  ;;  %v8041_v24 = vadd.f32 %v8040_v22, %v8039_v19  ;;  %v9721_v62 = vld [vmem:[%s10385_s13 + $0x968] ss:$108 sps:$4 sm:$0xff]   ;;  %v9726_v10 = vld [vmem:[%s10385_s13 + $0xa44] ss:$108 sps:$4 sm:$0xff]  }
 0x184   : > { %5222 = vmatmul.mubr.bf16.gmra.mrb[148].mxu1 %v9708_v15  ;;  %v1210_v15 = vld [vmem:[%s10800_s8 + $0x68] sm:$0xf] }
 0x185   : > { %v7942_v27 = vpop.f32.mrb[44].mxu0  ;;  %v10998_v31 = vadd.f32 %v8041_v24, %v4515_v21  ;;  %5229 = vmatprep.mubr.bf16.mxu1 %v9712_v20 }
 0x186   : > { %v7943_v33 = vpop.f32.mrb[45].mxu0 }
 0x187   : > { %v7944_v34 = vadd.f32 %v7943_v33, %v7942_v27  ;;  %v7945_v35 = vpop.f32.mrb[46].mxu0  ;;  %v8042_v39 = vpop.f32.mrb[44].mxu1  ;;  %v742_v33 = vld [vmem:[%s10385_s13 + $0xb18] sm:$0xff] }
 0x188   : > { %v7946_v42 = vpop.f32.mrb[47].mxu0  ;;  %v8043_v47 = vpop.f32.mrb[45].mxu1 }
 0x189   : > { %v4520_v44 = vadd.f32 %v7944_v34, %v7701_v28  ;;  %v7947_v45 = vadd.f32 %v7946_v42, %v7945_v35  ;;  %v8044_v51 = vadd.f32 %v8043_v47, %v8042_v39  ;;  %v8045_v52 = vpop.f32.mrb[46].mxu1  ;;  %v1237_v35 = vunpack.c.l.bf16 %v1210_v15 }
 0x18a   : > { %5086 = vmatmul.mubr.bf16.gmra.mrb[152].mxu0 %v9711_v26  ;;  %v8046_v55 = vpop.f32.mrb[47].mxu1 }
 0x18b   : > { %v4523_v54 = vadd.f32 %v7947_v45, %v7702_v36  ;;  %5093 = vmatprep.mubr.bf16.mxu0 %v9718_v29  ;;  %v11003_v57 = vadd.f32 %v8044_v51, %v4520_v44  ;;  %v8047_v58 = vadd.f32 %v8046_v55, %v8045_v52  ;;  %v9729_v29 = vld [vmem:[%s10385_s13 + $0xa40] ss:$108 sps:$4 sm:$0xff]   ;;  %v7363_v44 = vcombine.high %v742_v33, %v742_v33 }
 0x18c   : > { %5230 = vmatmul.mubr.bf16.gmra.mrb[152].mxu1 %v9714_v43  ;;  %v743_v45 = vld [vmem:[%s10385_s13 + $0xb20] sm:$0xff] }
 0x18d   : > { %v7948_v59 = vpop.f32.mrb[48].mxu0  ;;  %v11006_v0 = vadd.f32 %v8047_v58, %v4523_v54  ;;  %5237 = vmatprep.mubr.bf16.mxu1 %v9722_v53  ;;  %v9732_v53 = vld [vmem:[%s10385_s13 + $0xa48] ss:$108 sps:$4 sm:$0xff]   ;;  %v7365_v58 = vcombine.high %v743_v45, %v743_v45 }
 0x18e   : > { %v7949_v1 = vpop.f32.mrb[49].mxu0 }
 0x18f   : > { %v7950_v4 = vadd.f32 %v7949_v1, %v7948_v59  ;;  %v7951_v6 = vpop.f32.mrb[50].mxu0  ;;  %v8048_v12 = vpop.f32.mrb[48].mxu1 }
 0x190   : > { %v7952_v13 = vpop.f32.mrb[51].mxu0  ;;  %v8049_v20 = vpop.f32.mrb[49].mxu1 }
 0x191   : > { %v4528_v18 = vadd.f32 %v7950_v4, %v7705_v61  ;;  %v7953_v19 = vadd.f32 %v7952_v13, %v7951_v6  ;;  %v8050_v21 = vadd.f32 %v8049_v20, %v8048_v12  ;;  %v8051_v22 = vpop.f32.mrb[50].mxu1  ;;  %v7362_v4 = vcombine.low %v742_v33, %v742_v33  ;;  %v9748_v6 = vld [vmem:[%s10385_s13 + $0x34] ss:$108 sps:$4 sm:$0xff]  }
 0x192   : > { %5094 = vmatmul.mubr.bf16.gmra.mrb[156].mxu0 %v9721_v62  ;;  %v8052_v26 = vpop.f32.mrb[51].mxu1  ;;  %v9754_v33 = vld [vmem:[%s12105_s1 + $0x400] sm:$0xff]  }
 0x193   : > { %v4531_v24 = vadd.f32 %v7953_v19, %v7706_v8  ;;  %5101 = vmatprep.mubr.bf16.mxu0 %v9726_v10  ;;  %v11012_v27 = vadd.f32 %v8050_v21, %v4528_v18  ;;  %v8053_v28 = vadd.f32 %v8052_v26, %v8051_v22  ;;  %v7364_v18 = vcombine.low %v743_v45, %v743_v45  ;;  %v9753_v21 = vld [vmem:[%s10385_s13 + $0x3c] ss:$108 sps:$4 sm:$0xff]  }
 0x194   : > { %5238 = vmatmul.mubr.bf16.gmra.mrb[156].mxu1 %v9724_v9 }
 0x195   : > { %v7954_v34 = vpop.f32.mrb[52].mxu0  ;;  %v11016_v36 = vadd.f32 %v8053_v28, %v4531_v24  ;;  %5245 = vmatprep.mubr.bf16.mxu1 %v9730_v17 }
 0x196   : > { %v7955_v39 = vpop.f32.mrb[53].mxu0 }
 0x197   : > { %v7956_v42 = vadd.f32 %v7955_v39, %v7954_v34  ;;  %v7957_v43 = vpop.f32.mrb[54].mxu0  ;;  %v8054_v47 = vpop.f32.mrb[52].mxu1  ;;  %v9755_v34 = vld [vmem:[%s10385_s13 + $0x10c] ss:$108 sps:$4 sm:$0xff]  }
 0x198   : > { %v7958_v49 = vpop.f32.mrb[55].mxu0  ;;  %v8055_v52 = vpop.f32.mrb[53].mxu1  ;;  %v9751_v43 = vld [vmem:[%s10385_s13 + $0x38] ss:$108 sps:$4 sm:$0xff]  }
 0x199   : > { %v4536_v51 = vadd.f32 %v7956_v42, %v1237_v35  ;;  %v8056_v54 = vadd.f32 %v8055_v52, %v8054_v47  ;;  %v8057_v55 = vpop.f32.mrb[54].mxu1  ;;  %v9758_v47 = vld [vmem:[%s10385_s13 + $0x114] ss:$108 sps:$4 sm:$0xff]   ;;  %v9761_v49 = vld [vmem:[%s12105_s1 + $0x448] sm:$0xff]  }
 0x19a   : > { %5102 = vmatmul.mubr.bf16.gmra.mrb[160].mxu0 %v9729_v29  ;;  %v8058_v59 = vpop.f32.mrb[55].mxu1  ;;  %v9746_v29 = vld [vmem:[%s10385_s13 + $0x30] ss:$108 sps:$4 sm:$0xff]  }
 0x19b   : > { %5109 = vmatprep.mubr.bf16.mxu0 %v7363_v44  ;;  %v11020_v61 = vadd.f32 %v8056_v54, %v4536_v51  ;;  %v9764_v54 = vld [vmem:[%s12105_s1 + $0x408] sm:$0xff]   ;;  %v9806_v59 = vld [vmem:[%s12105_s1 + $0x480] sm:$0xff]  }
 0x19c   : > { %5246 = vmatmul.mubr.bf16.gmra.mrb[160].mxu1 %v9732_v53 }
 0x19d   : > { %v8076_v62 = vpop.f32.mrb[56].mxu0  ;;  %5253 = vmatprep.mubr.bf16.mxu1 %v7365_v58 }
 0x19e   : > { %v8077_v1 = vpop.f32.mrb[57].mxu0 }
 0x19f   : > { %v8078_v8 = vadd.f32 %v8077_v1, %v8076_v62  ;;  %v8079_v9 = vpop.f32.mrb[58].mxu0  ;;  %v8176_v10 = vpop.f32.mrb[56].mxu1 }
 0x1a0   : > { %v8080_v12 = vpop.f32.mrb[59].mxu0  ;;  %v8177_v17 = vpop.f32.mrb[57].mxu1 }
 0x1a1   : > { %v4720_v13 = vadd.f32 %v8078_v8, %v10808_v41  ;;  %v8081_v15 = vadd.f32 %v8080_v12, %v8079_v9  ;;  %v8178_v19 = vadd.f32 %v8177_v17, %v8176_v10  ;;  %v8179_v20 = vpop.f32.mrb[58].mxu1  ;;  %v9757_v8 = vld [vmem:[%s10385_s13 + $0x108] ss:$108 sps:$4 sm:$0xff]   ;;  %v9762_v12 = vld [vmem:[%s10385_s13 + $0x1e4] ss:$108 sps:$4 sm:$0xff]  }
 0x1a2   : > { %5110 = vmatmul.mubr.bf16.gmra.mrb[164].mxu0 %v7362_v4  ;;  %v8180_v24 = vpop.f32.mrb[59].mxu1  ;;  %v9775_v9 = vld [vmem:[%s12105_s1 + $0x450] sm:$0xff]  }
 0x1a3   : > { %v4723_v22 = vadd.f32 %v8081_v15, %v10815_v48  ;;  %5293 = vmatprep.mubr.bf16.mxu0 %v9748_v6  ;;  %v11026_v26 = vadd.f32 %v8178_v19, %v4720_v13  ;;  %v8181_v28 = vadd.f32 %v8180_v24, %v8179_v20  ;;  %v9776_v13 = vld [vmem:[%s12105_s1 + $0x410] sm:$0xff]  }
 0x1a4   : > { %5254 = vmatmul.mubr.bf16.gmra.mrb[164].mxu1 %v7364_v18  ;;  %v9760_v20 = vld [vmem:[%s10385_s13 + $0x110] ss:$108 sps:$4 sm:$0xff]   ;;  %v9766_v24 = vld [vmem:[%s10385_s13 + $0x1ec] ss:$108 sps:$4 sm:$0xff]  }
 0x1a5   : > { %v8082_v41 = vpop.f32.mrb[60].mxu0  ;;  %v11033_v35 = vadd.f32 %v8181_v28, %v4723_v22  ;;  %5437 = vmatprep.mubr.bf16.mxu1 %v9753_v21  ;;  %v9789_v28 = vld [vmem:[%s12105_s1 + $0x458] sm:$0xff]  }
 0x1a6   : > { %v8083_v39 = vpop.f32.mrb[61].mxu0 }
 0x1a7   : > { %v8084_v42 = vadd.f32 %v8083_v39, %v8082_v41  ;;  %v8085_v48 = vpop.f32.mrb[62].mxu0  ;;  %v8182_v44 = vpop.f32.mrb[60].mxu1  ;;  %v9790_v39 = vld [vmem:[%s12105_s1 + $0x418] sm:$0xff]  }
 0x1a8   : > { %v8086_v45 = vpop.f32.mrb[63].mxu0  ;;  %v8183_v53 = vpop.f32.mrb[61].mxu1 }
 0x1a9   : > { %v4728_v51 = vadd.f32 %v8084_v42, %v10832_v5  ;;  %v8087_v52 = vadd.f32 %v8086_v45, %v8085_v48  ;;  %v8184_v55 = vadd.f32 %v8183_v53, %v8182_v44  ;;  %v8185_v58 = vpop.f32.mrb[62].mxu1  ;;  %v9818_v5 = vld [vmem:[%s12105_s1 + $0x4c8] sm:$0xff]   ;;  %v9842_v53 = vld [vmem:[%s12105_s1 + $0x498] sm:$0xff]  }
 0x1aa   : > { %5294 = vmatmul.mubr.bf16.vlgmr.msra.gmra.mrb[168].mxu0 %v9746_v29  ;;  %v8186_v1 = vpop.f32.mrb[63].mxu1  ;;  %v9831_v29 = vld [vmem:[%s12105_s1 + $0x4d0] sm:$0xff]  }
 0x1ab   : > { %v4731_v62 = vadd.f32 %v8087_v52, %v10845_v14  ;;  %8661 = vmatpush3.bf16.msra.mxu0 %v9754_v33  ;;  %5301 = vmatprep.mubr.bf16.mxu0 %v9755_v34  ;;  %v11051_v4 = vadd.f32 %v8184_v55, %v4728_v51  ;;  %v8187_v6 = vadd.f32 %v8186_v1, %v8185_v58  ;;  %v9821_v14 = vld [vmem:[%s12105_s1 + $0x488] sm:$0xff]  }
 0x1ac   : > { %8662 = vmatprep.subr.bf16.mxu0 %v9761_v49  ;;  %5438 = vmatmul.mubr.bf16.vlgmr.msra.gmra.mrb[168].mxu1 %v9751_v43  ;;  %v9800_v43 = vld [vmem:[%s12105_s1 + $0x460] sm:$0xff]   ;;  %v9768_v1 = vld [vmem:[%s10385_s13 + $0x1e8] ss:$108 sps:$4 sm:$0xff]  }
 0x1ad   : > { %v8088_v10 = vpop.f32.mrb[64].mxu0  ;;  %v11064_v15 = vadd.f32 %v8187_v6, %v4731_v62  ;;  %5445 = vmatprep.mubr.bf16.mxu1 %v9758_v47  ;;  %8761 = vmatpush3.bf16.msra.mxu1 %v9806_v59  ;;  %v9839_v47 = vld [vmem:[%s12105_s1 + $0x4d8] sm:$0xff]   ;;  %v9765_v52 = vld [vmem:[%s10385_s13 + $0x1e0] ss:$108 sps:$4 sm:$0xff]  }
 0x1ae   : > { %v8089_v17 = vpop.f32.mrb[65].mxu0  ;;  %8762 = vmatprep.subr.bf16.mxu1 %v9818_v5  ;;  %v9803_v5 = vld [vmem:[%s12105_s1 + $0x420] sm:$0xff]  }
 0x1af   : > { %v8090_v18 = vadd.f32 %v8089_v17, %v8088_v10  ;;  %v8091_v19 = vpop.f32.mrb[66].mxu0  ;;  %8663 = vmatpush3.bf16.msra.mxu0 %v9764_v54  ;;  %v8188_v21 = vpop.f32.mrb[64].mxu1  ;;  %v9769_v54 = vld [vmem:[%s10385_s13 + $0x2bc] ss:$108 sps:$4 sm:$0xff]  }
 0x1b0   : > { %v8092_v22 = vpop.f32.mrb[67].mxu0  ;;  %8664 = vmatprep.subr.bf16.mxu0 %v9775_v9  ;;  %v8189_v34 = vpop.f32.mrb[65].mxu1  ;;  %v9772_v9 = vld [vmem:[%s10385_s13 + $0x2c4] ss:$108 sps:$4 sm:$0xff]  }
 0x1b1   : > { %v4736_v41 = vadd.f32 %v8090_v18, %v10868_v37  ;;  %v8093_v33 = vadd.f32 %v8092_v22, %v8091_v19  ;;  %v8190_v42 = vadd.f32 %v8189_v34, %v8188_v21  ;;  %v8191_v48 = vpop.f32.mrb[66].mxu1  ;;  %8763 = vmatpush3.bf16.msra.mxu1 %v9821_v14  ;;  %v9834_v37 = vld [vmem:[%s12105_s1 + $0x490] sm:$0xff]   ;;  %v9813_v14 = vld [vmem:[%s12105_s1 + $0x468] sm:$0xff]   ;;  %v9848_v10 = vld [vmem:[%s12105_s1 + $0x4e0] sm:$0xff]  }
 0x1b2   : > { %5302 = vmatmul.mubr.bf16.gmra.mrb[172].mxu0 %v9757_v8  ;;  %v8192_v45 = vpop.f32.mrb[67].mxu1  ;;  %8764 = vmatprep.subr.bf16.mxu1 %v9831_v29  ;;  %v9816_v18 = vld [vmem:[%s12105_s1 + $0x428] sm:$0xff]   ;;  %v9829_v21 = vld [vmem:[%s12105_s1 + $0x470] sm:$0xff]  }
 0x1b3   : > { %v4739_v44 = vadd.f32 %v8093_v33, %v10878_v46  ;;  %5309 = vmatprep.mubr.bf16.mxu0 %v9762_v12  ;;  %8665 = vmatpush3.bf16.msra.mxu0 %v9776_v13  ;;  %v11088_v49 = vadd.f32 %v8190_v42, %v4736_v41  ;;  %v8193_v51 = vadd.f32 %v8192_v45, %v8191_v48  ;;  %v9771_v33 = vld [vmem:[%s10385_s13 + $0x2b8] ss:$108 sps:$4 sm:$0xff]   ;;  %v9830_v42 = vld [vmem:[%s12105_s1 + $0x430] sm:$0xff]  }
 0x1b4   : > { %8666 = vmatprep.subr.bf16.mxu0 %v9789_v28  ;;  %5446 = vmatmul.mubr.bf16.gmra.mrb[172].mxu1 %v9760_v20  ;;  %v9851_v28 = vld [vmem:[%s12105_s1 + $0x4e8] sm:$0xff]  }
 0x1b5   : > { %v8094_v46 = vpop.f32.mrb[68].mxu0  ;;  %v11095_v55 = vadd.f32 %v8193_v51, %v4739_v44  ;;  %5453 = vmatprep.mubr.bf16.mxu1 %v9766_v24  ;;  %8765 = vmatpush3.bf16.msra.mxu1 %v9834_v37  ;;  %v9853_v34 = vld [vmem:[%s12105_s1 + $0x4a8] sm:$0xff]  }
 0x1b6   : > { %v8095_v58 = vpop.f32.mrb[69].mxu0  ;;  %8766 = vmatprep.subr.bf16.mxu1 %v9839_v47  ;;  %v9774_v45 = vld [vmem:[%s10385_s13 + $0x2c0] ss:$108 sps:$4 sm:$0xff]  }
 0x1b7   : > { %v8096_v59 = vadd.f32 %v8095_v58, %v8094_v46  ;;  %v8097_v62 = vpop.f32.mrb[70].mxu0  ;;  %8667 = vmatpush3.bf16.msra.mxu0 %v9790_v39  ;;  %v8194_v6 = vpop.f32.mrb[68].mxu1  ;;  %v9777_v39 = vld [vmem:[%s10385_s13 + $0x394] ss:$108 sps:$4 sm:$0xff]  }
 0x1b8   : > { %v8098_v8 = vpop.f32.mrb[71].mxu0  ;;  %8668 = vmatprep.subr.bf16.mxu0 %v9800_v43  ;;  %v8195_v17 = vpop.f32.mrb[69].mxu1  ;;  %v9857_v46 = vld [vmem:[%s12105_s1 + $0x4f0] sm:$0xff]  }
 0x1b9   : > { %v4744_v12 = vadd.f32 %v8096_v59, %v10901_v7  ;;  %v8099_v13 = vadd.f32 %v8098_v8, %v8097_v62  ;;  %v8196_v19 = vadd.f32 %v8195_v17, %v8194_v6  ;;  %v8197_v20 = vpop.f32.mrb[70].mxu1  ;;  %8767 = vmatpush3.bf16.msra.mxu1 %v9842_v53  ;;  %v9850_v7 = vld [vmem:[%s12105_s1 + $0x4a0] sm:$0xff]   ;;  %v9847_v53 = vld [vmem:[%s12105_s1 + $0x478] sm:$0xff]  }
 0x1ba   : > { %5310 = vmatmul.mubr.bf16.gmra.mrb[176].mxu0 %v9765_v52  ;;  %v8198_v24 = vpop.f32.mrb[71].mxu1  ;;  %8768 = vmatprep.subr.bf16.mxu1 %v9848_v10  ;;  %v9780_v52 = vld [vmem:[%s10385_s13 + $0x39c] ss:$108 sps:$4 sm:$0xff]  }
 0x1bb   : > { %v4747_v22 = vadd.f32 %v8099_v13, %v10911_v16  ;;  %5317 = vmatprep.mubr.bf16.mxu0 %v9769_v54  ;;  %8669 = vmatpush3.bf16.msra.mxu0 %v9803_v5  ;;  %v11122_v29 = vadd.f32 %v8196_v19, %v4744_v12  ;;  %v8199_v41 = vadd.f32 %v8198_v24, %v8197_v20  ;;  %v9849_v62 = vld [vmem:[%s12105_s1 + $0x438] sm:$0xff]  }
 0x1bc   : > { %8670 = vmatprep.subr.bf16.mxu0 %v9813_v14  ;;  %5454 = vmatmul.mubr.bf16.gmra.mrb[176].mxu1 %v9768_v1  ;;  %v9858_v1 = vld [vmem:[%s12105_s1 + $0x4b0] sm:$0xff]   ;;  %v9859_v8 = vld [vmem:[%s12105_s1 + $0x4f8] sm:$0xff]   ;;  %v9864_v14 = vld [vmem:[%s12105_s1 + $0x540] sm:$0xff]  }
 0x1bd   : > { %v8100_v16 = vpop.f32.mrb[72].mxu0  ;;  %v11132_v48 = vadd.f32 %v8199_v41, %v4747_v22  ;;  %5461 = vmatprep.mubr.bf16.mxu1 %v9772_v9  ;;  %8769 = vmatpush3.bf16.msra.mxu1 %v9850_v7  ;;  %v9779_v13 = vld [vmem:[%s10385_s13 + $0x390] ss:$108 sps:$4 sm:$0xff]  }
 0x1be   : > { %v8101_v43 = vpop.f32.mrb[73].mxu0  ;;  %8770 = vmatprep.subr.bf16.mxu1 %v9851_v28  ;;  %v9863_v20 = vld [vmem:[%s12105_s1 + $0x4b8] sm:$0xff]  }
 0x1bf   : > { %v8102_v37 = vadd.f32 %v8101_v43, %v8100_v16  ;;  %v8103_v44 = vpop.f32.mrb[74].mxu0  ;;  %8671 = vmatpush3.bf16.msra.mxu0 %v9816_v18  ;;  %v8200_v47 = vpop.f32.mrb[72].mxu1 }
 0x1c0   : > { %v8104_v51 = vpop.f32.mrb[75].mxu0  ;;  %8672 = vmatprep.subr.bf16.mxu0 %v9829_v21  ;;  %v8201_v59 = vpop.f32.mrb[73].mxu1 }
 0x1c1   : > { %v4752_v54 = vadd.f32 %v8102_v37, %v10934_v40  ;;  %v8105_v58 = vadd.f32 %v8104_v51, %v8103_v44  ;;  %v8202_v5 = vadd.f32 %v8201_v59, %v8200_v47  ;;  %v8203_v6 = vpop.f32.mrb[74].mxu1  ;;  %8771 = vmatpush3.bf16.msra.mxu1 %v9853_v34  ;;  %v9782_v34 = vld [vmem:[%s10385_s13 + $0x398] ss:$108 sps:$4 sm:$0xff]   ;;  %v9785_v47 = vld [vmem:[%s10385_s13 + $0x468] ss:$108 sps:$4 sm:$0xff]  }
 0x1c2   : > { %5318 = vmatmul.mubr.bf16.gmra.mrb[180].mxu0 %v9771_v33  ;;  %v8204_v9 = vpop.f32.mrb[75].mxu1  ;;  %8772 = vmatprep.subr.bf16.mxu1 %v9857_v46  ;;  %v9791_v51 = vld [vmem:[%s10385_s13 + $0x544] ss:$108 sps:$4 sm:$0xff]  }
 0x1c3   : > { %v4755_v40 = vadd.f32 %v8105_v58, %v10941_v50  ;;  %5325 = vmatprep.mubr.bf16.mxu0 %v9777_v39  ;;  %8673 = vmatpush3.bf16.msra.mxu0 %v9830_v42  ;;  %v11156_v10 = vadd.f32 %v8202_v5, %v4752_v54  ;;  %v8205_v12 = vadd.f32 %v8204_v9, %v8203_v6  ;;  %v9783_v50 = vld [vmem:[%s10385_s13 + $0x46c] ss:$108 sps:$4 sm:$0xff]   ;;  %v9786_v42 = vld [vmem:[%s10385_s13 + $0x474] ss:$108 sps:$4 sm:$0xff]   ;;  %v9788_v5 = vld [vmem:[%s10385_s13 + $0x470] ss:$108 sps:$4 sm:$0xff]  }
 0x1c4   : > { %8674 = vmatprep.subr.bf16.mxu0 %v9847_v53  ;;  %5462 = vmatmul.mubr.bf16.gmra.mrb[180].mxu1 %v9774_v45 }
 0x1c5   : > { %v8106_v17 = vpop.f32.mrb[76].mxu0  ;;  %v11159_v18 = vadd.f32 %v8205_v12, %v4755_v40  ;;  %5469 = vmatprep.mubr.bf16.mxu1 %v9780_v52  ;;  %8773 = vmatpush3.bf16.msra.mxu1 %v9858_v1  ;;  %v9794_v40 = vld [vmem:[%s10385_s13 + $0x54c] ss:$108 sps:$4 sm:$0xff]  }
 0x1c6   : > { %v8107_v19 = vpop.f32.mrb[77].mxu0  ;;  %8774 = vmatprep.subr.bf16.mxu1 %v9859_v8 }
 0x1c7   : > { %v8108_v21 = vadd.f32 %v8107_v19, %v8106_v17  ;;  %v8109_v7 = vpop.f32.mrb[78].mxu0  ;;  %8675 = vmatpush3.bf16.msra.mxu0 %v9849_v62  ;;  %v8206_v22 = vpop.f32.mrb[76].mxu1  ;;  %v9793_v19 = vld [vmem:[%s10385_s13 + $0x540] ss:$108 sps:$4 sm:$0xff]  }
 0x1c8   : > { %v8110_v24 = vpop.f32.mrb[79].mxu0  ;;  %8860 = vmatprep.subr.bf16.mxu0 %v9864_v14  ;;  %v8207_v33 = vpop.f32.mrb[77].mxu1 }
 0x1c9   : > { %v4760_v28 = vadd.f32 %v8108_v21, %v10946_v3  ;;  %v8111_v41 = vadd.f32 %v8110_v24, %v8109_v7  ;;  %v8208_v16 = vadd.f32 %v8207_v33, %v8206_v22  ;;  %v8209_v39 = vpop.f32.mrb[78].mxu1  ;;  %8775 = vmatpush3.bf16.msra.mxu1 %v9863_v20  ;;  %v9919_v20 = vld [vmem:[%s12105_s1 + $0x5c0] sm:$0xff]  }
 0x1ca   : > { %5326 = vmatmul.mubr.bf16.gmra.mrb[184].mxu0 %v9779_v13  ;;  %v8210_v37 = vpop.f32.mrb[79].mxu1  ;;  %v9797_v7 = vld [vmem:[%s10385_s13 + $0x61c] ss:$108 sps:$4 sm:$0xff]   ;;  %8960 = vmatprep.subr.bf16.mxu1 %v9919_v20 }
 0x1cb   : > { %v4763_v43 = vadd.f32 %v8111_v41, %v10950_v11  ;;  %5333 = vmatprep.mubr.bf16.mxu0 %v9783_v50  ;;  %v11169_v44 = vadd.f32 %v8208_v16, %v4760_v28  ;;  %v8211_v45 = vadd.f32 %v8210_v37, %v8209_v39 }
 0x1cc   : > { %5470 = vmatmul.mubr.bf16.gmra.mrb[184].mxu1 %v9782_v34  ;;  %v9796_v34 = vld [vmem:[%s10385_s13 + $0x548] ss:$108 sps:$4 sm:$0xff]  }
 0x1cd   : > { %v8112_v3 = vpop.f32.mrb[80].mxu0  ;;  %v11173_v52 = vadd.f32 %v8211_v45, %v4763_v43  ;;  %5477 = vmatprep.mubr.bf16.mxu1 %v9786_v42  ;;  %v9801_v42 = vld [vmem:[%s10385_s13 + $0x624] ss:$108 sps:$4 sm:$0xff]  }
 0x1ce   : > { %v8113_v53 = vpop.f32.mrb[81].mxu0 }
 0x1cf   : > { %v8114_v46 = vadd.f32 %v8113_v53, %v8112_v3  ;;  %v8115_v54 = vpop.f32.mrb[82].mxu0  ;;  %v8212_v58 = vpop.f32.mrb[80].mxu1 }
 0x1d0   : > { %v8116_v59 = vpop.f32.mrb[83].mxu0  ;;  %v8213_v1 = vpop.f32.mrb[81].mxu1 }
 0x1d1   : > { %v4768_v11 = vadd.f32 %v8114_v46, %v10955_v30  ;;  %v8117_v62 = vadd.f32 %v8116_v59, %v8115_v54  ;;  %v8214_v6 = vadd.f32 %v8213_v1, %v8212_v58  ;;  %v8215_v8 = vpop.f32.mrb[82].mxu1  ;;  %v9807_v58 = vld [vmem:[%s10385_s13 + $0x6f4] ss:$108 sps:$4 sm:$0xff]  }
 0x1d2   : > { %5334 = vmatmul.mubr.bf16.gmra.mrb[188].mxu0 %v9785_v47  ;;  %v8216_v14 = vpop.f32.mrb[83].mxu1 }
 0x1d3   : > { %v4771_v9 = vadd.f32 %v8117_v62, %v10962_v38  ;;  %5341 = vmatprep.mubr.bf16.mxu0 %v9791_v51  ;;  %v8217_v12 = vadd.f32 %v8216_v14, %v8215_v8  ;;  %v11179_v13 = vadd.f32 %v8214_v6, %v4768_v11  ;;  %v9799_v51 = vld [vmem:[%s10385_s13 + $0x618] ss:$108 sps:$4 sm:$0xff]  }
 0x1d4   : > { %5478 = vmatmul.mubr.bf16.gmra.mrb[188].mxu1 %v9788_v5  ;;  %v9804_v5 = vld [vmem:[%s10385_s13 + $0x620] ss:$108 sps:$4 sm:$0xff]  }
 0x1d5   : > { %v8118_v17 = vpop.f32.mrb[84].mxu0  ;;  %5485 = vmatprep.mubr.bf16.mxu1 %v9794_v40  ;;  %v11182_v50 = vadd.f32 %v8217_v12, %v4771_v9  ;;  %v9810_v40 = vld [vmem:[%s10385_s13 + $0x6fc] ss:$108 sps:$4 sm:$0xff]  }
 0x1d6   : > { %v8119_v30 = vpop.f32.mrb[85].mxu0 }
 0x1d7   : > { %v8120_v21 = vadd.f32 %v8119_v30, %v8118_v17  ;;  %v8121_v38 = vpop.f32.mrb[86].mxu0  ;;  %v8218_v22 = vpop.f32.mrb[84].mxu1 }
 0x1d8   : > { %v8122_v24 = vpop.f32.mrb[87].mxu0  ;;  %v8219_v33 = vpop.f32.mrb[85].mxu1 }
 0x1d9   : > { %v4776_v28 = vadd.f32 %v8120_v21, %v10967_v60  ;;  %v8123_v41 = vadd.f32 %v8122_v24, %v8121_v38  ;;  %v8220_v16 = vadd.f32 %v8219_v33, %v8218_v22  ;;  %v8221_v39 = vpop.f32.mrb[86].mxu1  ;;  %v9812_v33 = vld [vmem:[%s10385_s13 + $0x6f8] ss:$108 sps:$4 sm:$0xff]  }
 0x1da   : > { %5342 = vmatmul.mubr.bf16.gmra.mrb[192].mxu0 %v9793_v19  ;;  %v8222_v37 = vpop.f32.mrb[87].mxu1  ;;  %v9809_v19 = vld [vmem:[%s10385_s13 + $0x6f0] ss:$108 sps:$4 sm:$0xff]  }
 0x1db   : > { %v4779_v43 = vadd.f32 %v8123_v41, %v10971_v2  ;;  %5349 = vmatprep.mubr.bf16.mxu0 %v9797_v7  ;;  %v8223_v45 = vadd.f32 %v8222_v37, %v8221_v39  ;;  %v11192_v47 = vadd.f32 %v8220_v16, %v4776_v28  ;;  %v9814_v7 = vld [vmem:[%s10385_s13 + $0x7cc] ss:$108 sps:$4 sm:$0xff]   ;;  %v9819_v39 = vld [vmem:[%s10385_s13 + $0x7d4] ss:$108 sps:$4 sm:$0xff]  }
 0x1dc   : > { %5486 = vmatmul.mubr.bf16.gmra.mrb[192].mxu1 %v9796_v34 }
 0x1dd   : > { %v8124_v3 = vpop.f32.mrb[88].mxu0  ;;  %5493 = vmatprep.mubr.bf16.mxu1 %v9801_v42  ;;  %v11195_v53 = vadd.f32 %v8223_v45, %v4779_v43 }
 0x1de   : > { %v8125_v60 = vpop.f32.mrb[89].mxu0 }
 0x1df   : > { %v8126_v46 = vadd.f32 %v8125_v60, %v8124_v3  ;;  %v8127_v54 = vpop.f32.mrb[90].mxu0  ;;  %v8224_v59 = vpop.f32.mrb[88].mxu1  ;;  %v9817_v60 = vld [vmem:[%s10385_s13 + $0x7c8] ss:$108 sps:$4 sm:$0xff]  }
 0x1e0   : > { %v8128_v11 = vpop.f32.mrb[91].mxu0  ;;  %v8225_v1 = vpop.f32.mrb[89].mxu1 }
 0x1e1   : > { %v4784_v2 = vadd.f32 %v8126_v46, %v10976_v25  ;;  %v8129_v62 = vadd.f32 %v8128_v11, %v8127_v54  ;;  %v8226_v6 = vadd.f32 %v8225_v1, %v8224_v59  ;;  %v8227_v8 = vpop.f32.mrb[90].mxu1  ;;  %v9822_v1 = vld [vmem:[%s10385_s13 + $0x7d0] ss:$108 sps:$4 sm:$0xff]  }
 0x1e2   : > { %5350 = vmatmul.mubr.bf16.gmra.mrb[196].mxu0 %v9799_v51  ;;  %v8228_v14 = vpop.f32.mrb[91].mxu1 }
 0x1e3   : > { %v4787_v9 = vadd.f32 %v8129_v62, %v10980_v32  ;;  %5357 = vmatprep.mubr.bf16.mxu0 %v9807_v58  ;;  %v8229_v12 = vadd.f32 %v8228_v14, %v8227_v8  ;;  %v11202_v17 = vadd.f32 %v8226_v6, %v4784_v2  ;;  %v9823_v58 = vld [vmem:[%s10385_s13 + $0x8a4] ss:$108 sps:$4 sm:$0xff]   ;;  %v9826_v8 = vld [vmem:[%s10385_s13 + $0x8ac] ss:$108 sps:$4 sm:$0xff]  }
 0x1e4   : > { %5494 = vmatmul.mubr.bf16.gmra.mrb[196].mxu1 %v9804_v5 }
 0x1e5   : > { %v8130_v30 = vpop.f32.mrb[92].mxu0  ;;  %5501 = vmatprep.mubr.bf16.mxu1 %v9810_v40  ;;  %v11205_v20 = vadd.f32 %v8229_v12, %v4787_v9 }
 0x1e6   : > { %v8131_v25 = vpop.f32.mrb[93].mxu0 }
 0x1e7   : > { %v8132_v21 = vadd.f32 %v8131_v25, %v8130_v30  ;;  %v8133_v38 = vpop.f32.mrb[94].mxu0  ;;  %v8230_v22 = vpop.f32.mrb[92].mxu1  ;;  %v9825_v25 = vld [vmem:[%s10385_s13 + $0x8a0] ss:$108 sps:$4 sm:$0xff]  }
 0x1e8   : > { %v8134_v24 = vpop.f32.mrb[95].mxu0  ;;  %v8231_v41 = vpop.f32.mrb[93].mxu1 }
 0x1e9   : > { %v4792_v32 = vadd.f32 %v8132_v21, %v10985_v56  ;;  %v8135_v28 = vadd.f32 %v8134_v24, %v8133_v38  ;;  %v8232_v34 = vadd.f32 %v8231_v41, %v8230_v22  ;;  %v8233_v16 = vpop.f32.mrb[94].mxu1  ;;  %v9828_v41 = vld [vmem:[%s10385_s13 + $0x8a8] ss:$108 sps:$4 sm:$0xff]  }
 0x1ea   : > { %5358 = vmatmul.mubr.bf16.gmra.mrb[200].mxu0 %v9809_v19  ;;  %v8234_v43 = vpop.f32.mrb[95].mxu1 }
 0x1eb   : > { %v4795_v42 = vadd.f32 %v8135_v28, %v10989_v63  ;;  %5365 = vmatprep.mubr.bf16.mxu0 %v9814_v7  ;;  %v8235_v37 = vadd.f32 %v8234_v43, %v8233_v16  ;;  %v11212_v45 = vadd.f32 %v8232_v34, %v4792_v32  ;;  %v9832_v7 = vld [vmem:[%s10385_s13 + $0x97c] ss:$108 sps:$4 sm:$0xff]   ;;  %v9836_v16 = vld [vmem:[%s10385_s13 + $0x984] ss:$108 sps:$4 sm:$0xff]  }
 0x1ec   : > { %5502 = vmatmul.mubr.bf16.gmra.mrb[200].mxu1 %v9812_v33 }
 0x1ed   : > { %v8136_v3 = vpop.f32.mrb[96].mxu0  ;;  %5509 = vmatprep.mubr.bf16.mxu1 %v9819_v39  ;;  %v11215_v51 = vadd.f32 %v8235_v37, %v4795_v42 }
 0x1ee   : > { %v8137_v56 = vpop.f32.mrb[97].mxu0 }
 0x1ef   : > { %v8138_v46 = vadd.f32 %v8137_v56, %v8136_v3  ;;  %v8139_v54 = vpop.f32.mrb[98].mxu0  ;;  %v8236_v59 = vpop.f32.mrb[96].mxu1  ;;  %v9835_v56 = vld [vmem:[%s10385_s13 + $0x978] ss:$108 sps:$4 sm:$0xff]  }
 0x1f0   : > { %v8140_v11 = vpop.f32.mrb[99].mxu0  ;;  %v8237_v62 = vpop.f32.mrb[97].mxu1 }
 0x1f1   : > { %v4800_v63 = vadd.f32 %v8138_v46, %v10994_v23  ;;  %v8141_v2 = vadd.f32 %v8140_v11, %v8139_v54  ;;  %v8238_v5 = vadd.f32 %v8237_v62, %v8236_v59  ;;  %v8239_v6 = vpop.f32.mrb[98].mxu1  ;;  %v9838_v62 = vld [vmem:[%s10385_s13 + $0x980] ss:$108 sps:$4 sm:$0xff]  }
 0x1f2   : > { %5366 = vmatmul.mubr.bf16.gmra.mrb[204].mxu0 %v9817_v60  ;;  %v8240_v9 = vpop.f32.mrb[99].mxu1 }
 0x1f3   : > { %v4803_v40 = vadd.f32 %v8141_v2, %v10998_v31  ;;  %5373 = vmatprep.mubr.bf16.mxu0 %v9823_v58  ;;  %v8241_v14 = vadd.f32 %v8240_v9, %v8239_v6  ;;  %v11222_v12 = vadd.f32 %v8238_v5, %v4800_v63  ;;  %v9840_v58 = vld [vmem:[%s10385_s13 + $0xa54] ss:$108 sps:$4 sm:$0xff]   ;;  %v9844_v6 = vld [vmem:[%s10385_s13 + $0xa5c] ss:$108 sps:$4 sm:$0xff]  }
 0x1f4   : > { %5510 = vmatmul.mubr.bf16.gmra.mrb[204].mxu1 %v9822_v1 }
 0x1f5   : > { %v8142_v30 = vpop.f32.mrb[100].mxu0  ;;  %5517 = vmatprep.mubr.bf16.mxu1 %v9826_v8  ;;  %v11225_v19 = vadd.f32 %v8241_v14, %v4803_v40  ;;  %v744_v14 = vld [vmem:[%s10385_s13 + $0xb28] sm:$0xff] }
 0x1f6   : > { %v8143_v23 = vpop.f32.mrb[101].mxu0 }
 0x1f7   : > { %v8144_v21 = vadd.f32 %v8143_v23, %v8142_v30  ;;  %v8145_v38 = vpop.f32.mrb[102].mxu0  ;;  %v8242_v22 = vpop.f32.mrb[100].mxu1 }
 0x1f8   : > { %v8146_v24 = vpop.f32.mrb[103].mxu0  ;;  %v8243_v28 = vpop.f32.mrb[101].mxu1 }
 0x1f9   : > { %v4808_v31 = vadd.f32 %v8144_v21, %v11003_v57  ;;  %v8147_v32 = vadd.f32 %v8146_v24, %v8145_v38  ;;  %v8244_v33 = vadd.f32 %v8243_v28, %v8242_v22  ;;  %v8245_v34 = vpop.f32.mrb[102].mxu1  ;;  %v7367_v22 = vcombine.high %v744_v14, %v744_v14  ;;  %v745_v24 = vld [vmem:[%s10385_s13 + $0xb30] sm:$0xff] }
 0x1fa   : > { %5374 = vmatmul.mubr.bf16.gmra.mrb[208].mxu0 %v9825_v25  ;;  %v8246_v42 = vpop.f32.mrb[103].mxu1  ;;  %v9843_v25 = vld [vmem:[%s10385_s13 + $0xa50] ss:$108 sps:$4 sm:$0xff]  }
 0x1fb   : > { %v4811_v39 = vadd.f32 %v8147_v32, %v11006_v0  ;;  %5381 = vmatprep.mubr.bf16.mxu0 %v9832_v7  ;;  %v8247_v43 = vadd.f32 %v8246_v42, %v8245_v34  ;;  %v11232_v37 = vadd.f32 %v8244_v33, %v4808_v31 }
 0x1fc   : > { %5518 = vmatmul.mubr.bf16.gmra.mrb[208].mxu1 %v9828_v41  ;;  %v9846_v41 = vld [vmem:[%s10385_s13 + $0xa58] ss:$108 sps:$4 sm:$0xff]  }
 0x1fd   : > { %v8148_v3 = vpop.f32.mrb[104].mxu0  ;;  %5525 = vmatprep.mubr.bf16.mxu1 %v9836_v16  ;;  %v11235_v60 = vadd.f32 %v8247_v43, %v4811_v39  ;;  %v7369_v16 = vcombine.high %v745_v24, %v745_v24 }
 0x1fe   : > { %v8149_v57 = vpop.f32.mrb[105].mxu0 }
 0x1ff   : > { %v8150_v46 = vadd.f32 %v8149_v57, %v8148_v3  ;;  %v8151_v54 = vpop.f32.mrb[106].mxu0  ;;  %v8248_v59 = vpop.f32.mrb[104].mxu1  ;;  %v7366_v57 = vcombine.low %v744_v14, %v744_v14 }
 0x200   : > { %v8152_v0 = vpop.f32.mrb[107].mxu0  ;;  %v8249_v2 = vpop.f32.mrb[105].mxu1 }
 0x201   : > { %v4816_v11 = vadd.f32 %v8150_v46, %v11012_v27  ;;  %v8153_v63 = vadd.f32 %v8152_v0, %v8151_v54  ;;  %v8250_v1 = vadd.f32 %v8249_v2, %v8248_v59  ;;  %v8251_v5 = vpop.f32.mrb[106].mxu1 }
 0x202   : > { %5382 = vmatmul.mubr.bf16.gmra.mrb[212].mxu0 %v9835_v56  ;;  %v8252_v40 = vpop.f32.mrb[107].mxu1 }
 0x203   : > { %v4819_v8 = vadd.f32 %v8153_v63, %v11016_v36  ;;  %5389 = vmatprep.mubr.bf16.mxu0 %v9840_v58  ;;  %v8253_v9 = vadd.f32 %v8252_v40, %v8251_v5  ;;  %v11243_v30 = vadd.f32 %v8250_v1, %v4816_v11  ;;  %v7368_v63 = vcombine.low %v745_v24, %v745_v24  ;;  %v9867_v1 = vld [vmem:[%s10385_s13 + $0x4c] ss:$108 sps:$4 sm:$0xff]  }
 0x204   : > { %5526 = vmatmul.mubr.bf16.gmra.mrb[212].mxu1 %v9838_v62  ;;  %v9875_v24 = vld [vmem:[%s12105_s1 + $0x548] sm:$0xff]  }
 0x205   : > { %v8154_v27 = vpop.f32.mrb[108].mxu0  ;;  %5533 = vmatprep.mubr.bf16.mxu1 %v9844_v6  ;;  %v11246_v21 = vadd.f32 %v8253_v9, %v4819_v8 }
 0x206   : > { %v8155_v23 = vpop.f32.mrb[109].mxu0 }
 0x207   : > { %v8156_v38 = vadd.f32 %v8155_v23, %v8154_v27  ;;  %v8157_v7 = vpop.f32.mrb[110].mxu0  ;;  %v8254_v31 = vpop.f32.mrb[108].mxu1  ;;  %v9860_v27 = vld [vmem:[%s10385_s13 + $0x40] ss:$108 sps:$4 sm:$0xff]  }
 0x208   : > { %v8158_v36 = vpop.f32.mrb[111].mxu0  ;;  %v8255_v28 = vpop.f32.mrb[109].mxu1 }
 0x209   : > { %v4824_v32 = vadd.f32 %v8156_v38, %v11020_v61  ;;  %v8256_v33 = vadd.f32 %v8255_v28, %v8254_v31  ;;  %v8257_v34 = vpop.f32.mrb[110].mxu1  ;;  %v9862_v61 = vld [vmem:[%s10385_s13 + $0x44] ss:$108 sps:$4 sm:$0xff]   ;;  %v9869_v38 = vld [vmem:[%s10385_s13 + $0x11c] ss:$108 sps:$4 sm:$0xff]  }
 0x20a   : > { %5390 = vmatmul.mubr.bf16.gmra.mrb[216].mxu0 %v9843_v25  ;;  %v8258_v39 = vpop.f32.mrb[111].mxu1  ;;  %v9865_v28 = vld [vmem:[%s10385_s13 + $0x48] ss:$108 sps:$4 sm:$0xff]   ;;  %v9872_v34 = vld [vmem:[%s10385_s13 + $0x124] ss:$108 sps:$4 sm:$0xff]  }
 0x20b   : > { %5397 = vmatprep.mubr.bf16.mxu0 %v7367_v22  ;;  %v11251_v42 = vadd.f32 %v8256_v33, %v4824_v32 }
 0x20c   : > { %5534 = vmatmul.mubr.bf16.gmra.mrb[216].mxu1 %v9846_v41 }
 0x20d   : > { %v8276_v43 = vpop.f32.mrb[112].mxu0  ;;  %5541 = vmatprep.mubr.bf16.mxu1 %v7369_v16  ;;  %v9920_v16 = vld [vmem:[%s12105_s1 + $0x580] sm:$0xff]  }
 0x20e   : > { %v8277_v3 = vpop.f32.mrb[113].mxu0 }
 0x20f   : > { %v8278_v56 = vadd.f32 %v8277_v3, %v8276_v43  ;;  %v8279_v46 = vpop.f32.mrb[114].mxu0  ;;  %v8376_v54 = vpop.f32.mrb[112].mxu1  ;;  %v9932_v3 = vld [vmem:[%s12105_s1 + $0x5c8] sm:$0xff]  }
 0x210   : > { %v8280_v58 = vpop.f32.mrb[115].mxu0  ;;  %v8377_v11 = vpop.f32.mrb[113].mxu1 }
 0x211   : > { %v8281_v59 = vadd.f32 %v8280_v58, %v8279_v46  ;;  %v5008_v0 = vadd.f32 %v8278_v56, %v11026_v26  ;;  %v8378_v2 = vadd.f32 %v8377_v11, %v8376_v54  ;;  %v8379_v62 = vpop.f32.mrb[114].mxu1  ;;  %v9871_v58 = vld [vmem:[%s10385_s13 + $0x118] ss:$108 sps:$4 sm:$0xff]  }
 0x212   : > { %5398 = vmatmul.mubr.bf16.gmra.mrb[220].mxu0 %v7366_v57  ;;  %v8380_v6 = vpop.f32.mrb[115].mxu1 }
 0x213   : > { %v5011_v5 = vadd.f32 %v8281_v59, %v11033_v35  ;;  %5581 = vmatprep.mubr.bf16.mxu0 %v9862_v61  ;;  %v11257_v8 = vadd.f32 %v8378_v2, %v5008_v0  ;;  %v8381_v40 = vadd.f32 %v8380_v6, %v8379_v62  ;;  %v9868_v35 = vld [vmem:[%s12105_s1 + $0x500] sm:$0xff]   ;;  %v9936_v59 = vld [vmem:[%s12105_s1 + $0x588] sm:$0xff]   ;;  %v9890_v2 = vld [vmem:[%s12105_s1 + $0x510] sm:$0xff]  }
 0x214   : > { %5542 = vmatmul.mubr.bf16.gmra.mrb[220].mxu1 %v7368_v63  ;;  %v9876_v63 = vld [vmem:[%s10385_s13 + $0x1f4] ss:$108 sps:$4 sm:$0xff]  }
 0x215   : > { %v8282_v9 = vpop.f32.mrb[116].mxu0  ;;  %v11259_v14 = vadd.f32 %v8381_v40, %v5011_v5  ;;  %5725 = vmatprep.mubr.bf16.mxu1 %v9867_v1  ;;  %v9903_v5 = vld [vmem:[%s12105_s1 + $0x558] sm:$0xff]   ;;  %v9945_v6 = vld [vmem:[%s12105_s1 + $0x5d0] sm:$0xff]  }
 0x216   : > { %v8283_v26 = vpop.f32.mrb[117].mxu0 }
 0x217   : > { %v8284_v23 = vadd.f32 %v8283_v26, %v8282_v9  ;;  %v8285_v25 = vpop.f32.mrb[118].mxu0  ;;  %v8382_v7 = vpop.f32.mrb[116].mxu1 }
 0x218   : > { %v8286_v22 = vpop.f32.mrb[119].mxu0  ;;  %v8383_v32 = vpop.f32.mrb[117].mxu1 }
 0x219   : > { %v8287_v31 = vadd.f32 %v8286_v22, %v8285_v25  ;;  %v5016_v36 = vadd.f32 %v8284_v23, %v11051_v4  ;;  %v8384_v41 = vadd.f32 %v8383_v32, %v8382_v7  ;;  %v8385_v33 = vpop.f32.mrb[118].mxu1  ;;  %v9878_v4 = vld [vmem:[%s12105_s1 + $0x508] sm:$0xff]  }
 0x21a   : > { %5582 = vmatmul.mubr.bf16.vlgmr.msra.gmra.mrb[224].mxu0 %v9860_v27  ;;  %v8386_v43 = vpop.f32.mrb[119].mxu1  ;;  %v9874_v27 = vld [vmem:[%s10385_s13 + $0x120] ss:$108 sps:$4 sm:$0xff]  }
 0x21b   : > { %v5019_v39 = vadd.f32 %v8287_v31, %v11064_v15  ;;  %8861 = vmatpush3.bf16.msra.mxu0 %v9868_v35  ;;  %5589 = vmatprep.mubr.bf16.mxu0 %v9869_v38  ;;  %v11282_v57 = vadd.f32 %v8384_v41, %v5016_v36  ;;  %v8387_v56 = vadd.f32 %v8386_v43, %v8385_v33  ;;  %v9889_v15 = vld [vmem:[%s12105_s1 + $0x550] sm:$0xff]   ;;  %v9880_v35 = vld [vmem:[%s10385_s13 + $0x1fc] ss:$108 sps:$4 sm:$0xff]  }
 0x21c   : > { %8862 = vmatprep.subr.bf16.mxu0 %v9875_v24  ;;  %5726 = vmatmul.mubr.bf16.vlgmr.msra.gmra.mrb[224].mxu1 %v9865_v28  ;;  %v9949_v38 = vld [vmem:[%s12105_s1 + $0x590] sm:$0xff]   ;;  %v9953_v24 = vld [vmem:[%s12105_s1 + $0x5d8] sm:$0xff]  }
 0x21d   : > { %v8288_v46 = vpop.f32.mrb[120].mxu0  ;;  %v11287_v61 = vadd.f32 %v8387_v56, %v5019_v39  ;;  %5733 = vmatprep.mubr.bf16.mxu1 %v9872_v34  ;;  %8961 = vmatpush3.bf16.msra.mxu1 %v9920_v16  ;;  %v9879_v33 = vld [vmem:[%s10385_s13 + $0x1f0] ss:$108 sps:$4 sm:$0xff]   ;;  %v9883_v43 = vld [vmem:[%s10385_s13 + $0x2cc] ss:$108 sps:$4 sm:$0xff]  }
 0x21e   : > { %v8289_v54 = vpop.f32.mrb[121].mxu0  ;;  %8962 = vmatprep.subr.bf16.mxu1 %v9932_v3  ;;  %v9957_v34 = vld [vmem:[%s12105_s1 + $0x598] sm:$0xff]  }
 0x21f   : > { %v8290_v0 = vadd.f32 %v8289_v54, %v8288_v46  ;;  %v8291_v11 = vpop.f32.mrb[122].mxu0  ;;  %8863 = vmatpush3.bf16.msra.mxu0 %v9878_v4  ;;  %v8388_v62 = vpop.f32.mrb[120].mxu1  ;;  %v9917_v4 = vld [vmem:[%s12105_s1 + $0x520] sm:$0xff]  }
 0x220   : > { %v8292_v1 = vpop.f32.mrb[123].mxu0  ;;  %8864 = vmatprep.subr.bf16.mxu0 %v9889_v15  ;;  %v8389_v26 = vpop.f32.mrb[121].mxu1  ;;  %v9927_v15 = vld [vmem:[%s12105_s1 + $0x568] sm:$0xff]   ;;  %v9962_v46 = vld [vmem:[%s12105_s1 + $0x5e0] sm:$0xff]  }
 0x221   : > { %v8293_v40 = vadd.f32 %v8292_v1, %v8291_v11  ;;  %v5024_v9 = vadd.f32 %v8290_v0, %v11088_v49  ;;  %v8390_v23 = vadd.f32 %v8389_v26, %v8388_v62  ;;  %v8391_v25 = vpop.f32.mrb[122].mxu1  ;;  %8963 = vmatpush3.bf16.msra.mxu1 %v9936_v59  ;;  %v9904_v49 = vld [vmem:[%s12105_s1 + $0x518] sm:$0xff]   ;;  %v9964_v62 = vld [vmem:[%s12105_s1 + $0x5a0] sm:$0xff]  }
 0x222   : > { %5590 = vmatmul.mubr.bf16.gmra.mrb[228].mxu0 %v9871_v58  ;;  %v8392_v22 = vpop.f32.mrb[123].mxu1  ;;  %8964 = vmatprep.subr.bf16.mxu1 %v9945_v6  ;;  %v9882_v0 = vld [vmem:[%s10385_s13 + $0x1f8] ss:$108 sps:$4 sm:$0xff]  }
 0x223   : > { %v5027_v7 = vadd.f32 %v8293_v40, %v11095_v55  ;;  %5597 = vmatprep.mubr.bf16.mxu0 %v9876_v63  ;;  %8865 = vmatpush3.bf16.msra.mxu0 %v9890_v2  ;;  %v11316_v31 = vadd.f32 %v8390_v23, %v5024_v9  ;;  %v8393_v36 = vadd.f32 %v8392_v22, %v8391_v25  ;;  %v9914_v55 = vld [vmem:[%s12105_s1 + $0x560] sm:$0xff]   ;;  %v9965_v6 = vld [vmem:[%s12105_s1 + $0x5e8] sm:$0xff]  }
 0x224   : > { %8866 = vmatprep.subr.bf16.mxu0 %v9903_v5  ;;  %5734 = vmatmul.mubr.bf16.gmra.mrb[228].mxu1 %v9874_v27  ;;  %v9886_v2 = vld [vmem:[%s10385_s13 + $0x2d4] ss:$108 sps:$4 sm:$0xff]   ;;  %v9891_v22 = vld [vmem:[%s10385_s13 + $0x3a4] ss:$108 sps:$4 sm:$0xff]  }
 0x225   : > { %v8294_v32 = vpop.f32.mrb[124].mxu0  ;;  %v11321_v28 = vadd.f32 %v8393_v36, %v5027_v7  ;;  %5741 = vmatprep.mubr.bf16.mxu1 %v9880_v35  ;;  %8965 = vmatpush3.bf16.msra.mxu1 %v9949_v38  ;;  %v9885_v25 = vld [vmem:[%s10385_s13 + $0x2c8] ss:$108 sps:$4 sm:$0xff]  }
 0x226   : > { %v8295_v41 = vpop.f32.mrb[125].mxu0  ;;  %8966 = vmatprep.subr.bf16.mxu1 %v9953_v24  ;;  %v9968_v35 = vld [vmem:[%s12105_s1 + $0x5a8] sm:$0xff]  }
 0x227   : > { %v8296_v16 = vadd.f32 %v8295_v41, %v8294_v32  ;;  %v8297_v39 = vpop.f32.mrb[126].mxu0  ;;  %8867 = vmatpush3.bf16.msra.mxu0 %v9904_v49  ;;  %v8394_v3 = vpop.f32.mrb[124].mxu1  ;;  %v9944_v49 = vld [vmem:[%s12105_s1 + $0x530] sm:$0xff]  }
 0x228   : > { %v8298_v56 = vpop.f32.mrb[127].mxu0  ;;  %8868 = vmatprep.subr.bf16.mxu0 %v9914_v55  ;;  %v8395_v59 = vpop.f32.mrb[125].mxu1  ;;  %v9961_v55 = vld [vmem:[%s12105_s1 + $0x578] sm:$0xff]   ;;  %v9971_v32 = vld [vmem:[%s12105_s1 + $0x5f0] sm:$0xff]  }
 0x229   : > { %v8299_v54 = vadd.f32 %v8298_v56, %v8297_v39  ;;  %v5032_v58 = vadd.f32 %v8296_v16, %v11122_v29  ;;  %v8396_v11 = vadd.f32 %v8395_v59, %v8394_v3  ;;  %v8397_v63 = vpop.f32.mrb[126].mxu1  ;;  %8967 = vmatpush3.bf16.msra.mxu1 %v9957_v34  ;;  %v9931_v29 = vld [vmem:[%s12105_s1 + $0x528] sm:$0xff]   ;;  %v9888_v16 = vld [vmem:[%s10385_s13 + $0x2d0] ss:$108 sps:$4 sm:$0xff]  }
 0x22a   : > { %5598 = vmatmul.mubr.bf16.gmra.mrb[232].mxu0 %v9879_v33  ;;  %v8398_v5 = vpop.f32.mrb[127].mxu1  ;;  %8968 = vmatprep.subr.bf16.mxu1 %v9962_v46  ;;  %v9972_v3 = vld [vmem:[%s12105_s1 + $0x5b0] sm:$0xff]   ;;  %v9973_v46 = vld [vmem:[%s12105_s1 + $0x5f8] sm:$0xff]  }
 0x22b   : > { %v5035_v1 = vadd.f32 %v8299_v54, %v11132_v48  ;;  %5605 = vmatprep.mubr.bf16.mxu0 %v9883_v43  ;;  %8869 = vmatpush3.bf16.msra.mxu0 %v9917_v4  ;;  %v11350_v40 = vadd.f32 %v8396_v11, %v5032_v58  ;;  %v8399_v9 = vadd.f32 %v8398_v5, %v8397_v63  ;;  %v9943_v48 = vld [vmem:[%s12105_s1 + $0x570] sm:$0xff]   ;;  %v9897_v5 = vld [vmem:[%s10385_s13 + $0x47c] ss:$108 sps:$4 sm:$0xff]  }
 0x22c   : > { %8870 = vmatprep.subr.bf16.mxu0 %v9927_v15  ;;  %5742 = vmatmul.mubr.bf16.gmra.mrb[232].mxu1 %v9882_v0  ;;  %v9894_v4 = vld [vmem:[%s10385_s13 + $0x3ac] ss:$108 sps:$4 sm:$0xff]  }
 0x22d   : > { %v8300_v26 = vpop.f32.mrb[128].mxu0  ;;  %v11355_v27 = vadd.f32 %v8399_v9, %v5035_v1  ;;  %5749 = vmatprep.mubr.bf16.mxu1 %v9886_v2  ;;  %8969 = vmatpush3.bf16.msra.mxu1 %v9964_v62  ;;  %v9893_v63 = vld [vmem:[%s10385_s13 + $0x3a0] ss:$108 sps:$4 sm:$0xff]   ;;  %v9977_v2 = vld [vmem:[%s12105_s1 + $0x5b8] sm:$0xff]  }
 0x22e   : > { %v8301_v23 = vpop.f32.mrb[129].mxu0  ;;  %8970 = vmatprep.subr.bf16.mxu1 %v9965_v6 }
 0x22f   : > { %v8302_v38 = vadd.f32 %v8301_v23, %v8300_v26  ;;  %v8303_v7 = vpop.f32.mrb[130].mxu0  ;;  %8871 = vmatpush3.bf16.msra.mxu0 %v9931_v29  ;;  %v8400_v24 = vpop.f32.mrb[128].mxu1  ;;  %v9896_v23 = vld [vmem:[%s10385_s13 + $0x3a8] ss:$108 sps:$4 sm:$0xff]  }
 0x230   : > { %v8304_v36 = vpop.f32.mrb[131].mxu0  ;;  %8872 = vmatprep.subr.bf16.mxu0 %v9943_v48  ;;  %v8401_v34 = vpop.f32.mrb[129].mxu1 }
 0x231   : > { %v8305_v41 = vadd.f32 %v8304_v36, %v8303_v7  ;;  %v5040_v33 = vadd.f32 %v8302_v38, %v11156_v10  ;;  %v8402_v39 = vadd.f32 %v8401_v34, %v8400_v24  ;;  %v8403_v43 = vpop.f32.mrb[130].mxu1  ;;  %8971 = vmatpush3.bf16.msra.mxu1 %v9968_v35  ;;  %v9963_v10 = vld [vmem:[%s12105_s1 + $0x538] sm:$0xff]   ;;  %v9900_v38 = vld [vmem:[%s10385_s13 + $0x484] ss:$108 sps:$4 sm:$0xff]  }
 0x232   : > { %5606 = vmatmul.mubr.bf16.gmra.mrb[236].mxu0 %v9885_v25  ;;  %v8404_v15 = vpop.f32.mrb[131].mxu1  ;;  %8972 = vmatprep.subr.bf16.mxu1 %v9971_v32  ;;  %v9899_v32 = vld [vmem:[%s10385_s13 + $0x478] ss:$108 sps:$4 sm:$0xff]   ;;  %v9905_v34 = vld [vmem:[%s10385_s13 + $0x554] ss:$108 sps:$4 sm:$0xff]  }
 0x233   : > { %v5043_v56 = vadd.f32 %v8305_v41, %v11159_v18  ;;  %5613 = vmatprep.mubr.bf16.mxu0 %v9891_v22  ;;  %8873 = vmatpush3.bf16.msra.mxu0 %v9944_v49  ;;  %v11384_v54 = vadd.f32 %v8402_v39, %v5040_v33  ;;  %v8405_v58 = vadd.f32 %v8404_v15, %v8403_v43  ;;  %v9978_v18 = vld [vmem:[%s12105_s1 + $0x640] sm:$0xff]  }
 0x234   : > { %8874 = vmatprep.subr.bf16.mxu0 %v9961_v55  ;;  %5750 = vmatmul.mubr.bf16.gmra.mrb[236].mxu1 %v9888_v16 }
 0x235   : > { %v8306_v59 = vpop.f32.mrb[132].mxu0  ;;  %v11389_v0 = vadd.f32 %v8405_v58, %v5043_v56  ;;  %5757 = vmatprep.mubr.bf16.mxu1 %v9894_v4  ;;  %8973 = vmatpush3.bf16.msra.mxu1 %v9972_v3  ;;  %v9902_v3 = vld [vmem:[%s10385_s13 + $0x480] ss:$108 sps:$4 sm:$0xff]  }
 0x236   : > { %v8307_v11 = vpop.f32.mrb[133].mxu0  ;;  %8974 = vmatprep.subr.bf16.mxu1 %v9973_v46 }
 0x237   : > { %v8308_v62 = vadd.f32 %v8307_v11, %v8306_v59  ;;  %v8309_v1 = vpop.f32.mrb[134].mxu0  ;;  %8875 = vmatpush3.bf16.msra.mxu0 %v9963_v10  ;;  %v8406_v29 = vpop.f32.mrb[132].mxu1  ;;  %v9908_v10 = vld [vmem:[%s10385_s13 + $0x55c] ss:$108 sps:$4 sm:$0xff]  }
 0x238   : > { %v8310_v6 = vpop.f32.mrb[135].mxu0  ;;  %9060 = vmatprep.subr.bf16.mxu0 %v9978_v18  ;;  %v8407_v26 = vpop.f32.mrb[133].mxu1 }
 0x239   : > { %v8311_v9 = vadd.f32 %v8310_v6, %v8309_v1  ;;  %v5048_v48 = vadd.f32 %v8308_v62, %v11169_v44  ;;  %v8408_v25 = vadd.f32 %v8407_v26, %v8406_v29  ;;  %v8409_v35 = vpop.f32.mrb[134].mxu1  ;;  %8975 = vmatpush3.bf16.msra.mxu1 %v9977_v2  ;;  %v9907_v2 = vld [vmem:[%s10385_s13 + $0x550] ss:$108 sps:$4 sm:$0xff]  }
 0x23a   : > { %5614 = vmatmul.mubr.bf16.gmra.mrb[240].mxu0 %v9893_v63  ;;  %v8410_v22 = vpop.f32.mrb[135].mxu1  ;;  %v11418_v62 = vld [vmem:[%s12105_s1 + $0x680] sm:$0xff]  }
 0x23b   : > { %v5051_v7 = vadd.f32 %v8311_v9, %v11173_v52  ;;  %5621 = vmatprep.mubr.bf16.mxu0 %v9897_v5  ;;  %v11400_v49 = vadd.f32 %v8408_v25, %v5048_v48  ;;  %v8411_v24 = vadd.f32 %v8410_v22, %v8409_v35  ;;  %v9911_v5 = vld [vmem:[%s10385_s13 + $0x62c] ss:$108 sps:$4 sm:$0xff]   ;;  %9182 = vmatprep.subr.bf16.mxu1 %v11418_v62 }
 0x23c   : > { %5758 = vmatmul.mubr.bf16.gmra.mrb[240].mxu1 %v9896_v23  ;;  %v9910_v23 = vld [vmem:[%s10385_s13 + $0x558] ss:$108 sps:$4 sm:$0xff]  }
 0x23d   : > { %v8312_v36 = vpop.f32.mrb[136].mxu0  ;;  %v11402_v44 = vadd.f32 %v8411_v24, %v5051_v7  ;;  %5765 = vmatprep.mubr.bf16.mxu1 %v9900_v38  ;;  %v9915_v38 = vld [vmem:[%s10385_s13 + $0x634] ss:$108 sps:$4 sm:$0xff]  }
 0x23e   : > { %v8313_v55 = vpop.f32.mrb[137].mxu0 }
 0x23f   : > { %v8314_v41 = vadd.f32 %v8313_v55, %v8312_v36  ;;  %v8315_v33 = vpop.f32.mrb[138].mxu0  ;;  %v8412_v16 = vpop.f32.mrb[136].mxu1 }
 0x240   : > { %v8316_v39 = vpop.f32.mrb[139].mxu0  ;;  %v8413_v4 = vpop.f32.mrb[137].mxu1 }
 0x241   : > { %v5056_v52 = vadd.f32 %v8314_v41, %v11179_v13  ;;  %v8317_v43 = vadd.f32 %v8316_v39, %v8315_v33  ;;  %v8414_v56 = vadd.f32 %v8413_v4, %v8412_v16  ;;  %v8415_v15 = vpop.f32.mrb[138].mxu1  ;;  %v9913_v41 = vld [vmem:[%s10385_s13 + $0x628] ss:$108 sps:$4 sm:$0xff]   ;;  %v9923_v16 = vld [vmem:[%s10385_s13 + $0x704] ss:$108 sps:$4 sm:$0xff]  }
 0x242   : > { %5622 = vmatmul.mubr.bf16.gmra.mrb[244].mxu0 %v9899_v32  ;;  %v8416_v58 = vpop.f32.mrb[139].mxu1 }
 0x243   : > { %v5059_v46 = vadd.f32 %v8317_v43, %v11182_v50  ;;  %5629 = vmatprep.mubr.bf16.mxu0 %v9905_v34  ;;  %v11410_v18 = vadd.f32 %v8414_v56, %v5056_v52  ;;  %v8417_v59 = vadd.f32 %v8416_v58, %v8415_v15 }
 0x244   : > { %5766 = vmatmul.mubr.bf16.gmra.mrb[244].mxu1 %v9902_v3  ;;  %v9918_v3 = vld [vmem:[%s10385_s13 + $0x630] ss:$108 sps:$4 sm:$0xff]  }
 0x245   : > { %v8318_v11 = vpop.f32.mrb[140].mxu0  ;;  %v11412_v13 = vadd.f32 %v8417_v59, %v5059_v46  ;;  %5773 = vmatprep.mubr.bf16.mxu1 %v9908_v10  ;;  %v9926_v10 = vld [vmem:[%s10385_s13 + $0x70c] ss:$108 sps:$4 sm:$0xff]  }
 0x246   : > { %v8319_v63 = vpop.f32.mrb[141].mxu0 }
 0x247   : > { %v8320_v50 = vadd.f32 %v8319_v63, %v8318_v11  ;;  %v8321_v1 = vpop.f32.mrb[142].mxu0  ;;  %v8418_v29 = vpop.f32.mrb[140].mxu1 }
 0x248   : > { %v8322_v6 = vpop.f32.mrb[143].mxu0  ;;  %v8419_v26 = vpop.f32.mrb[141].mxu1 }
 0x249   : > { %v5064_v9 = vadd.f32 %v8320_v50, %v11192_v47  ;;  %v8323_v48 = vadd.f32 %v8322_v6, %v8321_v1  ;;  %v8420_v25 = vadd.f32 %v8419_v26, %v8418_v29  ;;  %v8421_v35 = vpop.f32.mrb[142].mxu1  ;;  %v9921_v50 = vld [vmem:[%s10385_s13 + $0x700] ss:$108 sps:$4 sm:$0xff]   ;;  %v9930_v29 = vld [vmem:[%s10385_s13 + $0x7dc] ss:$108 sps:$4 sm:$0xff]  }
 0x24a   : > { %5630 = vmatmul.mubr.bf16.gmra.mrb[248].mxu0 %v9907_v2  ;;  %v8422_v22 = vpop.f32.mrb[143].mxu1 }
 0x24b   : > { %v5067_v7 = vadd.f32 %v8323_v48, %v11195_v53  ;;  %5637 = vmatprep.mubr.bf16.mxu0 %v9911_v5  ;;  %v11426_v24 = vadd.f32 %v8420_v25, %v5064_v9  ;;  %v8423_v36 = vadd.f32 %v8422_v22, %v8421_v35 }
 0x24c   : > { %5774 = vmatmul.mubr.bf16.gmra.mrb[248].mxu1 %v9910_v23  ;;  %v9924_v23 = vld [vmem:[%s10385_s13 + $0x708] ss:$108 sps:$4 sm:$0xff]  }
 0x24d   : > { %v8324_v55 = vpop.f32.mrb[144].mxu0  ;;  %v11428_v47 = vadd.f32 %v8423_v36, %v5067_v7  ;;  %5781 = vmatprep.mubr.bf16.mxu1 %v9915_v38  ;;  %v9935_v38 = vld [vmem:[%s10385_s13 + $0x7e4] ss:$108 sps:$4 sm:$0xff]  }
 0x24e   : > { %v8325_v32 = vpop.f32.mrb[145].mxu0 }
 0x24f   : > { %v8326_v33 = vadd.f32 %v8325_v32, %v8324_v55  ;;  %v8327_v34 = vpop.f32.mrb[146].mxu0  ;;  %v8424_v39 = vpop.f32.mrb[144].mxu1 }
 0x250   : > { %v8328_v52 = vpop.f32.mrb[147].mxu0  ;;  %v8425_v4 = vpop.f32.mrb[145].mxu1 }
 0x251   : > { %v5072_v53 = vadd.f32 %v8326_v33, %v11202_v17  ;;  %v8329_v43 = vadd.f32 %v8328_v52, %v8327_v34  ;;  %v8426_v56 = vadd.f32 %v8425_v4, %v8424_v39  ;;  %v8427_v15 = vpop.f32.mrb[146].mxu1  ;;  %v9928_v33 = vld [vmem:[%s10385_s13 + $0x7d8] ss:$108 sps:$4 sm:$0xff]   ;;  %v9939_v39 = vld [vmem:[%s10385_s13 + $0x8b4] ss:$108 sps:$4 sm:$0xff]  }
 0x252   : > { %5638 = vmatmul.mubr.bf16.gmra.mrb[252].mxu0 %v9913_v41  ;;  %v8428_v58 = vpop.f32.mrb[147].mxu1 }
 0x253   : > { %v5075_v46 = vadd.f32 %v8329_v43, %v11205_v20  ;;  %5645 = vmatprep.mubr.bf16.mxu0 %v9923_v16  ;;  %v11436_v59 = vadd.f32 %v8426_v56, %v5072_v53  ;;  %v8429_v11 = vadd.f32 %v8428_v58, %v8427_v15 }
 0x254   : > { %5782 = vmatmul.mubr.bf16.gmra.mrb[252].mxu1 %v9918_v3  ;;  %v9933_v3 = vld [vmem:[%s10385_s13 + $0x7e0] ss:$108 sps:$4 sm:$0xff]  }
 0x255   : > { %v8330_v63 = vpop.f32.mrb[148].mxu0  ;;  %v11438_v17 = vadd.f32 %v8429_v11, %v5075_v46  ;;  %5789 = vmatprep.mubr.bf16.mxu1 %v9926_v10  ;;  %v9942_v10 = vld [vmem:[%s10385_s13 + $0x8bc] ss:$108 sps:$4 sm:$0xff]  }
 0x256   : > { %v8331_v2 = vpop.f32.mrb[149].mxu0 }
 0x257   : > { %v8332_v1 = vadd.f32 %v8331_v2, %v8330_v63  ;;  %v8333_v5 = vpop.f32.mrb[150].mxu0  ;;  %v8430_v6 = vpop.f32.mrb[148].mxu1 }
 0x258   : > { %v8334_v9 = vpop.f32.mrb[151].mxu0  ;;  %v8431_v26 = vpop.f32.mrb[149].mxu1 }
 0x259   : > { %v5080_v20 = vadd.f32 %v8332_v1, %v11212_v45  ;;  %v8335_v48 = vadd.f32 %v8334_v9, %v8333_v5  ;;  %v8432_v25 = vadd.f32 %v8431_v26, %v8430_v6  ;;  %v8433_v35 = vpop.f32.mrb[150].mxu1  ;;  %v9937_v1 = vld [vmem:[%s10385_s13 + $0x8b0] ss:$108 sps:$4 sm:$0xff]   ;;  %v9948_v6 = vld [vmem:[%s10385_s13 + $0x98c] ss:$108 sps:$4 sm:$0xff]  }
 0x25a   : > { %5646 = vmatmul.mubr.bf16.gmra.mrb[0].mxu0 %v9921_v50  ;;  %v8434_v22 = vpop.f32.mrb[151].mxu1 }
 0x25b   : > { %v5083_v7 = vadd.f32 %v8335_v48, %v11215_v51  ;;  %5653 = vmatprep.mubr.bf16.mxu0 %v9930_v29  ;;  %v11446_v36 = vadd.f32 %v8432_v25, %v5080_v20  ;;  %v8435_v55 = vadd.f32 %v8434_v22, %v8433_v35 }
 0x25c   : > { %5790 = vmatmul.mubr.bf16.gmra.mrb[0].mxu1 %v9924_v23  ;;  %v9940_v23 = vld [vmem:[%s10385_s13 + $0x8b8] ss:$108 sps:$4 sm:$0xff]  }
 0x25d   : > { %v8336_v32 = vpop.f32.mrb[152].mxu0  ;;  %v11448_v45 = vadd.f32 %v8435_v55, %v5083_v7  ;;  %5797 = vmatprep.mubr.bf16.mxu1 %v9935_v38  ;;  %v9952_v38 = vld [vmem:[%s10385_s13 + $0x994] ss:$108 sps:$4 sm:$0xff]  }
 0x25e   : > { %v8337_v41 = vpop.f32.mrb[153].mxu0 }
 0x25f   : > { %v8338_v34 = vadd.f32 %v8337_v41, %v8336_v32  ;;  %v8339_v16 = vpop.f32.mrb[154].mxu0  ;;  %v8436_v52 = vpop.f32.mrb[152].mxu1 }
 0x260   : > { %v8340_v53 = vpop.f32.mrb[155].mxu0  ;;  %v8437_v4 = vpop.f32.mrb[153].mxu1 }
 0x261   : > { %v5088_v51 = vadd.f32 %v8338_v34, %v11222_v12  ;;  %v8341_v43 = vadd.f32 %v8340_v53, %v8339_v16  ;;  %v8438_v56 = vadd.f32 %v8437_v4, %v8436_v52  ;;  %v8439_v15 = vpop.f32.mrb[154].mxu1  ;;  %v9946_v34 = vld [vmem:[%s10385_s13 + $0x988] ss:$108 sps:$4 sm:$0xff]   ;;  %v9956_v52 = vld [vmem:[%s10385_s13 + $0xa64] ss:$108 sps:$4 sm:$0xff]  }
 0x262   : > { %5654 = vmatmul.mubr.bf16.gmra.mrb[4].mxu0 %v9928_v33  ;;  %v8440_v58 = vpop.f32.mrb[155].mxu1 }
 0x263   : > { %v5091_v46 = vadd.f32 %v8341_v43, %v11225_v19  ;;  %5661 = vmatprep.mubr.bf16.mxu0 %v9939_v39  ;;  %v11456_v11 = vadd.f32 %v8438_v56, %v5088_v51  ;;  %v8441_v63 = vadd.f32 %v8440_v58, %v8439_v15 }
 0x264   : > { %5798 = vmatmul.mubr.bf16.gmra.mrb[4].mxu1 %v9933_v3  ;;  %v9950_v3 = vld [vmem:[%s10385_s13 + $0x990] ss:$108 sps:$4 sm:$0xff]  }
 0x265   : > { %v8342_v2 = vpop.f32.mrb[156].mxu0  ;;  %v11458_v12 = vadd.f32 %v8441_v63, %v5091_v46  ;;  %5805 = vmatprep.mubr.bf16.mxu1 %v9942_v10  ;;  %v9960_v10 = vld [vmem:[%s10385_s13 + $0xa6c] ss:$108 sps:$4 sm:$0xff]  }
 0x266   : > { %v8343_v50 = vpop.f32.mrb[157].mxu0 }
 0x267   : > { %v8344_v5 = vadd.f32 %v8343_v50, %v8342_v2  ;;  %v8345_v29 = vpop.f32.mrb[158].mxu0  ;;  %v8442_v9 = vpop.f32.mrb[156].mxu1  ;;  %v746_v50 = vld [vmem:[%s10385_s13 + $0xb38] sm:$0xff] }
 0x268   : > { %v8346_v20 = vpop.f32.mrb[159].mxu0  ;;  %v8443_v26 = vpop.f32.mrb[157].mxu1 }
 0x269   : > { %v5096_v19 = vadd.f32 %v8344_v5, %v11232_v37  ;;  %v8347_v48 = vadd.f32 %v8346_v20, %v8345_v29  ;;  %v8444_v25 = vadd.f32 %v8443_v26, %v8442_v9  ;;  %v8445_v35 = vpop.f32.mrb[158].mxu1  ;;  %v9954_v29 = vld [vmem:[%s10385_s13 + $0xa60] ss:$108 sps:$4 sm:$0xff]   ;;  %v7371_v20 = vcombine.high %v746_v50, %v746_v50 }
 0x26a   : > { %5662 = vmatmul.mubr.bf16.gmra.mrb[8].mxu0 %v9937_v1  ;;  %v8446_v22 = vpop.f32.mrb[159].mxu1 }
 0x26b   : > { %v5099_v7 = vadd.f32 %v8347_v48, %v11235_v60  ;;  %5669 = vmatprep.mubr.bf16.mxu0 %v9948_v6  ;;  %v11466_v55 = vadd.f32 %v8444_v25, %v5096_v19  ;;  %v8447_v32 = vadd.f32 %v8446_v22, %v8445_v35  ;;  %v747_v19 = vld [vmem:[%s10385_s13 + $0xb40] sm:$0xff]  ;;  %v9958_v25 = vld [vmem:[%s10385_s13 + $0xa68] ss:$108 sps:$4 sm:$0xff]  }
 0x26c   : > { %5806 = vmatmul.mubr.bf16.gmra.mrb[8].mxu1 %v9940_v23 }
 0x26d   : > { %v8348_v41 = vpop.f32.mrb[160].mxu0  ;;  %v11468_v37 = vadd.f32 %v8447_v32, %v5099_v7  ;;  %5813 = vmatprep.mubr.bf16.mxu1 %v9952_v38  ;;  %v7373_v7 = vcombine.high %v747_v19, %v747_v19 }
 0x26e   : > { %v8349_v33 = vpop.f32.mrb[161].mxu0 }
 0x26f   : > { %v8350_v16 = vadd.f32 %v8349_v33, %v8348_v41  ;;  %v8351_v39 = vpop.f32.mrb[162].mxu0  ;;  %v8448_v53 = vpop.f32.mrb[160].mxu1 }
 0x270   : > { %v8352_v60 = vpop.f32.mrb[163].mxu0  ;;  %v8449_v4 = vpop.f32.mrb[161].mxu1 }
 0x271   : > { %v5104_v51 = vadd.f32 %v8350_v16, %v11243_v30  ;;  %v8353_v43 = vadd.f32 %v8352_v60, %v8351_v39  ;;  %v8450_v56 = vadd.f32 %v8449_v4, %v8448_v53  ;;  %v8451_v15 = vpop.f32.mrb[162].mxu1  ;;  %v7372_v4 = vcombine.low %v747_v19, %v747_v19 }
 0x272   : > { %5670 = vmatmul.mubr.bf16.gmra.mrb[12].mxu0 %v9946_v34  ;;  %v8452_v58 = vpop.f32.mrb[163].mxu1  ;;  %v7370_v34 = vcombine.low %v746_v50, %v746_v50 }
 0x273   : > { %v5107_v46 = vadd.f32 %v8353_v43, %v11246_v21  ;;  %5677 = vmatprep.mubr.bf16.mxu0 %v9956_v52  ;;  %v11476_v63 = vadd.f32 %v8450_v56, %v5104_v51  ;;  %v8453_v2 = vadd.f32 %v8452_v58, %v8451_v15  ;;  %v9981_v15 = vld [vmem:[%s10385_s13 + $0x5c] ss:$108 sps:$4 sm:$0xff]  }
 0x274   : > { %5814 = vmatmul.mubr.bf16.gmra.mrb[12].mxu1 %v9950_v3 }
 0x275   : > { %v8354_v30 = vpop.f32.mrb[164].mxu0  ;;  %v11479_v1 = vadd.f32 %v8453_v2, %v5107_v46  ;;  %5821 = vmatprep.mubr.bf16.mxu1 %v9960_v10 }
 0x276   : > { %v8355_v5 = vpop.f32.mrb[165].mxu0 }
 0x277   : > { %v8356_v6 = vadd.f32 %v8355_v5, %v8354_v30  ;;  %v8357_v9 = vpop.f32.mrb[166].mxu0  ;;  %v8454_v48 = vpop.f32.mrb[164].mxu1  ;;  %v9974_v5 = vld [vmem:[%s10385_s13 + $0x50] ss:$108 sps:$4 sm:$0xff]  }
 0x278   : > { %v8358_v21 = vpop.f32.mrb[167].mxu0  ;;  %v8455_v23 = vpop.f32.mrb[165].mxu1  ;;  %v9985_v9 = vld [vmem:[%s10385_s13 + $0x12c] ss:$108 sps:$4 sm:$0xff]  }
 0x279   : > { %v5112_v26 = vadd.f32 %v8356_v6, %v11251_v42  ;;  %v8456_v35 = vadd.f32 %v8455_v23, %v8454_v48  ;;  %v8457_v38 = vpop.f32.mrb[166].mxu1  ;;  %v9976_v42 = vld [vmem:[%s10385_s13 + $0x54] ss:$108 sps:$4 sm:$0xff]   ;;  %v9989_v48 = vld [vmem:[%s12105_s1 + $0x648] sm:$0xff]  }
 0x27a   : > { %5678 = vmatmul.mubr.bf16.gmra.mrb[16].mxu0 %v9954_v29  ;;  %v8458_v22 = vpop.f32.mrb[167].mxu1 }
 0x27b   : > { %5685 = vmatprep.mubr.bf16.mxu0 %v7371_v20  ;;  %v11485_v32 = vadd.f32 %v8456_v35, %v5112_v26 }
 0x27c   : > { %5822 = vmatmul.mubr.bf16.gmra.mrb[16].mxu1 %v9958_v25  ;;  %v9979_v25 = vld [vmem:[%s10385_s13 + $0x58] ss:$108 sps:$4 sm:$0xff]  }
 0x27d   : > { %v8476_v41 = vpop.f32.mrb[168].mxu0  ;;  %5829 = vmatprep.mubr.bf16.mxu1 %v7373_v7  ;;  %v9988_v7 = vld [vmem:[%s10385_s13 + $0x134] ss:$108 sps:$4 sm:$0xff]  }
 0x27e   : > { %v8477_v33 = vpop.f32.mrb[169].mxu0 }
 0x27f   : > { %v8478_v16 = vadd.f32 %v8477_v33, %v8476_v41  ;;  %v8479_v39 = vpop.f32.mrb[170].mxu0  ;;  %v8576_v52 = vpop.f32.mrb[168].mxu1  ;;  %v9993_v33 = vld [vmem:[%s12105_s1 + $0x608] sm:$0xff]  }
 0x280   : > { %v8480_v53 = vpop.f32.mrb[171].mxu0  ;;  %v8577_v43 = vpop.f32.mrb[169].mxu1 }
 0x281   : > { %v5296_v60 = vadd.f32 %v8478_v16, %v11257_v8  ;;  %v8481_v51 = vadd.f32 %v8480_v53, %v8479_v39  ;;  %v8578_v3 = vadd.f32 %v8577_v43, %v8576_v52  ;;  %v8579_v56 = vpop.f32.mrb[170].mxu1  ;;  %v9983_v53 = vld [vmem:[%s10385_s13 + $0x128] ss:$108 sps:$4 sm:$0xff]   ;;  %v9992_v43 = vld [vmem:[%s10385_s13 + $0x204] ss:$108 sps:$4 sm:$0xff]  }
 0x282   : > { %5686 = vmatmul.mubr.bf16.gmra.mrb[20].mxu0 %v7370_v34  ;;  %v8580_v46 = vpop.f32.mrb[171].mxu1 }
 0x283   : > { %v5299_v10 = vadd.f32 %v8481_v51, %v11259_v14  ;;  %5869 = vmatprep.mubr.bf16.mxu0 %v9976_v42  ;;  %v11491_v58 = vadd.f32 %v8578_v3, %v5296_v60  ;;  %v8581_v2 = vadd.f32 %v8580_v46, %v8579_v56  ;;  %v9982_v14 = vld [vmem:[%s12105_s1 + $0x600] sm:$0xff]  }
 0x284   : > { %5830 = vmatmul.mubr.bf16.gmra.mrb[20].mxu1 %v7372_v4  ;;  %v10004_v4 = vld [vmem:[%s12105_s1 + $0x610] sm:$0xff]  }
 0x285   : > { %v8482_v50 = vpop.f32.mrb[172].mxu0  ;;  %v11493_v8 = vadd.f32 %v8581_v2, %v5299_v10  ;;  %6013 = vmatprep.mubr.bf16.mxu1 %v9981_v15  ;;  %v10017_v15 = vld [vmem:[%s12105_s1 + $0x658] sm:$0xff]  }
 0x286   : > { %v8483_v30 = vpop.f32.mrb[173].mxu0 }
 0x287   : > { %v8484_v29 = vadd.f32 %v8483_v30, %v8482_v50  ;;  %v8485_v6 = vpop.f32.mrb[174].mxu0  ;;  %v8582_v20 = vpop.f32.mrb[172].mxu1  ;;  %v9986_v50 = vld [vmem:[%s10385_s13 + $0x130] ss:$108 sps:$4 sm:$0xff]  }
 0x288   : > { %v8486_v19 = vpop.f32.mrb[175].mxu0  ;;  %v8583_v23 = vpop.f32.mrb[173].mxu1 }
 0x289   : > { %v5304_v21 = vadd.f32 %v8484_v29, %v11282_v57  ;;  %v8487_v26 = vadd.f32 %v8486_v19, %v8485_v6  ;;  %v8584_v35 = vadd.f32 %v8583_v23, %v8582_v20  ;;  %v8585_v38 = vpop.f32.mrb[174].mxu1  ;;  %v10045_v57 = vld [vmem:[%s12105_s1 + $0x688] sm:$0xff]  }
 0x28a   : > { %5870 = vmatmul.mubr.bf16.vlgmr.msra.gmra.mrb[24].mxu0 %v9974_v5  ;;  %v8586_v41 = vpop.f32.mrb[175].mxu1  ;;  %v9996_v29 = vld [vmem:[%s10385_s13 + $0x20c] ss:$108 sps:$4 sm:$0xff]  }
 0x28b   : > { %v5307_v22 = vadd.f32 %v8487_v26, %v11287_v61  ;;  %9061 = vmatpush3.bf16.msra.mxu0 %v9982_v14  ;;  %5877 = vmatprep.mubr.bf16.mxu0 %v9985_v9  ;;  %v11513_v34 = vadd.f32 %v8584_v35, %v5304_v21  ;;  %v8587_v16 = vadd.f32 %v8586_v41, %v8585_v38  ;;  %v10003_v61 = vld [vmem:[%s12105_s1 + $0x650] sm:$0xff]   ;;  %v10018_v9 = vld [vmem:[%s12105_s1 + $0x618] sm:$0xff]  }
 0x28c   : > { %9062 = vmatprep.subr.bf16.mxu0 %v9989_v48  ;;  %6014 = vmatmul.mubr.bf16.vlgmr.msra.gmra.mrb[24].mxu1 %v9979_v25  ;;  %v9990_v23 = vld [vmem:[%s10385_s13 + $0x200] ss:$108 sps:$4 sm:$0xff]   ;;  %v9999_v38 = vld [vmem:[%s10385_s13 + $0x2dc] ss:$108 sps:$4 sm:$0xff]  }
 0x28d   : > { %v8488_v39 = vpop.f32.mrb[176].mxu0  ;;  %v11518_v42 = vadd.f32 %v8587_v16, %v5307_v22  ;;  %6021 = vmatprep.mubr.bf16.mxu1 %v9988_v7  ;;  %9183 = vmatpush3.bf16.msra.mxu1 %v11418_v62  ;;  %v10057_v62 = vld [vmem:[%s12105_s1 + $0x690] sm:$0xff]   ;;  %v10032_v7 = vld [vmem:[%s12105_s1 + $0x620] sm:$0xff]  }
 0x28e   : > { %v8489_v52 = vpop.f32.mrb[177].mxu0  ;;  %9184 = vmatprep.subr.bf16.mxu1 %v10045_v57 }
 0x28f   : > { %v8490_v60 = vadd.f32 %v8489_v52, %v8488_v39  ;;  %v8491_v51 = vpop.f32.mrb[178].mxu0  ;;  %9063 = vmatpush3.bf16.msra.mxu0 %v9993_v33  ;;  %v8588_v3 = vpop.f32.mrb[176].mxu1  ;;  %v10040_v33 = vld [vmem:[%s12105_s1 + $0x668] sm:$0xff]  }
 0x290   : > { %v8492_v56 = vpop.f32.mrb[179].mxu0  ;;  %9064 = vmatprep.subr.bf16.mxu0 %v10003_v61  ;;  %v8589_v2 = vpop.f32.mrb[177].mxu1  ;;  %v9994_v52 = vld [vmem:[%s10385_s13 + $0x208] ss:$108 sps:$4 sm:$0xff]  }
 0x291   : > { %v5312_v10 = vadd.f32 %v8490_v60, %v11316_v31  ;;  %v8493_v46 = vadd.f32 %v8492_v56, %v8491_v51  ;;  %v8590_v30 = vadd.f32 %v8589_v2, %v8588_v3  ;;  %v8591_v5 = vpop.f32.mrb[178].mxu1  ;;  %9185 = vmatpush3.bf16.msra.mxu1 %v10045_v57  ;;  %v10067_v31 = vld [vmem:[%s12105_s1 + $0x698] sm:$0xff]   ;;  %v10073_v57 = vld [vmem:[%s12105_s1 + $0x6a0] sm:$0xff]   ;;  %v10044_v3 = vld [vmem:[%s12105_s1 + $0x628] sm:$0xff]  }
 0x292   : > { %5878 = vmatmul.mubr.bf16.gmra.mrb[28].mxu0 %v9983_v53  ;;  %v8592_v14 = vpop.f32.mrb[179].mxu1  ;;  %9186 = vmatprep.subr.bf16.mxu1 %v10057_v62  ;;  %v10002_v51 = vld [vmem:[%s10385_s13 + $0x2e4] ss:$108 sps:$4 sm:$0xff]  }
 0x293   : > { %v5315_v6 = vadd.f32 %v8493_v46, %v11321_v28  ;;  %5885 = vmatprep.mubr.bf16.mxu0 %v9992_v43  ;;  %9065 = vmatpush3.bf16.msra.mxu0 %v10004_v4  ;;  %v11542_v20 = vadd.f32 %v8590_v30, %v5312_v10  ;;  %v8593_v19 = vadd.f32 %v8592_v14, %v8591_v5  ;;  %v10028_v28 = vld [vmem:[%s12105_s1 + $0x660] sm:$0xff]  }
 0x294   : > { %9066 = vmatprep.subr.bf16.mxu0 %v10017_v15  ;;  %6022 = vmatmul.mubr.bf16.gmra.mrb[28].mxu1 %v9986_v50  ;;  %v9997_v2 = vld [vmem:[%s10385_s13 + $0x2d8] ss:$108 sps:$4 sm:$0xff]   ;;  %v10007_v5 = vld [vmem:[%s10385_s13 + $0x3b4] ss:$108 sps:$4 sm:$0xff]  }
 0x295   : > { %v8494_v48 = vpop.f32.mrb[180].mxu0  ;;  %v11547_v21 = vadd.f32 %v8593_v19, %v5315_v6  ;;  %6029 = vmatprep.mubr.bf16.mxu1 %v9996_v29  ;;  %9187 = vmatpush3.bf16.msra.mxu1 %v10057_v62  ;;  %v10056_v29 = vld [vmem:[%s12105_s1 + $0x630] sm:$0xff]  }
 0x296   : > { %v8495_v26 = vpop.f32.mrb[181].mxu0  ;;  %9188 = vmatprep.subr.bf16.mxu1 %v10067_v31 }
 0x297   : > { %v8496_v25 = vadd.f32 %v8495_v26, %v8494_v48  ;;  %v8497_v35 = vpop.f32.mrb[182].mxu0  ;;  %9067 = vmatpush3.bf16.msra.mxu0 %v10018_v9  ;;  %v8594_v22 = vpop.f32.mrb[180].mxu1  ;;  %v10071_v9 = vld [vmem:[%s12105_s1 + $0x678] sm:$0xff]   ;;  %v10000_v26 = vld [vmem:[%s10385_s13 + $0x2e0] ss:$108 sps:$4 sm:$0xff]  }
 0x298   : > { %v8498_v41 = vpop.f32.mrb[183].mxu0  ;;  %9068 = vmatprep.subr.bf16.mxu0 %v10028_v28  ;;  %v8595_v39 = vpop.f32.mrb[181].mxu1 }
 0x299   : > { %v5320_v16 = vadd.f32 %v8496_v25, %v11350_v40  ;;  %v8499_v61 = vadd.f32 %v8498_v41, %v8497_v35  ;;  %v8596_v53 = vadd.f32 %v8595_v39, %v8594_v22  ;;  %v8597_v60 = vpop.f32.mrb[182].mxu1  ;;  %9189 = vmatpush3.bf16.msra.mxu1 %v10067_v31  ;;  %v10076_v40 = vld [vmem:[%s12105_s1 + $0x6a8] sm:$0xff]   ;;  %v10079_v31 = vld [vmem:[%s12105_s1 + $0x6b0] sm:$0xff]   ;;  %v10072_v22 = vld [vmem:[%s12105_s1 + $0x638] sm:$0xff]  }
 0x29a   : > { %5886 = vmatmul.mubr.bf16.gmra.mrb[32].mxu0 %v9990_v23  ;;  %v8598_v4 = vpop.f32.mrb[183].mxu1  ;;  %9190 = vmatprep.subr.bf16.mxu1 %v10073_v57  ;;  %v10010_v35 = vld [vmem:[%s10385_s13 + $0x3bc] ss:$108 sps:$4 sm:$0xff]  }
 0x29b   : > { %v5323_v43 = vadd.f32 %v8499_v61, %v11355_v27  ;;  %5893 = vmatprep.mubr.bf16.mxu0 %v9999_v38  ;;  %9069 = vmatpush3.bf16.msra.mxu0 %v10032_v7  ;;  %v11570_v56 = vadd.f32 %v8596_v53, %v5320_v16  ;;  %v8599_v15 = vadd.f32 %v8598_v4, %v8597_v60  ;;  %v10055_v27 = vld [vmem:[%s12105_s1 + $0x670] sm:$0xff]  }
 0x29c   : > { %9070 = vmatprep.subr.bf16.mxu0 %v10040_v33  ;;  %6030 = vmatmul.mubr.bf16.gmra.mrb[32].mxu1 %v9994_v52  ;;  %v10005_v61 = vld [vmem:[%s10385_s13 + $0x3b0] ss:$108 sps:$4 sm:$0xff]   ;;  %v10013_v53 = vld [vmem:[%s10385_s13 + $0x48c] ss:$108 sps:$4 sm:$0xff]  }
 0x29d   : > { %v8500_v62 = vpop.f32.mrb[184].mxu0  ;;  %v11575_v10 = vadd.f32 %v8599_v15, %v5323_v43  ;;  %6037 = vmatprep.mubr.bf16.mxu1 %v10002_v51  ;;  %9191 = vmatpush3.bf16.msra.mxu1 %v10073_v57 }
 0x29e   : > { %v8501_v46 = vpop.f32.mrb[185].mxu0  ;;  %9192 = vmatprep.subr.bf16.mxu1 %v10076_v40 }
 0x29f   : > { %v8502_v50 = vadd.f32 %v8501_v46, %v8500_v62  ;;  %v8503_v30 = vpop.f32.mrb[186].mxu0  ;;  %9071 = vmatpush3.bf16.msra.mxu0 %v10044_v3  ;;  %v8600_v6 = vpop.f32.mrb[184].mxu1  ;;  %v10016_v62 = vld [vmem:[%s10385_s13 + $0x494] ss:$108 sps:$4 sm:$0xff]  }
 0x2a0   : > { %v8504_v14 = vpop.f32.mrb[187].mxu0  ;;  %9072 = vmatprep.subr.bf16.mxu0 %v10055_v27  ;;  %v8601_v48 = vpop.f32.mrb[185].mxu1 }
 0x2a1   : > { %v5328_v19 = vadd.f32 %v8502_v50, %v11384_v54  ;;  %v8505_v28 = vadd.f32 %v8504_v14, %v8503_v30  ;;  %v8602_v23 = vadd.f32 %v8601_v48, %v8600_v6  ;;  %v8603_v25 = vpop.f32.mrb[186].mxu1  ;;  %9193 = vmatpush3.bf16.msra.mxu1 %v10076_v40  ;;  %v10083_v54 = vld [vmem:[%s12105_s1 + $0x6b8] sm:$0xff]  }
 0x2a2   : > { %5894 = vmatmul.mubr.bf16.gmra.mrb[36].mxu0 %v9997_v2  ;;  %v8604_v7 = vpop.f32.mrb[187].mxu1  ;;  %9194 = vmatprep.subr.bf16.mxu1 %v10079_v31  ;;  %v10008_v40 = vld [vmem:[%s10385_s13 + $0x3b8] ss:$108 sps:$4 sm:$0xff]   ;;  %v10011_v6 = vld [vmem:[%s10385_s13 + $0x488] ss:$108 sps:$4 sm:$0xff]  }
 0x2a3   : > { %v5331_v38 = vadd.f32 %v8505_v28, %v11389_v0  ;;  %5901 = vmatprep.mubr.bf16.mxu0 %v10007_v5  ;;  %9073 = vmatpush3.bf16.msra.mxu0 %v10056_v29  ;;  %v11598_v41 = vadd.f32 %v8602_v23, %v5328_v19  ;;  %v8605_v33 = vadd.f32 %v8604_v7, %v8603_v25  ;;  %v10014_v23 = vld [vmem:[%s10385_s13 + $0x490] ss:$108 sps:$4 sm:$0xff]  }
 0x2a4   : > { %9074 = vmatprep.subr.bf16.mxu0 %v10071_v9  ;;  %6038 = vmatmul.mubr.bf16.gmra.mrb[36].mxu1 %v10000_v26 }
 0x2a5   : > { %v8506_v57 = vpop.f32.mrb[188].mxu0  ;;  %v11600_v0 = vadd.f32 %v8605_v33, %v5331_v38  ;;  %6045 = vmatprep.mubr.bf16.mxu1 %v10010_v35  ;;  %9195 = vmatpush3.bf16.msra.mxu1 %v10079_v31  ;;  %v10021_v31 = vld [vmem:[%s10385_s13 + $0x564] ss:$108 sps:$4 sm:$0xff]   ;;  %v10024_v38 = vld [vmem:[%s10385_s13 + $0x56c] ss:$108 sps:$4 sm:$0xff]  }
 0x2a6   : > { %v8507_v16 = vpop.f32.mrb[189].mxu0  ;;  %9196 = vmatprep.subr.bf16.mxu1 %v10083_v54 }
 0x2a7   : > { %v8508_v39 = vadd.f32 %v8507_v16, %v8506_v57  ;;  %v8509_v52 = vpop.f32.mrb[190].mxu0  ;;  %9075 = vmatpush3.bf16.msra.mxu0 %v10072_v22  ;;  %v8606_v60 = vpop.f32.mrb[188].mxu1 }
 0x2a8   : > { %v8510_v51 = vpop.f32.mrb[191].mxu0  ;;  %v8607_v3 = vpop.f32.mrb[189].mxu1 }
 0x2a9   : > { %v5336_v43 = vadd.f32 %v8508_v39, %v11400_v49  ;;  %v8511_v4 = vadd.f32 %v8510_v51, %v8509_v52  ;;  %v8608_v15 = vadd.f32 %v8607_v3, %v8606_v60  ;;  %v8609_v27 = vpop.f32.mrb[190].mxu1  ;;  %9197 = vmatpush3.bf16.msra.mxu1 %v10083_v54  ;;  %v10022_v3 = vld [vmem:[%s10385_s13 + $0x568] ss:$108 sps:$4 sm:$0xff]  }
 0x2aa   : > { %5902 = vmatmul.mubr.bf16.gmra.mrb[40].mxu0 %v10005_v61  ;;  %v8610_v2 = vpop.f32.mrb[191].mxu1  ;;  %v10019_v61 = vld [vmem:[%s10385_s13 + $0x560] ss:$108 sps:$4 sm:$0xff]  }
 0x2ab   : > { %v5339_v46 = vadd.f32 %v8511_v4, %v11402_v44  ;;  %5909 = vmatprep.mubr.bf16.mxu0 %v10013_v53  ;;  %v11608_v50 = vadd.f32 %v8608_v15, %v5336_v43  ;;  %v8611_v30 = vadd.f32 %v8610_v2, %v8609_v27  ;;  %v10027_v53 = vld [vmem:[%s10385_s13 + $0x63c] ss:$108 sps:$4 sm:$0xff]   ;;  %v10031_v27 = vld [vmem:[%s10385_s13 + $0x644] ss:$108 sps:$4 sm:$0xff]  }
 0x2ac   : > { %6046 = vmatmul.mubr.bf16.gmra.mrb[40].mxu1 %v10008_v40 }
 0x2ad   : > { %v8512_v49 = vpop.f32.mrb[192].mxu0  ;;  %v11610_v5 = vadd.f32 %v8611_v30, %v5339_v46  ;;  %6053 = vmatprep.mubr.bf16.mxu1 %v10016_v62 }
 0x2ae   : > { %v8513_v29 = vpop.f32.mrb[193].mxu0 }
 0x2af   : > { %v8514_v14 = vadd.f32 %v8513_v29, %v8512_v49  ;;  %v8515_v9 = vpop.f32.mrb[194].mxu0  ;;  %v8612_v19 = vpop.f32.mrb[192].mxu1 }
 0x2b0   : > { %v8516_v28 = vpop.f32.mrb[195].mxu0  ;;  %v8613_v26 = vpop.f32.mrb[193].mxu1 }
 0x2b1   : > { %v5344_v44 = vadd.f32 %v8514_v14, %v11410_v18  ;;  %v8517_v48 = vadd.f32 %v8516_v28, %v8515_v9  ;;  %v8614_v25 = vadd.f32 %v8613_v26, %v8612_v19  ;;  %v8615_v35 = vpop.f32.mrb[194].mxu1  ;;  %v10029_v26 = vld [vmem:[%s10385_s13 + $0x640] ss:$108 sps:$4 sm:$0xff]  }
 0x2b2   : > { %5910 = vmatmul.mubr.bf16.gmra.mrb[44].mxu0 %v10011_v6  ;;  %v8616_v22 = vpop.f32.mrb[195].mxu1  ;;  %v10025_v6 = vld [vmem:[%s10385_s13 + $0x638] ss:$108 sps:$4 sm:$0xff]  }
 0x2b3   : > { %v5347_v7 = vadd.f32 %v8517_v48, %v11412_v13  ;;  %5917 = vmatprep.mubr.bf16.mxu0 %v10021_v31  ;;  %v11618_v54 = vadd.f32 %v8614_v25, %v5344_v44  ;;  %v8617_v33 = vadd.f32 %v8616_v22, %v8615_v35  ;;  %v10036_v31 = vld [vmem:[%s10385_s13 + $0x714] ss:$108 sps:$4 sm:$0xff]   ;;  %v10039_v35 = vld [vmem:[%s10385_s13 + $0x71c] ss:$108 sps:$4 sm:$0xff]  }
 0x2b4   : > { %6054 = vmatmul.mubr.bf16.gmra.mrb[44].mxu1 %v10014_v23 }
 0x2b5   : > { %v8518_v57 = vpop.f32.mrb[196].mxu0  ;;  %v11620_v18 = vadd.f32 %v8617_v33, %v5347_v7  ;;  %6061 = vmatprep.mubr.bf16.mxu1 %v10024_v38 }
 0x2b6   : > { %v8519_v16 = vpop.f32.mrb[197].mxu0 }
 0x2b7   : > { %v8520_v39 = vadd.f32 %v8519_v16, %v8518_v57  ;;  %v8521_v52 = vpop.f32.mrb[198].mxu0  ;;  %v8618_v60 = vpop.f32.mrb[196].mxu1 }
 0x2b8   : > { %v8522_v51 = vpop.f32.mrb[199].mxu0  ;;  %v8619_v4 = vpop.f32.mrb[197].mxu1 }
 0x2b9   : > { %v5352_v13 = vadd.f32 %v8520_v39, %v11426_v24  ;;  %v8523_v43 = vadd.f32 %v8522_v51, %v8521_v52  ;;  %v8620_v40 = vadd.f32 %v8619_v4, %v8618_v60  ;;  %v8621_v15 = vpop.f32.mrb[198].mxu1  ;;  %v10037_v4 = vld [vmem:[%s10385_s13 + $0x718] ss:$108 sps:$4 sm:$0xff]  }
 0x2ba   : > { %5918 = vmatmul.mubr.bf16.gmra.mrb[48].mxu0 %v10019_v61  ;;  %v8622_v46 = vpop.f32.mrb[199].mxu1  ;;  %v10034_v61 = vld [vmem:[%s10385_s13 + $0x710] ss:$108 sps:$4 sm:$0xff]  }
 0x2bb   : > { %v5355_v62 = vadd.f32 %v8523_v43, %v11428_v47  ;;  %5925 = vmatprep.mubr.bf16.mxu0 %v10027_v53  ;;  %v11628_v2 = vadd.f32 %v8620_v40, %v5352_v13  ;;  %v8623_v30 = vadd.f32 %v8622_v46, %v8621_v15  ;;  %v10043_v53 = vld [vmem:[%s10385_s13 + $0x7ec] ss:$108 sps:$4 sm:$0xff]   ;;  %v10048_v15 = vld [vmem:[%s10385_s13 + $0x7f4] ss:$108 sps:$4 sm:$0xff]  }
 0x2bc   : > { %6062 = vmatmul.mubr.bf16.gmra.mrb[48].mxu1 %v10022_v3 }
 0x2bd   : > { %v8524_v49 = vpop.f32.mrb[200].mxu0  ;;  %v11630_v24 = vadd.f32 %v8623_v30, %v5355_v62  ;;  %6069 = vmatprep.mubr.bf16.mxu1 %v10031_v27 }
 0x2be   : > { %v8525_v29 = vpop.f32.mrb[201].mxu0 }
 0x2bf   : > { %v8526_v14 = vadd.f32 %v8525_v29, %v8524_v49  ;;  %v8527_v9 = vpop.f32.mrb[202].mxu0  ;;  %v8624_v19 = vpop.f32.mrb[200].mxu1 }
 0x2c0   : > { %v8528_v28 = vpop.f32.mrb[203].mxu0  ;;  %v8625_v48 = vpop.f32.mrb[201].mxu1 }
 0x2c1   : > { %v5360_v47 = vadd.f32 %v8526_v14, %v11436_v59  ;;  %v8529_v44 = vadd.f32 %v8528_v28, %v8527_v9  ;;  %v8626_v23 = vadd.f32 %v8625_v48, %v8624_v19  ;;  %v8627_v25 = vpop.f32.mrb[202].mxu1  ;;  %v10046_v48 = vld [vmem:[%s10385_s13 + $0x7f0] ss:$108 sps:$4 sm:$0xff]  }
 0x2c2   : > { %5926 = vmatmul.mubr.bf16.gmra.mrb[52].mxu0 %v10025_v6  ;;  %v8628_v7 = vpop.f32.mrb[203].mxu1  ;;  %v10041_v6 = vld [vmem:[%s10385_s13 + $0x7e8] ss:$108 sps:$4 sm:$0xff]  }
 0x2c3   : > { %v5363_v38 = vadd.f32 %v8529_v44, %v11438_v17  ;;  %5933 = vmatprep.mubr.bf16.mxu0 %v10036_v31  ;;  %v11638_v22 = vadd.f32 %v8626_v23, %v5360_v47  ;;  %v8629_v33 = vadd.f32 %v8628_v7, %v8627_v25  ;;  %v10051_v31 = vld [vmem:[%s10385_s13 + $0x8c4] ss:$108 sps:$4 sm:$0xff]   ;;  %v10054_v25 = vld [vmem:[%s10385_s13 + $0x8cc] ss:$108 sps:$4 sm:$0xff]  }
 0x2c4   : > { %6070 = vmatmul.mubr.bf16.gmra.mrb[52].mxu1 %v10029_v26 }
 0x2c5   : > { %v8530_v57 = vpop.f32.mrb[204].mxu0  ;;  %v11640_v59 = vadd.f32 %v8629_v33, %v5363_v38  ;;  %6077 = vmatprep.mubr.bf16.mxu1 %v10039_v35 }
 0x2c6   : > { %v8531_v16 = vpop.f32.mrb[205].mxu0 }
 0x2c7   : > { %v8532_v39 = vadd.f32 %v8531_v16, %v8530_v57  ;;  %v8533_v52 = vpop.f32.mrb[206].mxu0  ;;  %v8630_v60 = vpop.f32.mrb[204].mxu1  ;;  %v7708_v57 = vld [vmem:[%s11664_s20] sm:$0xff]  }
 0x2c8   : > { %v8534_v51 = vpop.f32.mrb[207].mxu0  ;;  %v8631_v43 = vpop.f32.mrb[205].mxu1 }
 0x2c9   : > { %v5368_v17 = vadd.f32 %v8532_v39, %v11446_v36  ;;  %v8535_v13 = vadd.f32 %v8534_v51, %v8533_v52  ;;  %v8632_v3 = vadd.f32 %v8631_v43, %v8630_v60  ;;  %v8633_v40 = vpop.f32.mrb[206].mxu1  ;;  %v7709_v39 = vunpack.c.l.bf16 %v7708_v57  ;;  %v10060_v51 = vld [vmem:[%s10385_s13 + $0x99c] ss:$108 sps:$4 sm:$0xff]  }
 0x2ca   : > { %5934 = vmatmul.mubr.bf16.gmra.mrb[56].mxu0 %v10034_v61  ;;  %v8634_v62 = vpop.f32.mrb[207].mxu1  ;;  %v7710_v52 = vunpack.c.h.bf16 %v7708_v57  ;;  %v10061_v57 = vld [vmem:[%s10385_s13 + $0x9a0] ss:$108 sps:$4 sm:$0xff]  }
 0x2cb   : > { %v5371_v27 = vadd.f32 %v8535_v13, %v11448_v45  ;;  %5941 = vmatprep.mubr.bf16.mxu0 %v10043_v53  ;;  %v11648_v46 = vadd.f32 %v8632_v3, %v5368_v17  ;;  %v8635_v30 = vadd.f32 %v8634_v62, %v8633_v40 }
 0x2cc   : > { %6078 = vmatmul.mubr.bf16.gmra.mrb[56].mxu1 %v10037_v4  ;;  %v9307_v43 = vpack.i.bf16 %v7710_v52, %v7709_v39  ;;  %v10070_v39 = vld [vmem:[%s10385_s13 + $0xa7c] ss:$108 sps:$4 sm:$0xff]  }
 0x2cd   : > { %v8536_v49 = vpop.f32.mrb[208].mxu0  ;;  %v11650_v36 = vadd.f32 %v8635_v30, %v5371_v27  ;;  %6085 = vmatprep.mubr.bf16.mxu1 %v10048_v15  ;;  %v10052_v15 = vld [vmem:[%s10385_s13 + $0x8c8] ss:$108 sps:$4 sm:$0xff]   ;;  %v10237_v27 = vmov 0  }
 0x2ce   : > { %v8537_v29 = vpop.f32.mrb[209].mxu0  ;;  %9306 = vset.pattern.permute.xlu0 %v10237_v27  ;;  %9317 = vset.pattern.permute.xlu1 %v10237_v27 }
 0x2cf   : > { %v8538_v14 = vadd.f32 %v8537_v29, %v8536_v49  ;;  %v8539_v9 = vpop.f32.mrb[210].mxu0  ;;  %v8636_v19 = vpop.f32.mrb[208].mxu1  ;;  %v10063_v49 = vld [vmem:[%s10385_s13 + $0x9a4] ss:$108 sps:$4 sm:$0xff]   ;;  %9308 = vperm.xlu0 %9306, %v9307_v43  }
 0x2d0   : > { %v8540_v45 = vpop.f32.mrb[211].mxu0  ;;  %v8637_v44 = vpop.f32.mrb[209].mxu1 }
 0x2d1   : > { %v5376_v28 = vadd.f32 %v8538_v14, %v11456_v11  ;;  %v8541_v47 = vadd.f32 %v8540_v45, %v8539_v9  ;;  %v8638_v26 = vadd.f32 %v8637_v44, %v8636_v19  ;;  %v8639_v23 = vpop.f32.mrb[210].mxu1 }
 0x2d2   : > { %5942 = vmatmul.mubr.bf16.gmra.mrb[60].mxu0 %v10041_v6  ;;  %v8640_v38 = vpop.f32.mrb[211].mxu1 }
 0x2d3   : > { %v5379_v35 = vadd.f32 %v8541_v47, %v11458_v12  ;;  %5949 = vmatprep.mubr.bf16.mxu0 %v10051_v31  ;;  %v11658_v7 = vadd.f32 %v8638_v26, %v5376_v28  ;;  %v8641_v33 = vadd.f32 %v8640_v38, %v8639_v23  ;;  %v10049_v12 = vld [vmem:[%s10385_s13 + $0x8c0] ss:$108 sps:$4 sm:$0xff]   ;;  %v10058_v28 = vld [vmem:[%s10385_s13 + $0x998] ss:$108 sps:$4 sm:$0xff]  }
 0x2d4   : > { %6086 = vmatmul.mubr.bf16.gmra.mrb[60].mxu1 %v10046_v48  ;;  %v7836_v31 = vld [vmem:[%s11664_s20 + $0x8] sm:$0xff]   ;;  %v10066_v26 = vld [vmem:[%s10385_s13 + $0xa74] ss:$108 sps:$4 sm:$0xff]  }
 0x2d5   : > { %v8542_v11 = vpop.f32.mrb[212].mxu0  ;;  %v11667_v16 = vadd.f32 %v8641_v33, %v5379_v35  ;;  %6093 = vmatprep.mubr.bf16.mxu1 %v10054_v25  ;;  %v7713_v47 = vunpack.c.l.bf16 %v7836_v31  ;;  %v7714_v44 = vunpack.c.h.bf16 %v7836_v31  ;;  %v10068_v31 = vld [vmem:[%s10385_s13 + $0xa78] ss:$108 sps:$4 sm:$0xff]  }
 0x2d6   : > { %v8543_v61 = vpop.f32.mrb[213].mxu0 }
 0x2d7   : > { %v8544_v53 = vadd.f32 %v8543_v61, %v8542_v11  ;;  %v8545_v60 = vpop.f32.mrb[214].mxu0  ;;  %v8642_v17 = vpop.f32.mrb[212].mxu1  ;;  %v9312_v35 = vpack.i.bf16 %v7714_v44, %v7713_v47 }
 0x2d8   : > { %v8546_v13 = vpop.f32.mrb[215].mxu0  ;;  %v8643_v40 = vpop.f32.mrb[213].mxu1 }
 0x2d9   : > { %v5384_v4 = vadd.f32 %v8544_v53, %v11466_v55  ;;  %v8547_v3 = vadd.f32 %v8546_v13, %v8545_v60  ;;  %v8644_v62 = vadd.f32 %v8643_v40, %v8642_v17  ;;  %v8645_v30 = vpop.f32.mrb[214].mxu1  ;;  %9313 = vperm.xlu0 %9306, %v9312_v35   ;;  %v748_v17 = vld [vmem:[%s10385_s13 + $0xb48] sm:$0xff] }
 0x2da   : > { %5950 = vmatmul.mubr.bf16.gmra.mrb[64].mxu0 %v10049_v12  ;;  %v8646_v6 = vpop.f32.mrb[215].mxu1  ;;  %v7837_v13 = vld [vmem:[%s11664_s20 + $0x10] sm:$0xff]  }
 0x2db   : > { %v5387_v29 = vadd.f32 %v8547_v3, %v11468_v37  ;;  %5957 = vmatprep.mubr.bf16.mxu0 %v10060_v51  ;;  %v11675_v14 = vadd.f32 %v8644_v62, %v5384_v4  ;;  %v8647_v55 = vadd.f32 %v8646_v6, %v8645_v30  ;;  %v10064_v3 = vld [vmem:[%s10385_s13 + $0xa70] ss:$108 sps:$4 sm:$0xff]   ;;  %v7717_v40 = vunpack.c.l.bf16 %v7837_v13 }
 0x2dc   : > { %6094 = vmatmul.mubr.bf16.gmra.mrb[64].mxu1 %v10052_v15  ;;  %v7718_v15 = vunpack.c.h.bf16 %v7837_v13  ;;  %v7375_v62 = vcombine.high %v748_v17, %v748_v17  ;;  %v749_v30 = vld [vmem:[%s10385_s13 + $0xb50] sm:$0xff] }
 0x2dd   : > { %v8548_v9 = vpop.f32.mrb[216].mxu0  ;;  %v11678_v19 = vadd.f32 %v8647_v55, %v5387_v29  ;;  %6101 = vmatprep.mubr.bf16.mxu1 %v10063_v49  ;;  %v7377_v47 = vcombine.high %v749_v30, %v749_v30 }
 0x2de   : > { %v8549_v45 = vpop.f32.mrb[217].mxu0  ;;  %v9318_v6 = vpack.i.bf16 %v7718_v15, %v7717_v40 }
 0x2df   : > { %v8550_v48 = vadd.f32 %v8549_v45, %v8548_v9  ;;  %v8551_v37 = vpop.f32.mrb[218].mxu0  ;;  %v8648_v23 = vpop.f32.mrb[216].mxu1 }
 0x2e0   : > { %v8552_v25 = vpop.f32.mrb[219].mxu0  ;;  %v8649_v11 = vpop.f32.mrb[217].mxu1  ;;  %9319 = vperm.xlu1 %9317, %v9318_v6  }
 0x2e1   : > { %v5392_v38 = vadd.f32 %v8550_v48, %v11476_v63  ;;  %v8553_v33 = vadd.f32 %v8552_v25, %v8551_v37  ;;  %v8650_v61 = vadd.f32 %v8649_v11, %v8648_v23  ;;  %v8651_v12 = vpop.f32.mrb[218].mxu1  ;;  %v7374_v25 = vcombine.low %v748_v17, %v748_v17  ;;  %v10082_v11 = vld [vmem:[%s10385_s13 + $0x64] ss:$108 sps:$4 sm:$0xff]   ;;  %v10084_v17 = vld [vmem:[%s10385_s13 + $0x68] ss:$108 sps:$4 sm:$0xff]  }
 0x2e2   : > { %5958 = vmatmul.mubr.bf16.gmra.mrb[68].mxu0 %v10058_v28  ;;  %v8652_v53 = vpop.f32.mrb[219].mxu1 }
 0x2e3   : > { %v5395_v52 = vadd.f32 %v8553_v33, %v11479_v1  ;;  %5965 = vmatprep.mubr.bf16.mxu0 %v10066_v26  ;;  %v11686_v60 = vadd.f32 %v8650_v61, %v5392_v38  ;;  %v8653_v51 = vadd.f32 %v8652_v53, %v8651_v12  ;;  %v7838_v26 = vld [vmem:[%s11664_s20 + $0x18] sm:$0xff]  }
 0x2e4   : > { %6102 = vmatmul.mubr.bf16.gmra.mrb[68].mxu1 %v10061_v57  ;;  %v7722_v35 = vunpack.c.h.bf16 %v7838_v26 }
 0x2e5   : > { %v8554_v63 = vpop.f32.mrb[220].mxu0  ;;  %v11690_v43 = vadd.f32 %v8653_v51, %v5395_v52  ;;  %6109 = vmatprep.mubr.bf16.mxu1 %v10070_v39  ;;  %v7376_v51 = vcombine.low %v749_v30, %v749_v30  ;;  %v10080_v30 = vld [vmem:[%s10385_s13 + $0x60] ss:$108 sps:$4 sm:$0xff]  }
 0x2e6   : > { %v8555_v4 = vpop.f32.mrb[221].mxu0 }
 0x2e7   : > { %v8556_v27 = vadd.f32 %v8555_v4, %v8554_v63  ;;  %v8557_v1 = vpop.f32.mrb[222].mxu0  ;;  %v8654_v49 = vpop.f32.mrb[220].mxu1 }
 0x2e8   : > { %v8558_v29 = vpop.f32.mrb[223].mxu0  ;;  %v8655_v9 = vpop.f32.mrb[221].mxu1 }
 0x2e9   : > { %v5400_v55 = vadd.f32 %v8556_v27, %v11485_v32  ;;  %v8656_v45 = vadd.f32 %v8655_v9, %v8654_v49  ;;  %v8657_v28 = vpop.f32.mrb[222].mxu1  ;;  %v7721_v32 = vunpack.c.l.bf16 %v7838_v26  ;;  %v7839_v27 = vld [vmem:[%s11664_s20 + $0x20] sm:$0xff]  }
 0x2ea   : > { %5966 = vmatmul.mubr.bf16.gmra.mrb[72].mxu0 %v10064_v3  ;;  %v8658_v44 = vpop.f32.mrb[223].mxu1  ;;  %v7725_v49 = vunpack.c.l.bf16 %v7839_v27  ;;  %v7726_v29 = vunpack.c.h.bf16 %v7839_v27 }
 0x2eb   : > { %5973 = vmatprep.mubr.bf16.mxu0 %v7375_v62  ;;  %v11696_v48 = vadd.f32 %v8656_v45, %v5400_v55  ;;  %v9323_v12 = vpack.i.bf16 %v7722_v35, %v7721_v32  ;;  %v10088_v55 = vld [vmem:[%s10385_s13 + $0x13c] ss:$108 sps:$4 sm:$0xff]  }
 0x2ec   : > { %6110 = vmatmul.mubr.bf16.gmra.mrb[72].mxu1 %v10068_v31  ;;  %v9328_v45 = vpack.i.bf16 %v7726_v29, %v7725_v49 }
 0x2ed   : > { %v8676_v37 = vpop.f32.mrb[224].mxu0  ;;  %6117 = vmatprep.mubr.bf16.mxu1 %v7377_v47  ;;  %9324 = vperm.xlu1 %9317, %v9323_v12   ;;  %v10086_v12 = vld [vmem:[%s10385_s13 + $0x138] ss:$108 sps:$4 sm:$0xff]  }
 0x2ee   : > { %v8677_v23 = vpop.f32.mrb[225].mxu0  ;;  %9329 = vperm.xlu0 %9306, %v9328_v45   ;;  %v10089_v45 = vld [vmem:[%s10385_s13 + $0x210] ss:$108 sps:$4 sm:$0xff]  }
 0x2ef   : > { %v8678_v38 = vadd.f32 %v8677_v23, %v8676_v37  ;;  %v8679_v33 = vpop.f32.mrb[226].mxu0  ;;  %v8776_v57 = vpop.f32.mrb[224].mxu1  ;;  %v10085_v37 = vld [vmem:[%s10385_s13 + $0x140] ss:$108 sps:$4 sm:$0xff]  }
 0x2f0   : > { %v8680_v61 = vpop.f32.mrb[227].mxu0  ;;  %v8777_v53 = vpop.f32.mrb[225].mxu1 }
 0x2f1   : > { %v5584_v39 = vadd.f32 %v8678_v38, %v11491_v58  ;;  %v8681_v52 = vadd.f32 %v8680_v61, %v8679_v33  ;;  %v8778_v63 = vadd.f32 %v8777_v53, %v8776_v57  ;;  %v8779_v13 = vpop.f32.mrb[226].mxu1 }
 0x2f2   : > { %5974 = vmatmul.mubr.bf16.gmra.mrb[76].mxu0 %v7374_v25  ;;  %v8780_v3 = vpop.f32.mrb[227].mxu1  ;;  %v10092_v25 = vld [vmem:[%s10385_s13 + $0x218] ss:$108 sps:$4 sm:$0xff]  }
 0x2f3   : > { %v5587_v4 = vadd.f32 %v8681_v52, %v11493_v8  ;;  %6157 = vmatprep.mubr.bf16.mxu0 %v10082_v11  ;;  %v11703_v40 = vadd.f32 %v8778_v63, %v5584_v39  ;;  %v8781_v15 = vadd.f32 %v8780_v3, %v8779_v13 }
 0x2f4   : > { %6118 = vmatmul.mubr.bf16.gmra.mrb[76].mxu1 %v7376_v51  ;;  %v10091_v51 = vld [vmem:[%s10385_s13 + $0x214] ss:$108 sps:$4 sm:$0xff]  }
 0x2f5   : > { %v8682_v58 = vpop.f32.mrb[228].mxu0  ;;  %v11706_v1 = vadd.f32 %v8781_v15, %v5587_v4  ;;  %9198 = vmatprep.mubr.bf16.mxu1 %v10084_v17 }
 0x2f6   : > { %v8683_v62 = vpop.f32.mrb[229].mxu0 }
 0x2f7   : > { %v8684_v6 = vadd.f32 %v8683_v62, %v8682_v58  ;;  %v8685_v8 = vpop.f32.mrb[230].mxu0  ;;  %v8782_v9 = vpop.f32.mrb[228].mxu1  ;;  %v10093_v58 = vld [vmem:[%s10385_s13 + $0x2f0] ss:$108 sps:$4 sm:$0xff]  }
 0x2f8   : > { %v8686_v31 = vpop.f32.mrb[231].mxu0  ;;  %v8783_v44 = vpop.f32.mrb[229].mxu1 }
 0x2f9   : > { %v5592_v28 = vadd.f32 %v8684_v6, %v11513_v34  ;;  %v8687_v47 = vadd.f32 %v8686_v31, %v8685_v8  ;;  %v8784_v26 = vadd.f32 %v8783_v44, %v8782_v9  ;;  %v8785_v23 = vpop.f32.mrb[230].mxu1  ;;  %v7840_v34 = vld [vmem:[%s11664_s20 + $0x28] sm:$0xff]  }
 0x2fa   : > { %6158 = vmatmul.mubr.bf16.vlgmr.msra.gmra.mrb[80].mxu0 %v10080_v30  ;;  %v8786_v35 = vpop.f32.mrb[231].mxu1  ;;  %v7729_v39 = vunpack.c.l.bf16 %v7840_v34  ;;  %v7730_v52 = vunpack.c.h.bf16 %v7840_v34  ;;  %v10100_v30 = vld [vmem:[%s10385_s13 + $0x3c8] ss:$108 sps:$4 sm:$0xff]  }
 0x2fb   : > { %v5595_v32 = vadd.f32 %v8687_v47, %v11518_v42  ;;  %6165 = vmatprep.mubr.bf16.mxu0 %v10088_v55  ;;  %v11714_v38 = vadd.f32 %v8784_v26, %v5592_v28  ;;  %v8787_v33 = vadd.f32 %v8786_v35, %v8785_v23 }
 0x2fc   : > { %9199 = vmatmul.mubr.bf16.vlgmr.msra.gmra.mrb[80].mxu1 %v10085_v37  ;;  %v9333_v17 = vpack.i.bf16 %v7730_v52, %v7729_v39  ;;  %v10096_v37 = vld [vmem:[%s10385_s13 + $0x2ec] ss:$108 sps:$4 sm:$0xff]  }
 0x2fd   : > { %v8688_v11 = vpop.f32.mrb[232].mxu0  ;;  %v11717_v57 = vadd.f32 %v8787_v33, %v5595_v32  ;;  %9202 = vmatprep.mubr.bf16.mxu1 %v10092_v25 }
 0x2fe   : > { %v8689_v61 = vpop.f32.mrb[233].mxu0  ;;  %9334 = vperm.xlu1 %9317, %v9333_v17   ;;  %v10094_v17 = vld [vmem:[%s10385_s13 + $0x2e8] ss:$108 sps:$4 sm:$0xff]  }
 0x2ff   : > { %v8690_v53 = vadd.f32 %v8689_v61, %v8688_v11  ;;  %v8691_v42 = vpop.f32.mrb[234].mxu0  ;;  %v8788_v63 = vpop.f32.mrb[232].mxu1  ;;  %v10101_v11 = vld [vmem:[%s10385_s13 + $0x4a0] ss:$108 sps:$4 sm:$0xff]  }
 0x300   : > { %v8692_v13 = vpop.f32.mrb[235].mxu0  ;;  %v8789_v15 = vpop.f32.mrb[233].mxu1 }
 0x301   : > { %v5600_v4 = vadd.f32 %v8690_v53, %v11542_v20  ;;  %v8693_v3 = vadd.f32 %v8692_v13, %v8691_v42  ;;  %v8790_v27 = vadd.f32 %v8789_v15, %v8788_v63  ;;  %v8791_v62 = vpop.f32.mrb[234].mxu1  ;;  %v7841_v20 = vld [vmem:[%s11664_s20 + $0x30] sm:$0xff]  }
 0x302   : > { %6166 = vmatmul.mubr.bf16.gmra.mrb[84].mxu0 %v10086_v12  ;;  %v8792_v29 = vpop.f32.mrb[235].mxu1  ;;  %v7733_v28 = vunpack.c.l.bf16 %v7841_v20  ;;  %v7734_v47 = vunpack.c.h.bf16 %v7841_v20  ;;  %v10108_v12 = vld [vmem:[%s10385_s13 + $0x578] ss:$108 sps:$4 sm:$0xff]  }
 0x303   : > { %v5603_v49 = vadd.f32 %v8693_v3, %v11547_v21  ;;  %6173 = vmatprep.mubr.bf16.mxu0 %v10091_v51  ;;  %v11725_v6 = vadd.f32 %v8790_v27, %v5600_v4  ;;  %v8793_v8 = vadd.f32 %v8792_v29, %v8791_v62 }
 0x304   : > { %9203 = vmatmul.mubr.bf16.gmra.mrb[84].mxu1 %v10093_v58  ;;  %v9338_v25 = vpack.i.bf16 %v7734_v47, %v7733_v28  ;;  %v10099_v58 = vld [vmem:[%s10385_s13 + $0x3c4] ss:$108 sps:$4 sm:$0xff]  }
 0x305   : > { %v8694_v55 = vpop.f32.mrb[236].mxu0  ;;  %v11728_v9 = vadd.f32 %v8793_v8, %v5603_v49  ;;  %9206 = vmatprep.mubr.bf16.mxu1 %v10100_v30 }
 0x306   : > { %v8695_v31 = vpop.f32.mrb[237].mxu0  ;;  %9339 = vperm.xlu0 %9306, %v9338_v25   ;;  %v10097_v25 = vld [vmem:[%s10385_s13 + $0x3c0] ss:$108 sps:$4 sm:$0xff]  }
 0x307   : > { %v8696_v44 = vadd.f32 %v8695_v31, %v8694_v55  ;;  %v8697_v21 = vpop.f32.mrb[238].mxu0  ;;  %v8794_v26 = vpop.f32.mrb[236].mxu1  ;;  %v10109_v55 = vld [vmem:[%s10385_s13 + $0x650] ss:$108 sps:$4 sm:$0xff]  }
 0x308   : > { %v8698_v23 = vpop.f32.mrb[239].mxu0  ;;  %v8795_v33 = vpop.f32.mrb[237].mxu1 }
 0x309   : > { %v5608_v32 = vadd.f32 %v8696_v44, %v11570_v56  ;;  %v8699_v35 = vadd.f32 %v8698_v23, %v8697_v21  ;;  %v8796_v34 = vadd.f32 %v8795_v33, %v8794_v26  ;;  %v8797_v61 = vpop.f32.mrb[238].mxu1  ;;  %v7842_v56 = vld [vmem:[%s11664_s20 + $0x38] sm:$0xff]  }
 0x30a   : > { %6174 = vmatmul.mubr.bf16.gmra.mrb[88].mxu0 %v10089_v45  ;;  %v8798_v52 = vpop.f32.mrb[239].mxu1  ;;  %v7737_v4 = vunpack.c.l.bf16 %v7842_v56  ;;  %v7738_v3 = vunpack.c.h.bf16 %v7842_v56  ;;  %v10116_v45 = vld [vmem:[%s10385_s13 + $0x728] ss:$108 sps:$4 sm:$0xff]  }
 0x30b   : > { %v5611_v39 = vadd.f32 %v8699_v35, %v11575_v10  ;;  %6181 = vmatprep.mubr.bf16.mxu0 %v10096_v37  ;;  %v11736_v53 = vadd.f32 %v8796_v34, %v5608_v32  ;;  %v8799_v42 = vadd.f32 %v8798_v52, %v8797_v61 }
 0x30c   : > { %9207 = vmatmul.mubr.bf16.gmra.mrb[88].mxu1 %v10101_v11  ;;  %v9343_v30 = vpack.i.bf16 %v7738_v3, %v7737_v4  ;;  %v10104_v11 = vld [vmem:[%s10385_s13 + $0x49c] ss:$108 sps:$4 sm:$0xff]  }
 0x30d   : > { %v8700_v51 = vpop.f32.mrb[240].mxu0  ;;  %v11739_v63 = vadd.f32 %v8799_v42, %v5611_v39  ;;  %9210 = vmatprep.mubr.bf16.mxu1 %v10108_v12 }
 0x30e   : > { %v8701_v13 = vpop.f32.mrb[241].mxu0  ;;  %9344 = vperm.xlu1 %9317, %v9343_v30   ;;  %v10102_v30 = vld [vmem:[%s10385_s13 + $0x498] ss:$108 sps:$4 sm:$0xff]  }
 0x30f   : > { %v8702_v15 = vadd.f32 %v8701_v13, %v8700_v51  ;;  %v8703_v10 = vpop.f32.mrb[242].mxu0  ;;  %v8800_v27 = vpop.f32.mrb[240].mxu1  ;;  %v10117_v51 = vld [vmem:[%s10385_s13 + $0x800] ss:$108 sps:$4 sm:$0xff]  }
 0x310   : > { %v8704_v62 = vpop.f32.mrb[243].mxu0  ;;  %v8801_v8 = vpop.f32.mrb[241].mxu1 }
 0x311   : > { %v5616_v49 = vadd.f32 %v8702_v15, %v11598_v41  ;;  %v8705_v29 = vadd.f32 %v8704_v62, %v8703_v10  ;;  %v8802_v20 = vadd.f32 %v8801_v8, %v8800_v27  ;;  %v8803_v31 = vpop.f32.mrb[242].mxu1  ;;  %v7843_v41 = vld [vmem:[%s11664_s20 + $0x40] sm:$0xff]  }
 0x312   : > { %6182 = vmatmul.mubr.bf16.gmra.mrb[92].mxu0 %v10094_v17  ;;  %v8804_v47 = vpop.f32.mrb[243].mxu1  ;;  %v7741_v32 = vunpack.c.l.bf16 %v7843_v41  ;;  %v7742_v35 = vunpack.c.h.bf16 %v7843_v41  ;;  %v10124_v17 = vld [vmem:[%s10385_s13 + $0x8d8] ss:$108 sps:$4 sm:$0xff]   ;;  %v7845_v41 = vld [vmem:[%s11664_s20 + $0x50] sm:$0xff]  }
 0x313   : > { %v5619_v28 = vadd.f32 %v8705_v29, %v11600_v0  ;;  %6189 = vmatprep.mubr.bf16.mxu0 %v10099_v58  ;;  %v11747_v44 = vadd.f32 %v8802_v20, %v5616_v49  ;;  %v8805_v21 = vadd.f32 %v8804_v47, %v8803_v31 }
 0x314   : > { %9211 = vmatmul.mubr.bf16.gmra.mrb[92].mxu1 %v10109_v55  ;;  %v9348_v12 = vpack.i.bf16 %v7742_v35, %v7741_v32  ;;  %v10107_v55 = vld [vmem:[%s10385_s13 + $0x574] ss:$108 sps:$4 sm:$0xff]   ;;  %v7749_v35 = vunpack.c.l.bf16 %v7845_v41 }
 0x315   : > { %v8706_v37 = vpop.f32.mrb[244].mxu0  ;;  %v11750_v26 = vadd.f32 %v8805_v21, %v5619_v28  ;;  %9214 = vmatprep.mubr.bf16.mxu1 %v10116_v45  ;;  %v10132_v32 = vld [vmem:[%s10385_s13 + $0xa88] ss:$108 sps:$4 sm:$0xff]  }
 0x316   : > { %v8707_v23 = vpop.f32.mrb[245].mxu0  ;;  %9349 = vperm.xlu0 %9306, %v9348_v12  }
 0x317   : > { %v8708_v33 = vadd.f32 %v8707_v23, %v8706_v37  ;;  %v8709_v0 = vpop.f32.mrb[246].mxu0  ;;  %v8806_v34 = vpop.f32.mrb[244].mxu1  ;;  %v10125_v37 = vld [vmem:[%s10385_s13 + $0x9b0] ss:$108 sps:$4 sm:$0xff]  }
 0x318   : > { %v8710_v61 = vpop.f32.mrb[247].mxu0  ;;  %v8807_v42 = vpop.f32.mrb[245].mxu1 }
 0x319   : > { %v5624_v39 = vadd.f32 %v8708_v33, %v11608_v50  ;;  %v8711_v52 = vadd.f32 %v8710_v61, %v8709_v0  ;;  %v8808_v56 = vadd.f32 %v8807_v42, %v8806_v34  ;;  %v8809_v13 = vpop.f32.mrb[246].mxu1  ;;  %v7844_v50 = vld [vmem:[%s11664_s20 + $0x48] sm:$0xff]   ;;  %v7750_v33 = vunpack.c.h.bf16 %v7845_v41  ;;  %v7846_v34 = vld [vmem:[%s11664_s20 + $0x58] sm:$0xff]  }
 0x31a   : > { %6190 = vmatmul.mubr.bf16.gmra.mrb[96].mxu0 %v10097_v25  ;;  %v8810_v3 = vpop.f32.mrb[247].mxu1  ;;  %v7745_v49 = vunpack.c.l.bf16 %v7844_v50  ;;  %v7746_v29 = vunpack.c.h.bf16 %v7844_v50  ;;  %v7754_v42 = vunpack.c.h.bf16 %v7846_v34 }
 0x31b   : > { %v5627_v4 = vadd.f32 %v8711_v52, %v11610_v5  ;;  %6197 = vmatprep.mubr.bf16.mxu0 %v10104_v11  ;;  %v11758_v15 = vadd.f32 %v8808_v56, %v5624_v39  ;;  %v8811_v10 = vadd.f32 %v8810_v3, %v8809_v13  ;;  %v9358_v12 = vpack.i.bf16 %v7750_v33, %v7749_v35 }
 0x31c   : > { %9215 = vmatmul.mubr.bf16.gmra.mrb[96].mxu1 %v10117_v51  ;;  %v9353_v45 = vpack.i.bf16 %v7746_v29, %v7745_v49  ;;  %v7753_v39 = vunpack.c.l.bf16 %v7846_v34  ;;  %v7847_v51 = vld [vmem:[%s11664_s20 + $0x60] sm:$0xff]  }
 0x31d   : > { %v8712_v58 = vpop.f32.mrb[248].mxu0  ;;  %v11761_v27 = vadd.f32 %v8811_v10, %v5627_v4  ;;  %9218 = vmatprep.mubr.bf16.mxu1 %v10124_v17  ;;  %v10105_v17 = vld [vmem:[%s10385_s13 + $0x570] ss:$108 sps:$4 sm:$0xff]   ;;  %9359 = vperm.xlu0 %9306, %v9358_v12   ;;  %v7758_v4 = vunpack.c.h.bf16 %v7847_v51 }
 0x31e   : > { %v8713_v62 = vpop.f32.mrb[249].mxu0  ;;  %9354 = vperm.xlu1 %9317, %v9353_v45   ;;  %v9363_v50 = vpack.i.bf16 %v7754_v42, %v7753_v39 }
 0x31f   : > { %v8714_v5 = vadd.f32 %v8713_v62, %v8712_v58  ;;  %v8715_v8 = vpop.f32.mrb[250].mxu0  ;;  %v8812_v20 = vpop.f32.mrb[248].mxu1  ;;  %v10112_v58 = vld [vmem:[%s10385_s13 + $0x64c] ss:$108 sps:$4 sm:$0xff]  }
 0x320   : > { %v8716_v31 = vpop.f32.mrb[251].mxu0  ;;  %v8813_v21 = vpop.f32.mrb[249].mxu1 }
 0x321   : > { %v5632_v28 = vadd.f32 %v8714_v5, %v11618_v54  ;;  %v8717_v47 = vadd.f32 %v8716_v31, %v8715_v8  ;;  %v8814_v23 = vadd.f32 %v8813_v21, %v8812_v20  ;;  %v8815_v25 = vpop.f32.mrb[250].mxu1  ;;  %v6534_v20 = vld [vmem:[%s11664_s20 + $0x68] sm:$0xf] }
 0x322   : > { %6198 = vmatmul.mubr.bf16.gmra.mrb[100].mxu0 %v10102_v30  ;;  %v8816_v11 = vpop.f32.mrb[251].mxu1  ;;  %9364 = vperm.xlu1 %9317, %v9363_v50   ;;  %v10120_v50 = vld [vmem:[%s10385_s13 + $0x7fc] ss:$108 sps:$4 sm:$0xff]  }
 0x323   : > { %v5635_v0 = vadd.f32 %v8717_v47, %v11620_v18  ;;  %6205 = vmatprep.mubr.bf16.mxu0 %v10107_v55  ;;  %v11771_v61 = vadd.f32 %v8814_v23, %v5632_v28  ;;  %v8817_v54 = vadd.f32 %v8816_v11, %v8815_v25  ;;  %v7757_v18 = vunpack.c.l.bf16 %v7847_v51  ;;  %v10133_v55 = vld [vmem:[%s10385_s13 + $0xb60] ss:$0 sps:$4 sm:$0xff]  }
 0x324   : > { %9219 = vmatmul.mubr.bf16.gmra.mrb[100].mxu1 %v10125_v37  ;;  %v6561_v28 = vunpack.c.l.bf16 %v6534_v20 }
 0x325   : > { %v8718_v52 = vpop.f32.mrb[252].mxu0  ;;  %v11774_v56 = vadd.f32 %v8817_v54, %v5635_v0  ;;  %9222 = vmatprep.mubr.bf16.mxu1 %v10132_v32  ;;  %v9368_v49 = vpack.i.bf16 %v7758_v4, %v7757_v18  ;;  %v10110_v32 = vld [vmem:[%s10385_s13 + $0x648] ss:$108 sps:$4 sm:$0xff]   ;;  %v10115_v0 = vld [vmem:[%s10385_s13 + $0x724] ss:$108 sps:$4 sm:$0xff]  }
 0x326   : > { %v8719_v13 = vpop.f32.mrb[253].mxu0  ;;  %6694 = vperm.xlu1 %9317, %v6561_v28  }
 0x327   : > { %v8720_v3 = vadd.f32 %v8719_v13, %v8718_v52  ;;  %v8721_v10 = vpop.f32.mrb[254].mxu0  ;;  %v8818_v62 = vpop.f32.mrb[252].mxu1  ;;  %9369 = vperm.xlu0 %9306, %v9368_v49  }
 0x328   : > { %v8722_v30 = vpop.f32.mrb[255].mxu0  ;;  %v8819_v8 = vpop.f32.mrb[253].mxu1 }
 0x329   : > { %v5640_v29 = vadd.f32 %v8720_v3, %v11628_v2  ;;  %v8723_v5 = vadd.f32 %v8722_v30, %v8721_v10  ;;  %v8820_v31 = vadd.f32 %v8819_v8, %v8818_v62  ;;  %v8821_v45 = vpop.f32.mrb[254].mxu1  ;;  %v10113_v10 = vld [vmem:[%s10385_s13 + $0x720] ss:$108 sps:$4 sm:$0xff]  }
 0x32a   : > { %6206 = vmatmul.mubr.bf16.gmra.mrb[104].mxu0 %v10105_v17  ;;  %v8822_v21 = vpop.f32.mrb[255].mxu1 }
 0x32b   : > { %v5643_v47 = vadd.f32 %v8723_v5, %v11630_v24  ;;  %6213 = vmatprep.mubr.bf16.mxu0 %v10112_v58  ;;  %v11782_v37 = vadd.f32 %v8820_v31, %v5640_v29  ;;  %v8823_v41 = vadd.f32 %v8822_v21, %v8821_v45 }
 0x32c   : > { %9223 = vmatmul.mubr.bf16.gmra.mrb[104].mxu1 %v10133_v55 }
 0x32d   : > { %v8724_v2 = vpop.f32.mrb[0].mxu0  ;;  %v11784_v23 = vadd.f32 %v8823_v41, %v5643_v47  ;;  %v10118_v41 = vld [vmem:[%s10385_s13 + $0x7f8] ss:$108 sps:$4 sm:$0xff]  }
 0x32e   : > { %v8725_v25 = vpop.f32.mrb[1].mxu0 }
 0x32f   : > { %v8726_v35 = vadd.f32 %v8725_v25, %v8724_v2  ;;  %v8727_v33 = vpop.f32.mrb[2].mxu0  ;;  %v8824_v11 = vpop.f32.mrb[0].mxu1  ;;  %v10123_v25 = vld [vmem:[%s10385_s13 + $0x8d4] ss:$108 sps:$4 sm:$0xff]  }
 0x330   : > { %v8728_v34 = vpop.f32.mrb[3].mxu0  ;;  %v8825_v12 = vpop.f32.mrb[1].mxu1 }
 0x331   : > { %v5648_v24 = vadd.f32 %v8726_v35, %v11638_v22  ;;  %v8729_v54 = vadd.f32 %v8728_v34, %v8727_v33  ;;  %v8826_v39 = vadd.f32 %v8825_v12, %v8824_v11  ;;  %v8827_v52 = vpop.f32.mrb[2].mxu1 }
 0x332   : > { %6214 = vmatmul.mubr.bf16.gmra.mrb[108].mxu0 %v10110_v32  ;;  %v8828_v51 = vpop.f32.mrb[3].mxu1 }
 0x333   : > { %v5651_v42 = vadd.f32 %v8729_v54, %v11640_v59  ;;  %6221 = vmatprep.mubr.bf16.mxu0 %v10115_v0  ;;  %v11790_v13 = vadd.f32 %v8826_v39, %v5648_v24  ;;  %v8829_v17 = vadd.f32 %v8828_v51, %v8827_v52 }
 0x335   : > { %v8730_v18 = vpop.f32.mrb[4].mxu0  ;;  %v11792_v4 = vadd.f32 %v8829_v17, %v5651_v42  ;;  %v10121_v17 = vld [vmem:[%s10385_s13 + $0x8d0] ss:$108 sps:$4 sm:$0xff]  }
 0x336   : > { %v8731_v3 = vpop.f32.mrb[5].mxu0 }
 0x337   : > { %v8732_v58 = vadd.f32 %v8731_v3, %v8730_v18  ;;  %v8733_v22 = vpop.f32.mrb[6].mxu0  ;;  %v8830_v62 = vpop.f32.mrb[4].mxu1  ;;  %v10128_v3 = vld [vmem:[%s10385_s13 + $0x9ac] ss:$108 sps:$4 sm:$0xff]  }
 0x338   : > { %v8734_v30 = vpop.f32.mrb[7].mxu0  ;;  %v8831_v59 = vpop.f32.mrb[5].mxu1 }
 0x339   : > { %v5656_v49 = vadd.f32 %v8732_v58, %v11648_v46  ;;  %v8735_v29 = vadd.f32 %v8734_v30, %v8733_v22  ;;  %v8832_v5 = vadd.f32 %v8831_v59, %v8830_v62  ;;  %v8833_v8 = vpop.f32.mrb[6].mxu1 }
 0x33a   : > { %6222 = vmatmul.mubr.bf16.gmra.mrb[112].mxu0 %v10113_v10  ;;  %v8834_v20 = vpop.f32.mrb[7].mxu1 }
 0x33b   : > { %v5659_v55 = vadd.f32 %v8735_v29, %v11650_v36  ;;  %6229 = vmatprep.mubr.bf16.mxu0 %v10120_v50  ;;  %v11798_v31 = vadd.f32 %v8832_v5, %v5656_v49  ;;  %v8835_v45 = vadd.f32 %v8834_v20, %v8833_v8 }
 0x33d   : > { %v8736_v28 = vpop.f32.mrb[8].mxu0  ;;  %v11800_v47 = vadd.f32 %v8835_v45, %v5659_v55  ;;  %v10126_v45 = vld [vmem:[%s10385_s13 + $0x9a8] ss:$108 sps:$4 sm:$0xff]  }
 0x33e   : > { %v8737_v21 = vpop.f32.mrb[9].mxu0 }
 0x33f   : > { %v8738_v2 = vadd.f32 %v8737_v21, %v8736_v28  ;;  %v8739_v46 = vpop.f32.mrb[10].mxu0  ;;  %v8836_v32 = vpop.f32.mrb[8].mxu1  ;;  %v10131_v21 = vld [vmem:[%s10385_s13 + $0xa84] ss:$108 sps:$4 sm:$0xff]  }
 0x340   : > { %v8740_v35 = vpop.f32.mrb[11].mxu0  ;;  %v8837_v36 = vpop.f32.mrb[9].mxu1 }
 0x341   : > { %v5664_v33 = vadd.f32 %v8738_v2, %v11658_v7  ;;  %v8741_v0 = vadd.f32 %v8740_v35, %v8739_v46  ;;  %v8838_v11 = vadd.f32 %v8837_v36, %v8836_v32  ;;  %v8839_v34 = vpop.f32.mrb[10].mxu1 }
 0x342   : > { %6230 = vmatmul.mubr.bf16.gmra.mrb[116].mxu0 %v10118_v41  ;;  %v8840_v54 = vpop.f32.mrb[11].mxu1 }
 0x343   : > { %v5667_v24 = vadd.f32 %v8741_v0, %v11667_v16  ;;  %6237 = vmatprep.mubr.bf16.mxu0 %v10123_v25  ;;  %v11806_v12 = vadd.f32 %v8838_v11, %v5664_v33  ;;  %v8841_v39 = vadd.f32 %v8840_v54, %v8839_v34  ;;  %v750_v34 = vld [vmem:[%s10385_s13 + $0xb58] sm:$0xff] }
 0x345   : > { %v8742_v52 = vpop.f32.mrb[12].mxu0  ;;  %v11808_v42 = vadd.f32 %v8841_v39, %v5667_v24 }
 0x346   : > { %v8743_v51 = vpop.f32.mrb[13].mxu0 }
 0x347   : > { %v8744_v18 = vadd.f32 %v8743_v51, %v8742_v52  ;;  %v8745_v7 = vpop.f32.mrb[14].mxu0  ;;  %v8842_v10 = vpop.f32.mrb[12].mxu1  ;;  %v10129_v52 = vld [vmem:[%s10385_s13 + $0xa80] ss:$108 sps:$4 sm:$0xff]  }
 0x348   : > { %v8746_v58 = vpop.f32.mrb[15].mxu0  ;;  %v8843_v16 = vpop.f32.mrb[13].mxu1 }
 0x349   : > { %v5672_v22 = vadd.f32 %v8744_v18, %v11675_v14  ;;  %v8747_v50 = vadd.f32 %v8746_v58, %v8745_v7  ;;  %v8844_v62 = vadd.f32 %v8843_v16, %v8842_v10  ;;  %v8845_v30 = vpop.f32.mrb[14].mxu1 }
 0x34a   : > { %6238 = vmatmul.mubr.bf16.gmra.mrb[120].mxu0 %v10121_v17  ;;  %v8846_v29 = vpop.f32.mrb[15].mxu1  ;;  %v7379_v17 = vcombine.high %v750_v34, %v750_v34 }
 0x34b   : > { %v5675_v49 = vadd.f32 %v8747_v50, %v11678_v19  ;;  %6245 = vmatprep.mubr.bf16.mxu0 %v10128_v3  ;;  %v11814_v59 = vadd.f32 %v8844_v62, %v5672_v22  ;;  %v8847_v5 = vadd.f32 %v8846_v29, %v8845_v30  ;;  %v7378_v30 = vcombine.low %v750_v34, %v750_v34 }
 0x34d   : > { %v8748_v8 = vpop.f32.mrb[16].mxu0  ;;  %v11816_v55 = vadd.f32 %v8847_v5, %v5675_v49 }
 0x34e   : > { %v8749_v20 = vpop.f32.mrb[17].mxu0 }
 0x34f   : > { %v8750_v28 = vadd.f32 %v8749_v20, %v8748_v8  ;;  %v8751_v14 = vpop.f32.mrb[18].mxu0  ;;  %v8848_v41 = vpop.f32.mrb[16].mxu1 }
 0x350   : > { %v8752_v2 = vpop.f32.mrb[19].mxu0  ;;  %v8849_v25 = vpop.f32.mrb[17].mxu1 }
 0x351   : > { %v5680_v46 = vadd.f32 %v8750_v28, %v11686_v60  ;;  %v8753_v19 = vadd.f32 %v8752_v2, %v8751_v14  ;;  %v8850_v32 = vadd.f32 %v8849_v25, %v8848_v41  ;;  %v8851_v35 = vpop.f32.mrb[18].mxu1 }
 0x352   : > { %6246 = vmatmul.mubr.bf16.gmra.mrb[124].mxu0 %v10126_v45  ;;  %v8852_v0 = vpop.f32.mrb[19].mxu1 }
 0x353   : > { %v5683_v33 = vadd.f32 %v8753_v19, %v11690_v43  ;;  %6253 = vmatprep.mubr.bf16.mxu0 %v10131_v21  ;;  %v11822_v36 = vadd.f32 %v8850_v32, %v5680_v46  ;;  %v8853_v11 = vadd.f32 %v8852_v0, %v8851_v35 }
 0x355   : > { %v8754_v24 = vpop.f32.mrb[20].mxu0  ;;  %v11825_v54 = vadd.f32 %v8853_v11, %v5683_v33 }
 0x356   : > { %v8755_v39 = vpop.f32.mrb[21].mxu0 }
 0x357   : > { %v8756_v51 = vadd.f32 %v8755_v39, %v8754_v24  ;;  %v8757_v60 = vpop.f32.mrb[22].mxu0  ;;  %v8854_v18 = vpop.f32.mrb[20].mxu1 }
 0x358   : > { %v8758_v7 = vpop.f32.mrb[23].mxu0  ;;  %v8855_v10 = vpop.f32.mrb[21].mxu1 }
 0x359   : > { %v5688_v3 = vadd.f32 %v8756_v51, %v11696_v48  ;;  %v8856_v43 = vadd.f32 %v8855_v10, %v8854_v18  ;;  %v8857_v58 = vpop.f32.mrb[22].mxu1 }
 0x35a   : > { %6254 = vmatmul.mubr.bf16.gmra.mrb[128].mxu0 %v10129_v52  ;;  %v8858_v22 = vpop.f32.mrb[23].mxu1 }
 0x35b   : > { %6261 = vmatprep.mubr.bf16.mxu0 %v7379_v17  ;;  %v11829_v50 = vadd.f32 %v8856_v43, %v5688_v3 }
 0x35d   : > { %v8876_v16 = vpop.f32.mrb[24].mxu0 }
 0x35e   : > { %v8877_v62 = vpop.f32.mrb[25].mxu0 }
 0x35f   : > { %v8878_v49 = vadd.f32 %v8877_v62, %v8876_v16  ;;  %v8879_v29 = vpop.f32.mrb[26].mxu0  ;;  %v8976_v5 = vpop.f32.mrb[24].mxu1 }
 0x360   : > { %v8880_v8 = vpop.f32.mrb[27].mxu0  ;;  %v8977_v28 = vpop.f32.mrb[25].mxu1 }
 0x361   : > { %v5872_v20 = vadd.f32 %v8878_v49, %v11703_v40  ;;  %v8881_v45 = vadd.f32 %v8880_v8, %v8879_v29  ;;  %v8978_v48 = vadd.f32 %v8977_v28, %v8976_v5  ;;  %v8979_v14 = vpop.f32.mrb[26].mxu1 }
 0x362   : > { %6262 = vmatmul.mubr.bf16.gmra.mrb[132].mxu0 %v7378_v30  ;;  %v8980_v41 = vpop.f32.mrb[27].mxu1 }
 0x363   : > { %v5875_v21 = vadd.f32 %v8881_v45, %v11706_v1  ;;  %v11833_v2 = vadd.f32 %v8978_v48, %v5872_v20  ;;  %v8981_v46 = vadd.f32 %v8980_v41, %v8979_v14 }
 0x365   : > { %v8882_v19 = vpop.f32.mrb[28].mxu0  ;;  %v11835_v25 = vadd.f32 %v8981_v46, %v5875_v21 }
 0x366   : > { %v8883_v32 = vpop.f32.mrb[29].mxu0 }
 0x367   : > { %v8884_v35 = vadd.f32 %v8883_v32, %v8882_v19  ;;  %v8885_v33 = vpop.f32.mrb[30].mxu0  ;;  %v8982_v0 = vpop.f32.mrb[28].mxu1 }
 0x368   : > { %v8886_v11 = vpop.f32.mrb[31].mxu0  ;;  %v8983_v24 = vpop.f32.mrb[29].mxu1 }
 0x369   : > { %v5880_v40 = vadd.f32 %v8884_v35, %v11714_v38  ;;  %v8887_v34 = vadd.f32 %v8886_v11, %v8885_v33  ;;  %v8984_v39 = vadd.f32 %v8983_v24, %v8982_v0  ;;  %v8985_v52 = vpop.f32.mrb[30].mxu1 }
 0x36a   : > { %v8986_v51 = vpop.f32.mrb[31].mxu1 }
 0x36b   : > { %v5883_v1 = vadd.f32 %v8887_v34, %v11717_v57  ;;  %v11839_v60 = vadd.f32 %v8984_v39, %v5880_v40  ;;  %v8987_v17 = vadd.f32 %v8986_v51, %v8985_v52 }
 0x36d   : > { %v8888_v18 = vpop.f32.mrb[32].mxu0  ;;  %v11841_v7 = vadd.f32 %v8987_v17, %v5883_v1 }
 0x36e   : > { %v8889_v3 = vpop.f32.mrb[33].mxu0 }
 0x36f   : > { %v8890_v10 = vadd.f32 %v8889_v3, %v8888_v18  ;;  %v8891_v43 = vpop.f32.mrb[34].mxu0  ;;  %v8988_v58 = vpop.f32.mrb[32].mxu1 }
 0x370   : > { %v8892_v22 = vpop.f32.mrb[35].mxu0  ;;  %v8989_v62 = vpop.f32.mrb[33].mxu1 }
 0x371   : > { %v5888_v38 = vadd.f32 %v8890_v10, %v11725_v6  ;;  %v8893_v16 = vadd.f32 %v8892_v22, %v8891_v43  ;;  %v8990_v30 = vadd.f32 %v8989_v62, %v8988_v58  ;;  %v8991_v49 = vpop.f32.mrb[34].mxu1 }
 0x372   : > { %v8992_v29 = vpop.f32.mrb[35].mxu1 }
 0x373   : > { %v5891_v57 = vadd.f32 %v8893_v16, %v11728_v9  ;;  %v11845_v5 = vadd.f32 %v8990_v30, %v5888_v38  ;;  %v8993_v8 = vadd.f32 %v8992_v29, %v8991_v49 }
 0x375   : > { %v8894_v20 = vpop.f32.mrb[36].mxu0  ;;  %v11847_v45 = vadd.f32 %v8993_v8, %v5891_v57 }
 0x376   : > { %v8895_v28 = vpop.f32.mrb[37].mxu0 }
 0x377   : > { %v8896_v48 = vadd.f32 %v8895_v28, %v8894_v20  ;;  %v8897_v14 = vpop.f32.mrb[38].mxu0  ;;  %v8994_v21 = vpop.f32.mrb[36].mxu1 }
 0x378   : > { %v8898_v41 = vpop.f32.mrb[39].mxu0  ;;  %v8995_v19 = vpop.f32.mrb[37].mxu1 }
 0x379   : > { %v5896_v6 = vadd.f32 %v8896_v48, %v11736_v53  ;;  %v8899_v46 = vadd.f32 %v8898_v41, %v8897_v14  ;;  %v8996_v32 = vadd.f32 %v8995_v19, %v8994_v21  ;;  %v8997_v35 = vpop.f32.mrb[38].mxu1 }
 0x37a   : > { %v8998_v33 = vpop.f32.mrb[39].mxu1 }
 0x37b   : > { %v5899_v9 = vadd.f32 %v8899_v46, %v11739_v63  ;;  %v11851_v0 = vadd.f32 %v8996_v32, %v5896_v6  ;;  %v8999_v11 = vadd.f32 %v8998_v33, %v8997_v35 }
 0x37d   : > { %v8900_v40 = vpop.f32.mrb[40].mxu0  ;;  %v11853_v34 = vadd.f32 %v8999_v11, %v5899_v9 }
 0x37e   : > { %v8901_v24 = vpop.f32.mrb[41].mxu0 }
 0x37f   : > { %v8902_v39 = vadd.f32 %v8901_v24, %v8900_v40  ;;  %v8903_v52 = vpop.f32.mrb[42].mxu0  ;;  %v9000_v1 = vpop.f32.mrb[40].mxu1 }
 0x380   : > { %v8904_v51 = vpop.f32.mrb[43].mxu0  ;;  %v9001_v18 = vpop.f32.mrb[41].mxu1 }
 0x381   : > { %v5904_v53 = vadd.f32 %v8902_v39, %v11747_v44  ;;  %v8905_v17 = vadd.f32 %v8904_v51, %v8903_v52  ;;  %v9002_v3 = vadd.f32 %v9001_v18, %v9000_v1  ;;  %v9003_v10 = vpop.f32.mrb[42].mxu1 }
 0x382   : > { %v9004_v43 = vpop.f32.mrb[43].mxu1 }
 0x383   : > { %v5907_v63 = vadd.f32 %v8905_v17, %v11750_v26  ;;  %v11857_v58 = vadd.f32 %v9002_v3, %v5904_v53  ;;  %v9005_v22 = vadd.f32 %v9004_v43, %v9003_v10 }
 0x385   : > { %v8906_v38 = vpop.f32.mrb[44].mxu0  ;;  %v11859_v16 = vadd.f32 %v9005_v22, %v5907_v63 }
 0x386   : > { %v8907_v62 = vpop.f32.mrb[45].mxu0 }
 0x387   : > { %v8908_v30 = vadd.f32 %v8907_v62, %v8906_v38  ;;  %v8909_v49 = vpop.f32.mrb[46].mxu0  ;;  %v9006_v57 = vpop.f32.mrb[44].mxu1 }
 0x388   : > { %v8910_v29 = vpop.f32.mrb[47].mxu0  ;;  %v9007_v20 = vpop.f32.mrb[45].mxu1 }
 0x389   : > { %v5912_v44 = vadd.f32 %v8908_v30, %v11758_v15  ;;  %v8911_v8 = vadd.f32 %v8910_v29, %v8909_v49  ;;  %v9008_v28 = vadd.f32 %v9007_v20, %v9006_v57  ;;  %v9009_v48 = vpop.f32.mrb[46].mxu1 }
 0x38a   : > { %v9010_v14 = vpop.f32.mrb[47].mxu1 }
 0x38b   : > { %v5915_v26 = vadd.f32 %v8911_v8, %v11761_v27  ;;  %v11863_v21 = vadd.f32 %v9008_v28, %v5912_v44  ;;  %v9011_v41 = vadd.f32 %v9010_v14, %v9009_v48 }
 0x38d   : > { %v8912_v6 = vpop.f32.mrb[48].mxu0  ;;  %v11865_v46 = vadd.f32 %v9011_v41, %v5915_v26 }
 0x38e   : > { %v8913_v19 = vpop.f32.mrb[49].mxu0 }
 0x38f   : > { %v8914_v32 = vadd.f32 %v8913_v19, %v8912_v6  ;;  %v8915_v35 = vpop.f32.mrb[50].mxu0  ;;  %v9012_v9 = vpop.f32.mrb[48].mxu1 }
 0x390   : > { %v8916_v33 = vpop.f32.mrb[51].mxu0  ;;  %v9013_v40 = vpop.f32.mrb[49].mxu1 }
 0x391   : > { %v5920_v15 = vadd.f32 %v8914_v32, %v11771_v61  ;;  %v8917_v11 = vadd.f32 %v8916_v33, %v8915_v35  ;;  %v9014_v24 = vadd.f32 %v9013_v40, %v9012_v9  ;;  %v9015_v39 = vpop.f32.mrb[50].mxu1 }
 0x392   : > { %v9016_v52 = vpop.f32.mrb[51].mxu1 }
 0x393   : > { %v5923_v27 = vadd.f32 %v8917_v11, %v11774_v56  ;;  %v11869_v1 = vadd.f32 %v9014_v24, %v5920_v15  ;;  %v9017_v51 = vadd.f32 %v9016_v52, %v9015_v39 }
 0x395   : > { %v8918_v53 = vpop.f32.mrb[52].mxu0  ;;  %v11871_v17 = vadd.f32 %v9017_v51, %v5923_v27 }
 0x396   : > { %v8919_v18 = vpop.f32.mrb[53].mxu0 }
 0x397   : > { %v8920_v3 = vadd.f32 %v8919_v18, %v8918_v53  ;;  %v8921_v10 = vpop.f32.mrb[54].mxu0  ;;  %v9018_v63 = vpop.f32.mrb[52].mxu1 }
 0x398   : > { %v8922_v43 = vpop.f32.mrb[55].mxu0  ;;  %v9019_v38 = vpop.f32.mrb[53].mxu1 }
 0x399   : > { %v5928_v61 = vadd.f32 %v8920_v3, %v11782_v37  ;;  %v8923_v22 = vadd.f32 %v8922_v43, %v8921_v10  ;;  %v9020_v62 = vadd.f32 %v9019_v38, %v9018_v63  ;;  %v9021_v30 = vpop.f32.mrb[54].mxu1 }
 0x39a   : > { %v9022_v49 = vpop.f32.mrb[55].mxu1 }
 0x39b   : > { %v5931_v56 = vadd.f32 %v8923_v22, %v11784_v23  ;;  %v11875_v57 = vadd.f32 %v9020_v62, %v5928_v61  ;;  %v9023_v29 = vadd.f32 %v9022_v49, %v9021_v30 }
 0x39d   : > { %v8924_v44 = vpop.f32.mrb[56].mxu0  ;;  %v11877_v8 = vadd.f32 %v9023_v29, %v5931_v56 }
 0x39e   : > { %v8925_v20 = vpop.f32.mrb[57].mxu0 }
 0x39f   : > { %v8926_v28 = vadd.f32 %v8925_v20, %v8924_v44  ;;  %v8927_v48 = vpop.f32.mrb[58].mxu0  ;;  %v9024_v26 = vpop.f32.mrb[56].mxu1 }
 0x3a0   : > { %v8928_v14 = vpop.f32.mrb[59].mxu0  ;;  %v9025_v6 = vpop.f32.mrb[57].mxu1 }
 0x3a1   : > { %v5936_v37 = vadd.f32 %v8926_v28, %v11790_v13  ;;  %v8929_v41 = vadd.f32 %v8928_v14, %v8927_v48  ;;  %v9026_v19 = vadd.f32 %v9025_v6, %v9024_v26  ;;  %v9027_v32 = vpop.f32.mrb[58].mxu1 }
 0x3a2   : > { %v9028_v35 = vpop.f32.mrb[59].mxu1 }
 0x3a3   : > { %v5939_v23 = vadd.f32 %v8929_v41, %v11792_v4  ;;  %v11881_v9 = vadd.f32 %v9026_v19, %v5936_v37  ;;  %v9029_v33 = vadd.f32 %v9028_v35, %v9027_v32 }
 0x3a5   : > { %v8930_v15 = vpop.f32.mrb[60].mxu0  ;;  %v11883_v11 = vadd.f32 %v9029_v33, %v5939_v23 }
 0x3a6   : > { %v8931_v40 = vpop.f32.mrb[61].mxu0 }
 0x3a7   : > { %v8932_v24 = vadd.f32 %v8931_v40, %v8930_v15  ;;  %v8933_v39 = vpop.f32.mrb[62].mxu0  ;;  %v9030_v27 = vpop.f32.mrb[60].mxu1 }
 0x3a8   : > { %v8934_v52 = vpop.f32.mrb[63].mxu0  ;;  %v9031_v53 = vpop.f32.mrb[61].mxu1 }
 0x3a9   : > { %v5944_v13 = vadd.f32 %v8932_v24, %v11798_v31  ;;  %v8935_v51 = vadd.f32 %v8934_v52, %v8933_v39  ;;  %v9032_v18 = vadd.f32 %v9031_v53, %v9030_v27  ;;  %v9033_v3 = vpop.f32.mrb[62].mxu1 }
 0x3aa   : > { %v9034_v10 = vpop.f32.mrb[63].mxu1 }
 0x3ab   : > { %v5947_v4 = vadd.f32 %v8935_v51, %v11800_v47  ;;  %v11887_v63 = vadd.f32 %v9032_v18, %v5944_v13  ;;  %v9035_v43 = vadd.f32 %v9034_v10, %v9033_v3 }
 0x3ad   : > { %v8936_v61 = vpop.f32.mrb[64].mxu0  ;;  %v11889_v22 = vadd.f32 %v9035_v43, %v5947_v4 }
 0x3ae   : > { %v8937_v38 = vpop.f32.mrb[65].mxu0 }
 0x3af   : > { %v8938_v62 = vadd.f32 %v8937_v38, %v8936_v61  ;;  %v8939_v30 = vpop.f32.mrb[66].mxu0  ;;  %v9036_v56 = vpop.f32.mrb[64].mxu1 }
 0x3b0   : > { %v8940_v49 = vpop.f32.mrb[67].mxu0  ;;  %v9037_v44 = vpop.f32.mrb[65].mxu1 }
 0x3b1   : > { %v5952_v31 = vadd.f32 %v8938_v62, %v11806_v12  ;;  %v8941_v29 = vadd.f32 %v8940_v49, %v8939_v30  ;;  %v9038_v20 = vadd.f32 %v9037_v44, %v9036_v56  ;;  %v9039_v28 = vpop.f32.mrb[66].mxu1 }
 0x3b2   : > { %v9040_v48 = vpop.f32.mrb[67].mxu1 }
 0x3b3   : > { %v5955_v47 = vadd.f32 %v8941_v29, %v11808_v42  ;;  %v11893_v26 = vadd.f32 %v9038_v20, %v5952_v31  ;;  %v9041_v14 = vadd.f32 %v9040_v48, %v9039_v28 }
 0x3b5   : > { %v8942_v37 = vpop.f32.mrb[68].mxu0  ;;  %v11895_v41 = vadd.f32 %v9041_v14, %v5955_v47 }
 0x3b6   : > { %v8943_v6 = vpop.f32.mrb[69].mxu0 }
 0x3b7   : > { %v8944_v19 = vadd.f32 %v8943_v6, %v8942_v37  ;;  %v8945_v32 = vpop.f32.mrb[70].mxu0  ;;  %v9042_v23 = vpop.f32.mrb[68].mxu1 }
 0x3b8   : > { %v8946_v35 = vpop.f32.mrb[71].mxu0  ;;  %v9043_v15 = vpop.f32.mrb[69].mxu1 }
 0x3b9   : > { %v5960_v12 = vadd.f32 %v8944_v19, %v11814_v59  ;;  %v8947_v33 = vadd.f32 %v8946_v35, %v8945_v32  ;;  %v9044_v40 = vadd.f32 %v9043_v15, %v9042_v23  ;;  %v9045_v24 = vpop.f32.mrb[70].mxu1 }
 0x3ba   : > { %v9046_v39 = vpop.f32.mrb[71].mxu1 }
 0x3bb   : > { %v5963_v42 = vadd.f32 %v8947_v33, %v11816_v55  ;;  %v11899_v27 = vadd.f32 %v9044_v40, %v5960_v12  ;;  %v9047_v52 = vadd.f32 %v9046_v39, %v9045_v24 }
 0x3bd   : > { %v8948_v13 = vpop.f32.mrb[72].mxu0  ;;  %v11901_v51 = vadd.f32 %v9047_v52, %v5963_v42 }
 0x3be   : > { %v8949_v53 = vpop.f32.mrb[73].mxu0 }
 0x3bf   : > { %v8950_v18 = vadd.f32 %v8949_v53, %v8948_v13  ;;  %v8951_v3 = vpop.f32.mrb[74].mxu0  ;;  %v9048_v4 = vpop.f32.mrb[72].mxu1 }
 0x3c0   : > { %v8952_v10 = vpop.f32.mrb[75].mxu0  ;;  %v9049_v61 = vpop.f32.mrb[73].mxu1 }
 0x3c1   : > { %v5968_v59 = vadd.f32 %v8950_v18, %v11822_v36  ;;  %v8953_v43 = vadd.f32 %v8952_v10, %v8951_v3  ;;  %v9050_v38 = vadd.f32 %v9049_v61, %v9048_v4  ;;  %v9051_v62 = vpop.f32.mrb[74].mxu1  ;;  %v11922_v18 = vld [vmem:[%s12107_s3] ss:$0 sm:$0xff]  ;;  %v9309_v10 = vpop.permute.xlu0 %9308 }
 0x3c2   : > { %v9052_v30 = vpop.f32.mrb[75].mxu1 }
 0x3c3   : > { %v5971_v55 = vadd.f32 %v8953_v43, %v11825_v54  ;;  %v11905_v56 = vadd.f32 %v9050_v38, %v5968_v59  ;;  %v9053_v49 = vadd.f32 %v9052_v30, %v9051_v62 }
 0x3c5   : > { %v8954_v31 = vpop.f32.mrb[76].mxu0  ;;  %v11907_v29 = vadd.f32 %v9053_v49, %v5971_v55  ;;  %v9311_v55 = vunpack.i.h.bf16 %v9309_v10 }
 0x3c6   : > { %v8955_v44 = vpop.f32.mrb[77].mxu0 }
 0x3c7   : > { %v8956_v20 = vadd.f32 %v8955_v44, %v8954_v31  ;;  %v8957_v28 = vpop.f32.mrb[78].mxu0  ;;  %v9054_v47 = vpop.f32.mrb[76].mxu1 }
 0x3c8   : > { %v8958_v48 = vpop.f32.mrb[79].mxu0  ;;  %v9055_v14 = vpop.f32.mrb[77].mxu1 }
 0x3c9   : > { %v5976_v36 = vadd.f32 %v8956_v20, %v11829_v50  ;;  %v9056_v37 = vadd.f32 %v9055_v14, %v9054_v47  ;;  %v9057_v6 = vpop.f32.mrb[78].mxu1  ;;  %v11916_v50 = vld [vmem:[%s12106_s2] ss:$0 sm:$0xff] }
 0x3ca   : > { %v9058_v19 = vpop.f32.mrb[79].mxu1 }
 0x3cb   : > { %v11910_v32 = vadd.f32 %v9056_v37, %v5976_v36 }
 0x3cd   : > { %v9076_v54 = vpop.f32.mrb[80].mxu0 }
 0x3ce   : > { %v9077_v23 = vpop.f32.mrb[81].mxu0 }
 0x3cf   : > { %v9078_v35 = vadd.f32 %v9077_v23, %v9076_v54  ;;  %v9079_v12 = vpop.f32.mrb[82].mxu0  ;;  %v9200_v15 = vpop.f32.mrb[80].mxu1 }
 0x3d0   : > { %v9080_v33 = vpop.f32.mrb[83].mxu0  ;;  %v6303_v42 = vpop.f32.mrb[81].mxu1 }
 0x3d1   : > { %v9081_v40 = vadd.f32 %v9080_v33, %v9079_v12  ;;  %v6160_v24 = vadd.f32 %v9078_v35, %v11833_v2  ;;  %v9201_v39 = vpop.f32.mrb[82].mxu1  ;;  %v9314_v33 = vpop.permute.xlu0 %9313 }
 0x3d2   : > { %v6306_v53 = vpop.f32.mrb[83].mxu1 }
 0x3d3   : > { %v6304_v52 = vadd.f32 %v6303_v42, %v6160_v24  ;;  %v6163_v13 = vadd.f32 %v9081_v40, %v11835_v25  ;;  %v9310_v25 = vunpack.i.l.bf16 %v9309_v10 }
 0x3d5   : > { %v6420_v3 = vmul.f32 %v11916_v50, %v6304_v52  ;;  %v6307_v4 = vadd.f32 %v6306_v53, %v6163_v13  ;;  %v9082_v2 = vpop.f32.mrb[84].mxu0  ;;  %v9316_v52 = vunpack.i.h.bf16 %v9314_v33  ;;  %v9315_v13 = vunpack.i.l.bf16 %v9314_v33 }
 0x3d6   : > { %v9083_v59 = vpop.f32.mrb[85].mxu0 }
 0x3d7   : > { %v6454_v43 = vadd.f32 %v11922_v18, %v6420_v3  ;;  %v6421_v61 = vmul.f32 %v11916_v50, %v6307_v4  ;;  %v9084_v38 = vadd.f32 %v9083_v59, %v9082_v2  ;;  %v9085_v62 = vpop.f32.mrb[86].mxu0  ;;  %v11927_v49 = vpop.f32.mrb[84].mxu1 }
 0x3d8   : > { %v9086_v30 = vpop.f32.mrb[87].mxu0  ;;  %v6319_v47 = vpop.f32.mrb[85].mxu1 }
 0x3d9   : > { %v6481_v31 = vmax.f32 %v6454_v43, 0.0  ;;  %v6455_v44 = vadd.f32 %v11922_v18, %v6421_v61  ;;  %v6168_v20 = vadd.f32 %v9084_v38, %v11839_v60  ;;  %v9087_v28 = vadd.f32 %v9086_v30, %v9085_v62  ;;  %v11931_v48 = vpop.f32.mrb[86].mxu1 }
 0x3da   : > { %v6322_v6 = vpop.f32.mrb[87].mxu1 }
 0x3db   : > { %v6482_v36 = vmax.f32 %v6455_v44, 0.0  ;;  %v6312_v14 = vadd.f32 %v9200_v15, %v6168_v20  ;;  %v6171_v37 = vadd.f32 %v9087_v28, %v11841_v7  ;;  %v6697_v54 = vmul.f32 %v9310_v25, %v6481_v31  ;;  %v9320_v28 = vpop.permute.xlu1 %9319 }
 0x3dd   : > { %v6422_v19 = vmul.f32 %v11916_v50, %v6312_v14  ;;  %v6698_v23 = vmul.f32 %v9311_v55, %v6482_v36  ;;  %v6315_v35 = vadd.f32 %v9201_v39, %v6171_v37  ;;  %v9088_v12 = vpop.f32.mrb[88].mxu0 }
 0x3de   : > { %v9089_v60 = vpop.f32.mrb[89].mxu0 }
 0x3df   : > { %v7762_v40 = vpack.c.bf16 %v6698_v23, %v6697_v54  ;;  %v6423_v15 = vmul.f32 %v11916_v50, %v6315_v35  ;;  %v9090_v24 = vadd.f32 %v9089_v60, %v9088_v12  ;;  %v9091_v7 = vpop.f32.mrb[90].mxu0  ;;  %v6456_v42 = vadd.f32 %v11922_v18, %v6422_v19  ;;  %v11943_v39 = vpop.f32.mrb[88].mxu1 }
 0x3e0   : > { %v9092_v53 = vpop.f32.mrb[91].mxu0  ;;  %v6335_v59 = vpop.f32.mrb[89].mxu1  ;;  %v9321_v23 = vunpack.i.l.bf16 %v9320_v28 }
 0x3e1   : > { %7763 = vst [vmem:[%s11939_s24] sm:$0xff] %v7762_v40   ;;  %v6457_v3 = vadd.f32 %v11922_v18, %v6423_v15  ;;  %v6483_v4 = vmax.f32 %v6456_v42, 0.0  ;;  %v9093_v2 = vadd.f32 %v9092_v53, %v9091_v7  ;;  %v6176_v10 = vadd.f32 %v9090_v24, %v11845_v5  ;;  %v11948_v43 = vpop.f32.mrb[90].mxu1 }
 0x3e2   : > { %v6338_v55 = vpop.f32.mrb[91].mxu1 }
 0x3e3   : > { %v6484_v61 = vmax.f32 %v6457_v3, 0.0  ;;  %v6320_v38 = vadd.f32 %v6319_v47, %v6176_v10  ;;  %v6179_v62 = vadd.f32 %v9093_v2, %v11847_v45  ;;  %v6699_v25 = vmul.f32 %v9315_v13, %v6483_v4  ;;  %v9325_v2 = vpop.permute.xlu1 %9324 }
 0x3e4   : > { %v9322_v47 = vunpack.i.h.bf16 %v9320_v28 }
 0x3e5   : > { %v6700_v30 = vmul.f32 %v9316_v52, %v6484_v61  ;;  %v6424_v31 = vmul.f32 %v11916_v50, %v6320_v38  ;;  %v6323_v44 = vadd.f32 %v6322_v6, %v6179_v62  ;;  %v9094_v20 = vpop.f32.mrb[92].mxu0 }
 0x3e6   : > { %v9095_v36 = vpop.f32.mrb[93].mxu0 }
 0x3e7   : > { %v7767_v14 = vpack.c.bf16 %v6700_v30, %v6699_v25  ;;  %v6458_v5 = vadd.f32 %v11922_v18, %v6424_v31  ;;  %v6425_v37 = vmul.f32 %v11916_v50, %v6323_v44  ;;  %v9096_v19 = vadd.f32 %v9095_v36, %v9094_v20  ;;  %v9097_v54 = vpop.f32.mrb[94].mxu0  ;;  %v11954_v35 = vpop.f32.mrb[92].mxu1 }
 0x3e8   : > { %v9098_v45 = vpop.f32.mrb[95].mxu0  ;;  %v11959_v40 = vpop.f32.mrb[93].mxu1  ;;  %v9326_v30 = vunpack.i.l.bf16 %v9325_v2 }
 0x3e9   : > { %7848 = vst [vmem:[%s11939_s24 + $0x8] sm:$0xff] %v7767_v14   ;;  %v6485_v12 = vmax.f32 %v6458_v5, 0.0  ;;  %v6459_v33 = vadd.f32 %v11922_v18, %v6425_v37  ;;  %v6184_v6 = vadd.f32 %v9096_v19, %v11851_v0  ;;  %v9099_v60 = vadd.f32 %v9098_v45, %v9097_v54  ;;  %v11961_v15 = vpop.f32.mrb[94].mxu1 }
 0x3ea   : > { %v11965_v52 = vpop.f32.mrb[95].mxu1 }
 0x3eb   : > { %v6486_v24 = vmax.f32 %v6459_v33, 0.0  ;;  %v6328_v7 = vadd.f32 %v11927_v49, %v6184_v6  ;;  %v6187_v42 = vadd.f32 %v9099_v60, %v11853_v34  ;;  %v6701_v53 = vmul.f32 %v9321_v23, %v6485_v12  ;;  %v9330_v60 = vpop.permute.xlu0 %9329 }
 0x3ec   : > { %v9327_v34 = vunpack.i.h.bf16 %v9325_v2 }
 0x3ed   : > { %v6426_v13 = vmul.f32 %v11916_v50, %v6328_v7  ;;  %v6702_v3 = vmul.f32 %v9322_v47, %v6486_v24  ;;  %v6331_v4 = vadd.f32 %v11931_v48, %v6187_v42  ;;  %v9100_v0 = vpop.f32.mrb[96].mxu0 }
 0x3ee   : > { %v9101_v10 = vpop.f32.mrb[97].mxu0 }
 0x3ef   : > { %v7772_v61 = vpack.c.bf16 %v6702_v3, %v6701_v53  ;;  %v6427_v38 = vmul.f32 %v11916_v50, %v6331_v4  ;;  %v9102_v62 = vadd.f32 %v9101_v10, %v9100_v0  ;;  %v9103_v25 = vpop.f32.mrb[98].mxu0  ;;  %v6460_v49 = vadd.f32 %v11922_v18, %v6426_v13  ;;  %v11971_v44 = vpop.f32.mrb[96].mxu1 }
 0x3f0   : > { %v9104_v31 = vpop.f32.mrb[99].mxu0  ;;  %v11976_v14 = vpop.f32.mrb[97].mxu1  ;;  %v9332_v53 = vunpack.i.h.bf16 %v9330_v60 }
 0x3f1   : > { %7849 = vst [vmem:[%s11939_s24 + $0x10] sm:$0xff] %v7772_v61   ;;  %v6461_v20 = vadd.f32 %v11922_v18, %v6427_v38  ;;  %v6487_v28 = vmax.f32 %v6460_v49, 0.0  ;;  %v9105_v48 = vadd.f32 %v9104_v31, %v9103_v25  ;;  %v6192_v36 = vadd.f32 %v9102_v62, %v11857_v58  ;;  %v11978_v5 = vpop.f32.mrb[98].mxu1 }
 0x3f2   : > { %v11981_v47 = vpop.f32.mrb[99].mxu1 }
 0x3f3   : > { %v6488_v37 = vmax.f32 %v6461_v20, 0.0  ;;  %v6336_v19 = vadd.f32 %v6335_v59, %v6192_v36  ;;  %v6195_v54 = vadd.f32 %v9105_v48, %v11859_v16  ;;  %v6703_v23 = vmul.f32 %v9326_v30, %v6487_v28  ;;  %v9335_v48 = vpop.permute.xlu1 %9334 }
 0x3f4   : > { %v9331_v16 = vunpack.i.l.bf16 %v9330_v60 }
 0x3f5   : > { %v6704_v45 = vmul.f32 %v9327_v34, %v6488_v37  ;;  %v6428_v12 = vmul.f32 %v11916_v50, %v6336_v19  ;;  %v6339_v33 = vadd.f32 %v6338_v55, %v6195_v54  ;;  %v9106_v6 = vpop.f32.mrb[100].mxu0 }
 0x3f6   : > { %v9107_v24 = vpop.f32.mrb[101].mxu0 }
 0x3f7   : > { %v7777_v58 = vpack.c.bf16 %v6704_v45, %v6703_v23  ;;  %v6462_v7 = vadd.f32 %v11922_v18, %v6428_v12  ;;  %v6429_v42 = vmul.f32 %v11916_v50, %v6339_v33  ;;  %v9108_v13 = vadd.f32 %v9107_v24, %v9106_v6  ;;  %v9109_v59 = vpop.f32.mrb[102].mxu0  ;;  %v11986_v4 = vpop.f32.mrb[100].mxu1 }
 0x3f8   : > { %v9110_v3 = vpop.f32.mrb[103].mxu0  ;;  %v11991_v61 = vpop.f32.mrb[101].mxu1  ;;  %v9336_v45 = vunpack.i.l.bf16 %v9335_v48 }
 0x3f9   : > { %7850 = vst [vmem:[%s11939_s24 + $0x18] sm:$0xff] %v7777_v58   ;;  %v6489_v0 = vmax.f32 %v6462_v7, 0.0  ;;  %v6463_v2 = vadd.f32 %v11922_v18, %v6429_v42  ;;  %v6200_v55 = vadd.f32 %v9108_v13, %v11863_v21  ;;  %v9111_v10 = vadd.f32 %v9110_v3, %v9109_v59  ;;  %v11993_v38 = vpop.f32.mrb[102].mxu1 }
 0x3fa   : > { %v11997_v34 = vpop.f32.mrb[103].mxu1 }
 0x3fb   : > { %v6490_v62 = vmax.f32 %v6463_v2, 0.0  ;;  %v6344_v25 = vadd.f32 %v11943_v39, %v6200_v55  ;;  %v6203_v49 = vadd.f32 %v9111_v10, %v11865_v46  ;;  %v6705_v31 = vmul.f32 %v9331_v16, %v6489_v0  ;;  %v9340_v10 = vpop.permute.xlu0 %9339 }
 0x3fc   : > { %v9337_v46 = vunpack.i.h.bf16 %v9335_v48 }
 0x3fd   : > { %v6430_v30 = vmul.f32 %v11916_v50, %v6344_v25  ;;  %v6706_v20 = vmul.f32 %v9332_v53, %v6490_v62  ;;  %v6347_v28 = vadd.f32 %v11948_v43, %v6203_v49  ;;  %v9112_v21 = vpop.f32.mrb[104].mxu0 }
 0x3fe   : > { %v9113_v36 = vpop.f32.mrb[105].mxu0 }
 0x3ff   : > { %v7782_v37 = vpack.c.bf16 %v6706_v20, %v6705_v31  ;;  %v6431_v19 = vmul.f32 %v11916_v50, %v6347_v28  ;;  %v9114_v54 = vadd.f32 %v9113_v36, %v9112_v21  ;;  %v9115_v23 = vpop.f32.mrb[106].mxu0  ;;  %v6464_v39 = vadd.f32 %v11922_v18, %v6430_v30  ;;  %v12003_v33 = vpop.f32.mrb[104].mxu1 }
 0x400   : > { %v9116_v12 = vpop.f32.mrb[107].mxu0  ;;  %v12008_v58 = vpop.f32.mrb[105].mxu1  ;;  %v9341_v31 = vunpack.i.l.bf16 %v9340_v10 }
 0x401   : > { %7851 = vst [vmem:[%s11939_s24 + $0x20] sm:$0xff] %v7782_v37   ;;  %v6465_v6 = vadd.f32 %v11922_v18, %v6431_v19  ;;  %v6491_v60 = vmax.f32 %v6464_v39, 0.0  ;;  %v9117_v43 = vadd.f32 %v9116_v12, %v9115_v23  ;;  %v6208_v24 = vadd.f32 %v9114_v54, %v11869_v1  ;;  %v9225_v7 = vpop.f32.mrb[106].mxu1  ;;  %v9345_v12 = vpop.permute.xlu1 %9344 }
 0x402   : > { %v12012_v53 = vpop.f32.mrb[107].mxu1 }
 0x403   : > { %v6492_v42 = vmax.f32 %v6465_v6, 0.0  ;;  %v6352_v13 = vadd.f32 %v11959_v40, %v6208_v24  ;;  %v6211_v59 = vadd.f32 %v9117_v43, %v11871_v17  ;;  %v6707_v16 = vmul.f32 %v9336_v45, %v6491_v60 }
 0x404   : > { %v9342_v17 = vunpack.i.h.bf16 %v9340_v10 }
 0x405   : > { %v6708_v3 = vmul.f32 %v9337_v46, %v6492_v42  ;;  %v6432_v0 = vmul.f32 %v11916_v50, %v6352_v13  ;;  %v6355_v2 = vadd.f32 %v11965_v52, %v6211_v59  ;;  %v9118_v55 = vpop.f32.mrb[108].mxu0  ;;  %v9346_v42 = vunpack.i.l.bf16 %v9345_v12 }
 0x406   : > { %v9119_v1 = vpop.f32.mrb[109].mxu0 }
 0x407   : > { %v7787_v62 = vpack.c.bf16 %v6708_v3, %v6707_v16  ;;  %v6466_v25 = vadd.f32 %v11922_v18, %v6432_v0  ;;  %v6433_v49 = vmul.f32 %v11916_v50, %v6355_v2  ;;  %v9120_v40 = vadd.f32 %v9119_v1, %v9118_v55  ;;  %v9121_v30 = vpop.f32.mrb[110].mxu0 }
 0x408   : > { %v9122_v20 = vpop.f32.mrb[111].mxu0 }
 0x409   : > { %7852 = vst [vmem:[%s11939_s24 + $0x28] sm:$0xff] %v7787_v62   ;;  %v6493_v28 = vmax.f32 %v6466_v25, 0.0  ;;  %v6467_v21 = vadd.f32 %v11922_v18, %v6433_v49  ;;  %v6216_v48 = vadd.f32 %v9120_v40, %v11875_v57  ;;  %v9123_v52 = vadd.f32 %v9122_v20, %v9121_v30  ;;  %v9350_v49 = vpop.permute.xlu0 %9349 }
 0x40b   : > { %v6494_v36 = vmax.f32 %v6467_v21, 0.0  ;;  %v6360_v37 = vadd.f32 %v11954_v35, %v6216_v48  ;;  %v6219_v19 = vadd.f32 %v9123_v52, %v11877_v8  ;;  %v6709_v23 = vmul.f32 %v9341_v31, %v6493_v28 }
 0x40c   : > { %v9347_v35 = vunpack.i.h.bf16 %v9345_v12  ;;  %v9351_v28 = vunpack.i.l.bf16 %v9350_v49  ;;  %v9355_v12 = vpop.permute.xlu1 %9354 }
 0x40d   : > { %v6434_v54 = vmul.f32 %v11916_v50, %v6360_v37  ;;  %v6710_v39 = vmul.f32 %v9342_v17, %v6494_v36  ;;  %v6363_v46 = vadd.f32 %v11961_v15, %v6219_v19  ;;  %v9124_v45 = vpop.f32.mrb[112].mxu0 }
 0x40e   : > { %v9125_v6 = vpop.f32.mrb[113].mxu0 }
 0x40f   : > { %v7792_v60 = vpack.c.bf16 %v6710_v39, %v6709_v23  ;;  %v6435_v43 = vmul.f32 %v11916_v50, %v6363_v46  ;;  %v9126_v57 = vadd.f32 %v9125_v6, %v9124_v45  ;;  %v9127_v24 = vpop.f32.mrb[114].mxu0  ;;  %v6468_v7 = vadd.f32 %v11922_v18, %v6434_v54 }
 0x410   : > { %v9128_v8 = vpop.f32.mrb[115].mxu0 }
 0x411   : > { %7853 = vst [vmem:[%s11939_s24 + $0x30] sm:$0xff] %v7792_v60   ;;  %v6469_v13 = vadd.f32 %v11922_v18, %v6435_v43  ;;  %v6495_v59 = vmax.f32 %v6468_v7, 0.0  ;;  %v9129_v16 = vadd.f32 %v9128_v8, %v9127_v24  ;;  %v6224_v15 = vadd.f32 %v9126_v57, %v11881_v9 }
 0x412   : > { %v9356_v7 = vunpack.i.l.bf16 %v9355_v12 }
 0x413   : > { %v6496_v3 = vmax.f32 %v6469_v13, 0.0  ;;  %v6368_v0 = vadd.f32 %v11976_v14, %v6224_v15  ;;  %v6227_v2 = vadd.f32 %v9129_v16, %v11883_v11  ;;  %v6711_v55 = vmul.f32 %v9346_v42, %v6495_v59 }
 0x414   : > { %v9352_v14 = vunpack.i.h.bf16 %v9350_v49 }
 0x415   : > { %v6712_v10 = vmul.f32 %v9347_v35, %v6496_v3  ;;  %v6436_v1 = vmul.f32 %v11916_v50, %v6368_v0  ;;  %v6371_v62 = vadd.f32 %v11981_v47, %v6227_v2  ;;  %v9130_v25 = vpop.f32.mrb[116].mxu0 }
 0x416   : > { %v9131_v40 = vpop.f32.mrb[117].mxu0 }
 0x417   : > { %v7797_v30 = vpack.c.bf16 %v6712_v10, %v6711_v55  ;;  %v6470_v17 = vadd.f32 %v11922_v18, %v6436_v1  ;;  %v6437_v9 = vmul.f32 %v11916_v50, %v6371_v62  ;;  %v9132_v31 = vadd.f32 %v9131_v40, %v9130_v25  ;;  %v9133_v20 = vpop.f32.mrb[118].mxu0 }
 0x418   : > { %v9134_v11 = vpop.f32.mrb[119].mxu0 }
 0x419   : > { %7854 = vst [vmem:[%s11939_s24 + $0x38] sm:$0xff] %v7797_v30   ;;  %v6497_v21 = vmax.f32 %v6470_v17, 0.0  ;;  %v6471_v48 = vadd.f32 %v11922_v18, %v6437_v9  ;;  %v6232_v52 = vadd.f32 %v9132_v31, %v11887_v63  ;;  %v9135_v47 = vadd.f32 %v9134_v11, %v9133_v20 }
 0x41b   : > { %v6498_v36 = vmax.f32 %v6471_v48, 0.0  ;;  %v6376_v37 = vadd.f32 %v11971_v44, %v6232_v52  ;;  %v6235_v19 = vadd.f32 %v9135_v47, %v11889_v22  ;;  %v6713_v23 = vmul.f32 %v9351_v28, %v6497_v21 }
 0x41c   : > { %v9357_v44 = vunpack.i.h.bf16 %v9355_v12 }
 0x41d   : > { %v6438_v54 = vmul.f32 %v11916_v50, %v6376_v37  ;;  %v6714_v39 = vmul.f32 %v9352_v14, %v6498_v36  ;;  %v6379_v46 = vadd.f32 %v11978_v5, %v6235_v19  ;;  %v9136_v45 = vpop.f32.mrb[120].mxu0 }
 0x41e   : > { %v9137_v6 = vpop.f32.mrb[121].mxu0 }
 0x41f   : > { %v7802_v60 = vpack.c.bf16 %v6714_v39, %v6713_v23  ;;  %v6439_v43 = vmul.f32 %v11916_v50, %v6379_v46  ;;  %v9138_v63 = vadd.f32 %v9137_v6, %v9136_v45  ;;  %v9139_v57 = vpop.f32.mrb[122].mxu0  ;;  %v6472_v24 = vadd.f32 %v11922_v18, %v6438_v54 }
 0x420   : > { %v9140_v22 = vpop.f32.mrb[123].mxu0 }
 0x421   : > { %7855 = vst [vmem:[%s11939_s24 + $0x40] sm:$0xff] %v7802_v60   ;;  %v6473_v35 = vadd.f32 %v11922_v18, %v6439_v43  ;;  %v6499_v42 = vmax.f32 %v6472_v24, 0.0  ;;  %v9141_v8 = vadd.f32 %v9140_v22, %v9139_v57  ;;  %v6240_v5 = vadd.f32 %v9138_v63, %v11893_v26  ;;  %v9360_v26 = vpop.permute.xlu0 %9359 }
 0x422   : > { %v9362_v20 = vunpack.i.h.bf16 %v9360_v26 }
 0x423   : > { %v6500_v13 = vmax.f32 %v6473_v35, 0.0  ;;  %v6384_v59 = vadd.f32 %v11991_v61, %v6240_v5  ;;  %v6243_v16 = vadd.f32 %v9141_v8, %v11895_v41  ;;  %v6715_v15 = vmul.f32 %v9356_v7, %v6499_v42 }
 0x424   : > { %v9361_v61 = vunpack.i.l.bf16 %v9360_v26 }
 0x425   : > { %v6716_v3 = vmul.f32 %v9357_v44, %v6500_v13  ;;  %v6440_v0 = vmul.f32 %v11916_v50, %v6384_v59  ;;  %v6387_v2 = vadd.f32 %v11997_v34, %v6243_v16  ;;  %v9142_v55 = vpop.f32.mrb[124].mxu0  ;;  %v9370_v59 = vpop.permute.xlu0 %9369 }
 0x426   : > { %v9143_v10 = vpop.f32.mrb[125].mxu0 }
 0x427   : > { %v7807_v1 = vpack.c.bf16 %v6716_v3, %v6715_v15  ;;  %v6474_v62 = vadd.f32 %v11922_v18, %v6440_v0  ;;  %v6441_v25 = vmul.f32 %v11916_v50, %v6387_v2  ;;  %v9144_v49 = vadd.f32 %v9143_v10, %v9142_v55  ;;  %v9145_v40 = vpop.f32.mrb[126].mxu0 }
 0x428   : > { %v9146_v30 = vpop.f32.mrb[127].mxu0  ;;  %v9371_v3 = vunpack.i.l.bf16 %v9370_v59 }
 0x429   : > { %7856 = vst [vmem:[%s11939_s24 + $0x48] sm:$0xff] %v7807_v1   ;;  %v6501_v41 = vmax.f32 %v6474_v62, 0.0  ;;  %v6475_v17 = vadd.f32 %v11922_v18, %v6441_v25  ;;  %v6248_v9 = vadd.f32 %v9144_v49, %v11899_v27  ;;  %v9147_v31 = vadd.f32 %v9146_v30, %v9145_v40 }
 0x42b   : > { %v6502_v34 = vmax.f32 %v6475_v17, 0.0  ;;  %v6392_v14 = vadd.f32 %v11986_v4, %v6248_v9  ;;  %v6251_v28 = vadd.f32 %v9147_v31, %v11901_v51  ;;  %v6717_v11 = vmul.f32 %v9361_v61, %v6501_v41  ;;  %v9365_v4 = vpop.permute.xlu1 %9364 }
 0x42c   : > { %v9367_v6 = vunpack.i.h.bf16 %v9365_v4 }
 0x42d   : > { %v6718_v21 = vmul.f32 %v9362_v20, %v6502_v34  ;;  %v6442_v48 = vmul.f32 %v11916_v50, %v6392_v14  ;;  %v6395_v52 = vadd.f32 %v11993_v38, %v6251_v28  ;;  %v9148_v47 = vpop.f32.mrb[128].mxu0  ;;  %v9366_v38 = vunpack.i.l.bf16 %v9365_v4 }
 0x42e   : > { %v9149_v36 = vpop.f32.mrb[129].mxu0 }
 0x42f   : > { %v7812_v37 = vpack.c.bf16 %v6718_v21, %v6717_v11  ;;  %v6476_v19 = vadd.f32 %v11922_v18, %v6442_v48  ;;  %v6443_v27 = vmul.f32 %v11916_v50, %v6395_v52  ;;  %v9150_v54 = vadd.f32 %v9149_v36, %v9148_v47  ;;  %v9151_v23 = vpop.f32.mrb[130].mxu0  ;;  %v6695_v49 = vpop.permute.xlu1 %6694 }
 0x430   : > { %v9152_v39 = vpop.f32.mrb[131].mxu0 }
 0x431   : > { %7857 = vst [vmem:[%s11939_s24 + $0x50] sm:$0xff] %v7812_v37   ;;  %v6503_v46 = vmax.f32 %v6476_v19, 0.0  ;;  %v6477_v51 = vadd.f32 %v11922_v18, %v6443_v27  ;;  %v9153_v45 = vadd.f32 %v9152_v39, %v9151_v23  ;;  %v6256_v12 = vadd.f32 %v9150_v54, %v11905_v56 }
 0x433   : > { %v6504_v60 = vmax.f32 %v6477_v51, 0.0  ;;  %v6400_v43 = vadd.f32 %v12008_v58, %v6256_v12  ;;  %v6259_v63 = vadd.f32 %v9153_v45, %v11907_v29  ;;  %v6719_v57 = vmul.f32 %v9366_v38, %v6503_v46 }
 0x435   : > { %v6720_v24 = vmul.f32 %v9367_v6, %v6504_v60  ;;  %v6444_v44 = vmul.f32 %v11916_v50, %v6400_v43  ;;  %v6403_v7 = vadd.f32 %v12012_v53, %v6259_v63  ;;  %v9154_v22 = vpop.f32.mrb[132].mxu0  ;;  %v9372_v53 = vunpack.i.h.bf16 %v9370_v59 }
 0x436   : > { %v9155_v35 = vpop.f32.mrb[133].mxu0 }
 0x437   : > { %v7817_v42 = vpack.c.bf16 %v6720_v24, %v6719_v57  ;;  %v6478_v8 = vadd.f32 %v11922_v18, %v6444_v44  ;;  %v6445_v56 = vmul.f32 %v11916_v50, %v6403_v7  ;;  %v9156_v5 = vadd.f32 %v9155_v35, %v9154_v22  ;;  %v9157_v13 = vpop.f32.mrb[134].mxu0 }
 0x438   : > { %v9158_v58 = vpop.f32.mrb[135].mxu0 }
 0x439   : > { %7858 = vst [vmem:[%s11939_s24 + $0x58] sm:$0xff] %v7817_v42   ;;  %v6505_v29 = vmax.f32 %v6478_v8, 0.0  ;;  %v6479_v16 = vadd.f32 %v11922_v18, %v6445_v56  ;;  %v6264_v15 = vadd.f32 %v9156_v5, %v11910_v32 }
 0x43b   : > { %v6506_v0 = vmax.f32 %v6479_v16, 0.0  ;;  %v6408_v2 = vadd.f32 %v12003_v33, %v6264_v15  ;;  %v6721_v55 = vmul.f32 %v9371_v3, %v6505_v29 }
 0x43d   : > { %v6722_v10 = vmul.f32 %v9372_v53, %v6506_v0  ;;  %v6446_v1 = vmul.f32 %v11916_v50, %v6408_v2 }
 0x43f   : > { %v7822_v62 = vpack.c.bf16 %v6722_v10, %v6721_v55  ;;  %v6480_v25 = vadd.f32 %v11922_v18, %v6446_v1 }
 0x441   : > { %7859 = vst [vmem:[%s11939_s24 + $0x60] sm:$0xff] %v7822_v62   ;;  %v6507_v26 = vmax.f32 %v6480_v25, 0.0 }
 0x443   : > { %v6723_v40 = vmul.f32 %v6695_v49, %v6507_v26 }
 0x445   : > { %v7654_v61 = vpack.c.bf16 %v6723_v40, %v6723_v40 }
 0x447   : > { %6859 = vst [vmem:[%s11939_s24 + $0x68] sm:$0xf] %v7654_v61 }
 0x448 PF: > { %s19_s28 = sadd.s32 1, %s10232_s28   ;;  %s12115_s21 = smov %s10208_s22 }
 0x449   : > { %p16_p11 = scmp.ge.s32.totalorder %s19_s28, 14   ;;  %s12116_s22 = smov %s10212_s23 }
 0x44a   : > { %s12117_s23 = smov %s10339_s16  ;;  %s12118_s24 = smov %s10224_s26 }
 0x44b   : > { %s12119_s25 = smov %s10228_s27  ;;  %s12120_s26 = smov %s12123_s30 }
 0x44c   : > { %s12121_s27 = smov %s12127_s7  ;;  %18 = sbr.rel (!%p16_p11) target bundleno = 5 (0x5), region = 90 }
 0x453   :  { %6890 = vsyncpa [#allocation3], 1 }
 0x454   :  { %6892 = vsyncpa [#allocation3 + $0x1], 1 }

// kernel: scmb_forward.6
= control target key start
LH: loop header
LB: loop body
LE: loop exit
PB: predicated region body
PF: predicated region fallthrough
CT: control target
= control target key end

     0   :  { %s9513_s18 = smov 0   ;;  %s9515_s19 = smov 0   ;;  %s11151_s0 = inlined_call_operand.vmem [shape: bf16[2,400,3456], index: 0, kind: input, shape index: {}]   ;;  %s11152_s1 = inlined_call_operand.vmem [shape: bf16[3456,128], index: 1, kind: input, shape index: {}]   ;;  %s11153_s2 = inlined_call_operand.vmem [shape: f32[1,128], index: 2, kind: input, shape index: {}]   ;;  %s11154_s3 = inlined_call_operand.vmem [shape: f32[1,128], index: 3, kind: input, shape index: {}]   ;;  %s11155_s4 = inlined_call_operand.vmem [shape: bf16[2,400,1], index: 4, kind: input, shape index: {}]   ;;  %s11156_s5 = inlined_call_operand.vmem [shape: bf16[2,400,128], index: 5, kind: output, shape index: {}]  }
   0x1   :  { %s9517_s20 = smov 0   ;;  %s9519_s21 = smov 0  }
   0x2   :  { %s9521_s22 = smov 0  }
   0x3 LB: > { %s24_s23 = sadd.s32 1, %s9470_s20  ;;  %s27_s24 = sadd.s32 1, %s9474_s21  ;;  %s9478_s22 = sphi %s9521_s22, %s15_s22   ;;  %s9474_s21 = sphi %s9519_s21, %s11160_s21   ;;  %s9470_s20 = sphi %s9517_s20, %s11159_s20   ;;  %s9466_s19 = sphi %s9515_s19, %s11158_s19   ;;  %s9462_s18 = sphi %s9513_s18, %s11157_s18  }
   0x4   : > { %p25_p0 = scmp.ge.s32.totalorder %s24_s23, 2  ;;  %p6543_p1 = scmp.ge.s32.totalorder %s9478_s22, 1 }
   0x5   : > { %p226_p2 = scmp.lt.s32.totalorder %s9478_s22, 5 }
   0x6   : > { %s11162_s23 = smov (%p25_p0, %s24_s23), 0  ;;  %s11164_s24 = smov (!%p25_p0, %s27_s24), %s9474_s21 }
   0x7   : > { %p227_p3 = pnand %p6543_p1, %p226_p2  ;;  %p29_p4 = scmp.ge.s32.totalorder %s11164_s24, 2 }
   0x8   : > { %v8717_v0 = vld [vmem:[%s11152_s1 + $0x40] sm:$0xff] (!%p227_p3)   ;;  %v8721_v4 = vld [vmem:[%s11152_s1 + $0x48] sm:$0xff] (!%p227_p3)   ;;  %s272_s16 = smul.u32 (!%p227_p3), 25, %s9462_s18  ;;  %v8725_v8 = vld [vmem:[%s11152_s1 + $0x50] sm:$0xff] (!%p227_p3)   ;;  %p273_p5 = scmp.lt.s32.totalorder (!%p227_p3), %s9466_s19, 1  ;;  %vm9482_vm0 = vmmov (!%p227_p3), 0  }
   0x9   : > { %s11166_s24 = smov (%p29_p4, %s11164_s24), 0  ;;  %230 = sbr.rel (%p227_p3) target bundleno = 993 (0x3e1), region = 40 }
   0xa   : > { %v8718_v1 = vld [vmem:[%s11152_s1 + $0xc0] sm:$0xff] (!%p227_p3)   ;;  %7298 = vmatprep.subr.bf16.mxu0 (!%p227_p3), %v8717_v0  ;;  %v8722_v5 = vld [vmem:[%s11152_s1 + $0xc8] sm:$0xff] (!%p227_p3)   ;;  %v8726_v9 = vld [vmem:[%s11152_s1 + $0xd0] sm:$0xff] (!%p227_p3)   ;;  %p275_p6 = scmp.lt.s32.totalorder (!%p227_p3), %s272_s16, 49 }
   0xb   : > { %v8719_v2 = vld [vmem:[%s11152_s1] sm:$0xff] (!%p227_p3)   ;;  %7392 = vmatprep.subr.bf16.mxu1 (!%p227_p3), %v8718_v1  ;;  %v8723_v6 = vld [vmem:[%s11152_s1 + $0x8] sm:$0xff] (!%p227_p3)   ;;  %v8727_v10 = vld [vmem:[%s11152_s1 + $0x10] sm:$0xff] (!%p227_p3)  }
   0xc   : > { %v8720_v3 = vld [vmem:[%s11152_s1 + $0x80] sm:$0xff] (!%p227_p3)   ;;  %7299 = vmatpush3.bf16.msra.mxu0 (!%p227_p3), %v8719_v2  ;;  %v8724_v7 = vld [vmem:[%s11152_s1 + $0x88] sm:$0xff] (!%p227_p3)   ;;  %v8728_v11 = vld [vmem:[%s11152_s1 + $0x90] sm:$0xff] (!%p227_p3)  }
   0xd   : > { %7393 = vmatpush3.bf16.msra.mxu1 (!%p227_p3), %v8720_v3  ;;  %7300 = vmatprep.subr.bf16.mxu0 (!%p227_p3), %v8721_v4  ;;  %v8729_v12 = vld [vmem:[%s11152_s1 + $0x58] sm:$0xff] (!%p227_p3)   ;;  %v8733_v16 = vld [vmem:[%s11152_s1 + $0x60] sm:$0xff] (!%p227_p3)   ;;  %v8737_v20 = vld [vmem:[%s11152_s1 + $0x68] sm:$0xff] (!%p227_p3)  }
   0xe   : > { %7394 = vmatprep.subr.bf16.mxu1 (!%p227_p3), %v8722_v5  ;;  %v8730_v13 = vld [vmem:[%s11152_s1 + $0xd8] sm:$0xff] (!%p227_p3)   ;;  %v8734_v17 = vld [vmem:[%s11152_s1 + $0xe0] sm:$0xff] (!%p227_p3)   ;;  %v8738_v21 = vld [vmem:[%s11152_s1 + $0xe8] sm:$0xff] (!%p227_p3)  }
   0xf   : > { %v8731_v14 = vld [vmem:[%s11152_s1 + $0x18] sm:$0xff] (!%p227_p3)   ;;  %v8735_v18 = vld [vmem:[%s11152_s1 + $0x20] sm:$0xff] (!%p227_p3)   ;;  %v8739_v22 = vld [vmem:[%s11152_s1 + $0x28] sm:$0xff] (!%p227_p3)  }
  0x10   : > { %7301 = vmatpush3.bf16.msra.mxu0 %v8723_v6  ;;  %s11168_s19 = smov (!%p273_p5, %s9466_s19), 1  ;;  %v8732_v15 = vld [vmem:[%s11152_s1 + $0x98] sm:$0xff]   ;;  %s11170_s16 = smov (!%p275_p6, %s272_s16), 49  ;;  %v8736_v19 = vld [vmem:[%s11152_s1 + $0xa0] sm:$0xff]   ;;  %v8740_v23 = vld [vmem:[%s11152_s1 + $0xa8] sm:$0xff]  }
  0x11   : > { %7395 = vmatpush3.bf16.msra.mxu1 %v8724_v7  ;;  %7302 = vmatprep.subr.bf16.mxu0 %v8725_v8  ;;  %s8610_s28 = smul.u32 1350, %s11168_s19  ;;  %v8741_v24 = vld [vmem:[%s11152_s1 + $0x70] sm:$0xff]   ;;  %v8745_v28 = vld [vmem:[%s11152_s1 + $0x78] sm:$0xff]   ;;  %v8755_v36 = vld [vmem:[%s11152_s1 + $0x140] sm:$0xff]  }
  0x12   : > { %7396 = vmatprep.subr.bf16.mxu1 %v8726_v9  ;;  %s8609_s18 = smul.u32 27, %s11170_s16  ;;  %v8742_v25 = vld [vmem:[%s11152_s1 + $0xf0] sm:$0xff]   ;;  %v8746_v29 = vld [vmem:[%s11152_s1 + $0xf8] sm:$0xff]   ;;  %v8756_v37 = vld [vmem:[%s11152_s1 + $0x100] sm:$0xff]  }
  0x13   : > { %v8743_v26 = vld [vmem:[%s11152_s1 + $0x30] sm:$0xff]   ;;  %v8747_v30 = vld [vmem:[%s11152_s1 + $0x38] sm:$0xff]   ;;  %v8757_v38 = vld [vmem:[%s11152_s1 + $0x1c0] sm:$0xff]   ;;  %s8611_s10 = smul.u32 50, %s11168_s19 }
  0x14   : > { %7303 = vmatpush3.bf16.msra.mxu0 %v8727_v10  ;;  %s279_s14 = sadd.s32 %s8610_s28, %s8609_s18  ;;  %v8744_v27 = vld [vmem:[%s11152_s1 + $0xb0] sm:$0xff]   ;;  %v8748_v31 = vld [vmem:[%s11152_s1 + $0xb8] sm:$0xff]   ;;  %v8758_v39 = vld [vmem:[%s11152_s1 + $0x180] sm:$0xff]  }
  0x15   : > { %7397 = vmatpush3.bf16.msra.mxu1 %v8728_v11  ;;  %7304 = vmatprep.subr.bf16.mxu0 %v8729_v12  ;;  %s6544_s30 = sshll.u32 %s279_s14, 2  ;;  %v8765_v44 = vld [vmem:[%s11152_s1 + $0x148] sm:$0xff]   ;;  %v8781_v54 = vld [vmem:[%s11152_s1 + $0x150] sm:$0xff]   ;;  %v8795_v62 = vld [vmem:[%s11152_s1 + $0x158] sm:$0xff]   ;;  %s10750_s11 = sadd.s32 %s8611_s10, %s11170_s16 }
  0x16   : > { %7398 = vmatprep.subr.bf16.mxu1 %v8730_v13  ;;  %s9649_s12 = scalar_lea.vmem %s11151_s0, %s6544_s30  ;;  %v8766_v45 = vld [vmem:[%s11152_s1 + $0x108] sm:$0xff]   ;;  %v8782_v55 = vld [vmem:[%s11152_s1 + $0x110] sm:$0xff]   ;;  %v8798_v63 = vld [vmem:[%s11152_s1 + $0x118] sm:$0xff]   ;;  %s6545_s19 = sshll.u32 %s10750_s11, 2 }
  0x17   : > { %v8749_v32 = vld [vmem:[%s9649_s12] ss:$108 sps:$4 sm:$0xff]   ;;  %v8751_v33 = vld [vmem:[%s9649_s12 + $0x4] ss:$108 sps:$4 sm:$0xff]   ;;  %v8752_v34 = vld [vmem:[%s9649_s12 + $0x8] ss:$108 sps:$4 sm:$0xff]   ;;  %s10761_s15 = scalar_lea.vmem %s11155_s4, %s6545_s19  ;;  %s11055_s29 = scalar_lea.vmem %s11156_s5, %s6545_s19 }
  0x18   : > { %7305 = vmatpush3.bf16.msra.mxu0 %v8731_v14  ;;  %v8754_v35 = vld [vmem:[%s9649_s12 + $0xc] ss:$108 sps:$4 sm:$0xff]   ;;  %4141 = vmatprep.mubr.bf16.mxu0 %v8751_v33  ;;  %v8759_v40 = vld [vmem:[%s9649_s12 + $0xdc] ss:$108 sps:$4 sm:$0xff]   ;;  %v8761_v41 = vld [vmem:[%s9649_s12 + $0xe4] ss:$108 sps:$4 sm:$0xff]  }
  0x19   : > { %7399 = vmatpush3.bf16.msra.mxu1 %v8732_v15  ;;  %7306 = vmatprep.subr.bf16.mxu0 %v8733_v16  ;;  %v8763_v42 = vld [vmem:[%s9649_s12 + $0xd8] ss:$108 sps:$4 sm:$0xff]   ;;  %v8764_v43 = vld [vmem:[%s9649_s12 + $0xe0] ss:$108 sps:$4 sm:$0xff]   ;;  %v8769_v47 = vld [vmem:[%s9649_s12 + $0x1bc] ss:$108 sps:$4 sm:$0xff]  }
  0x1a   : > { %7400 = vmatprep.subr.bf16.mxu1 %v8734_v17  ;;  %4277 = vmatprep.mubr.bf16.mxu1 %v8754_v35  ;;  %v8767_v46 = vld [vmem:[%s9649_s12 + $0x1b4] ss:$108 sps:$4 sm:$0xff]   ;;  %v8771_v48 = vld [vmem:[%s9649_s12 + $0x1b0] ss:$108 sps:$4 sm:$0xff]   ;;  %v8773_v49 = vld [vmem:[%s11152_s1 + $0x1c8] sm:$0xff]  }
  0x1b   : > { %v8774_v50 = vld [vmem:[%s11152_s1 + $0x188] sm:$0xff]   ;;  %v8772_v51 = vld [vmem:[%s9649_s12 + $0x1b8] ss:$108 sps:$4 sm:$0xff]   ;;  %v8777_v53 = vld [vmem:[%s9649_s12 + $0x294] ss:$108 sps:$4 sm:$0xff]  }
  0x1c   : > { %7307 = vmatpush3.bf16.msra.mxu0 %v8735_v18  ;;  %v8775_v52 = vld [vmem:[%s9649_s12 + $0x28c] ss:$108 sps:$4 sm:$0xff]   ;;  %v8779_v56 = vld [vmem:[%s9649_s12 + $0x288] ss:$108 sps:$4 sm:$0xff]   ;;  %v8780_v57 = vld [vmem:[%s9649_s12 + $0x290] ss:$108 sps:$4 sm:$0xff]  }
  0x1d   : > { %7401 = vmatpush3.bf16.msra.mxu1 %v8736_v19  ;;  %7308 = vmatprep.subr.bf16.mxu0 %v8737_v20  ;;  %v8787_v58 = vld [vmem:[%s11152_s1 + $0x1d0] sm:$0xff]   ;;  %v8785_v61 = vld [vmem:[%s9649_s12 + $0x36c] ss:$108 sps:$4 sm:$0xff]   ;;  %v8791_v4 = vld [vmem:[%s9649_s12 + $0x43c] ss:$108 sps:$4 sm:$0xff]  }
  0x1e   : > { %7402 = vmatprep.subr.bf16.mxu1 %v8738_v21  ;;  %v8783_v59 = vld [vmem:[%s9649_s12 + $0x364] ss:$108 sps:$4 sm:$0xff]   ;;  %v8788_v0 = vld [vmem:[%s9649_s12 + $0x360] ss:$108 sps:$4 sm:$0xff]   ;;  %v8799_v1 = vld [vmem:[%s11152_s1 + $0x1d8] sm:$0xff]  }
  0x1f   : > { %v8790_v60 = vld [vmem:[%s11152_s1 + $0x190] sm:$0xff]   ;;  %v8800_v2 = vld [vmem:[%s11152_s1 + $0x198] sm:$0xff]   ;;  %v8807_v6 = vld [vmem:[%s11152_s1 + $0x160] sm:$0xff]  }
  0x20   : > { %7309 = vmatpush3.bf16.msra.mxu0 %v8739_v22  ;;  %v8789_v3 = vld [vmem:[%s9649_s12 + $0x368] ss:$108 sps:$4 sm:$0xff]   ;;  %v8793_v5 = vld [vmem:[%s9649_s12 + $0x444] ss:$108 sps:$4 sm:$0xff]   ;;  %v8797_v9 = vld [vmem:[%s9649_s12 + $0x440] ss:$108 sps:$4 sm:$0xff]  }
  0x21   : > { %7403 = vmatpush3.bf16.msra.mxu1 %v8740_v23  ;;  %7310 = vmatprep.subr.bf16.mxu0 %v8741_v24  ;;  %v8808_v7 = vld [vmem:[%s11152_s1 + $0x120] sm:$0xff]   ;;  %v8803_v13 = vld [vmem:[%s9649_s12 + $0x51c] ss:$108 sps:$4 sm:$0xff]   ;;  %v8809_v19 = vld [vmem:[%s9649_s12 + $0x5ec] ss:$108 sps:$4 sm:$0xff]  }
  0x22   : > { %7404 = vmatprep.subr.bf16.mxu1 %v8742_v25  ;;  %v8796_v8 = vld [vmem:[%s9649_s12 + $0x438] ss:$108 sps:$4 sm:$0xff]   ;;  %v8801_v10 = vld [vmem:[%s9649_s12 + $0x514] ss:$108 sps:$4 sm:$0xff]   ;;  %v8823_v14 = vld [vmem:[%s11152_s1 + $0x168] sm:$0xff]  }
  0x23   : > { %v8815_v11 = vld [vmem:[%s11152_s1 + $0x1e0] sm:$0xff]   ;;  %v8824_v15 = vld [vmem:[%s11152_s1 + $0x128] sm:$0xff]   ;;  %v8805_v16 = vld [vmem:[%s9649_s12 + $0x510] ss:$108 sps:$4 sm:$0xff]  }
  0x24   : > { %7311 = vmatpush3.bf16.msra.mxu0 %v8743_v26  ;;  %v8816_v12 = vld [vmem:[%s11152_s1 + $0x1a0] sm:$0xff]   ;;  %v8825_v17 = vld [vmem:[%s11152_s1 + $0x1e8] sm:$0xff]   ;;  %v8833_v22 = vld [vmem:[%s11152_s1 + $0x170] sm:$0xff]  }
  0x25   : > { %7405 = vmatpush3.bf16.msra.mxu1 %v8744_v27  ;;  %7312 = vmatprep.subr.bf16.mxu0 %v8745_v28  ;;  %v8806_v18 = vld [vmem:[%s9649_s12 + $0x518] ss:$108 sps:$4 sm:$0xff]   ;;  %v8830_v20 = vld [vmem:[%s11152_s1 + $0x1a8] sm:$0xff]   ;;  %v8811_v21 = vld [vmem:[%s9649_s12 + $0x5f4] ss:$108 sps:$4 sm:$0xff]  }
  0x26   : > { %7406 = vmatprep.subr.bf16.mxu1 %v8746_v29  ;;  %v8813_v23 = vld [vmem:[%s9649_s12 + $0x5e8] ss:$108 sps:$4 sm:$0xff]   ;;  %v8814_v25 = vld [vmem:[%s9649_s12 + $0x5f0] ss:$108 sps:$4 sm:$0xff]   ;;  %v8819_v29 = vld [vmem:[%s9649_s12 + $0x6cc] ss:$108 sps:$4 sm:$0xff]  }
  0x27   : > { %v8838_v24 = vld [vmem:[%s11152_s1 + $0x130] sm:$0xff]   ;;  %v8856_v35 = vld [vmem:[%s11152_s1 + $0x1b8] sm:$0xff]  }
  0x28   : > { %7313 = vmatpush3.bf16.msra.mxu0 %v8747_v30  ;;  %v8817_v26 = vld [vmem:[%s9649_s12 + $0x6c4] ss:$108 sps:$4 sm:$0xff]   ;;  %v8849_v30 = vld [vmem:[%s11152_s1 + $0x178] sm:$0xff]   ;;  %v8822_v33 = vld [vmem:[%s9649_s12 + $0x6c8] ss:$108 sps:$4 sm:$0xff]  }
  0x29   : > { %7407 = vmatpush3.bf16.msra.mxu1 %v8748_v31  ;;  %7486 = vmatprep.subr.bf16.mxu0 %v8755_v36  ;;  %v8841_v27 = vld [vmem:[%s11152_s1 + $0x1f0] sm:$0xff]   ;;  %v8850_v31 = vld [vmem:[%s11152_s1 + $0x138] sm:$0xff]  }
  0x2a   : > { %7580 = vmatprep.subr.bf16.mxu1 %v8757_v38  ;;  %v8842_v28 = vld [vmem:[%s11152_s1 + $0x1b0] sm:$0xff]   ;;  %v8826_v36 = vld [vmem:[%s9649_s12 + $0x79c] ss:$108 sps:$4 sm:$0xff]   ;;  %v8860_v38 = vld [vmem:[%s11152_s1 + $0x240] sm:$0xff]  }
  0x2b   : > { %4142 = vmatmul.mubr.bf16.vlgmr.msra.gmra.mrb[0].mxu0 %v8749_v32  ;;  %v8821_v32 = vld [vmem:[%s9649_s12 + $0x6c0] ss:$108 sps:$4 sm:$0xff]  }
  0x2c   : > { %4278 = vmatmul.mubr.bf16.vlgmr.msra.gmra.mrb[0].mxu1 %v8752_v34  ;;  %7487 = vmatpush3.bf16.msra.mxu0 %v8756_v37  ;;  %v8855_v34 = vld [vmem:[%s11152_s1 + $0x1f8] sm:$0xff]   ;;  %v8828_v37 = vld [vmem:[%s9649_s12 + $0x7a4] ss:$108 sps:$4 sm:$0xff]  }
  0x2d   : > { %7581 = vmatpush3.bf16.msra.mxu1 %v8758_v39  ;;  %4149 = vmatprep.mubr.bf16.mxu0 %v8759_v40  ;;  %v8865_v39 = vld [vmem:[%s11152_s1 + $0x2c0] sm:$0xff]  }
  0x2e   : > { %4285 = vmatprep.mubr.bf16.mxu1 %v8761_v41  ;;  %7488 = vmatprep.subr.bf16.mxu0 %v8765_v44  ;;  %v8831_v40 = vld [vmem:[%s9649_s12 + $0x798] ss:$108 sps:$4 sm:$0xff]   ;;  %v8832_v41 = vld [vmem:[%s9649_s12 + $0x7a0] ss:$108 sps:$4 sm:$0xff]   ;;  %v8839_v44 = vld [vmem:[%s9649_s12 + $0x870] ss:$108 sps:$4 sm:$0xff]  }
  0x2f   : > { %7582 = vmatprep.subr.bf16.mxu1 %v8773_v49  ;;  %v641_v49 = vld [vmem:[%s9649_s12 + $0xa28] sm:$0xff] }
  0x30   : > { %7489 = vmatpush3.bf16.msra.mxu0 %v8766_v45  ;;  %v8840_v45 = vld [vmem:[%s9649_s12 + $0x878] ss:$108 sps:$4 sm:$0xff]  }
  0x31   : > { %7583 = vmatpush3.bf16.msra.mxu1 %v8774_v50  ;;  %7490 = vmatprep.subr.bf16.mxu0 %v8781_v54  ;;  %v8847_v50 = vld [vmem:[%s9649_s12 + $0x948] ss:$108 sps:$4 sm:$0xff]  }
  0x32   : > { %7584 = vmatprep.subr.bf16.mxu1 %v8787_v58  ;;  %v8857_v58 = vld [vmem:[%s9649_s12 + $0x10] ss:$108 sps:$4 sm:$0xff]  }
  0x33   : > { %4150 = vmatmul.mubr.bf16.gmra.mrb[4].mxu0 %v8763_v42  ;;  %v8834_v42 = vld [vmem:[%s9649_s12 + $0x874] ss:$108 sps:$4 sm:$0xff]  }
  0x34   : > { %4286 = vmatmul.mubr.bf16.gmra.mrb[4].mxu1 %v8764_v43  ;;  %4157 = vmatprep.mubr.bf16.mxu0 %v8767_v46  ;;  %v8836_v43 = vld [vmem:[%s9649_s12 + $0x87c] ss:$108 sps:$4 sm:$0xff]   ;;  %v8843_v46 = vld [vmem:[%s9649_s12 + $0x94c] ss:$108 sps:$4 sm:$0xff]  }
  0x35   : > { %4293 = vmatprep.mubr.bf16.mxu1 %v8769_v47  ;;  %7491 = vmatpush3.bf16.msra.mxu0 %v8782_v55  ;;  %v8845_v47 = vld [vmem:[%s9649_s12 + $0x954] ss:$108 sps:$4 sm:$0xff]   ;;  %v6873_v55 = vcombine.low %v641_v49, %v641_v49 }
  0x36   : > { %7585 = vmatpush3.bf16.msra.mxu1 %v8790_v60  ;;  %7492 = vmatprep.subr.bf16.mxu0 %v8795_v62  ;;  %v8864_v60 = vld [vmem:[%s11152_s1 + $0x200] sm:$0xff]   ;;  %v8867_v62 = vld [vmem:[%s9649_s12 + $0xec] ss:$108 sps:$4 sm:$0xff]  }
  0x37   : > { %7586 = vmatprep.subr.bf16.mxu1 %v8799_v1  ;;  %v8881_v1 = vld [vmem:[%s11152_s1 + $0x2c8] sm:$0xff]  }
  0x39   : > { %7493 = vmatpush3.bf16.msra.mxu0 %v8798_v63  ;;  %v8870_v63 = vld [vmem:[%s9649_s12 + $0xf4] ss:$108 sps:$4 sm:$0xff]  }
  0x3a   : > { %7587 = vmatpush3.bf16.msra.mxu1 %v8800_v2  ;;  %7494 = vmatprep.subr.bf16.mxu0 %v8807_v6  ;;  %v8874_v2 = vld [vmem:[%s11152_s1 + $0x208] sm:$0xff]   ;;  %v8872_v6 = vld [vmem:[%s9649_s12 + $0xf0] ss:$108 sps:$4 sm:$0xff]  }
  0x3b   : > { %4158 = vmatmul.mubr.bf16.gmra.mrb[8].mxu0 %v8771_v48  ;;  %7588 = vmatprep.subr.bf16.mxu1 %v8815_v11  ;;  %v640_v48 = vld [vmem:[%s9649_s12 + $0xa20] sm:$0xff]  ;;  %v8895_v11 = vld [vmem:[%s11152_s1 + $0x290] sm:$0xff]  }
  0x3c   : > { %4294 = vmatmul.mubr.bf16.gmra.mrb[8].mxu1 %v8772_v51  ;;  %4165 = vmatprep.mubr.bf16.mxu0 %v8775_v52  ;;  %v8848_v51 = vld [vmem:[%s9649_s12 + $0x950] ss:$108 sps:$4 sm:$0xff]   ;;  %v6872_v52 = vcombine.high %v640_v48, %v640_v48  ;;  %v6871_v54 = vcombine.low %v640_v48, %v640_v48 }
  0x3d   : > { %4301 = vmatprep.mubr.bf16.mxu1 %v8777_v53  ;;  %7495 = vmatpush3.bf16.msra.mxu0 %v8808_v7  ;;  %v6874_v53 = vcombine.high %v641_v49, %v641_v49  ;;  %v8893_v7 = vld [vmem:[%s11152_s1 + $0x2d0] sm:$0xff]   ;;  %v8912_v49 = vld [vmem:[%s9649_s12 + $0x52c] ss:$108 sps:$4 sm:$0xff]  }
  0x3e   : > { %7589 = vmatpush3.bf16.msra.mxu1 %v8816_v12  ;;  %7496 = vmatprep.subr.bf16.mxu0 %v8823_v14  ;;  %v8901_v12 = vld [vmem:[%s11152_s1 + $0x258] sm:$0xff]   ;;  %v8877_v14 = vld [vmem:[%s9649_s12 + $0x1c0] ss:$108 sps:$4 sm:$0xff]   ;;  %v8909_v48 = vld [vmem:[%s9649_s12 + $0x524] ss:$108 sps:$4 sm:$0xff]  }
  0x3f   : > { %7590 = vmatprep.subr.bf16.mxu1 %v8825_v17  ;;  %v8883_v17 = vld [vmem:[%s9649_s12 + $0x29c] ss:$108 sps:$4 sm:$0xff]  }
  0x41   : > { %7497 = vmatpush3.bf16.msra.mxu0 %v8824_v15  ;;  %v8903_v15 = vld [vmem:[%s11152_s1 + $0x218] sm:$0xff]  }
  0x42   : > { %7591 = vmatpush3.bf16.msra.mxu1 %v8830_v20  ;;  %7498 = vmatprep.subr.bf16.mxu0 %v8833_v22  ;;  %v8886_v20 = vld [vmem:[%s9649_s12 + $0x2a4] ss:$108 sps:$4 sm:$0xff]  }
  0x43   : > { %4166 = vmatmul.mubr.bf16.gmra.mrb[12].mxu0 %v8779_v56  ;;  %7592 = vmatprep.subr.bf16.mxu1 %v8841_v27  ;;  %v8859_v56 = vld [vmem:[%s9649_s12 + $0x14] ss:$108 sps:$4 sm:$0xff]   ;;  %v8932_v27 = vld [vmem:[%s11152_s1 + $0x228] sm:$0xff]  }
  0x44   : > { %4302 = vmatmul.mubr.bf16.gmra.mrb[12].mxu1 %v8780_v57  ;;  %4173 = vmatprep.mubr.bf16.mxu0 %v8783_v59  ;;  %v8863_v57 = vld [vmem:[%s9649_s12 + $0x1c] ss:$108 sps:$4 sm:$0xff]   ;;  %v8861_v59 = vld [vmem:[%s9649_s12 + $0x18] ss:$108 sps:$4 sm:$0xff]  }
  0x45   : > { %4309 = vmatprep.mubr.bf16.mxu1 %v8785_v61  ;;  %7499 = vmatpush3.bf16.msra.mxu0 %v8838_v24  ;;  %v8866_v61 = vld [vmem:[%s11152_s1 + $0x280] sm:$0xff]   ;;  %v8930_v24 = vld [vmem:[%s11152_s1 + $0x268] sm:$0xff]  }
  0x46   : > { %7593 = vmatpush3.bf16.msra.mxu1 %v8842_v28  ;;  %7500 = vmatprep.subr.bf16.mxu0 %v8849_v30  ;;  %v8916_v22 = vld [vmem:[%s11152_s1 + $0x220] sm:$0xff]   ;;  %v8936_v28 = vld [vmem:[%s11152_s1 + $0x2a8] sm:$0xff]  }
  0x47   : > { %7594 = vmatprep.subr.bf16.mxu1 %v8855_v34  ;;  %v8891_v30 = vld [vmem:[%s9649_s12 + $0x374] ss:$108 sps:$4 sm:$0xff]  }
  0x48   : > { %v8944_v34 = vld [vmem:[%s11152_s1 + $0x230] sm:$0xff]  }
  0x49   : > { %7501 = vmatpush3.bf16.msra.mxu0 %v8850_v31  ;;  %v8941_v31 = vld [vmem:[%s11152_s1 + $0x270] sm:$0xff]  }
  0x4a   : > { %7595 = vmatpush3.bf16.msra.mxu1 %v8856_v35  ;;  %7674 = vmatprep.subr.bf16.mxu0 %v8860_v38  ;;  %v8950_v35 = vld [vmem:[%s11152_s1 + $0x2b0] sm:$0xff]   ;;  %v8958_v38 = vld [vmem:[%s11152_s1 + $0x238] sm:$0xff]  }
  0x4b   : > { %4174 = vmatmul.mubr.bf16.gmra.mrb[16].mxu0 %v8788_v0  ;;  %7768 = vmatprep.subr.bf16.mxu1 %v8865_v39  ;;  %v8873_v0 = vld [vmem:[%s11152_s1 + $0x248] sm:$0xff]   ;;  %v8894_v39 = vld [vmem:[%s9649_s12 + $0x370] ss:$108 sps:$4 sm:$0xff]  }
  0x4c   : > { %4310 = vmatmul.mubr.bf16.gmra.mrb[16].mxu1 %v8789_v3  ;;  %4181 = vmatprep.mubr.bf16.mxu0 %v8791_v4  ;;  %v8882_v3 = vld [vmem:[%s11152_s1 + $0x288] sm:$0xff]  }
  0x4d   : > { %4317 = vmatprep.mubr.bf16.mxu1 %v8793_v5  ;;  %v8869_v4 = vld [vmem:[%s9649_s12 + $0xe8] ss:$108 sps:$4 sm:$0xff]  }
  0x4e   : > { %v8889_v5 = vld [vmem:[%s11152_s1 + $0x250] sm:$0xff]  }
  0x53   : > { %4182 = vmatmul.mubr.bf16.gmra.mrb[20].mxu0 %v8796_v8  ;;  %v8875_v8 = vld [vmem:[%s9649_s12 + $0x1c4] ss:$108 sps:$4 sm:$0xff]  }
  0x54   : > { %4318 = vmatmul.mubr.bf16.gmra.mrb[20].mxu1 %v8797_v9  ;;  %4189 = vmatprep.mubr.bf16.mxu0 %v8801_v10  ;;  %v8878_v9 = vld [vmem:[%s9649_s12 + $0x1cc] ss:$108 sps:$4 sm:$0xff]   ;;  %v8890_v10 = vld [vmem:[%s11152_s1 + $0x210] sm:$0xff]  }
  0x55   : > { %4325 = vmatprep.mubr.bf16.mxu1 %v8803_v13  ;;  %v8907_v13 = vld [vmem:[%s11152_s1 + $0x2d8] sm:$0xff]  }
  0x5b   : > { %4190 = vmatmul.mubr.bf16.gmra.mrb[24].mxu0 %v8805_v16  ;;  %v8880_v16 = vld [vmem:[%s9649_s12 + $0x1c8] ss:$108 sps:$4 sm:$0xff]  }
  0x5c   : > { %4326 = vmatmul.mubr.bf16.gmra.mrb[24].mxu1 %v8806_v18  ;;  %4197 = vmatprep.mubr.bf16.mxu0 %v8809_v19  ;;  %v8908_v18 = vld [vmem:[%s11152_s1 + $0x298] sm:$0xff]   ;;  %v8915_v19 = vld [vmem:[%s11152_s1 + $0x260] sm:$0xff]  }
  0x5d   : > { %4333 = vmatprep.mubr.bf16.mxu1 %v8811_v21  ;;  %v8922_v21 = vld [vmem:[%s11152_s1 + $0x2e0] sm:$0xff]  }
  0x63   : > { %4198 = vmatmul.mubr.bf16.gmra.mrb[28].mxu0 %v8813_v23  ;;  %v8924_v23 = vld [vmem:[%s11152_s1 + $0x2a0] sm:$0xff]  }
  0x64   : > { %4334 = vmatmul.mubr.bf16.gmra.mrb[28].mxu1 %v8814_v25  ;;  %4205 = vmatprep.mubr.bf16.mxu0 %v8817_v26  ;;  %v8933_v25 = vld [vmem:[%s11152_s1 + $0x2e8] sm:$0xff]   ;;  %v8885_v26 = vld [vmem:[%s9649_s12 + $0x298] ss:$108 sps:$4 sm:$0xff]  }
  0x65   : > { %4341 = vmatprep.mubr.bf16.mxu1 %v8819_v29  ;;  %v8888_v29 = vld [vmem:[%s9649_s12 + $0x2a0] ss:$108 sps:$4 sm:$0xff]  }
  0x6b   : > { %4206 = vmatmul.mubr.bf16.gmra.mrb[32].mxu0 %v8821_v32  ;;  %v8949_v32 = vld [vmem:[%s11152_s1 + $0x2f0] sm:$0xff]  }
  0x6c   : > { %4342 = vmatmul.mubr.bf16.gmra.mrb[32].mxu1 %v8822_v33  ;;  %4213 = vmatprep.mubr.bf16.mxu0 %v8826_v36  ;;  %v8896_v33 = vld [vmem:[%s9649_s12 + $0x37c] ss:$108 sps:$4 sm:$0xff]  }
  0x6d   : > { %4349 = vmatprep.mubr.bf16.mxu1 %v8828_v37  ;;  %v8957_v36 = vld [vmem:[%s11152_s1 + $0x278] sm:$0xff]  }
  0x6e   : > { %v8961_v37 = vld [vmem:[%s11152_s1 + $0x2f8] sm:$0xff]  }
  0x73   : > { %4214 = vmatmul.mubr.bf16.gmra.mrb[36].mxu0 %v8831_v40  ;;  %v8963_v40 = vld [vmem:[%s11152_s1 + $0x2b8] sm:$0xff]  }
  0x74   : > { %4350 = vmatmul.mubr.bf16.gmra.mrb[36].mxu1 %v8832_v41  ;;  %4221 = vmatprep.mubr.bf16.mxu0 %v8834_v42  ;;  %v8898_v41 = vld [vmem:[%s9649_s12 + $0x378] ss:$108 sps:$4 sm:$0xff]  }
  0x75   : > { %4357 = vmatprep.mubr.bf16.mxu1 %v8836_v43  ;;  %v8968_v42 = vld [vmem:[%s11152_s1 + $0x340] sm:$0xff]  }
  0x76   : > { %v8973_v43 = vld [vmem:[%s11152_s1 + $0x3c0] sm:$0xff]  }
  0x7b   : > { %4222 = vmatmul.mubr.bf16.gmra.mrb[40].mxu0 %v8839_v44  ;;  %v8899_v44 = vld [vmem:[%s9649_s12 + $0x44c] ss:$108 sps:$4 sm:$0xff]  }
  0x7c   : > { %4358 = vmatmul.mubr.bf16.gmra.mrb[40].mxu1 %v8840_v45  ;;  %4229 = vmatprep.mubr.bf16.mxu0 %v8843_v46  ;;  %v8904_v45 = vld [vmem:[%s9649_s12 + $0x454] ss:$108 sps:$4 sm:$0xff]  }
  0x7d   : > { %4365 = vmatprep.mubr.bf16.mxu1 %v8845_v47  ;;  %v8902_v46 = vld [vmem:[%s9649_s12 + $0x448] ss:$108 sps:$4 sm:$0xff]   ;;  %v8906_v47 = vld [vmem:[%s9649_s12 + $0x450] ss:$108 sps:$4 sm:$0xff]  }
  0x83   : > { %4230 = vmatmul.mubr.bf16.gmra.mrb[44].mxu0 %v8847_v50  ;;  %v8911_v50 = vld [vmem:[%s9649_s12 + $0x520] ss:$108 sps:$4 sm:$0xff]  }
  0x84   : > { %4366 = vmatmul.mubr.bf16.gmra.mrb[44].mxu1 %v8848_v51  ;;  %4237 = vmatprep.mubr.bf16.mxu0 %v6872_v52  ;;  %v8914_v51 = vld [vmem:[%s9649_s12 + $0x528] ss:$108 sps:$4 sm:$0xff]  }
  0x85   : > { %4373 = vmatprep.mubr.bf16.mxu1 %v6874_v53  ;;  %v8917_v52 = vld [vmem:[%s9649_s12 + $0x5fc] ss:$108 sps:$4 sm:$0xff]   ;;  %v8920_v53 = vld [vmem:[%s9649_s12 + $0x604] ss:$108 sps:$4 sm:$0xff]  }
  0x8b   : > { %4238 = vmatmul.mubr.bf16.gmra.mrb[48].mxu0 %v6871_v54  ;;  %v8919_v54 = vld [vmem:[%s9649_s12 + $0x5f8] ss:$108 sps:$4 sm:$0xff]  }
  0x8c   : > { %4374 = vmatmul.mubr.bf16.gmra.mrb[48].mxu1 %v6873_v55  ;;  %4413 = vmatprep.mubr.bf16.mxu0 %v8859_v56  ;;  %v8923_v55 = vld [vmem:[%s9649_s12 + $0x600] ss:$108 sps:$4 sm:$0xff]  }
  0x8d   : > { %4549 = vmatprep.mubr.bf16.mxu1 %v8863_v57  ;;  %v8925_v56 = vld [vmem:[%s9649_s12 + $0x6d4] ss:$108 sps:$4 sm:$0xff]   ;;  %v8928_v57 = vld [vmem:[%s9649_s12 + $0x6dc] ss:$108 sps:$4 sm:$0xff]  }
  0x93   : > { %4414 = vmatmul.mubr.bf16.vlgmr.msra.gmra.mrb[52].mxu0 %v8857_v58  ;;  %v8927_v58 = vld [vmem:[%s9649_s12 + $0x6d0] ss:$108 sps:$4 sm:$0xff]  }
  0x94   : > { %7675 = vmatpush3.bf16.msra.mxu0 %v8864_v60  ;;  %4550 = vmatmul.mubr.bf16.vlgmr.msra.gmra.mrb[52].mxu1 %v8861_v59  ;;  %v8931_v59 = vld [vmem:[%s9649_s12 + $0x6d8] ss:$108 sps:$4 sm:$0xff]  }
  0x95   : > { %7769 = vmatpush3.bf16.msra.mxu1 %v8866_v61  ;;  %4421 = vmatprep.mubr.bf16.mxu0 %v8867_v62  ;;  %v8934_v60 = vld [vmem:[%s9649_s12 + $0x7ac] ss:$108 sps:$4 sm:$0xff]   ;;  %v8938_v61 = vld [vmem:[%s9649_s12 + $0x7b4] ss:$108 sps:$4 sm:$0xff]  }
  0x96   : > { %4557 = vmatprep.mubr.bf16.mxu1 %v8870_v63  ;;  %7676 = vmatprep.subr.bf16.mxu0 %v8873_v0  ;;  %v8937_v62 = vld [vmem:[%s9649_s12 + $0x7a8] ss:$108 sps:$4 sm:$0xff]   ;;  %v8940_v63 = vld [vmem:[%s9649_s12 + $0x7b0] ss:$108 sps:$4 sm:$0xff]  }
  0x97   : > { %7770 = vmatprep.subr.bf16.mxu1 %v8881_v1  ;;  %v8942_v0 = vld [vmem:[%s9649_s12 + $0x884] ss:$108 sps:$4 sm:$0xff]   ;;  %v8946_v1 = vld [vmem:[%s9649_s12 + $0x88c] ss:$108 sps:$4 sm:$0xff]  }
  0x98   : > { %7677 = vmatpush3.bf16.msra.mxu0 %v8874_v2  ;;  %v8945_v2 = vld [vmem:[%s9649_s12 + $0x880] ss:$108 sps:$4 sm:$0xff]  }
  0x99   : > { %7771 = vmatpush3.bf16.msra.mxu1 %v8882_v3  ;;  %7678 = vmatprep.subr.bf16.mxu0 %v8889_v5  ;;  %v8948_v3 = vld [vmem:[%s9649_s12 + $0x888] ss:$108 sps:$4 sm:$0xff]   ;;  %v8954_v5 = vld [vmem:[%s9649_s12 + $0x964] ss:$108 sps:$4 sm:$0xff]  }
  0x9a   : > { %7772 = vmatprep.subr.bf16.mxu1 %v8893_v7  ;;  %v643_v7 = vld [vmem:[%s9649_s12 + $0xa38] sm:$0xff] }
  0x9b   : > { %4422 = vmatmul.mubr.bf16.gmra.mrb[56].mxu0 %v8869_v4  ;;  %v8951_v4 = vld [vmem:[%s9649_s12 + $0x95c] ss:$108 sps:$4 sm:$0xff]  }
  0x9c   : > { %4558 = vmatmul.mubr.bf16.gmra.mrb[56].mxu1 %v8872_v6  ;;  %4429 = vmatprep.mubr.bf16.mxu0 %v8875_v8  ;;  %v642_v6 = vld [vmem:[%s9649_s12 + $0xa30] sm:$0xff]  ;;  %v8953_v8 = vld [vmem:[%s9649_s12 + $0x958] ss:$108 sps:$4 sm:$0xff]  }
  0x9d   : > { %4565 = vmatprep.mubr.bf16.mxu1 %v8878_v9  ;;  %7679 = vmatpush3.bf16.msra.mxu0 %v8890_v10  ;;  %v8956_v9 = vld [vmem:[%s9649_s12 + $0x960] ss:$108 sps:$4 sm:$0xff]   ;;  %v6876_v10 = vcombine.high %v642_v6, %v642_v6 }
  0x9e   : > { %7773 = vmatpush3.bf16.msra.mxu1 %v8895_v11  ;;  %7680 = vmatprep.subr.bf16.mxu0 %v8901_v12  ;;  %v6878_v11 = vcombine.high %v643_v7, %v643_v7  ;;  %v6875_v12 = vcombine.low %v642_v6, %v642_v6 }
  0x9f   : > { %7774 = vmatprep.subr.bf16.mxu1 %v8907_v13  ;;  %v6877_v13 = vcombine.low %v643_v7, %v643_v7  ;;  %v9038_v7 = vld [vmem:[%s11152_s1 + $0x368] sm:$0xff]  }
  0xa1   : > { %7681 = vmatpush3.bf16.msra.mxu0 %v8903_v15  ;;  %v8971_v15 = vld [vmem:[%s9649_s12 + $0x2c] ss:$108 sps:$4 sm:$0xff]  }
  0xa2   : > { %7775 = vmatpush3.bf16.msra.mxu1 %v8908_v18  ;;  %7682 = vmatprep.subr.bf16.mxu0 %v8915_v19  ;;  %v8972_v18 = vld [vmem:[%s11152_s1 + $0x300] sm:$0xff]  }
  0xa3   : > { %4430 = vmatmul.mubr.bf16.gmra.mrb[60].mxu0 %v8877_v14  ;;  %7776 = vmatprep.subr.bf16.mxu1 %v8922_v21  ;;  %v8967_v14 = vld [vmem:[%s9649_s12 + $0x24] ss:$108 sps:$4 sm:$0xff]  }
  0xa4   : > { %4566 = vmatmul.mubr.bf16.gmra.mrb[60].mxu1 %v8880_v16  ;;  %4437 = vmatprep.mubr.bf16.mxu0 %v8883_v17  ;;  %v8965_v16 = vld [vmem:[%s9649_s12 + $0x20] ss:$108 sps:$4 sm:$0xff]   ;;  %v8969_v17 = vld [vmem:[%s9649_s12 + $0x28] ss:$108 sps:$4 sm:$0xff]   ;;  %v8978_v21 = vld [vmem:[%s9649_s12 + $0x104] ss:$108 sps:$4 sm:$0xff]  }
  0xa5   : > { %4573 = vmatprep.mubr.bf16.mxu1 %v8886_v20  ;;  %7683 = vmatpush3.bf16.msra.mxu0 %v8916_v22  ;;  %v8974_v19 = vld [vmem:[%s11152_s1 + $0x380] sm:$0xff]   ;;  %v8975_v20 = vld [vmem:[%s9649_s12 + $0xfc] ss:$108 sps:$4 sm:$0xff]  }
  0xa6   : > { %7777 = vmatpush3.bf16.msra.mxu1 %v8924_v23  ;;  %7684 = vmatprep.subr.bf16.mxu0 %v8930_v24  ;;  %v8981_v22 = vld [vmem:[%s11152_s1 + $0x348] sm:$0xff]  }
  0xa7   : > { %7778 = vmatprep.subr.bf16.mxu1 %v8933_v25  ;;  %v8982_v23 = vld [vmem:[%s11152_s1 + $0x308] sm:$0xff]  }
  0xa8   : > { %v8989_v24 = vld [vmem:[%s11152_s1 + $0x3c8] sm:$0xff]  }
  0xa9   : > { %7685 = vmatpush3.bf16.msra.mxu0 %v8932_v27  ;;  %v8990_v25 = vld [vmem:[%s11152_s1 + $0x388] sm:$0xff]   ;;  %v8977_v27 = vld [vmem:[%s9649_s12 + $0xf8] ss:$108 sps:$4 sm:$0xff]  }
  0xaa   : > { %7779 = vmatpush3.bf16.msra.mxu1 %v8936_v28  ;;  %7686 = vmatprep.subr.bf16.mxu0 %v8941_v31  ;;  %v9001_v31 = vld [vmem:[%s11152_s1 + $0x3d0] sm:$0xff]  }
  0xab   : > { %4438 = vmatmul.mubr.bf16.gmra.mrb[64].mxu0 %v8885_v26  ;;  %7780 = vmatprep.subr.bf16.mxu1 %v8949_v32  ;;  %v8997_v26 = vld [vmem:[%s11152_s1 + $0x350] sm:$0xff]  }
  0xac   : > { %4574 = vmatmul.mubr.bf16.gmra.mrb[64].mxu1 %v8888_v29  ;;  %4445 = vmatprep.mubr.bf16.mxu0 %v8891_v30  ;;  %v8980_v29 = vld [vmem:[%s9649_s12 + $0x100] ss:$108 sps:$4 sm:$0xff]  }
  0xad   : > { %4581 = vmatprep.mubr.bf16.mxu1 %v8896_v33  ;;  %7687 = vmatpush3.bf16.msra.mxu0 %v8944_v34  ;;  %v8983_v30 = vld [vmem:[%s9649_s12 + $0x1d4] ss:$108 sps:$4 sm:$0xff]   ;;  %v8986_v34 = vld [vmem:[%s9649_s12 + $0x1dc] ss:$108 sps:$4 sm:$0xff]  }
  0xae   : > { %7781 = vmatpush3.bf16.msra.mxu1 %v8950_v35  ;;  %7688 = vmatprep.subr.bf16.mxu0 %v8957_v36  ;;  %v8998_v35 = vld [vmem:[%s11152_s1 + $0x310] sm:$0xff]  }
  0xaf   : > { %7782 = vmatprep.subr.bf16.mxu1 %v8961_v37 }
  0xb1   : > { %7689 = vmatpush3.bf16.msra.mxu0 %v8958_v38 }
  0xb2   : > { %7783 = vmatpush3.bf16.msra.mxu1 %v8963_v40  ;;  %7862 = vmatprep.subr.bf16.mxu0 %v8968_v42  ;;  %v9003_v42 = vld [vmem:[%s11152_s1 + $0x390] sm:$0xff]  }
  0xb3   : > { %4446 = vmatmul.mubr.bf16.gmra.mrb[68].mxu0 %v8894_v39  ;;  %7956 = vmatprep.subr.bf16.mxu1 %v8973_v43 }
  0xb4   : > { %4582 = vmatmul.mubr.bf16.gmra.mrb[68].mxu1 %v8898_v41  ;;  %4453 = vmatprep.mubr.bf16.mxu0 %v8899_v44 }
  0xb5   : > { %4589 = vmatprep.mubr.bf16.mxu1 %v8904_v45  ;;  %v9009_v45 = vld [vmem:[%s11152_s1 + $0x358] sm:$0xff]  }
  0xbb   : > { %4454 = vmatmul.mubr.bf16.gmra.mrb[72].mxu0 %v8902_v46 }
  0xbc   : > { %4590 = vmatmul.mubr.bf16.gmra.mrb[72].mxu1 %v8906_v47  ;;  %4461 = vmatprep.mubr.bf16.mxu0 %v8909_v48  ;;  %v9015_v48 = vld [vmem:[%s11152_s1 + $0x3d8] sm:$0xff]  }
  0xbd   : > { %4597 = vmatprep.mubr.bf16.mxu1 %v8912_v49  ;;  %v9011_v49 = vld [vmem:[%s11152_s1 + $0x318] sm:$0xff]  }
  0xc3   : > { %4462 = vmatmul.mubr.bf16.gmra.mrb[76].mxu0 %v8911_v50  ;;  %v9016_v50 = vld [vmem:[%s11152_s1 + $0x398] sm:$0xff]  }
  0xc4   : > { %4598 = vmatmul.mubr.bf16.gmra.mrb[76].mxu1 %v8914_v51  ;;  %4469 = vmatprep.mubr.bf16.mxu0 %v8917_v52  ;;  %v9023_v51 = vld [vmem:[%s11152_s1 + $0x360] sm:$0xff]  }
  0xc5   : > { %4605 = vmatprep.mubr.bf16.mxu1 %v8920_v53  ;;  %v8985_v53 = vld [vmem:[%s9649_s12 + $0x1d0] ss:$108 sps:$4 sm:$0xff]  }
  0xcb   : > { %4470 = vmatmul.mubr.bf16.gmra.mrb[80].mxu0 %v8919_v54  ;;  %v9030_v54 = vld [vmem:[%s11152_s1 + $0x3e0] sm:$0xff]  }
  0xcc   : > { %4606 = vmatmul.mubr.bf16.gmra.mrb[80].mxu1 %v8923_v55  ;;  %4477 = vmatprep.mubr.bf16.mxu0 %v8925_v56  ;;  %v8988_v56 = vld [vmem:[%s9649_s12 + $0x1d8] ss:$108 sps:$4 sm:$0xff]  }
  0xcd   : > { %4613 = vmatprep.mubr.bf16.mxu1 %v8928_v57  ;;  %v8991_v57 = vld [vmem:[%s9649_s12 + $0x2ac] ss:$108 sps:$4 sm:$0xff]  }
  0xd3   : > { %4478 = vmatmul.mubr.bf16.gmra.mrb[84].mxu0 %v8927_v58 }
  0xd4   : > { %4614 = vmatmul.mubr.bf16.gmra.mrb[84].mxu1 %v8931_v59  ;;  %4485 = vmatprep.mubr.bf16.mxu0 %v8934_v60  ;;  %v8994_v60 = vld [vmem:[%s9649_s12 + $0x2b4] ss:$108 sps:$4 sm:$0xff]  }
  0xd5   : > { %4621 = vmatprep.mubr.bf16.mxu1 %v8938_v61 }
  0xdb   : > { %4486 = vmatmul.mubr.bf16.gmra.mrb[88].mxu0 %v8937_v62 }
  0xdc   : > { %4622 = vmatmul.mubr.bf16.gmra.mrb[88].mxu1 %v8940_v63  ;;  %4493 = vmatprep.mubr.bf16.mxu0 %v8942_v0 }
  0xdd   : > { %4629 = vmatprep.mubr.bf16.mxu1 %v8946_v1 }
  0xe3   : > { %4494 = vmatmul.mubr.bf16.gmra.mrb[92].mxu0 %v8945_v2 }
  0xe4   : > { %4630 = vmatmul.mubr.bf16.gmra.mrb[92].mxu1 %v8948_v3  ;;  %4501 = vmatprep.mubr.bf16.mxu0 %v8951_v4  ;;  %v9024_v3 = vld [vmem:[%s11152_s1 + $0x320] sm:$0xff]  }
  0xe5   : > { %4637 = vmatprep.mubr.bf16.mxu1 %v8954_v5  ;;  %v9032_v4 = vld [vmem:[%s11152_s1 + $0x3a0] sm:$0xff]  }
  0xeb   : > { %4502 = vmatmul.mubr.bf16.gmra.mrb[96].mxu0 %v8953_v8 }
  0xec   : > { %4638 = vmatmul.mubr.bf16.gmra.mrb[96].mxu1 %v8956_v9  ;;  %4509 = vmatprep.mubr.bf16.mxu0 %v6876_v10  ;;  %v9041_v10 = vld [vmem:[%s11152_s1 + $0x3e8] sm:$0xff]  }
  0xed   : > { %4645 = vmatprep.mubr.bf16.mxu1 %v6878_v11  ;;  %v9040_v11 = vld [vmem:[%s11152_s1 + $0x328] sm:$0xff]  }
  0xf3   : > { %4510 = vmatmul.mubr.bf16.gmra.mrb[100].mxu0 %v6875_v12  ;;  %v9044_v12 = vld [vmem:[%s11152_s1 + $0x3a8] sm:$0xff]  }
  0xf4   : > { %4646 = vmatmul.mubr.bf16.gmra.mrb[100].mxu1 %v6877_v13  ;;  %4685 = vmatprep.mubr.bf16.mxu0 %v8967_v14  ;;  %v9049_v13 = vld [vmem:[%s11152_s1 + $0x370] sm:$0xff]  }
  0xf5   : > { %4821 = vmatprep.mubr.bf16.mxu1 %v8971_v15  ;;  %v8993_v15 = vld [vmem:[%s9649_s12 + $0x2a8] ss:$108 sps:$4 sm:$0xff]  }
  0xfb   : > { %4686 = vmatmul.mubr.bf16.vlgmr.msra.gmra.mrb[104].mxu0 %v8965_v16  ;;  %v9057_v16 = vld [vmem:[%s11152_s1 + $0x3f0] sm:$0xff]  }
  0xfc   : > { %7863 = vmatpush3.bf16.msra.mxu0 %v8972_v18  ;;  %4822 = vmatmul.mubr.bf16.vlgmr.msra.gmra.mrb[104].mxu1 %v8969_v17  ;;  %v8996_v18 = vld [vmem:[%s9649_s12 + $0x2b0] ss:$108 sps:$4 sm:$0xff]  }
  0xfd   : > { %7957 = vmatpush3.bf16.msra.mxu1 %v8974_v19  ;;  %4693 = vmatprep.mubr.bf16.mxu0 %v8975_v20  ;;  %v8999_v19 = vld [vmem:[%s9649_s12 + $0x384] ss:$108 sps:$4 sm:$0xff]  }
  0xfe   : > { %v7314_v28 = vpop.f32.mrb[0].mxu0  ;;  %4829 = vmatprep.mubr.bf16.mxu1 %v8978_v21  ;;  %7864 = vmatprep.subr.bf16.mxu0 %v8981_v22  ;;  %v9004_v22 = vld [vmem:[%s9649_s12 + $0x38c] ss:$108 sps:$4 sm:$0xff]  }
  0xff   : > { %v7408_v32 = vpop.f32.mrb[0].mxu1  ;;  %v7315_v33 = vpop.f32.mrb[1].mxu0  ;;  %7958 = vmatprep.subr.bf16.mxu1 %v8989_v24 }
 0x100   : > { %v7316_v36 = vadd.f32 %v7315_v33, %v7314_v28  ;;  %v7409_v37 = vpop.f32.mrb[1].mxu1  ;;  %v7317_v38 = vpop.f32.mrb[2].mxu0  ;;  %7865 = vmatpush3.bf16.msra.mxu0 %v8982_v23  ;;  %v9065_v33 = vld [vmem:[%s11152_s1 + $0x378] sm:$0xff]  }
 0x101   : > { %v7410_v39 = vadd.f32 %v7409_v37, %v7408_v32  ;;  %v7411_v40 = vpop.f32.mrb[2].mxu1  ;;  %v7318_v41 = vpop.f32.mrb[3].mxu0  ;;  %7959 = vmatpush3.bf16.msra.mxu1 %v8990_v25  ;;  %7866 = vmatprep.subr.bf16.mxu0 %v8997_v26  ;;  %v9058_v32 = vld [vmem:[%s11152_s1 + $0x3b0] sm:$0xff]   ;;  %v9069_v37 = vld [vmem:[%s11152_s1 + $0x3f8] sm:$0xff]  }
 0x102   : > { %v7319_v43 = vadd.f32 %v7318_v41, %v7317_v38  ;;  %v7412_v44 = vpop.f32.mrb[3].mxu1  ;;  %7960 = vmatprep.subr.bf16.mxu1 %v9001_v31  ;;  %v9071_v38 = vld [vmem:[%s11152_s1 + $0x3b8] sm:$0xff]   ;;  %v9002_v41 = vld [vmem:[%s9649_s12 + $0x380] ss:$108 sps:$4 sm:$0xff]  }
 0x103   : > { %v9998_v46 = vadd.f32 %v7410_v39, %v7316_v36  ;;  %v7413_v47 = vadd.f32 %v7412_v44, %v7411_v40  ;;  %4694 = vmatmul.mubr.bf16.gmra.mrb[108].mxu0 %v8977_v27  ;;  %v9066_v36 = vld [vmem:[%s11152_s1 + $0x338] sm:$0xff]   ;;  %v9076_v39 = vld [vmem:[%s11152_s1 + $0x440] sm:$0xff]   ;;  %v9006_v44 = vld [vmem:[%s9649_s12 + $0x388] ss:$108 sps:$4 sm:$0xff]  }
 0x104   : > { %4830 = vmatmul.mubr.bf16.gmra.mrb[108].mxu1 %v8980_v29  ;;  %4701 = vmatprep.mubr.bf16.mxu0 %v8983_v30  ;;  %v9052_v29 = vld [vmem:[%s11152_s1 + $0x330] sm:$0xff]  }
 0x105   : > { %v10012_v52 = vadd.f32 %v7413_v47, %v7319_v43  ;;  %4837 = vmatprep.mubr.bf16.mxu1 %v8986_v34  ;;  %7867 = vmatpush3.bf16.msra.mxu0 %v8998_v35 }
 0x106   : > { %v7320_v55 = vpop.f32.mrb[4].mxu0  ;;  %7961 = vmatpush3.bf16.msra.mxu1 %v9003_v42  ;;  %7868 = vmatprep.subr.bf16.mxu0 %v9009_v45  ;;  %v9081_v42 = vld [vmem:[%s11152_s1 + $0x4c0] sm:$0xff]   ;;  %v9007_v45 = vld [vmem:[%s9649_s12 + $0x45c] ss:$108 sps:$4 sm:$0xff]  }
 0x107   : > { %v7414_v58 = vpop.f32.mrb[4].mxu1  ;;  %v7321_v59 = vpop.f32.mrb[5].mxu0  ;;  %7962 = vmatprep.subr.bf16.mxu1 %v9015_v48 }
 0x108   : > { %v7322_v61 = vadd.f32 %v7321_v59, %v7320_v55  ;;  %v7415_v62 = vpop.f32.mrb[5].mxu1  ;;  %v7323_v63 = vpop.f32.mrb[6].mxu0 }
 0x109   : > { %v7416_v0 = vadd.f32 %v7415_v62, %v7414_v58  ;;  %v7417_v1 = vpop.f32.mrb[6].mxu1  ;;  %v7324_v2 = vpop.f32.mrb[7].mxu0  ;;  %7869 = vmatpush3.bf16.msra.mxu0 %v9011_v49  ;;  %v9010_v62 = vld [vmem:[%s9649_s12 + $0x458] ss:$108 sps:$4 sm:$0xff]  }
 0x10a   : > { %v7325_v5 = vadd.f32 %v7324_v2, %v7323_v63  ;;  %v7418_v6 = vpop.f32.mrb[7].mxu1  ;;  %7963 = vmatpush3.bf16.msra.mxu1 %v9016_v50  ;;  %7870 = vmatprep.subr.bf16.mxu0 %v9023_v51 }
 0x10b   : > { %v10030_v8 = vadd.f32 %v7416_v0, %v7322_v61  ;;  %v7419_v9 = vadd.f32 %v7418_v6, %v7417_v1  ;;  %4702 = vmatmul.mubr.bf16.gmra.mrb[112].mxu0 %v8985_v53  ;;  %7964 = vmatprep.subr.bf16.mxu1 %v9030_v54  ;;  %v9014_v0 = vld [vmem:[%s9649_s12 + $0x460] ss:$108 sps:$4 sm:$0xff]  }
 0x10c   : > { %4838 = vmatmul.mubr.bf16.gmra.mrb[112].mxu1 %v8988_v56  ;;  %4709 = vmatprep.mubr.bf16.mxu0 %v8991_v57  ;;  %v9012_v56 = vld [vmem:[%s9649_s12 + $0x464] ss:$108 sps:$4 sm:$0xff]   ;;  %v9017_v1 = vld [vmem:[%s9649_s12 + $0x534] ss:$108 sps:$4 sm:$0xff]  }
 0x10d   : > { %v10044_v14 = vadd.f32 %v7419_v9, %v7325_v5  ;;  %4845 = vmatprep.mubr.bf16.mxu1 %v8994_v60  ;;  %7871 = vmatpush3.bf16.msra.mxu0 %v9024_v3 }
 0x10e   : > { %v7326_v17 = vpop.f32.mrb[8].mxu0  ;;  %7965 = vmatpush3.bf16.msra.mxu1 %v9032_v4  ;;  %7872 = vmatprep.subr.bf16.mxu0 %v9038_v7 }
 0x10f   : > { %v7420_v20 = vpop.f32.mrb[8].mxu1  ;;  %v7327_v21 = vpop.f32.mrb[9].mxu0  ;;  %7966 = vmatprep.subr.bf16.mxu1 %v9041_v10 }
 0x110   : > { %v7328_v23 = vadd.f32 %v7327_v21, %v7326_v17  ;;  %v7421_v24 = vpop.f32.mrb[9].mxu1  ;;  %v7329_v25 = vpop.f32.mrb[10].mxu0  ;;  %v9025_v21 = vld [vmem:[%s9649_s12 + $0x60c] ss:$108 sps:$4 sm:$0xff]  }
 0x111   : > { %v7422_v26 = vadd.f32 %v7421_v24, %v7420_v20  ;;  %v7423_v27 = vpop.f32.mrb[10].mxu1  ;;  %v7330_v28 = vpop.f32.mrb[11].mxu0  ;;  %7873 = vmatpush3.bf16.msra.mxu0 %v9040_v11  ;;  %v9020_v11 = vld [vmem:[%s9649_s12 + $0x53c] ss:$108 sps:$4 sm:$0xff]   ;;  %v9022_v20 = vld [vmem:[%s9649_s12 + $0x538] ss:$108 sps:$4 sm:$0xff]  }
 0x112   : > { %v7331_v30 = vadd.f32 %v7330_v28, %v7329_v25  ;;  %v7424_v31 = vpop.f32.mrb[11].mxu1  ;;  %7967 = vmatpush3.bf16.msra.mxu1 %v9044_v12  ;;  %7874 = vmatprep.subr.bf16.mxu0 %v9049_v13 }
 0x113   : > { %v10062_v34 = vadd.f32 %v7422_v26, %v7328_v23  ;;  %v7425_v35 = vadd.f32 %v7424_v31, %v7423_v27  ;;  %4710 = vmatmul.mubr.bf16.gmra.mrb[116].mxu0 %v8993_v15  ;;  %7968 = vmatprep.subr.bf16.mxu1 %v9057_v16 }
 0x114   : > { %4846 = vmatmul.mubr.bf16.gmra.mrb[116].mxu1 %v8996_v18  ;;  %4717 = vmatprep.mubr.bf16.mxu0 %v8999_v19  ;;  %v9019_v18 = vld [vmem:[%s9649_s12 + $0x530] ss:$108 sps:$4 sm:$0xff]  }
 0x115   : > { %v10076_v40 = vadd.f32 %v7425_v35, %v7331_v30  ;;  %4853 = vmatprep.mubr.bf16.mxu1 %v9004_v22  ;;  %7875 = vmatpush3.bf16.msra.mxu0 %v9052_v29  ;;  %v9028_v30 = vld [vmem:[%s9649_s12 + $0x614] ss:$108 sps:$4 sm:$0xff]  }
 0x116   : > { %v7332_v43 = vpop.f32.mrb[12].mxu0  ;;  %7969 = vmatpush3.bf16.msra.mxu1 %v9058_v32  ;;  %7876 = vmatprep.subr.bf16.mxu0 %v9065_v33 }
 0x117   : > { %v7426_v47 = vpop.f32.mrb[12].mxu1  ;;  %v7333_v48 = vpop.f32.mrb[13].mxu0  ;;  %7970 = vmatprep.subr.bf16.mxu1 %v9069_v37  ;;  %v9027_v37 = vld [vmem:[%s9649_s12 + $0x608] ss:$108 sps:$4 sm:$0xff]  }
 0x118   : > { %v7334_v49 = vadd.f32 %v7333_v48, %v7332_v43  ;;  %v7427_v50 = vpop.f32.mrb[13].mxu1  ;;  %v7335_v51 = vpop.f32.mrb[14].mxu0 }
 0x119   : > { %v7428_v53 = vadd.f32 %v7427_v50, %v7426_v47  ;;  %v7429_v54 = vpop.f32.mrb[14].mxu1  ;;  %v7336_v55 = vpop.f32.mrb[15].mxu0  ;;  %7877 = vmatpush3.bf16.msra.mxu0 %v9066_v36 }
 0x11a   : > { %v7337_v57 = vadd.f32 %v7336_v55, %v7335_v51  ;;  %v7430_v58 = vpop.f32.mrb[15].mxu1  ;;  %7971 = vmatpush3.bf16.msra.mxu1 %v9071_v38  ;;  %8050 = vmatprep.subr.bf16.mxu0 %v9076_v39  ;;  %v9031_v39 = vld [vmem:[%s9649_s12 + $0x610] ss:$108 sps:$4 sm:$0xff]   ;;  %v9036_v51 = vld [vmem:[%s9649_s12 + $0x6ec] ss:$108 sps:$4 sm:$0xff]  }
 0x11b   : > { %v10085_v59 = vadd.f32 %v7428_v53, %v7334_v49  ;;  %v7431_v60 = vadd.f32 %v7430_v58, %v7429_v54  ;;  %4718 = vmatmul.mubr.bf16.gmra.mrb[120].mxu0 %v9002_v41  ;;  %8144 = vmatprep.subr.bf16.mxu1 %v9081_v42  ;;  %v9033_v41 = vld [vmem:[%s9649_s12 + $0x6e4] ss:$108 sps:$4 sm:$0xff]   ;;  %v9035_v58 = vld [vmem:[%s9649_s12 + $0x6e0] ss:$108 sps:$4 sm:$0xff]  }
 0x11c   : > { %4854 = vmatmul.mubr.bf16.gmra.mrb[120].mxu1 %v9006_v44  ;;  %4725 = vmatprep.mubr.bf16.mxu0 %v9007_v45 }
 0x11d   : > { %v10087_v61 = vadd.f32 %v7431_v60, %v7337_v57  ;;  %4861 = vmatprep.mubr.bf16.mxu1 %v9012_v56 }
 0x11e   : > { %v7338_v63 = vpop.f32.mrb[16].mxu0 }
 0x11f   : > { %v7432_v2 = vpop.f32.mrb[16].mxu1  ;;  %v7339_v3 = vpop.f32.mrb[17].mxu0 }
 0x120   : > { %v7340_v4 = vadd.f32 %v7339_v3, %v7338_v63  ;;  %v7433_v5 = vpop.f32.mrb[17].mxu1  ;;  %v7341_v6 = vpop.f32.mrb[18].mxu0  ;;  %v9042_v63 = vld [vmem:[%s9649_s12 + $0x7bc] ss:$108 sps:$4 sm:$0xff]  }
 0x121   : > { %v7434_v7 = vadd.f32 %v7433_v5, %v7432_v2  ;;  %v7435_v9 = vpop.f32.mrb[18].mxu1  ;;  %v7342_v10 = vpop.f32.mrb[19].mxu0 }
 0x122   : > { %v7343_v12 = vadd.f32 %v7342_v10, %v7341_v6  ;;  %v7436_v13 = vpop.f32.mrb[19].mxu1 }
 0x123   : > { %v10093_v15 = vadd.f32 %v7434_v7, %v7340_v4  ;;  %v7437_v16 = vadd.f32 %v7436_v13, %v7435_v9  ;;  %4726 = vmatmul.mubr.bf16.gmra.mrb[124].mxu0 %v9010_v62  ;;  %v9039_v62 = vld [vmem:[%s9649_s12 + $0x6e8] ss:$108 sps:$4 sm:$0xff]   ;;  %v9046_v9 = vld [vmem:[%s9649_s12 + $0x7c4] ss:$108 sps:$4 sm:$0xff]  }
 0x124   : > { %4862 = vmatmul.mubr.bf16.gmra.mrb[124].mxu1 %v9014_v0  ;;  %4733 = vmatprep.mubr.bf16.mxu0 %v9017_v1 }
 0x125   : > { %v10095_v17 = vadd.f32 %v7437_v16, %v7343_v12  ;;  %4869 = vmatprep.mubr.bf16.mxu1 %v9020_v11 }
 0x126   : > { %v7344_v19 = vpop.f32.mrb[20].mxu0 }
 0x127   : > { %v7438_v22 = vpop.f32.mrb[20].mxu1  ;;  %v7345_v23 = vpop.f32.mrb[21].mxu0 }
 0x128   : > { %v7346_v24 = vadd.f32 %v7345_v23, %v7344_v19  ;;  %v7439_v25 = vpop.f32.mrb[21].mxu1  ;;  %v7347_v26 = vpop.f32.mrb[22].mxu0 }
 0x129   : > { %v7440_v27 = vadd.f32 %v7439_v25, %v7438_v22  ;;  %v7441_v28 = vpop.f32.mrb[22].mxu1  ;;  %v7348_v29 = vpop.f32.mrb[23].mxu0 }
 0x12a   : > { %v7349_v31 = vadd.f32 %v7348_v29, %v7347_v26  ;;  %v7442_v32 = vpop.f32.mrb[23].mxu1 }
 0x12b   : > { %v10101_v33 = vadd.f32 %v7440_v27, %v7346_v24  ;;  %v7443_v35 = vadd.f32 %v7442_v32, %v7441_v28  ;;  %4734 = vmatmul.mubr.bf16.gmra.mrb[128].mxu0 %v9019_v18  ;;  %v9045_v18 = vld [vmem:[%s9649_s12 + $0x7b8] ss:$108 sps:$4 sm:$0xff]   ;;  %v9054_v24 = vld [vmem:[%s9649_s12 + $0x89c] ss:$108 sps:$4 sm:$0xff]  }
 0x12c   : > { %4870 = vmatmul.mubr.bf16.gmra.mrb[128].mxu1 %v9022_v20  ;;  %4741 = vmatprep.mubr.bf16.mxu0 %v9025_v21  ;;  %v9048_v20 = vld [vmem:[%s9649_s12 + $0x7c0] ss:$108 sps:$4 sm:$0xff]  }
 0x12d   : > { %v10103_v36 = vadd.f32 %v7443_v35, %v7349_v31  ;;  %4877 = vmatprep.mubr.bf16.mxu1 %v9028_v30  ;;  %v9050_v21 = vld [vmem:[%s9649_s12 + $0x894] ss:$108 sps:$4 sm:$0xff]  }
 0x12e   : > { %v7350_v38 = vpop.f32.mrb[24].mxu0 }
 0x12f   : > { %v7444_v42 = vpop.f32.mrb[24].mxu1  ;;  %v7351_v43 = vpop.f32.mrb[25].mxu0 }
 0x130   : > { %v7352_v44 = vadd.f32 %v7351_v43, %v7350_v38  ;;  %v7445_v45 = vpop.f32.mrb[25].mxu1  ;;  %v7353_v47 = vpop.f32.mrb[26].mxu0  ;;  %v9059_v43 = vld [vmem:[%s9649_s12 + $0x96c] ss:$108 sps:$4 sm:$0xff]  }
 0x131   : > { %v7446_v48 = vadd.f32 %v7445_v45, %v7444_v42  ;;  %v7447_v49 = vpop.f32.mrb[26].mxu1  ;;  %v7354_v50 = vpop.f32.mrb[27].mxu0  ;;  %v9056_v42 = vld [vmem:[%s9649_s12 + $0x898] ss:$108 sps:$4 sm:$0xff]  }
 0x132   : > { %v7355_v53 = vadd.f32 %v7354_v50, %v7353_v47  ;;  %v7448_v54 = vpop.f32.mrb[27].mxu1 }
 0x133   : > { %v10109_v55 = vadd.f32 %v7446_v48, %v7352_v44  ;;  %v7449_v56 = vadd.f32 %v7448_v54, %v7447_v49  ;;  %4742 = vmatmul.mubr.bf16.gmra.mrb[132].mxu0 %v9027_v37  ;;  %v9062_v54 = vld [vmem:[%s9649_s12 + $0x974] ss:$108 sps:$4 sm:$0xff]  }
 0x134   : > { %4878 = vmatmul.mubr.bf16.gmra.mrb[132].mxu1 %v9031_v39  ;;  %4749 = vmatprep.mubr.bf16.mxu0 %v9033_v41  ;;  %v9053_v39 = vld [vmem:[%s9649_s12 + $0x890] ss:$108 sps:$4 sm:$0xff]  }
 0x135   : > { %v10111_v57 = vadd.f32 %v7449_v56, %v7355_v53  ;;  %4885 = vmatprep.mubr.bf16.mxu1 %v9036_v51 }
 0x136   : > { %v7356_v60 = vpop.f32.mrb[28].mxu0 }
 0x137   : > { %v7450_v0 = vpop.f32.mrb[28].mxu1  ;;  %v7357_v1 = vpop.f32.mrb[29].mxu0 }
 0x138   : > { %v7358_v2 = vadd.f32 %v7357_v1, %v7356_v60  ;;  %v7451_v3 = vpop.f32.mrb[29].mxu1  ;;  %v7359_v4 = vpop.f32.mrb[30].mxu0 }
 0x139   : > { %v7452_v5 = vadd.f32 %v7451_v3, %v7450_v0  ;;  %v7453_v6 = vpop.f32.mrb[30].mxu1  ;;  %v7360_v7 = vpop.f32.mrb[31].mxu0  ;;  %v645_v0 = vld [vmem:[%s9649_s12 + $0xa48] sm:$0xff] }
 0x13a   : > { %v7361_v10 = vadd.f32 %v7360_v7, %v7359_v4  ;;  %v7454_v11 = vpop.f32.mrb[31].mxu1  ;;  %v9064_v4 = vld [vmem:[%s9649_s12 + $0x970] ss:$108 sps:$4 sm:$0xff]  }
 0x13b   : > { %v10117_v12 = vadd.f32 %v7452_v5, %v7358_v2  ;;  %v7455_v13 = vadd.f32 %v7454_v11, %v7453_v6  ;;  %4750 = vmatmul.mubr.bf16.gmra.mrb[136].mxu0 %v9035_v58  ;;  %v9061_v2 = vld [vmem:[%s9649_s12 + $0x968] ss:$108 sps:$4 sm:$0xff]  }
 0x13c   : > { %4886 = vmatmul.mubr.bf16.gmra.mrb[136].mxu1 %v9039_v62  ;;  %4757 = vmatprep.mubr.bf16.mxu0 %v9042_v63  ;;  %v644_v63 = vld [vmem:[%s9649_s12 + $0xa40] sm:$0xff] }
 0x13d   : > { %v10119_v16 = vadd.f32 %v7455_v13, %v7361_v10  ;;  %4893 = vmatprep.mubr.bf16.mxu1 %v9046_v9  ;;  %v6880_v11 = vcombine.high %v644_v63, %v644_v63 }
 0x13e   : > { %v7362_v19 = vpop.f32.mrb[32].mxu0 }
 0x13f   : > { %v7456_v22 = vpop.f32.mrb[32].mxu1  ;;  %v7363_v23 = vpop.f32.mrb[33].mxu0 }
 0x140   : > { %v7364_v25 = vadd.f32 %v7363_v23, %v7362_v19  ;;  %v7457_v26 = vpop.f32.mrb[33].mxu1  ;;  %v7365_v27 = vpop.f32.mrb[34].mxu0 }
 0x141   : > { %v7458_v28 = vadd.f32 %v7457_v26, %v7456_v22  ;;  %v7459_v29 = vpop.f32.mrb[34].mxu1  ;;  %v7366_v30 = vpop.f32.mrb[35].mxu0 }
 0x142   : > { %v7367_v31 = vadd.f32 %v7366_v30, %v7365_v27  ;;  %v7460_v32 = vpop.f32.mrb[35].mxu1  ;;  %v9075_v27 = vld [vmem:[%s9649_s12 + $0x34] ss:$108 sps:$4 sm:$0xff]   ;;  %v6879_v30 = vcombine.low %v644_v63, %v644_v63  ;;  %v9083_v63 = vld [vmem:[%s9649_s12 + $0x10c] ss:$108 sps:$4 sm:$0xff]  }
 0x143   : > { %v10125_v35 = vadd.f32 %v7458_v28, %v7364_v25  ;;  %v7461_v37 = vadd.f32 %v7460_v32, %v7459_v29  ;;  %4758 = vmatmul.mubr.bf16.gmra.mrb[140].mxu0 %v9045_v18 }
 0x144   : > { %4894 = vmatmul.mubr.bf16.gmra.mrb[140].mxu1 %v9048_v20  ;;  %4765 = vmatprep.mubr.bf16.mxu0 %v9050_v21  ;;  %v6882_v20 = vcombine.high %v645_v0, %v645_v0 }
 0x145   : > { %v10127_v38 = vadd.f32 %v7461_v37, %v7367_v31  ;;  %4901 = vmatprep.mubr.bf16.mxu1 %v9054_v24 }
 0x146   : > { %v7368_v41 = vpop.f32.mrb[36].mxu0 }
 0x147   : > { %v7462_v44 = vpop.f32.mrb[36].mxu1  ;;  %v7369_v45 = vpop.f32.mrb[37].mxu0 }
 0x148   : > { %v7370_v47 = vadd.f32 %v7369_v45, %v7368_v41  ;;  %v7463_v48 = vpop.f32.mrb[37].mxu1  ;;  %v7371_v49 = vpop.f32.mrb[38].mxu0 }
 0x149   : > { %v7464_v50 = vadd.f32 %v7463_v48, %v7462_v44  ;;  %v7465_v51 = vpop.f32.mrb[38].mxu1  ;;  %v7372_v53 = vpop.f32.mrb[39].mxu0  ;;  %v9079_v44 = vld [vmem:[%s9649_s12 + $0x3c] ss:$108 sps:$4 sm:$0xff]  }
 0x14a   : > { %v7373_v56 = vadd.f32 %v7372_v53, %v7371_v49  ;;  %v7466_v58 = vpop.f32.mrb[39].mxu1 }
 0x14b   : > { %v10133_v60 = vadd.f32 %v7464_v50, %v7370_v47  ;;  %v7467_v62 = vadd.f32 %v7466_v58, %v7465_v51  ;;  %4766 = vmatmul.mubr.bf16.gmra.mrb[144].mxu0 %v9053_v39  ;;  %v6881_v39 = vcombine.low %v645_v0, %v645_v0  ;;  %v9073_v51 = vld [vmem:[%s9649_s12 + $0x30] ss:$108 sps:$4 sm:$0xff]  }
 0x14c   : > { %4902 = vmatmul.mubr.bf16.gmra.mrb[144].mxu1 %v9056_v42  ;;  %4773 = vmatprep.mubr.bf16.mxu0 %v9059_v43 }
 0x14d   : > { %v10137_v1 = vadd.f32 %v7467_v62, %v7373_v56  ;;  %4909 = vmatprep.mubr.bf16.mxu1 %v9062_v54  ;;  %v9077_v54 = vld [vmem:[%s9649_s12 + $0x38] ss:$108 sps:$4 sm:$0xff]  }
 0x14e   : > { %v7374_v3 = vpop.f32.mrb[40].mxu0  ;;  %v9080_v56 = vld [vmem:[%s11152_s1 + $0x400] sm:$0xff]  }
 0x14f   : > { %v7468_v5 = vpop.f32.mrb[40].mxu1  ;;  %v7375_v6 = vpop.f32.mrb[41].mxu0 }
 0x150   : > { %v7376_v7 = vadd.f32 %v7375_v6, %v7374_v3  ;;  %v7469_v9 = vpop.f32.mrb[41].mxu1  ;;  %v7377_v10 = vpop.f32.mrb[42].mxu0 }
 0x151   : > { %v7470_v13 = vadd.f32 %v7469_v9, %v7468_v5  ;;  %v7471_v18 = vpop.f32.mrb[42].mxu1  ;;  %v7378_v19 = vpop.f32.mrb[43].mxu0  ;;  %v9082_v9 = vld [vmem:[%s11152_s1 + $0x480] sm:$0xff]  }
 0x152   : > { %v7379_v21 = vadd.f32 %v7378_v19, %v7377_v10  ;;  %v7472_v22 = vpop.f32.mrb[43].mxu1  ;;  %v9089_v10 = vld [vmem:[%s11152_s1 + $0x448] sm:$0xff]  }
 0x153   : > { %v10141_v23 = vadd.f32 %v7470_v13, %v7376_v7  ;;  %v7473_v24 = vadd.f32 %v7472_v22, %v7471_v18  ;;  %4774 = vmatmul.mubr.bf16.gmra.mrb[148].mxu0 %v9061_v2  ;;  %v9090_v13 = vld [vmem:[%s11152_s1 + $0x408] sm:$0xff]  }
 0x154   : > { %4910 = vmatmul.mubr.bf16.gmra.mrb[148].mxu1 %v9064_v4  ;;  %4781 = vmatprep.mubr.bf16.mxu0 %v6880_v11  ;;  %v9086_v4 = vld [vmem:[%s9649_s12 + $0x114] ss:$108 sps:$4 sm:$0xff]   ;;  %v9097_v18 = vld [vmem:[%s11152_s1 + $0x4c8] sm:$0xff]  }
 0x155   : > { %v10143_v25 = vadd.f32 %v7473_v24, %v7379_v21  ;;  %4917 = vmatprep.mubr.bf16.mxu1 %v6882_v20  ;;  %v9098_v20 = vld [vmem:[%s11152_s1 + $0x488] sm:$0xff]   ;;  %v9105_v21 = vld [vmem:[%s11152_s1 + $0x450] sm:$0xff]  }
 0x156   : > { %v7380_v26 = vpop.f32.mrb[44].mxu0  ;;  %v9085_v22 = vld [vmem:[%s9649_s12 + $0x108] ss:$108 sps:$4 sm:$0xff]  }
 0x157   : > { %v7474_v28 = vpop.f32.mrb[44].mxu1  ;;  %v7381_v29 = vpop.f32.mrb[45].mxu0 }
 0x158   : > { %v7382_v31 = vadd.f32 %v7381_v29, %v7380_v26  ;;  %v7475_v32 = vpop.f32.mrb[45].mxu1  ;;  %v7383_v37 = vpop.f32.mrb[46].mxu0  ;;  %v9088_v26 = vld [vmem:[%s9649_s12 + $0x110] ss:$108 sps:$4 sm:$0xff]  }
 0x159   : > { %v7476_v41 = vadd.f32 %v7475_v32, %v7474_v28  ;;  %v7477_v42 = vpop.f32.mrb[46].mxu1  ;;  %v7384_v43 = vpop.f32.mrb[47].mxu0  ;;  %v9109_v28 = vld [vmem:[%s11152_s1 + $0x4d0] sm:$0xff]  }
 0x15a   : > { %v7385_v45 = vadd.f32 %v7384_v43, %v7383_v37  ;;  %v7478_v47 = vpop.f32.mrb[47].mxu1  ;;  %v9106_v32 = vld [vmem:[%s11152_s1 + $0x410] sm:$0xff]  }
 0x15b   : > { %v10147_v48 = vadd.f32 %v7476_v41, %v7382_v31  ;;  %v7479_v49 = vadd.f32 %v7478_v47, %v7477_v42  ;;  %4782 = vmatmul.mubr.bf16.gmra.mrb[152].mxu0 %v6879_v30  ;;  %v9094_v31 = vld [vmem:[%s9649_s12 + $0x1ec] ss:$108 sps:$4 sm:$0xff]  }
 0x15c   : > { %4918 = vmatmul.mubr.bf16.gmra.mrb[152].mxu1 %v6881_v39  ;;  %4957 = vmatprep.mubr.bf16.mxu0 %v9075_v27  ;;  %v9091_v27 = vld [vmem:[%s9649_s12 + $0x1e4] ss:$108 sps:$4 sm:$0xff]  }
 0x15d   : > { %v10149_v50 = vadd.f32 %v7479_v49, %v7385_v45  ;;  %5093 = vmatprep.mubr.bf16.mxu1 %v9079_v44  ;;  %v9111_v45 = vld [vmem:[%s11152_s1 + $0x490] sm:$0xff]  }
 0x15e   : > { %v7386_v53 = vpop.f32.mrb[48].mxu0 }
 0x15f   : > { %v7480_v58 = vpop.f32.mrb[48].mxu1  ;;  %v7387_v62 = vpop.f32.mrb[49].mxu0 }
 0x160   : > { %v7388_v0 = vadd.f32 %v7387_v62, %v7386_v53  ;;  %v7481_v2 = vpop.f32.mrb[49].mxu1  ;;  %v7389_v3 = vpop.f32.mrb[50].mxu0  ;;  %v9117_v53 = vld [vmem:[%s11152_s1 + $0x458] sm:$0xff]  }
 0x161   : > { %v7482_v5 = vadd.f32 %v7481_v2, %v7480_v58  ;;  %v7390_v6 = vpop.f32.mrb[51].mxu0  ;;  %v7483_v7 = vpop.f32.mrb[50].mxu1  ;;  %v9123_v58 = vld [vmem:[%s11152_s1 + $0x4d8] sm:$0xff]   ;;  %v9093_v2 = vld [vmem:[%s9649_s12 + $0x1e0] ss:$108 sps:$4 sm:$0xff]  }
 0x162   : > { %v7484_v11 = vpop.f32.mrb[51].mxu1  ;;  %v9138_v6 = vld [vmem:[%s11152_s1 + $0x4e0] sm:$0xff]  }
 0x163   : > { %v10170_v19 = vadd.f32 %v7482_v5, %v7388_v0  ;;  %4958 = vmatmul.mubr.bf16.vlgmr.msra.gmra.mrb[156].mxu0 %v9073_v51  ;;  %v9131_v0 = vld [vmem:[%s11152_s1 + $0x460] sm:$0xff]   ;;  %v9099_v5 = vld [vmem:[%s9649_s12 + $0x2bc] ss:$108 sps:$4 sm:$0xff]  }
 0x164   : > { %8051 = vmatpush3.bf16.msra.mxu0 %v9080_v56  ;;  %5094 = vmatmul.mubr.bf16.vlgmr.msra.gmra.mrb[156].mxu1 %v9077_v54  ;;  %v9119_v56 = vld [vmem:[%s11152_s1 + $0x418] sm:$0xff]  }
 0x165   : > { %8145 = vmatpush3.bf16.msra.mxu1 %v9082_v9  ;;  %4965 = vmatprep.mubr.bf16.mxu0 %v9083_v63  ;;  %v9124_v63 = vld [vmem:[%s11152_s1 + $0x498] sm:$0xff]  }
 0x166   : > { %v7502_v24 = vpop.f32.mrb[52].mxu0  ;;  %5101 = vmatprep.mubr.bf16.mxu1 %v9086_v4  ;;  %8052 = vmatprep.subr.bf16.mxu0 %v9089_v10  ;;  %v9102_v10 = vld [vmem:[%s9649_s12 + $0x2c4] ss:$108 sps:$4 sm:$0xff]  }
 0x167   : > { %v7503_v29 = vpop.f32.mrb[53].mxu0  ;;  %v7596_v30 = vpop.f32.mrb[52].mxu1  ;;  %8146 = vmatprep.subr.bf16.mxu1 %v9097_v18 }
 0x168   : > { %v7504_v37 = vadd.f32 %v7503_v29, %v7502_v24  ;;  %v7505_v39 = vpop.f32.mrb[54].mxu0  ;;  %v7597_v41 = vpop.f32.mrb[53].mxu1  ;;  %8053 = vmatpush3.bf16.msra.mxu0 %v9090_v13  ;;  %v9132_v24 = vld [vmem:[%s11152_s1 + $0x420] sm:$0xff]  }
 0x169   : > { %v7506_v42 = vpop.f32.mrb[55].mxu0  ;;  %v7598_v43 = vadd.f32 %v7597_v41, %v7596_v30  ;;  %v7599_v44 = vpop.f32.mrb[54].mxu1  ;;  %8147 = vmatpush3.bf16.msra.mxu1 %v9098_v20  ;;  %8054 = vmatprep.subr.bf16.mxu0 %v9105_v21  ;;  %v9146_v30 = vld [vmem:[%s11152_s1 + $0x468] sm:$0xff]   ;;  %v9157_v41 = vld [vmem:[%s11152_s1 + $0x470] sm:$0xff]  }
 0x16a   : > { %v4416_v47 = vadd.f32 %v7504_v37, %v9998_v46  ;;  %v7507_v49 = vadd.f32 %v7506_v42, %v7505_v39  ;;  %v7600_v51 = vpop.f32.mrb[55].mxu1  ;;  %8148 = vmatprep.subr.bf16.mxu1 %v9109_v28  ;;  %v9152_v39 = vld [vmem:[%s11152_s1 + $0x4a8] sm:$0xff]  }
 0x16b   : > { %v7601_v54 = vadd.f32 %v7600_v51, %v7599_v44  ;;  %4966 = vmatmul.mubr.bf16.gmra.mrb[160].mxu0 %v9085_v22 }
 0x16c   : > { %v4419_v46 = vadd.f32 %v7507_v49, %v10012_v52  ;;  %v10202_v62 = vadd.f32 %v7598_v43, %v4416_v47  ;;  %5102 = vmatmul.mubr.bf16.gmra.mrb[160].mxu1 %v9088_v26  ;;  %4973 = vmatprep.mubr.bf16.mxu0 %v9091_v27  ;;  %v9096_v52 = vld [vmem:[%s9649_s12 + $0x1e8] ss:$108 sps:$4 sm:$0xff]   ;;  %v9140_v26 = vld [vmem:[%s11152_s1 + $0x4a0] sm:$0xff]  }
 0x16d   : > { %5109 = vmatprep.mubr.bf16.mxu1 %v9094_v31  ;;  %8055 = vmatpush3.bf16.msra.mxu0 %v9106_v32  ;;  %v9148_v32 = vld [vmem:[%s11152_s1 + $0x428] sm:$0xff]   ;;  %v9101_v43 = vld [vmem:[%s9649_s12 + $0x2b8] ss:$108 sps:$4 sm:$0xff]   ;;  %v9107_v47 = vld [vmem:[%s9649_s12 + $0x394] ss:$108 sps:$4 sm:$0xff]  }
 0x16e   : > { %v10211_v3 = vadd.f32 %v7601_v54, %v4419_v46  ;;  %v7508_v4 = vpop.f32.mrb[56].mxu0  ;;  %8149 = vmatpush3.bf16.msra.mxu1 %v9111_v45  ;;  %8056 = vmatprep.subr.bf16.mxu0 %v9117_v53  ;;  %v9104_v45 = vld [vmem:[%s9649_s12 + $0x2c0] ss:$108 sps:$4 sm:$0xff]   ;;  %v9112_v54 = vld [vmem:[%s9649_s12 + $0x39c] ss:$108 sps:$4 sm:$0xff]  }
 0x16f   : > { %v7509_v7 = vpop.f32.mrb[57].mxu0  ;;  %v7602_v9 = vpop.f32.mrb[56].mxu1  ;;  %8150 = vmatprep.subr.bf16.mxu1 %v9123_v58 }
 0x170   : > { %v7510_v11 = vadd.f32 %v7509_v7, %v7508_v4  ;;  %v7511_v13 = vpop.f32.mrb[58].mxu0  ;;  %v7603_v18 = vpop.f32.mrb[57].mxu1  ;;  %v9160_v4 = vld [vmem:[%s11152_s1 + $0x430] sm:$0xff]  }
 0x171   : > { %v7512_v20 = vpop.f32.mrb[59].mxu0  ;;  %v7604_v21 = vadd.f32 %v7603_v18, %v7602_v9  ;;  %v7605_v22 = vpop.f32.mrb[58].mxu1  ;;  %8057 = vmatpush3.bf16.msra.mxu0 %v9119_v56  ;;  %v9166_v7 = vld [vmem:[%s11152_s1 + $0x4b0] sm:$0xff]   ;;  %v9173_v9 = vld [vmem:[%s11152_s1 + $0x478] sm:$0xff]  }
 0x172   : > { %v4424_v27 = vadd.f32 %v7510_v11, %v10030_v8  ;;  %v7513_v28 = vadd.f32 %v7512_v20, %v7511_v13  ;;  %v7606_v29 = vpop.f32.mrb[59].mxu1  ;;  %8151 = vmatpush3.bf16.msra.mxu1 %v9124_v63  ;;  %8058 = vmatprep.subr.bf16.mxu0 %v9131_v0  ;;  %v9149_v8 = vld [vmem:[%s11152_s1 + $0x4e8] sm:$0xff]   ;;  %v9177_v11 = vld [vmem:[%s11152_s1 + $0x4f8] sm:$0xff]   ;;  %v9184_v20 = vld [vmem:[%s11152_s1 + $0x540] sm:$0xff]  }
 0x173   : > { %v7607_v31 = vadd.f32 %v7606_v29, %v7605_v22  ;;  %4974 = vmatmul.mubr.bf16.gmra.mrb[164].mxu0 %v9093_v2  ;;  %8152 = vmatprep.subr.bf16.mxu1 %v9138_v6  ;;  %v9179_v18 = vld [vmem:[%s11152_s1 + $0x4b8] sm:$0xff]  }
 0x174   : > { %v4427_v37 = vadd.f32 %v7513_v28, %v10044_v14  ;;  %5110 = vmatmul.mubr.bf16.gmra.mrb[164].mxu1 %v9096_v52  ;;  %4981 = vmatprep.mubr.bf16.mxu0 %v9099_v5  ;;  %v10242_v42 = vadd.f32 %v7604_v21, %v4424_v27  ;;  %v9165_v14 = vld [vmem:[%s11152_s1 + $0x4f0] sm:$0xff]   ;;  %v9115_v27 = vld [vmem:[%s9649_s12 + $0x46c] ss:$108 sps:$4 sm:$0xff]  }
 0x175   : > { %5117 = vmatprep.mubr.bf16.mxu1 %v9102_v10  ;;  %8059 = vmatpush3.bf16.msra.mxu0 %v9132_v24  ;;  %v9110_v22 = vld [vmem:[%s9649_s12 + $0x390] ss:$108 sps:$4 sm:$0xff]   ;;  %v9189_v24 = vld [vmem:[%s11152_s1 + $0x5c0] sm:$0xff]  }
 0x176   : > { %v7514_v44 = vpop.f32.mrb[60].mxu0  ;;  %8153 = vmatpush3.bf16.msra.mxu1 %v9140_v26  ;;  %8060 = vmatprep.subr.bf16.mxu0 %v9146_v30  ;;  %v10250_v49 = vadd.f32 %v7607_v31, %v4427_v37  ;;  %v9114_v26 = vld [vmem:[%s9649_s12 + $0x398] ss:$108 sps:$4 sm:$0xff]  }
 0x177   : > { %v7515_v51 = vpop.f32.mrb[61].mxu0  ;;  %v7608_v53 = vpop.f32.mrb[60].mxu1  ;;  %8154 = vmatprep.subr.bf16.mxu1 %v9149_v8 }
 0x178   : > { %v7516_v56 = vadd.f32 %v7515_v51, %v7514_v44  ;;  %v7517_v58 = vpop.f32.mrb[62].mxu0  ;;  %v7609_v46 = vpop.f32.mrb[61].mxu1 }
 0x179   : > { %v7518_v63 = vpop.f32.mrb[63].mxu0  ;;  %v7610_v0 = vadd.f32 %v7609_v46, %v7608_v53  ;;  %v7611_v2 = vpop.f32.mrb[62].mxu1  ;;  %8061 = vmatpush3.bf16.msra.mxu0 %v9148_v32 }
 0x17a   : > { %v4432_v52 = vadd.f32 %v7516_v56, %v10062_v34  ;;  %v7519_v5 = vadd.f32 %v7518_v63, %v7517_v58  ;;  %v7612_v6 = vpop.f32.mrb[63].mxu1  ;;  %8155 = vmatpush3.bf16.msra.mxu1 %v9152_v39  ;;  %8062 = vmatprep.subr.bf16.mxu0 %v9157_v41  ;;  %v9174_v34 = vld [vmem:[%s11152_s1 + $0x438] sm:$0xff]  }
 0x17b   : > { %v7613_v10 = vadd.f32 %v7612_v6, %v7611_v2  ;;  %4982 = vmatmul.mubr.bf16.gmra.mrb[168].mxu0 %v9101_v43  ;;  %8156 = vmatprep.subr.bf16.mxu1 %v9165_v14  ;;  %v9120_v43 = vld [vmem:[%s9649_s12 + $0x474] ss:$108 sps:$4 sm:$0xff]   ;;  %v9122_v58 = vld [vmem:[%s9649_s12 + $0x470] ss:$108 sps:$4 sm:$0xff]  }
 0x17c   : > { %v4435_v13 = vadd.f32 %v7519_v5, %v10076_v40  ;;  %5118 = vmatmul.mubr.bf16.gmra.mrb[168].mxu1 %v9104_v45  ;;  %4989 = vmatprep.mubr.bf16.mxu0 %v9107_v47  ;;  %v10276_v21 = vadd.f32 %v7610_v0, %v4432_v52 }
 0x17d   : > { %5125 = vmatprep.mubr.bf16.mxu1 %v9112_v54  ;;  %8063 = vmatpush3.bf16.msra.mxu0 %v9160_v4  ;;  %v9118_v54 = vld [vmem:[%s9649_s12 + $0x468] ss:$108 sps:$4 sm:$0xff]  }
 0x17e   : > { %v7520_v40 = vpop.f32.mrb[64].mxu0  ;;  %8157 = vmatpush3.bf16.msra.mxu1 %v9166_v7  ;;  %8064 = vmatprep.subr.bf16.mxu0 %v9173_v9  ;;  %v10284_v28 = vadd.f32 %v7613_v10, %v4435_v13  ;;  %v9128_v7 = vld [vmem:[%s9649_s12 + $0x54c] ss:$108 sps:$4 sm:$0xff]  }
 0x17f   : > { %v7521_v29 = vpop.f32.mrb[65].mxu0  ;;  %v7614_v30 = vpop.f32.mrb[64].mxu1  ;;  %8158 = vmatprep.subr.bf16.mxu1 %v9177_v11 }
 0x180   : > { %v7522_v31 = vadd.f32 %v7521_v29, %v7520_v40  ;;  %v7523_v32 = vpop.f32.mrb[66].mxu0  ;;  %v7615_v8 = vpop.f32.mrb[65].mxu1  ;;  %v9133_v40 = vld [vmem:[%s9649_s12 + $0x61c] ss:$108 sps:$4 sm:$0xff]  }
 0x181   : > { %v7524_v37 = vpop.f32.mrb[67].mxu0  ;;  %v7616_v39 = vadd.f32 %v7615_v8, %v7614_v30  ;;  %v7617_v41 = vpop.f32.mrb[66].mxu1  ;;  %8065 = vmatpush3.bf16.msra.mxu0 %v9174_v34 }
 0x182   : > { %v4440_v44 = vadd.f32 %v7522_v31, %v10085_v59  ;;  %v7525_v45 = vadd.f32 %v7524_v37, %v7523_v32  ;;  %v7618_v47 = vpop.f32.mrb[67].mxu1  ;;  %8159 = vmatpush3.bf16.msra.mxu1 %v9179_v18  ;;  %8238 = vmatprep.subr.bf16.mxu0 %v9184_v20  ;;  %v9125_v59 = vld [vmem:[%s9649_s12 + $0x544] ss:$108 sps:$4 sm:$0xff]   ;;  %v9127_v20 = vld [vmem:[%s9649_s12 + $0x540] ss:$108 sps:$4 sm:$0xff]  }
 0x183   : > { %v7619_v14 = vadd.f32 %v7618_v47, %v7617_v41  ;;  %4990 = vmatmul.mubr.bf16.gmra.mrb[172].mxu0 %v9110_v22  ;;  %8332 = vmatprep.subr.bf16.mxu1 %v9189_v24  ;;  %v9130_v24 = vld [vmem:[%s9649_s12 + $0x548] ss:$108 sps:$4 sm:$0xff]   ;;  %v9136_v37 = vld [vmem:[%s9649_s12 + $0x624] ss:$108 sps:$4 sm:$0xff]  }
 0x184   : > { %v4443_v51 = vadd.f32 %v7525_v45, %v10087_v61  ;;  %5126 = vmatmul.mubr.bf16.gmra.mrb[172].mxu1 %v9114_v26  ;;  %4997 = vmatprep.mubr.bf16.mxu0 %v9115_v27  ;;  %v10289_v53 = vadd.f32 %v7616_v39, %v4440_v44 }
 0x185   : > { %5133 = vmatprep.mubr.bf16.mxu1 %v9120_v43 }
 0x186   : > { %v7526_v56 = vpop.f32.mrb[68].mxu0  ;;  %v10294_v46 = vadd.f32 %v7619_v14, %v4443_v51  ;;  %v9135_v14 = vld [vmem:[%s9649_s12 + $0x618] ss:$108 sps:$4 sm:$0xff]  }
 0x187   : > { %v7527_v63 = vpop.f32.mrb[69].mxu0  ;;  %v7620_v0 = vpop.f32.mrb[68].mxu1 }
 0x188   : > { %v7528_v2 = vadd.f32 %v7527_v63, %v7526_v56  ;;  %v7529_v4 = vpop.f32.mrb[70].mxu0  ;;  %v7621_v52 = vpop.f32.mrb[69].mxu1  ;;  %v9141_v56 = vld [vmem:[%s9649_s12 + $0x6f4] ss:$108 sps:$4 sm:$0xff]  }
 0x189   : > { %v7530_v5 = vpop.f32.mrb[71].mxu0  ;;  %v7622_v61 = vadd.f32 %v7621_v52, %v7620_v0  ;;  %v7623_v6 = vpop.f32.mrb[70].mxu1 }
 0x18a   : > { %v4448_v9 = vadd.f32 %v7528_v2, %v10093_v15  ;;  %v7531_v10 = vadd.f32 %v7530_v5, %v7529_v4  ;;  %v7624_v34 = vpop.f32.mrb[71].mxu1  ;;  %v9144_v5 = vld [vmem:[%s9649_s12 + $0x6fc] ss:$108 sps:$4 sm:$0xff]  }
 0x18b   : > { %v7625_v11 = vadd.f32 %v7624_v34, %v7623_v6  ;;  %4998 = vmatmul.mubr.bf16.gmra.mrb[176].mxu0 %v9118_v54  ;;  %v9139_v54 = vld [vmem:[%s9649_s12 + $0x620] ss:$108 sps:$4 sm:$0xff]  }
 0x18c   : > { %v4451_v13 = vadd.f32 %v7531_v10, %v10095_v17  ;;  %5134 = vmatmul.mubr.bf16.gmra.mrb[176].mxu1 %v9122_v58  ;;  %5005 = vmatprep.mubr.bf16.mxu0 %v9125_v59  ;;  %v10299_v18 = vadd.f32 %v7622_v61, %v4448_v9 }
 0x18d   : > { %5141 = vmatprep.mubr.bf16.mxu1 %v9128_v7 }
 0x18e   : > { %v7532_v22 = vpop.f32.mrb[72].mxu0  ;;  %v10304_v26 = vadd.f32 %v7625_v11, %v4451_v13  ;;  %v9143_v11 = vld [vmem:[%s9649_s12 + $0x6f0] ss:$108 sps:$4 sm:$0xff]  }
 0x18f   : > { %v7533_v27 = vpop.f32.mrb[73].mxu0  ;;  %v7626_v15 = vpop.f32.mrb[72].mxu1 }
 0x190   : > { %v7534_v29 = vadd.f32 %v7533_v27, %v7532_v22  ;;  %v7535_v30 = vpop.f32.mrb[74].mxu0  ;;  %v7627_v31 = vpop.f32.mrb[73].mxu1  ;;  %v9150_v22 = vld [vmem:[%s9649_s12 + $0x7cc] ss:$108 sps:$4 sm:$0xff]  }
 0x191   : > { %v7536_v32 = vpop.f32.mrb[75].mxu0  ;;  %v7628_v17 = vadd.f32 %v7627_v31, %v7626_v15  ;;  %v7629_v8 = vpop.f32.mrb[74].mxu1 }
 0x192   : > { %v4456_v39 = vadd.f32 %v7534_v29, %v10101_v33  ;;  %v7537_v41 = vadd.f32 %v7536_v32, %v7535_v30  ;;  %v7630_v43 = vpop.f32.mrb[75].mxu1  ;;  %v9154_v32 = vld [vmem:[%s9649_s12 + $0x7d4] ss:$108 sps:$4 sm:$0xff]  }
 0x193   : > { %v7631_v44 = vadd.f32 %v7630_v43, %v7629_v8  ;;  %5006 = vmatmul.mubr.bf16.gmra.mrb[180].mxu0 %v9127_v20  ;;  %v9147_v20 = vld [vmem:[%s9649_s12 + $0x6f8] ss:$108 sps:$4 sm:$0xff]  }
 0x194   : > { %v4459_v45 = vadd.f32 %v7537_v41, %v10103_v36  ;;  %5142 = vmatmul.mubr.bf16.gmra.mrb[180].mxu1 %v9130_v24  ;;  %5013 = vmatprep.mubr.bf16.mxu0 %v9133_v40  ;;  %v10309_v47 = vadd.f32 %v7628_v17, %v4456_v39 }
 0x195   : > { %5149 = vmatprep.mubr.bf16.mxu1 %v9136_v37 }
 0x196   : > { %v7538_v51 = vpop.f32.mrb[76].mxu0  ;;  %v10314_v58 = vadd.f32 %v7631_v44, %v4459_v45 }
 0x197   : > { %v7539_v59 = vpop.f32.mrb[77].mxu0  ;;  %v7632_v33 = vpop.f32.mrb[76].mxu1 }
 0x198   : > { %v7540_v63 = vadd.f32 %v7539_v59, %v7538_v51  ;;  %v7541_v0 = vpop.f32.mrb[78].mxu0  ;;  %v7633_v2 = vpop.f32.mrb[77].mxu1 }
 0x199   : > { %v7542_v4 = vpop.f32.mrb[79].mxu0  ;;  %v7634_v36 = vadd.f32 %v7633_v2, %v7632_v33  ;;  %v7635_v52 = vpop.f32.mrb[78].mxu1  ;;  %v9156_v33 = vld [vmem:[%s9649_s12 + $0x7d0] ss:$108 sps:$4 sm:$0xff]  }
 0x19a   : > { %v4464_v61 = vadd.f32 %v7540_v63, %v10109_v55  ;;  %v7543_v6 = vadd.f32 %v7542_v4, %v7541_v0  ;;  %v7636_v7 = vpop.f32.mrb[79].mxu1  ;;  %v9158_v63 = vld [vmem:[%s9649_s12 + $0x8a4] ss:$108 sps:$4 sm:$0xff]   ;;  %v9162_v4 = vld [vmem:[%s9649_s12 + $0x8ac] ss:$108 sps:$4 sm:$0xff]  }
 0x19b   : > { %v7637_v9 = vadd.f32 %v7636_v7, %v7635_v52  ;;  %5014 = vmatmul.mubr.bf16.gmra.mrb[184].mxu0 %v9135_v14 }
 0x19c   : > { %v4467_v10 = vadd.f32 %v7543_v6, %v10111_v57  ;;  %5150 = vmatmul.mubr.bf16.gmra.mrb[184].mxu1 %v9139_v54  ;;  %5021 = vmatprep.mubr.bf16.mxu0 %v9141_v56  ;;  %v10319_v34 = vadd.f32 %v7634_v36, %v4464_v61 }
 0x19d   : > { %5157 = vmatprep.mubr.bf16.mxu1 %v9144_v5 }
 0x19e   : > { %v7544_v13 = vpop.f32.mrb[80].mxu0  ;;  %v10324_v24 = vadd.f32 %v7637_v9, %v4467_v10 }
 0x19f   : > { %v7545_v40 = vpop.f32.mrb[81].mxu0  ;;  %v7638_v55 = vpop.f32.mrb[80].mxu1 }
 0x1a0   : > { %v7546_v27 = vadd.f32 %v7545_v40, %v7544_v13  ;;  %v7547_v15 = vpop.f32.mrb[82].mxu0  ;;  %v7639_v29 = vpop.f32.mrb[81].mxu1 }
 0x1a1   : > { %v7548_v30 = vpop.f32.mrb[83].mxu0  ;;  %v7640_v31 = vadd.f32 %v7639_v29, %v7638_v55  ;;  %v7641_v57 = vpop.f32.mrb[82].mxu1  ;;  %v9164_v55 = vld [vmem:[%s9649_s12 + $0x8a8] ss:$108 sps:$4 sm:$0xff]  }
 0x1a2   : > { %v4472_v17 = vadd.f32 %v7546_v27, %v10117_v12  ;;  %v7549_v8 = vadd.f32 %v7548_v30, %v7547_v15  ;;  %v7642_v37 = vpop.f32.mrb[83].mxu1  ;;  %v9153_v12 = vld [vmem:[%s9649_s12 + $0x7c8] ss:$108 sps:$4 sm:$0xff]   ;;  %v9170_v30 = vld [vmem:[%s9649_s12 + $0x984] ss:$108 sps:$4 sm:$0xff]  }
 0x1a3   : > { %v7643_v39 = vadd.f32 %v7642_v37, %v7641_v57  ;;  %5022 = vmatmul.mubr.bf16.gmra.mrb[188].mxu0 %v9143_v11  ;;  %v9167_v27 = vld [vmem:[%s9649_s12 + $0x97c] ss:$108 sps:$4 sm:$0xff]  }
 0x1a4   : > { %v4475_v41 = vadd.f32 %v7549_v8, %v10119_v16  ;;  %5158 = vmatmul.mubr.bf16.gmra.mrb[188].mxu1 %v9147_v20  ;;  %5029 = vmatprep.mubr.bf16.mxu0 %v9150_v22  ;;  %v10329_v43 = vadd.f32 %v7640_v31, %v4472_v17 }
 0x1a5   : > { %5165 = vmatprep.mubr.bf16.mxu1 %v9154_v32 }
 0x1a6   : > { %v7550_v44 = vpop.f32.mrb[84].mxu0  ;;  %v10331_v45 = vadd.f32 %v7643_v39, %v4475_v41  ;;  %v646_v39 = vld [vmem:[%s9649_s12 + $0xa50] sm:$0xff] }
 0x1a7   : > { %v7551_v14 = vpop.f32.mrb[85].mxu0  ;;  %v7644_v51 = vpop.f32.mrb[84].mxu1 }
 0x1a8   : > { %v7552_v54 = vadd.f32 %v7551_v14, %v7550_v44  ;;  %v7553_v56 = vpop.f32.mrb[86].mxu0  ;;  %v7645_v59 = vpop.f32.mrb[85].mxu1  ;;  %v647_v44 = vld [vmem:[%s9649_s12 + $0xa58] sm:$0xff] }
 0x1a9   : > { %v7554_v0 = vpop.f32.mrb[87].mxu0  ;;  %v7646_v2 = vadd.f32 %v7645_v59, %v7644_v51  ;;  %v7647_v16 = vpop.f32.mrb[86].mxu1 }
 0x1aa   : > { %v4480_v36 = vadd.f32 %v7552_v54, %v10125_v35  ;;  %v7555_v52 = vadd.f32 %v7554_v0, %v7553_v56  ;;  %v7648_v5 = vpop.f32.mrb[87].mxu1  ;;  %v9161_v35 = vld [vmem:[%s9649_s12 + $0x8a0] ss:$108 sps:$4 sm:$0xff]  }
 0x1ab   : > { %v7649_v61 = vadd.f32 %v7648_v5, %v7647_v16  ;;  %5030 = vmatmul.mubr.bf16.gmra.mrb[192].mxu0 %v9153_v12  ;;  %v9169_v12 = vld [vmem:[%s9649_s12 + $0x978] ss:$108 sps:$4 sm:$0xff]   ;;  %v6886_v16 = vcombine.high %v647_v44, %v647_v44 }
 0x1ac   : > { %v4483_v6 = vadd.f32 %v7555_v52, %v10127_v38  ;;  %5166 = vmatmul.mubr.bf16.gmra.mrb[192].mxu1 %v9156_v33  ;;  %5037 = vmatprep.mubr.bf16.mxu0 %v9158_v63  ;;  %v10339_v7 = vadd.f32 %v7646_v2, %v4480_v36  ;;  %v9172_v33 = vld [vmem:[%s9649_s12 + $0x980] ss:$108 sps:$4 sm:$0xff]   ;;  %v6884_v63 = vcombine.high %v646_v39, %v646_v39 }
 0x1ad   : > { %5173 = vmatprep.mubr.bf16.mxu1 %v9162_v4 }
 0x1ae   : > { %v7556_v9 = vpop.f32.mrb[88].mxu0  ;;  %v10341_v10 = vadd.f32 %v7649_v61, %v4483_v6 }
 0x1af   : > { %v7557_v11 = vpop.f32.mrb[89].mxu0  ;;  %v7650_v13 = vpop.f32.mrb[88].mxu1 }
 0x1b0   : > { %v7558_v20 = vadd.f32 %v7557_v11, %v7556_v9  ;;  %v7559_v22 = vpop.f32.mrb[90].mxu0  ;;  %v7651_v40 = vpop.f32.mrb[89].mxu1 }
 0x1b1   : > { %v7560_v15 = vpop.f32.mrb[91].mxu0  ;;  %v7652_v38 = vadd.f32 %v7651_v40, %v7650_v13  ;;  %v7653_v29 = vpop.f32.mrb[90].mxu1 }
 0x1b2   : > { %v4488_v31 = vadd.f32 %v7558_v20, %v10133_v60  ;;  %v7561_v57 = vadd.f32 %v7560_v15, %v7559_v22  ;;  %v7654_v32 = vpop.f32.mrb[91].mxu1  ;;  %v6883_v20 = vcombine.low %v646_v39, %v646_v39 }
 0x1b3   : > { %v7655_v17 = vadd.f32 %v7654_v32, %v7653_v29  ;;  %5038 = vmatmul.mubr.bf16.gmra.mrb[196].mxu0 %v9161_v35  ;;  %v9187_v29 = vld [vmem:[%s9649_s12 + $0x4c] ss:$108 sps:$4 sm:$0xff]  }
 0x1b4   : > { %v4491_v8 = vadd.f32 %v7561_v57, %v10137_v1  ;;  %5174 = vmatmul.mubr.bf16.gmra.mrb[196].mxu1 %v9164_v55  ;;  %5045 = vmatprep.mubr.bf16.mxu0 %v9167_v27  ;;  %v10349_v37 = vadd.f32 %v7652_v38, %v4488_v31  ;;  %v6885_v55 = vcombine.low %v647_v44, %v647_v44  ;;  %v9183_v27 = vld [vmem:[%s9649_s12 + $0x44] ss:$108 sps:$4 sm:$0xff]  }
 0x1b5   : > { %5181 = vmatprep.mubr.bf16.mxu1 %v9170_v30 }
 0x1b6   : > { %v7562_v41 = vpop.f32.mrb[92].mxu0  ;;  %v10353_v14 = vadd.f32 %v7655_v17, %v4491_v8 }
 0x1b7   : > { %v7563_v51 = vpop.f32.mrb[93].mxu0  ;;  %v7656_v60 = vpop.f32.mrb[92].mxu1 }
 0x1b8   : > { %v7564_v54 = vadd.f32 %v7563_v51, %v7562_v41  ;;  %v7565_v56 = vpop.f32.mrb[94].mxu0  ;;  %v7657_v59 = vpop.f32.mrb[93].mxu1 }
 0x1b9   : > { %v7566_v0 = vpop.f32.mrb[95].mxu0  ;;  %v7658_v1 = vadd.f32 %v7657_v59, %v7656_v60  ;;  %v7659_v2 = vpop.f32.mrb[94].mxu1 }
 0x1ba   : > { %v4496_v4 = vadd.f32 %v7564_v54, %v10141_v23  ;;  %v7567_v36 = vadd.f32 %v7566_v0, %v7565_v56  ;;  %v7660_v52 = vpop.f32.mrb[95].mxu1  ;;  %v9185_v56 = vld [vmem:[%s9649_s12 + $0x48] ss:$108 sps:$4 sm:$0xff]   ;;  %v9190_v0 = vld [vmem:[%s11152_s1 + $0x580] sm:$0xff]  }
 0x1bb   : > { %v7661_v5 = vadd.f32 %v7660_v52, %v7659_v2  ;;  %5046 = vmatmul.mubr.bf16.gmra.mrb[200].mxu0 %v9169_v12  ;;  %v9205_v52 = vld [vmem:[%s11152_s1 + $0x5c8] sm:$0xff]  }
 0x1bc   : > { %v4499_v61 = vadd.f32 %v7567_v36, %v10143_v25  ;;  %5182 = vmatmul.mubr.bf16.gmra.mrb[200].mxu1 %v9172_v33  ;;  %5053 = vmatprep.mubr.bf16.mxu0 %v6884_v63  ;;  %v10359_v6 = vadd.f32 %v7658_v1, %v4496_v4  ;;  %v9191_v1 = vld [vmem:[%s9649_s12 + $0x11c] ss:$108 sps:$4 sm:$0xff]   ;;  %v9194_v4 = vld [vmem:[%s9649_s12 + $0x124] ss:$108 sps:$4 sm:$0xff]  }
 0x1bd   : > { %5189 = vmatprep.mubr.bf16.mxu1 %v6886_v16  ;;  %v9197_v36 = vld [vmem:[%s11152_s1 + $0x548] sm:$0xff]  }
 0x1be   : > { %v7568_v9 = vpop.f32.mrb[96].mxu0  ;;  %v10361_v11 = vadd.f32 %v7661_v5, %v4499_v61  ;;  %v9198_v5 = vld [vmem:[%s11152_s1 + $0x508] sm:$0xff]  }
 0x1bf   : > { %v7569_v13 = vpop.f32.mrb[97].mxu0  ;;  %v7662_v35 = vpop.f32.mrb[96].mxu1 }
 0x1c0   : > { %v7570_v23 = vadd.f32 %v7569_v13, %v7568_v9  ;;  %v7571_v22 = vpop.f32.mrb[98].mxu0  ;;  %v7663_v40 = vpop.f32.mrb[97].mxu1  ;;  %v9213_v9 = vld [vmem:[%s11152_s1 + $0x550] sm:$0xff]  }
 0x1c1   : > { %v7572_v15 = vpop.f32.mrb[99].mxu0  ;;  %v7664_v38 = vadd.f32 %v7663_v40, %v7662_v35  ;;  %v7665_v25 = vpop.f32.mrb[98].mxu1  ;;  %v9217_v35 = vld [vmem:[%s11152_s1 + $0x5d0] sm:$0xff]  }
 0x1c2   : > { %v4504_v30 = vadd.f32 %v7570_v23, %v10147_v48  ;;  %v7573_v31 = vadd.f32 %v7572_v15, %v7571_v22  ;;  %v7666_v57 = vpop.f32.mrb[99].mxu1  ;;  %v9181_v48 = vld [vmem:[%s9649_s12 + $0x40] ss:$108 sps:$4 sm:$0xff]   ;;  %v9193_v22 = vld [vmem:[%s9649_s12 + $0x118] ss:$108 sps:$4 sm:$0xff]  }
 0x1c3   : > { %v7667_v32 = vadd.f32 %v7666_v57, %v7665_v25  ;;  %5054 = vmatmul.mubr.bf16.gmra.mrb[204].mxu0 %v6883_v20  ;;  %v9196_v15 = vld [vmem:[%s9649_s12 + $0x120] ss:$108 sps:$4 sm:$0xff]   ;;  %v9214_v57 = vld [vmem:[%s11152_s1 + $0x510] sm:$0xff]  }
 0x1c4   : > { %v4507_v17 = vadd.f32 %v7573_v31, %v10149_v50  ;;  %5190 = vmatmul.mubr.bf16.gmra.mrb[204].mxu1 %v6885_v55  ;;  %5229 = vmatprep.mubr.bf16.mxu0 %v9183_v27  ;;  %v10367_v8 = vadd.f32 %v7664_v38, %v4504_v30  ;;  %v9188_v50 = vld [vmem:[%s11152_s1 + $0x500] sm:$0xff]   ;;  %v9202_v31 = vld [vmem:[%s9649_s12 + $0x1fc] ss:$108 sps:$4 sm:$0xff]  }
 0x1c5   : > { %5365 = vmatprep.mubr.bf16.mxu1 %v9187_v29  ;;  %v9199_v38 = vld [vmem:[%s9649_s12 + $0x1f4] ss:$108 sps:$4 sm:$0xff]  }
 0x1c6   : > { %v7574_v39 = vpop.f32.mrb[100].mxu0  ;;  %v10369_v41 = vadd.f32 %v7667_v32, %v4507_v17 }
 0x1c7   : > { %v7575_v44 = vpop.f32.mrb[101].mxu0  ;;  %v7668_v51 = vpop.f32.mrb[100].mxu1 }
 0x1c8   : > { %v7576_v60 = vadd.f32 %v7575_v44, %v7574_v39  ;;  %v7577_v12 = vpop.f32.mrb[102].mxu0  ;;  %v7669_v54 = vpop.f32.mrb[101].mxu1  ;;  %v9219_v44 = vld [vmem:[%s11152_s1 + $0x590] sm:$0xff]  }
 0x1c9   : > { %v7578_v59 = vpop.f32.mrb[103].mxu0  ;;  %v7670_v33 = vadd.f32 %v7669_v54, %v7668_v51  ;;  %v7671_v63 = vpop.f32.mrb[102].mxu1  ;;  %v9225_v51 = vld [vmem:[%s11152_s1 + $0x558] sm:$0xff]  }
 0x1ca   : > { %v4512_v2 = vadd.f32 %v7576_v60, %v10170_v19  ;;  %v7672_v16 = vpop.f32.mrb[103].mxu1  ;;  %v9206_v19 = vld [vmem:[%s11152_s1 + $0x588] sm:$0xff]   ;;  %v9231_v60 = vld [vmem:[%s11152_s1 + $0x5d8] sm:$0xff]  }
 0x1cb   : > { %5230 = vmatmul.mubr.bf16.vlgmr.msra.gmra.mrb[208].mxu0 %v9181_v48  ;;  %v9227_v54 = vld [vmem:[%s11152_s1 + $0x518] sm:$0xff]  }
 0x1cc   : > { %8239 = vmatpush3.bf16.msra.mxu0 %v9188_v50  ;;  %5366 = vmatmul.mubr.bf16.vlgmr.msra.gmra.mrb[208].mxu1 %v9185_v56  ;;  %v10391_v61 = vadd.f32 %v7670_v33, %v4512_v2  ;;  %v9232_v50 = vld [vmem:[%s11152_s1 + $0x598] sm:$0xff]  }
 0x1cd   : > { %8333 = vmatpush3.bf16.msra.mxu1 %v9190_v0  ;;  %5237 = vmatprep.mubr.bf16.mxu0 %v9191_v1  ;;  %v9201_v0 = vld [vmem:[%s9649_s12 + $0x1f0] ss:$108 sps:$4 sm:$0xff]   ;;  %v9246_v1 = vld [vmem:[%s11152_s1 + $0x5e0] sm:$0xff]  }
 0x1ce   : > { %v7690_v13 = vpop.f32.mrb[104].mxu0  ;;  %5373 = vmatprep.mubr.bf16.mxu1 %v9194_v4  ;;  %8240 = vmatprep.subr.bf16.mxu0 %v9197_v36  ;;  %v9204_v36 = vld [vmem:[%s9649_s12 + $0x1f8] ss:$108 sps:$4 sm:$0xff]  }
 0x1cf   : > { %v7691_v20 = vpop.f32.mrb[105].mxu0  ;;  %v7784_v23 = vpop.f32.mrb[104].mxu1  ;;  %8334 = vmatprep.subr.bf16.mxu1 %v9205_v52  ;;  %v9207_v52 = vld [vmem:[%s9649_s12 + $0x2cc] ss:$108 sps:$4 sm:$0xff]  }
 0x1d0   : > { %v7692_v40 = vadd.f32 %v7691_v20, %v7690_v13  ;;  %v7693_v55 = vpop.f32.mrb[106].mxu0  ;;  %v7785_v27 = vpop.f32.mrb[105].mxu1  ;;  %8241 = vmatpush3.bf16.msra.mxu0 %v9198_v5  ;;  %v9210_v13 = vld [vmem:[%s9649_s12 + $0x2d4] ss:$108 sps:$4 sm:$0xff]  }
 0x1d1   : > { %v7694_v25 = vpop.f32.mrb[107].mxu0  ;;  %v7786_v29 = vadd.f32 %v7785_v27, %v7784_v23  ;;  %v7787_v30 = vpop.f32.mrb[106].mxu1  ;;  %8335 = vmatpush3.bf16.msra.mxu1 %v9206_v19  ;;  %8242 = vmatprep.subr.bf16.mxu0 %v9213_v9 }
 0x1d2   : > { %v4688_v32 = vadd.f32 %v7692_v40, %v10202_v62  ;;  %v7695_v17 = vadd.f32 %v7694_v25, %v7693_v55  ;;  %v7788_v39 = vpop.f32.mrb[107].mxu1  ;;  %8336 = vmatprep.subr.bf16.mxu1 %v9217_v35  ;;  %v9240_v35 = vld [vmem:[%s11152_s1 + $0x520] sm:$0xff]   ;;  %v9254_v55 = vld [vmem:[%s11152_s1 + $0x568] sm:$0xff]  }
 0x1d3   : > { %v7789_v48 = vadd.f32 %v7788_v39, %v7787_v30  ;;  %5238 = vmatmul.mubr.bf16.gmra.mrb[212].mxu0 %v9193_v22  ;;  %v9248_v40 = vld [vmem:[%s11152_s1 + $0x5a0] sm:$0xff]   ;;  %v9256_v25 = vld [vmem:[%s11152_s1 + $0x528] sm:$0xff]   ;;  %v9273_v39 = vld [vmem:[%s11152_s1 + $0x5f0] sm:$0xff]  }
 0x1d4   : > { %v4691_v62 = vadd.f32 %v7695_v17, %v10211_v3  ;;  %5374 = vmatmul.mubr.bf16.gmra.mrb[212].mxu1 %v9196_v15  ;;  %5245 = vmatprep.mubr.bf16.mxu0 %v9199_v38  ;;  %v10420_v12 = vadd.f32 %v7786_v29, %v4688_v32  ;;  %v9239_v3 = vld [vmem:[%s11152_s1 + $0x560] sm:$0xff]   ;;  %v9257_v15 = vld [vmem:[%s11152_s1 + $0x5e8] sm:$0xff]  }
 0x1d5   : > { %5381 = vmatprep.mubr.bf16.mxu1 %v9202_v31  ;;  %8243 = vmatpush3.bf16.msra.mxu0 %v9214_v57  ;;  %v9265_v31 = vld [vmem:[%s11152_s1 + $0x570] sm:$0xff]  }
 0x1d6   : > { %v7696_v56 = vpop.f32.mrb[108].mxu0  ;;  %8337 = vmatpush3.bf16.msra.mxu1 %v9219_v44  ;;  %8244 = vmatprep.subr.bf16.mxu0 %v9225_v51  ;;  %v10431_v59 = vadd.f32 %v7789_v48, %v4691_v62  ;;  %v9209_v17 = vld [vmem:[%s9649_s12 + $0x2c8] ss:$108 sps:$4 sm:$0xff]   ;;  %v9215_v62 = vld [vmem:[%s9649_s12 + $0x3a4] ss:$108 sps:$4 sm:$0xff]  }
 0x1d7   : > { %v7697_v33 = vpop.f32.mrb[109].mxu0  ;;  %v7790_v63 = vpop.f32.mrb[108].mxu1  ;;  %8338 = vmatprep.subr.bf16.mxu1 %v9231_v60  ;;  %v9212_v60 = vld [vmem:[%s9649_s12 + $0x2d0] ss:$108 sps:$4 sm:$0xff]  }
 0x1d8   : > { %v7698_v2 = vadd.f32 %v7697_v33, %v7696_v56  ;;  %v7699_v16 = vpop.f32.mrb[110].mxu0  ;;  %v7791_v4 = vpop.f32.mrb[109].mxu1  ;;  %v9268_v33 = vld [vmem:[%s11152_s1 + $0x530] sm:$0xff]  }
 0x1d9   : > { %v7700_v5 = vpop.f32.mrb[111].mxu0  ;;  %v7792_v19 = vadd.f32 %v7791_v4, %v7790_v63  ;;  %v7793_v9 = vpop.f32.mrb[110].mxu1  ;;  %8245 = vmatpush3.bf16.msra.mxu0 %v9227_v54 }
 0x1da   : > { %v4696_v20 = vadd.f32 %v7698_v2, %v10242_v42  ;;  %v7701_v23 = vadd.f32 %v7700_v5, %v7699_v16  ;;  %v7794_v22 = vpop.f32.mrb[111].mxu1  ;;  %8339 = vmatpush3.bf16.msra.mxu1 %v9232_v50  ;;  %8246 = vmatprep.subr.bf16.mxu0 %v9239_v3  ;;  %v9220_v3 = vld [vmem:[%s9649_s12 + $0x3ac] ss:$108 sps:$4 sm:$0xff]   ;;  %v9274_v2 = vld [vmem:[%s11152_s1 + $0x5b0] sm:$0xff]  }
 0x1db   : > { %v7795_v27 = vadd.f32 %v7794_v22, %v7793_v9  ;;  %5246 = vmatmul.mubr.bf16.gmra.mrb[216].mxu0 %v9201_v0  ;;  %8340 = vmatprep.subr.bf16.mxu1 %v9246_v1  ;;  %v9281_v16 = vld [vmem:[%s11152_s1 + $0x578] sm:$0xff]   ;;  %v9222_v22 = vld [vmem:[%s9649_s12 + $0x3a8] ss:$108 sps:$4 sm:$0xff]  }
 0x1dc   : > { %v4699_v42 = vadd.f32 %v7701_v23, %v10250_v49  ;;  %v10454_v38 = vadd.f32 %v7792_v19, %v4696_v20  ;;  %5382 = vmatmul.mubr.bf16.gmra.mrb[216].mxu1 %v9204_v36  ;;  %5253 = vmatprep.mubr.bf16.mxu0 %v9207_v52  ;;  %v9260_v49 = vld [vmem:[%s11152_s1 + $0x5a8] sm:$0xff]   ;;  %v9285_v36 = vld [vmem:[%s11152_s1 + $0x5f8] sm:$0xff]  }
 0x1dd   : > { %5389 = vmatprep.mubr.bf16.mxu1 %v9210_v13  ;;  %8247 = vmatpush3.bf16.msra.mxu0 %v9240_v35  ;;  %v9282_v5 = vld [vmem:[%s11152_s1 + $0x538] sm:$0xff]   ;;  %v9292_v13 = vld [vmem:[%s11152_s1 + $0x640] sm:$0xff]  }
 0x1de   : > { %v10459_v29 = vadd.f32 %v7795_v27, %v4699_v42  ;;  %v7702_v30 = vpop.f32.mrb[112].mxu0  ;;  %8341 = vmatpush3.bf16.msra.mxu1 %v9248_v40  ;;  %8248 = vmatprep.subr.bf16.mxu0 %v9254_v55  ;;  %v9218_v23 = vld [vmem:[%s9649_s12 + $0x3a0] ss:$108 sps:$4 sm:$0xff]  }
 0x1df   : > { %v7703_v57 = vpop.f32.mrb[113].mxu0  ;;  %v7796_v32 = vpop.f32.mrb[112].mxu1  ;;  %8342 = vmatprep.subr.bf16.mxu1 %v9257_v15  ;;  %v9223_v15 = vld [vmem:[%s9649_s12 + $0x47c] ss:$108 sps:$4 sm:$0xff]  }
 0x1e0   : > { %v7704_v44 = vadd.f32 %v7703_v57, %v7702_v30  ;;  %v7705_v51 = vpop.f32.mrb[114].mxu0  ;;  %v7797_v48 = vpop.f32.mrb[113].mxu1 }
 0x1e1   : > { %v7706_v54 = vpop.f32.mrb[115].mxu0  ;;  %v7798_v56 = vadd.f32 %v7797_v48, %v7796_v32  ;;  %v7799_v50 = vpop.f32.mrb[114].mxu1  ;;  %8249 = vmatpush3.bf16.msra.mxu0 %v9256_v25 }
 0x1e2   : > { %v4704_v63 = vadd.f32 %v7704_v44, %v10276_v21  ;;  %v7707_v0 = vadd.f32 %v7706_v54, %v7705_v51  ;;  %v7800_v1 = vpop.f32.mrb[115].mxu1  ;;  %8343 = vmatpush3.bf16.msra.mxu1 %v9260_v49  ;;  %8250 = vmatprep.subr.bf16.mxu0 %v9265_v31  ;;  %v9228_v49 = vld [vmem:[%s9649_s12 + $0x484] ss:$108 sps:$4 sm:$0xff]  }
 0x1e3   : > { %v7801_v4 = vadd.f32 %v7800_v1, %v7799_v50  ;;  %5254 = vmatmul.mubr.bf16.gmra.mrb[220].mxu0 %v9209_v17  ;;  %8344 = vmatprep.subr.bf16.mxu1 %v9273_v39  ;;  %v9480_v39 = vmov 0.0   ;;  %v9226_v54 = vld [vmem:[%s9649_s12 + $0x478] ss:$108 sps:$4 sm:$0xff]  }
 0x1e4   : > { %v4707_v21 = vadd.f32 %v7707_v0, %v10284_v28  ;;  %v10488_v52 = vadd.f32 %v7798_v56, %v4704_v63  ;;  %5390 = vmatmul.mubr.bf16.gmra.mrb[220].mxu1 %v9212_v60  ;;  %5261 = vmatprep.mubr.bf16.mxu0 %v9215_v62  ;;  %v9288_v28 = vld [vmem:[%s11152_s1 + $0x5b8] sm:$0xff]   ;;  %v9233_v63 = vld [vmem:[%s9649_s12 + $0x554] ss:$108 sps:$4 sm:$0xff]  }
 0x1e5   : > { %5397 = vmatprep.mubr.bf16.mxu1 %v9220_v3  ;;  %8251 = vmatpush3.bf16.msra.mxu0 %v9268_v33  ;;  %v9230_v33 = vld [vmem:[%s9649_s12 + $0x480] ss:$108 sps:$4 sm:$0xff]  }
 0x1e6   : > { %v10493_v19 = vadd.f32 %v7801_v4, %v4707_v21  ;;  %v7708_v9 = vpop.f32.mrb[116].mxu0  ;;  %8345 = vmatpush3.bf16.msra.mxu1 %v9274_v2  ;;  %8252 = vmatprep.subr.bf16.mxu0 %v9281_v16  ;;  %v9236_v2 = vld [vmem:[%s9649_s12 + $0x55c] ss:$108 sps:$4 sm:$0xff]  }
 0x1e7   : > { %v7709_v35 = vpop.f32.mrb[117].mxu0  ;;  %v7802_v20 = vpop.f32.mrb[116].mxu1  ;;  %8346 = vmatprep.subr.bf16.mxu1 %v9285_v36 }
 0x1e8   : > { %v7710_v40 = vadd.f32 %v7709_v35, %v7708_v9  ;;  %v7711_v55 = vpop.f32.mrb[118].mxu0  ;;  %v7803_v27 = vpop.f32.mrb[117].mxu1 }
 0x1e9   : > { %v7712_v42 = vpop.f32.mrb[119].mxu0  ;;  %v7804_v25 = vadd.f32 %v7803_v27, %v7802_v20  ;;  %v7805_v30 = vpop.f32.mrb[118].mxu1  ;;  %8253 = vmatpush3.bf16.msra.mxu0 %v9282_v5  ;;  %v9241_v27 = vld [vmem:[%s9649_s12 + $0x62c] ss:$108 sps:$4 sm:$0xff]  }
 0x1ea   : > { %v4712_v31 = vadd.f32 %v7710_v40, %v10289_v53  ;;  %v7713_v57 = vadd.f32 %v7712_v42, %v7711_v55  ;;  %v7806_v32 = vpop.f32.mrb[119].mxu1  ;;  %8347 = vmatpush3.bf16.msra.mxu1 %v9288_v28  ;;  %8426 = vmatprep.subr.bf16.mxu0 %v9292_v13  ;;  %v9238_v55 = vld [vmem:[%s9649_s12 + $0x558] ss:$108 sps:$4 sm:$0xff]  }
 0x1eb   : > { %v7807_v17 = vadd.f32 %v7806_v32, %v7805_v30  ;;  %5262 = vmatmul.mubr.bf16.gmra.mrb[224].mxu0 %v9218_v23  ;;  %8541 = vmatprep.subr.bf16.mxu1 %v9480_v39 }
 0x1ec   : > { %v4715_v44 = vadd.f32 %v7713_v57, %v10294_v46  ;;  %v10508_v51 = vadd.f32 %v7804_v25, %v4712_v31  ;;  %5398 = vmatmul.mubr.bf16.gmra.mrb[224].mxu1 %v9222_v22  ;;  %5269 = vmatprep.mubr.bf16.mxu0 %v9223_v15  ;;  %v9244_v25 = vld [vmem:[%s9649_s12 + $0x634] ss:$108 sps:$4 sm:$0xff]  }
 0x1ed   : > { %5405 = vmatprep.mubr.bf16.mxu1 %v9228_v49 }
 0x1ee   : > { %v10510_v53 = vadd.f32 %v7807_v17, %v4715_v44  ;;  %v7714_v48 = vpop.f32.mrb[120].mxu0 }
 0x1ef   : > { %v7715_v60 = vpop.f32.mrb[121].mxu0  ;;  %v7808_v62 = vpop.f32.mrb[120].mxu1 }
 0x1f0   : > { %v7716_v56 = vadd.f32 %v7715_v60, %v7714_v48  ;;  %v7717_v50 = vpop.f32.mrb[122].mxu0  ;;  %v7809_v3 = vpop.f32.mrb[121].mxu1 }
 0x1f1   : > { %v7718_v0 = vpop.f32.mrb[123].mxu0  ;;  %v7810_v1 = vadd.f32 %v7809_v3, %v7808_v62  ;;  %v7811_v46 = vpop.f32.mrb[122].mxu1  ;;  %v9247_v3 = vld [vmem:[%s9649_s12 + $0x630] ss:$108 sps:$4 sm:$0xff]  }
 0x1f2   : > { %v4720_v16 = vadd.f32 %v7716_v56, %v10299_v18  ;;  %v7719_v4 = vadd.f32 %v7718_v0, %v7717_v50  ;;  %v7812_v36 = vpop.f32.mrb[123].mxu1  ;;  %v9235_v18 = vld [vmem:[%s9649_s12 + $0x550] ss:$108 sps:$4 sm:$0xff]  }
 0x1f3   : > { %v7813_v21 = vadd.f32 %v7812_v36, %v7811_v46  ;;  %5270 = vmatmul.mubr.bf16.gmra.mrb[228].mxu0 %v9226_v54 }
 0x1f4   : > { %v4723_v5 = vadd.f32 %v7719_v4, %v10304_v26  ;;  %v10518_v9 = vadd.f32 %v7810_v1, %v4720_v16  ;;  %5406 = vmatmul.mubr.bf16.gmra.mrb[228].mxu1 %v9230_v33  ;;  %5277 = vmatprep.mubr.bf16.mxu0 %v9233_v63  ;;  %v9249_v33 = vld [vmem:[%s9649_s12 + $0x704] ss:$108 sps:$4 sm:$0xff]   ;;  %v9252_v1 = vld [vmem:[%s9649_s12 + $0x70c] ss:$108 sps:$4 sm:$0xff]  }
 0x1f5   : > { %5413 = vmatprep.mubr.bf16.mxu1 %v9236_v2 }
 0x1f6   : > { %v10520_v28 = vadd.f32 %v7813_v21, %v4723_v5  ;;  %v7720_v13 = vpop.f32.mrb[124].mxu0 }
 0x1f7   : > { %v7721_v35 = vpop.f32.mrb[125].mxu0  ;;  %v7814_v20 = vpop.f32.mrb[124].mxu1 }
 0x1f8   : > { %v7722_v23 = vadd.f32 %v7721_v35, %v7720_v13  ;;  %v7723_v22 = vpop.f32.mrb[126].mxu0  ;;  %v7815_v40 = vpop.f32.mrb[125].mxu1 }
 0x1f9   : > { %v7724_v15 = vpop.f32.mrb[127].mxu0  ;;  %v7816_v42 = vadd.f32 %v7815_v40, %v7814_v20  ;;  %v7817_v26 = vpop.f32.mrb[126].mxu1  ;;  %v9255_v40 = vld [vmem:[%s9649_s12 + $0x708] ss:$108 sps:$4 sm:$0xff]  }
 0x1fa   : > { %v4728_v30 = vadd.f32 %v7722_v23, %v10309_v47  ;;  %v7725_v49 = vadd.f32 %v7724_v15, %v7723_v22  ;;  %v7818_v31 = vpop.f32.mrb[127].mxu1  ;;  %v9243_v47 = vld [vmem:[%s9649_s12 + $0x628] ss:$108 sps:$4 sm:$0xff]  }
 0x1fb   : > { %v7819_v57 = vadd.f32 %v7818_v31, %v7817_v26  ;;  %5278 = vmatmul.mubr.bf16.gmra.mrb[232].mxu0 %v9235_v18 }
 0x1fc   : > { %v4731_v32 = vadd.f32 %v7725_v49, %v10314_v58  ;;  %v10528_v17 = vadd.f32 %v7816_v42, %v4728_v30  ;;  %5414 = vmatmul.mubr.bf16.gmra.mrb[232].mxu1 %v9238_v55  ;;  %5285 = vmatprep.mubr.bf16.mxu0 %v9241_v27  ;;  %v9258_v55 = vld [vmem:[%s9649_s12 + $0x7dc] ss:$108 sps:$4 sm:$0xff]   ;;  %v9262_v42 = vld [vmem:[%s9649_s12 + $0x7e4] ss:$108 sps:$4 sm:$0xff]  }
 0x1fd   : > { %5421 = vmatprep.mubr.bf16.mxu1 %v9244_v25 }
 0x1fe   : > { %v10530_v44 = vadd.f32 %v7819_v57, %v4731_v32  ;;  %v7726_v48 = vpop.f32.mrb[128].mxu0 }
 0x1ff   : > { %v7727_v60 = vpop.f32.mrb[129].mxu0  ;;  %v7820_v62 = vpop.f32.mrb[128].mxu1 }
 0x200   : > { %v7728_v54 = vadd.f32 %v7727_v60, %v7726_v48  ;;  %v7729_v56 = vpop.f32.mrb[130].mxu0  ;;  %v7821_v50 = vpop.f32.mrb[129].mxu1 }
 0x201   : > { %v7730_v63 = vpop.f32.mrb[131].mxu0  ;;  %v7822_v0 = vadd.f32 %v7821_v50, %v7820_v62  ;;  %v7823_v58 = vpop.f32.mrb[130].mxu1  ;;  %v9264_v50 = vld [vmem:[%s9649_s12 + $0x7e0] ss:$108 sps:$4 sm:$0xff]  }
 0x202   : > { %v4736_v46 = vadd.f32 %v7728_v54, %v10319_v34  ;;  %v7731_v2 = vadd.f32 %v7730_v63, %v7729_v56  ;;  %v7824_v16 = vpop.f32.mrb[131].mxu1  ;;  %v9251_v34 = vld [vmem:[%s9649_s12 + $0x700] ss:$108 sps:$4 sm:$0xff]  }
 0x203   : > { %v7825_v4 = vadd.f32 %v7824_v16, %v7823_v58  ;;  %5286 = vmatmul.mubr.bf16.gmra.mrb[236].mxu0 %v9243_v47 }
 0x204   : > { %v4739_v36 = vadd.f32 %v7731_v2, %v10324_v24  ;;  %v10538_v21 = vadd.f32 %v7822_v0, %v4736_v46  ;;  %5422 = vmatmul.mubr.bf16.gmra.mrb[236].mxu1 %v9247_v3  ;;  %5293 = vmatprep.mubr.bf16.mxu0 %v9249_v33  ;;  %v9266_v3 = vld [vmem:[%s9649_s12 + $0x8b4] ss:$108 sps:$4 sm:$0xff]   ;;  %v9270_v0 = vld [vmem:[%s9649_s12 + $0x8bc] ss:$108 sps:$4 sm:$0xff]  }
 0x205   : > { %5429 = vmatprep.mubr.bf16.mxu1 %v9252_v1 }
 0x206   : > { %v10540_v5 = vadd.f32 %v7825_v4, %v4739_v36  ;;  %v7732_v13 = vpop.f32.mrb[132].mxu0 }
 0x207   : > { %v7733_v35 = vpop.f32.mrb[133].mxu0  ;;  %v7826_v20 = vpop.f32.mrb[132].mxu1 }
 0x208   : > { %v7734_v18 = vadd.f32 %v7733_v35, %v7732_v13  ;;  %v7735_v23 = vpop.f32.mrb[134].mxu0  ;;  %v7827_v22 = vpop.f32.mrb[133].mxu1 }
 0x209   : > { %v7736_v27 = vpop.f32.mrb[135].mxu0  ;;  %v7828_v15 = vadd.f32 %v7827_v22, %v7826_v20  ;;  %v7829_v24 = vpop.f32.mrb[134].mxu1  ;;  %v9272_v22 = vld [vmem:[%s9649_s12 + $0x8b8] ss:$108 sps:$4 sm:$0xff]  }
 0x20a   : > { %v4744_v26 = vadd.f32 %v7734_v18, %v10329_v43  ;;  %v7737_v25 = vadd.f32 %v7736_v27, %v7735_v23  ;;  %v7830_v30 = vpop.f32.mrb[135].mxu1  ;;  %v9261_v43 = vld [vmem:[%s9649_s12 + $0x7d8] ss:$108 sps:$4 sm:$0xff]  }
 0x20b   : > { %v7831_v49 = vadd.f32 %v7830_v30, %v7829_v24  ;;  %5294 = vmatmul.mubr.bf16.gmra.mrb[240].mxu0 %v9251_v34 }
 0x20c   : > { %v4747_v31 = vadd.f32 %v7737_v25, %v10331_v45  ;;  %v10548_v57 = vadd.f32 %v7828_v15, %v4744_v26  ;;  %5430 = vmatmul.mubr.bf16.gmra.mrb[240].mxu1 %v9255_v40  ;;  %5301 = vmatprep.mubr.bf16.mxu0 %v9258_v55  ;;  %v9275_v40 = vld [vmem:[%s9649_s12 + $0x98c] ss:$108 sps:$4 sm:$0xff]   ;;  %v9278_v15 = vld [vmem:[%s9649_s12 + $0x994] ss:$108 sps:$4 sm:$0xff]  }
 0x20d   : > { %5437 = vmatprep.mubr.bf16.mxu1 %v9262_v42 }
 0x20e   : > { %v10550_v32 = vadd.f32 %v7831_v49, %v4747_v31  ;;  %v7738_v48 = vpop.f32.mrb[136].mxu0  ;;  %v648_v31 = vld [vmem:[%s9649_s12 + $0xa60] sm:$0xff] }
 0x20f   : > { %v7739_v60 = vpop.f32.mrb[137].mxu0  ;;  %v7832_v62 = vpop.f32.mrb[136].mxu1 }
 0x210   : > { %v7740_v47 = vadd.f32 %v7739_v60, %v7738_v48  ;;  %v7741_v54 = vpop.f32.mrb[138].mxu0  ;;  %v7833_v56 = vpop.f32.mrb[137].mxu1 }
 0x211   : > { %v7742_v33 = vpop.f32.mrb[139].mxu0  ;;  %v7834_v63 = vadd.f32 %v7833_v56, %v7832_v62  ;;  %v7835_v45 = vpop.f32.mrb[138].mxu1  ;;  %v649_v62 = vld [vmem:[%s9649_s12 + $0xa68] sm:$0xff] }
 0x212   : > { %v4752_v58 = vadd.f32 %v7740_v47, %v10339_v7  ;;  %v7743_v1 = vadd.f32 %v7742_v33, %v7741_v54  ;;  %v7836_v46 = vpop.f32.mrb[139].mxu1  ;;  %v9269_v7 = vld [vmem:[%s9649_s12 + $0x8b0] ss:$108 sps:$4 sm:$0xff]   ;;  %v9277_v47 = vld [vmem:[%s9649_s12 + $0x988] ss:$108 sps:$4 sm:$0xff]   ;;  %v6888_v33 = vcombine.high %v648_v31, %v648_v31 }
 0x213   : > { %v7837_v2 = vadd.f32 %v7836_v46, %v7835_v45  ;;  %5302 = vmatmul.mubr.bf16.gmra.mrb[244].mxu0 %v9261_v43 }
 0x214   : > { %v4755_v16 = vadd.f32 %v7743_v1, %v10341_v10  ;;  %v10558_v4 = vadd.f32 %v7834_v63, %v4752_v58  ;;  %5438 = vmatmul.mubr.bf16.gmra.mrb[244].mxu1 %v9264_v50  ;;  %5309 = vmatprep.mubr.bf16.mxu0 %v9266_v3  ;;  %v9280_v3 = vld [vmem:[%s9649_s12 + $0x990] ss:$108 sps:$4 sm:$0xff]  }
 0x215   : > { %5445 = vmatprep.mubr.bf16.mxu1 %v9270_v0  ;;  %v6890_v0 = vcombine.high %v649_v62, %v649_v62 }
 0x216   : > { %v10560_v36 = vadd.f32 %v7837_v2, %v4755_v16  ;;  %v7744_v13 = vpop.f32.mrb[140].mxu0 }
 0x217   : > { %v7745_v35 = vpop.f32.mrb[141].mxu0  ;;  %v7838_v20 = vpop.f32.mrb[140].mxu1 }
 0x218   : > { %v7746_v34 = vadd.f32 %v7745_v35, %v7744_v13  ;;  %v7747_v18 = vpop.f32.mrb[142].mxu0  ;;  %v7839_v23 = vpop.f32.mrb[141].mxu1 }
 0x219   : > { %v7748_v55 = vpop.f32.mrb[143].mxu0  ;;  %v7840_v10 = vadd.f32 %v7839_v23, %v7838_v20  ;;  %v7841_v27 = vpop.f32.mrb[142].mxu1 }
 0x21a   : > { %v4760_v24 = vadd.f32 %v7746_v34, %v10349_v37  ;;  %v7749_v42 = vadd.f32 %v7748_v55, %v7747_v18  ;;  %v7842_v26 = vpop.f32.mrb[143].mxu1  ;;  %v6887_v18 = vcombine.low %v648_v31, %v648_v31  ;;  %v9291_v55 = vld [vmem:[%s9649_s12 + $0x54] ss:$108 sps:$4 sm:$0xff]  }
 0x21b   : > { %v7843_v25 = vadd.f32 %v7842_v26, %v7841_v27  ;;  %5310 = vmatmul.mubr.bf16.gmra.mrb[248].mxu0 %v9269_v7 }
 0x21c   : > { %v4763_v30 = vadd.f32 %v7749_v42, %v10353_v14  ;;  %v10568_v49 = vadd.f32 %v7840_v10, %v4760_v24  ;;  %5446 = vmatmul.mubr.bf16.gmra.mrb[248].mxu1 %v9272_v22  ;;  %5317 = vmatprep.mubr.bf16.mxu0 %v9275_v40  ;;  %v6889_v40 = vcombine.low %v649_v62, %v649_v62 }
 0x21d   : > { %5453 = vmatprep.mubr.bf16.mxu1 %v9278_v15  ;;  %v9295_v15 = vld [vmem:[%s9649_s12 + $0x5c] ss:$108 sps:$4 sm:$0xff]  }
 0x21e   : > { %v10571_v48 = vadd.f32 %v7843_v25, %v4763_v30  ;;  %v7750_v60 = vpop.f32.mrb[144].mxu0 }
 0x21f   : > { %v7751_v43 = vpop.f32.mrb[145].mxu0  ;;  %v7844_v37 = vpop.f32.mrb[144].mxu1 }
 0x220   : > { %v7752_v54 = vadd.f32 %v7751_v43, %v7750_v60  ;;  %v7753_v56 = vpop.f32.mrb[146].mxu0  ;;  %v7845_v50 = vpop.f32.mrb[145].mxu1 }
 0x221   : > { %v7754_v63 = vpop.f32.mrb[147].mxu0  ;;  %v7846_v14 = vadd.f32 %v7845_v50, %v7844_v37  ;;  %v7847_v45 = vpop.f32.mrb[146].mxu1  ;;  %v9293_v50 = vld [vmem:[%s9649_s12 + $0x58] ss:$108 sps:$4 sm:$0xff]  }
 0x222   : > { %v4768_v58 = vadd.f32 %v7752_v54, %v10359_v6  ;;  %v7755_v1 = vadd.f32 %v7754_v63, %v7753_v56  ;;  %v7848_v46 = vpop.f32.mrb[147].mxu1 }
 0x223   : > { %v7849_v2 = vadd.f32 %v7848_v46, %v7847_v45  ;;  %5318 = vmatmul.mubr.bf16.gmra.mrb[252].mxu0 %v9277_v47  ;;  %v9300_v45 = vld [vmem:[%s9649_s12 + $0x12c] ss:$108 sps:$4 sm:$0xff]  }
 0x224   : > { %v4771_v16 = vadd.f32 %v7755_v1, %v10361_v11  ;;  %v10578_v13 = vadd.f32 %v7846_v14, %v4768_v58  ;;  %5454 = vmatmul.mubr.bf16.gmra.mrb[252].mxu1 %v9280_v3  ;;  %5325 = vmatprep.mubr.bf16.mxu0 %v6888_v33  ;;  %v9297_v14 = vld [vmem:[%s11152_s1 + $0x680] sm:$0xff]   ;;  %v9304_v46 = vld [vmem:[%s11152_s1 + $0x648] sm:$0xff]  }
 0x225   : > { %5461 = vmatprep.mubr.bf16.mxu1 %v6890_v0  ;;  %v9303_v1 = vld [vmem:[%s9649_s12 + $0x134] ss:$108 sps:$4 sm:$0xff]  }
 0x226   : > { %v10580_v35 = vadd.f32 %v7849_v2, %v4771_v16  ;;  %v7756_v20 = vpop.f32.mrb[148].mxu0  ;;  %v9305_v16 = vld [vmem:[%s11152_s1 + $0x608] sm:$0xff]  }
 0x227   : > { %v7757_v7 = vpop.f32.mrb[149].mxu0  ;;  %v7850_v34 = vpop.f32.mrb[148].mxu1 }
 0x228   : > { %v7758_v6 = vadd.f32 %v7757_v7, %v7756_v20  ;;  %v7759_v23 = vpop.f32.mrb[150].mxu0  ;;  %v7851_v22 = vpop.f32.mrb[149].mxu1  ;;  %v9319_v20 = vld [vmem:[%s11152_s1 + $0x650] sm:$0xff]  }
 0x229   : > { %v7760_v10 = vpop.f32.mrb[151].mxu0  ;;  %v7852_v27 = vadd.f32 %v7851_v22, %v7850_v34  ;;  %v7853_v11 = vpop.f32.mrb[150].mxu1 }
 0x22a   : > { %v4776_v24 = vadd.f32 %v7758_v6, %v10367_v8  ;;  %v7761_v42 = vadd.f32 %v7760_v10, %v7759_v23  ;;  %v7854_v26 = vpop.f32.mrb[151].mxu1  ;;  %v9289_v8 = vld [vmem:[%s9649_s12 + $0x50] ss:$108 sps:$4 sm:$0xff]   ;;  %v9298_v6 = vld [vmem:[%s9649_s12 + $0x128] ss:$108 sps:$4 sm:$0xff]  }
 0x22b   : > { %v7855_v25 = vadd.f32 %v7854_v26, %v7853_v11  ;;  %5326 = vmatmul.mubr.bf16.gmra.mrb[0].mxu0 %v6887_v18  ;;  %v9308_v10 = vld [vmem:[%s9649_s12 + $0x204] ss:$108 sps:$4 sm:$0xff]  }
 0x22c   : > { %v4779_v30 = vadd.f32 %v7761_v42, %v10369_v41  ;;  %v10586_v31 = vadd.f32 %v7852_v27, %v4776_v24  ;;  %5462 = vmatmul.mubr.bf16.gmra.mrb[0].mxu1 %v6889_v40  ;;  %5501 = vmatprep.mubr.bf16.mxu0 %v9291_v55  ;;  %v9296_v41 = vld [vmem:[%s11152_s1 + $0x600] sm:$0xff]   ;;  %v9301_v55 = vld [vmem:[%s9649_s12 + $0x130] ss:$108 sps:$4 sm:$0xff]   ;;  %v9311_v24 = vld [vmem:[%s9649_s12 + $0x20c] ss:$108 sps:$4 sm:$0xff]  }
 0x22d   : > { %5637 = vmatprep.mubr.bf16.mxu1 %v9295_v15  ;;  %v9320_v42 = vld [vmem:[%s11152_s1 + $0x610] sm:$0xff]  }
 0x22e   : > { %v10588_v60 = vadd.f32 %v7855_v25, %v4779_v30  ;;  %v7762_v62 = vpop.f32.mrb[152].mxu0 }
 0x22f   : > { %v7763_v43 = vpop.f32.mrb[153].mxu0  ;;  %v7856_v37 = vpop.f32.mrb[152].mxu1 }
 0x230   : > { %v7764_v47 = vadd.f32 %v7763_v43, %v7762_v62  ;;  %v7765_v54 = vpop.f32.mrb[154].mxu0  ;;  %v7857_v56 = vpop.f32.mrb[153].mxu1  ;;  %v9324_v62 = vld [vmem:[%s11152_s1 + $0x690] sm:$0xff]   ;;  %v9331_v43 = vld [vmem:[%s11152_s1 + $0x658] sm:$0xff]  }
 0x231   : > { %v7766_v3 = vpop.f32.mrb[155].mxu0  ;;  %v7858_v33 = vadd.f32 %v7857_v56, %v7856_v37  ;;  %v7859_v63 = vpop.f32.mrb[154].mxu1 }
 0x232   : > { %v4784_v0 = vadd.f32 %v7764_v47, %v10391_v61  ;;  %v7860_v58 = vpop.f32.mrb[155].mxu1  ;;  %v9312_v61 = vld [vmem:[%s11152_s1 + $0x688] sm:$0xff]  }
 0x233   : > { %5502 = vmatmul.mubr.bf16.vlgmr.msra.gmra.mrb[4].mxu0 %v9289_v8  ;;  %v9315_v58 = vld [vmem:[%s9649_s12 + $0x2dc] ss:$108 sps:$4 sm:$0xff]  }
 0x234   : > { %v10604_v2 = vadd.f32 %v7858_v33, %v4784_v0  ;;  %8427 = vmatpush3.bf16.msra.mxu0 %v9296_v41  ;;  %5638 = vmatmul.mubr.bf16.vlgmr.msra.gmra.mrb[4].mxu1 %v9293_v50  ;;  %v9343_v50 = vld [vmem:[%s11152_s1 + $0x660] sm:$0xff]   ;;  %v9309_v0 = vld [vmem:[%s9649_s12 + $0x208] ss:$108 sps:$4 sm:$0xff]  }
 0x235   : > { %8542 = vmatpush3.bf16.msra.mxu1 %v9297_v14  ;;  %5509 = vmatprep.mubr.bf16.mxu0 %v9300_v45  ;;  %v9306_v33 = vld [vmem:[%s9649_s12 + $0x200] ss:$108 sps:$4 sm:$0xff]  }
 0x236   : > { %v7878_v7 = vpop.f32.mrb[156].mxu0  ;;  %5645 = vmatprep.mubr.bf16.mxu1 %v9303_v1  ;;  %8428 = vmatprep.subr.bf16.mxu0 %v9304_v46 }
 0x237   : > { %v7879_v34 = vpop.f32.mrb[157].mxu0  ;;  %v7972_v18 = vpop.f32.mrb[156].mxu1  ;;  %8543 = vmatprep.subr.bf16.mxu1 %v9480_v39 }
 0x238   : > { %v7880_v23 = vadd.f32 %v7879_v34, %v7878_v7  ;;  %v7881_v22 = vpop.f32.mrb[158].mxu0  ;;  %v7973_v40 = vpop.f32.mrb[157].mxu1  ;;  %8429 = vmatpush3.bf16.msra.mxu0 %v9305_v16 }
 0x239   : > { %v7882_v27 = vpop.f32.mrb[159].mxu0  ;;  %v7974_v11 = vadd.f32 %v7973_v40, %v7972_v18  ;;  %v7975_v15 = vpop.f32.mrb[158].mxu1  ;;  %8544 = vmatpush3.bf16.msra.mxu1 %v9312_v61  ;;  %8430 = vmatprep.subr.bf16.mxu0 %v9319_v20  ;;  %v9318_v61 = vld [vmem:[%s9649_s12 + $0x2e4] ss:$108 sps:$4 sm:$0xff]  }
 0x23a   : > { %v4960_v26 = vadd.f32 %v7880_v23, %v10420_v12  ;;  %v7883_v25 = vadd.f32 %v7882_v27, %v7881_v22  ;;  %v7976_v30 = vpop.f32.mrb[159].mxu1  ;;  %8545 = vmatprep.subr.bf16.mxu1 %v9480_v39  ;;  %v9332_v12 = vld [vmem:[%s11152_s1 + $0x618] sm:$0xff]   ;;  %v9344_v20 = vld [vmem:[%s11152_s1 + $0x620] sm:$0xff]   ;;  %v9358_v23 = vld [vmem:[%s11152_s1 + $0x668] sm:$0xff]  }
 0x23b   : > { %v7977_v37 = vadd.f32 %v7976_v30, %v7975_v15  ;;  %5510 = vmatmul.mubr.bf16.gmra.mrb[8].mxu0 %v9298_v6  ;;  %v9351_v6 = vld [vmem:[%s11152_s1 + $0x6a0] sm:$0xff]  }
 0x23c   : > { %v4963_v8 = vadd.f32 %v7883_v25, %v10431_v59  ;;  %v10632_v47 = vadd.f32 %v7974_v11, %v4960_v26  ;;  %5646 = vmatmul.mubr.bf16.gmra.mrb[8].mxu1 %v9301_v55  ;;  %5517 = vmatprep.mubr.bf16.mxu0 %v9308_v10  ;;  %v9336_v59 = vld [vmem:[%s11152_s1 + $0x698] sm:$0xff]   ;;  %v9359_v55 = vld [vmem:[%s11152_s1 + $0x628] sm:$0xff]   ;;  %v9367_v11 = vld [vmem:[%s11152_s1 + $0x670] sm:$0xff]  }
 0x23d   : > { %5653 = vmatprep.mubr.bf16.mxu1 %v9311_v24  ;;  %8431 = vmatpush3.bf16.msra.mxu0 %v9320_v42  ;;  %v9313_v42 = vld [vmem:[%s9649_s12 + $0x2d8] ss:$108 sps:$4 sm:$0xff]  }
 0x23e   : > { %v10637_v54 = vadd.f32 %v7977_v37, %v4963_v8  ;;  %v7884_v56 = vpop.f32.mrb[160].mxu0  ;;  %8546 = vmatpush3.bf16.msra.mxu1 %v9324_v62  ;;  %8432 = vmatprep.subr.bf16.mxu0 %v9331_v43  ;;  %v9316_v62 = vld [vmem:[%s9649_s12 + $0x2e0] ss:$108 sps:$4 sm:$0xff]  }
 0x23f   : > { %v7885_v41 = vpop.f32.mrb[161].mxu0  ;;  %v7978_v3 = vpop.f32.mrb[160].mxu1  ;;  %8547 = vmatprep.subr.bf16.mxu1 %v9480_v39  ;;  %v9323_v43 = vld [vmem:[%s9649_s12 + $0x3b4] ss:$108 sps:$4 sm:$0xff]  }
 0x240   : > { %v7886_v63 = vadd.f32 %v7885_v41, %v7884_v56  ;;  %v7887_v14 = vpop.f32.mrb[162].mxu0  ;;  %v7979_v45 = vpop.f32.mrb[161].mxu1  ;;  %v9327_v56 = vld [vmem:[%s9649_s12 + $0x3bc] ss:$108 sps:$4 sm:$0xff]  }
 0x241   : > { %v7888_v1 = vpop.f32.mrb[163].mxu0  ;;  %v7980_v46 = vadd.f32 %v7979_v45, %v7978_v3  ;;  %v7981_v16 = vpop.f32.mrb[162].mxu1  ;;  %8433 = vmatpush3.bf16.msra.mxu0 %v9332_v12 }
 0x242   : > { %v4968_v7 = vadd.f32 %v7886_v63, %v10454_v38  ;;  %v7889_v34 = vadd.f32 %v7888_v1, %v7887_v14  ;;  %v7982_v18 = vpop.f32.mrb[163].mxu1  ;;  %8548 = vmatpush3.bf16.msra.mxu1 %v9336_v59  ;;  %8434 = vmatprep.subr.bf16.mxu0 %v9343_v50  ;;  %v9371_v59 = vld [vmem:[%s11152_s1 + $0x630] sm:$0xff]   ;;  %v9382_v63 = vld [vmem:[%s11152_s1 + $0x678] sm:$0xff]  }
 0x243   : > { %v7983_v22 = vadd.f32 %v7982_v18, %v7981_v16  ;;  %5518 = vmatmul.mubr.bf16.gmra.mrb[12].mxu0 %v9306_v33  ;;  %8549 = vmatprep.subr.bf16.mxu1 %v9480_v39  ;;  %v9375_v33 = vld [vmem:[%s11152_s1 + $0x6b0] sm:$0xff]   ;;  %v9325_v18 = vld [vmem:[%s9649_s12 + $0x3b8] ss:$108 sps:$4 sm:$0xff]  }
 0x244   : > { %v4971_v40 = vadd.f32 %v7889_v34, %v10459_v29  ;;  %v10662_v38 = vadd.f32 %v7980_v46, %v4968_v7  ;;  %5654 = vmatmul.mubr.bf16.gmra.mrb[12].mxu1 %v9309_v0  ;;  %5525 = vmatprep.mubr.bf16.mxu0 %v9315_v58  ;;  %v9363_v29 = vld [vmem:[%s11152_s1 + $0x6a8] sm:$0xff]   ;;  %v9383_v0 = vld [vmem:[%s11152_s1 + $0x638] sm:$0xff]  }
 0x245   : > { %5661 = vmatprep.mubr.bf16.mxu1 %v9318_v61  ;;  %8435 = vmatpush3.bf16.msra.mxu0 %v9344_v20  ;;  %v9321_v61 = vld [vmem:[%s9649_s12 + $0x3b0] ss:$108 sps:$4 sm:$0xff]  }
 0x246   : > { %v10667_v10 = vadd.f32 %v7983_v22, %v4971_v40  ;;  %v7890_v27 = vpop.f32.mrb[164].mxu0  ;;  %8550 = vmatpush3.bf16.msra.mxu1 %v9351_v6  ;;  %8436 = vmatprep.subr.bf16.mxu0 %v9358_v23  ;;  %v9330_v6 = vld [vmem:[%s9649_s12 + $0x48c] ss:$108 sps:$4 sm:$0xff]  }
 0x247   : > { %v7891_v15 = vpop.f32.mrb[165].mxu0  ;;  %v7984_v24 = vpop.f32.mrb[164].mxu1  ;;  %8551 = vmatprep.subr.bf16.mxu1 %v9480_v39 }
 0x248   : > { %v7892_v26 = vadd.f32 %v7891_v15, %v7890_v27  ;;  %v7893_v25 = vpop.f32.mrb[166].mxu0  ;;  %v7985_v30 = vpop.f32.mrb[165].mxu1 }
 0x249   : > { %v7894_v37 = vpop.f32.mrb[167].mxu0  ;;  %v7986_v8 = vadd.f32 %v7985_v30, %v7984_v24  ;;  %v7987_v12 = vpop.f32.mrb[166].mxu1  ;;  %8437 = vmatpush3.bf16.msra.mxu0 %v9359_v55  ;;  %v9335_v55 = vld [vmem:[%s9649_s12 + $0x494] ss:$108 sps:$4 sm:$0xff]  }
 0x24a   : > { %v4976_v50 = vadd.f32 %v7892_v26, %v10488_v52  ;;  %v7895_v41 = vadd.f32 %v7894_v37, %v7893_v25  ;;  %v7988_v3 = vpop.f32.mrb[167].mxu1  ;;  %8552 = vmatpush3.bf16.msra.mxu1 %v9363_v29  ;;  %8438 = vmatprep.subr.bf16.mxu0 %v9367_v11 }
 0x24b   : > { %v7989_v14 = vadd.f32 %v7988_v3, %v7987_v12  ;;  %5526 = vmatmul.mubr.bf16.gmra.mrb[16].mxu0 %v9313_v42  ;;  %8553 = vmatprep.subr.bf16.mxu1 %v9480_v39  ;;  %v9333_v12 = vld [vmem:[%s9649_s12 + $0x490] ss:$108 sps:$4 sm:$0xff]  }
 0x24c   : > { %v4979_v45 = vadd.f32 %v7895_v41, %v10493_v19  ;;  %v10692_v52 = vadd.f32 %v7986_v8, %v4976_v50  ;;  %5662 = vmatmul.mubr.bf16.gmra.mrb[16].mxu1 %v9316_v62  ;;  %5533 = vmatprep.mubr.bf16.mxu0 %v9323_v43  ;;  %v9388_v19 = vld [vmem:[%s11152_s1 + $0x6b8] sm:$0xff]   ;;  %v9328_v62 = vld [vmem:[%s9649_s12 + $0x488] ss:$108 sps:$4 sm:$0xff]  }
 0x24d   : > { %5669 = vmatprep.mubr.bf16.mxu1 %v9327_v56  ;;  %8439 = vmatpush3.bf16.msra.mxu0 %v9371_v59  ;;  %v9339_v56 = vld [vmem:[%s9649_s12 + $0x564] ss:$108 sps:$4 sm:$0xff]   ;;  %v9342_v41 = vld [vmem:[%s9649_s12 + $0x56c] ss:$108 sps:$4 sm:$0xff]  }
 0x24e   : > { %v10697_v58 = vadd.f32 %v7989_v14, %v4979_v45  ;;  %v7896_v1 = vpop.f32.mrb[168].mxu0  ;;  %8554 = vmatpush3.bf16.msra.mxu1 %v9375_v33  ;;  %8440 = vmatprep.subr.bf16.mxu0 %v9382_v63 }
 0x24f   : > { %v7897_v46 = vpop.f32.mrb[169].mxu0  ;;  %v7990_v16 = vpop.f32.mrb[168].mxu1  ;;  %8555 = vmatprep.subr.bf16.mxu1 %v9480_v39 }
 0x250   : > { %v7898_v20 = vadd.f32 %v7897_v46, %v7896_v1  ;;  %v7899_v7 = vpop.f32.mrb[170].mxu0  ;;  %v7991_v34 = vpop.f32.mrb[169].mxu1 }
 0x251   : > { %v7900_v23 = vpop.f32.mrb[171].mxu0  ;;  %v7992_v22 = vadd.f32 %v7991_v34, %v7990_v16  ;;  %v7993_v40 = vpop.f32.mrb[170].mxu1  ;;  %8441 = vmatpush3.bf16.msra.mxu0 %v9383_v0  ;;  %v9340_v34 = vld [vmem:[%s9649_s12 + $0x568] ss:$108 sps:$4 sm:$0xff]  }
 0x252   : > { %v4984_v27 = vadd.f32 %v7898_v20, %v10508_v51  ;;  %v7901_v29 = vadd.f32 %v7900_v23, %v7899_v7  ;;  %v7994_v11 = vpop.f32.mrb[171].mxu1  ;;  %8556 = vmatpush3.bf16.msra.mxu1 %v9388_v19 }
 0x253   : > { %v7995_v15 = vadd.f32 %v7994_v11, %v7993_v40  ;;  %5534 = vmatmul.mubr.bf16.gmra.mrb[20].mxu0 %v9321_v61 }
 0x254   : > { %v4987_v24 = vadd.f32 %v7901_v29, %v10510_v53  ;;  %v10709_v42 = vadd.f32 %v7992_v22, %v4984_v27  ;;  %5670 = vmatmul.mubr.bf16.gmra.mrb[20].mxu1 %v9325_v18  ;;  %5541 = vmatprep.mubr.bf16.mxu0 %v9330_v6  ;;  %v9347_v18 = vld [vmem:[%s9649_s12 + $0x63c] ss:$108 sps:$4 sm:$0xff]   ;;  %v9350_v22 = vld [vmem:[%s9649_s12 + $0x644] ss:$108 sps:$4 sm:$0xff]  }
 0x255   : > { %5677 = vmatprep.mubr.bf16.mxu1 %v9335_v55 }
 0x256   : > { %v10711_v26 = vadd.f32 %v7995_v15, %v4987_v24  ;;  %v7902_v25 = vpop.f32.mrb[172].mxu0 }
 0x257   : > { %v7903_v30 = vpop.f32.mrb[173].mxu0  ;;  %v7996_v51 = vpop.f32.mrb[172].mxu1 }
 0x258   : > { %v7904_v43 = vadd.f32 %v7903_v30, %v7902_v25  ;;  %v7905_v37 = vpop.f32.mrb[174].mxu0  ;;  %v7997_v8 = vpop.f32.mrb[173].mxu1 }
 0x259   : > { %v7906_v59 = vpop.f32.mrb[175].mxu0  ;;  %v7998_v50 = vadd.f32 %v7997_v8, %v7996_v51  ;;  %v7999_v53 = vpop.f32.mrb[174].mxu1  ;;  %v9348_v8 = vld [vmem:[%s9649_s12 + $0x640] ss:$108 sps:$4 sm:$0xff]  }
 0x25a   : > { %v4992_v3 = vadd.f32 %v7904_v43, %v10518_v9  ;;  %v7907_v33 = vadd.f32 %v7906_v59, %v7905_v37  ;;  %v8000_v63 = vpop.f32.mrb[175].mxu1  ;;  %v9337_v9 = vld [vmem:[%s9649_s12 + $0x560] ss:$108 sps:$4 sm:$0xff]  }
 0x25b   : > { %v8001_v14 = vadd.f32 %v8000_v63, %v7999_v53  ;;  %5542 = vmatmul.mubr.bf16.gmra.mrb[24].mxu0 %v9328_v62 }
 0x25c   : > { %v4995_v45 = vadd.f32 %v7907_v33, %v10520_v28  ;;  %v10719_v0 = vadd.f32 %v7998_v50, %v4992_v3  ;;  %5678 = vmatmul.mubr.bf16.gmra.mrb[24].mxu1 %v9333_v12  ;;  %5549 = vmatprep.mubr.bf16.mxu0 %v9339_v56  ;;  %v9354_v12 = vld [vmem:[%s9649_s12 + $0x714] ss:$108 sps:$4 sm:$0xff]   ;;  %v9357_v50 = vld [vmem:[%s9649_s12 + $0x71c] ss:$108 sps:$4 sm:$0xff]  }
 0x25d   : > { %5685 = vmatprep.mubr.bf16.mxu1 %v9342_v41 }
 0x25e   : > { %v10721_v1 = vadd.f32 %v8001_v14, %v4995_v45  ;;  %v7908_v19 = vpop.f32.mrb[176].mxu0 }
 0x25f   : > { %v7909_v46 = vpop.f32.mrb[177].mxu0  ;;  %v8002_v16 = vpop.f32.mrb[176].mxu1 }
 0x260   : > { %v7910_v61 = vadd.f32 %v7909_v46, %v7908_v19  ;;  %v7911_v20 = vpop.f32.mrb[178].mxu0  ;;  %v8003_v7 = vpop.f32.mrb[177].mxu1 }
 0x261   : > { %v7912_v6 = vpop.f32.mrb[179].mxu0  ;;  %v8004_v23 = vadd.f32 %v8003_v7, %v8002_v16  ;;  %v8005_v28 = vpop.f32.mrb[178].mxu1  ;;  %v9352_v16 = vld [vmem:[%s9649_s12 + $0x710] ss:$108 sps:$4 sm:$0xff]   ;;  %v9355_v7 = vld [vmem:[%s9649_s12 + $0x718] ss:$108 sps:$4 sm:$0xff]  }
 0x262   : > { %v5000_v40 = vadd.f32 %v7910_v61, %v10528_v17  ;;  %v7913_v55 = vadd.f32 %v7912_v6, %v7911_v20  ;;  %v8006_v27 = vpop.f32.mrb[179].mxu1  ;;  %v9345_v17 = vld [vmem:[%s9649_s12 + $0x638] ss:$108 sps:$4 sm:$0xff]  }
 0x263   : > { %v8007_v29 = vadd.f32 %v8006_v27, %v8005_v28  ;;  %5550 = vmatmul.mubr.bf16.gmra.mrb[28].mxu0 %v9337_v9 }
 0x264   : > { %v5003_v11 = vadd.f32 %v7913_v55, %v10530_v44  ;;  %v10729_v15 = vadd.f32 %v8004_v23, %v5000_v40  ;;  %5686 = vmatmul.mubr.bf16.gmra.mrb[28].mxu1 %v9340_v34  ;;  %5557 = vmatprep.mubr.bf16.mxu0 %v9347_v18  ;;  %v9362_v34 = vld [vmem:[%s9649_s12 + $0x7ec] ss:$108 sps:$4 sm:$0xff]   ;;  %v9366_v23 = vld [vmem:[%s9649_s12 + $0x7f4] ss:$108 sps:$4 sm:$0xff]  }
 0x265   : > { %5693 = vmatprep.mubr.bf16.mxu1 %v9350_v22 }
 0x266   : > { %v10731_v24 = vadd.f32 %v8007_v29, %v5003_v11  ;;  %v7914_v25 = vpop.f32.mrb[180].mxu0 }
 0x267   : > { %v7915_v30 = vpop.f32.mrb[181].mxu0  ;;  %v8008_v51 = vpop.f32.mrb[180].mxu1 }
 0x268   : > { %v7916_v62 = vadd.f32 %v7915_v30, %v7914_v25  ;;  %v7917_v43 = vpop.f32.mrb[182].mxu0  ;;  %v8009_v37 = vpop.f32.mrb[181].mxu1 }
 0x269   : > { %v7918_v56 = vpop.f32.mrb[183].mxu0  ;;  %v8010_v59 = vadd.f32 %v8009_v37, %v8008_v51  ;;  %v8011_v44 = vpop.f32.mrb[182].mxu1  ;;  %v9360_v51 = vld [vmem:[%s9649_s12 + $0x7e8] ss:$108 sps:$4 sm:$0xff]  }
 0x26a   : > { %v5008_v53 = vadd.f32 %v7916_v62, %v10538_v21  ;;  %v7919_v41 = vadd.f32 %v7918_v56, %v7917_v43  ;;  %v8012_v3 = vpop.f32.mrb[183].mxu1  ;;  %v9370_v56 = vld [vmem:[%s9649_s12 + $0x8c4] ss:$108 sps:$4 sm:$0xff]  }
 0x26b   : > { %v8013_v33 = vadd.f32 %v8012_v3, %v8011_v44  ;;  %5558 = vmatmul.mubr.bf16.gmra.mrb[32].mxu0 %v9345_v17 }
 0x26c   : > { %v5011_v63 = vadd.f32 %v7919_v41, %v10540_v5  ;;  %v10739_v14 = vadd.f32 %v8010_v59, %v5008_v53  ;;  %5694 = vmatmul.mubr.bf16.gmra.mrb[32].mxu1 %v9348_v8  ;;  %5565 = vmatprep.mubr.bf16.mxu0 %v9354_v12  ;;  %v9364_v12 = vld [vmem:[%s9649_s12 + $0x7f0] ss:$108 sps:$4 sm:$0xff]   ;;  %v9374_v53 = vld [vmem:[%s9649_s12 + $0x8cc] ss:$108 sps:$4 sm:$0xff]  }
 0x26d   : > { %5701 = vmatprep.mubr.bf16.mxu1 %v9357_v50 }
 0x26e   : > { %v10741_v45 = vadd.f32 %v8013_v33, %v5011_v63  ;;  %v7920_v19 = vpop.f32.mrb[184].mxu0 }
 0x26f   : > { %v7921_v46 = vpop.f32.mrb[185].mxu0  ;;  %v8014_v21 = vpop.f32.mrb[184].mxu1 }
 0x270   : > { %v7922_v9 = vadd.f32 %v7921_v46, %v7920_v19  ;;  %v7923_v61 = vpop.f32.mrb[186].mxu0  ;;  %v8015_v20 = vpop.f32.mrb[185].mxu1  ;;  %v9481_v19 = vmov 0  }
 0x271   : > { %v7924_v5 = vpop.f32.mrb[187].mxu0  ;;  %v8016_v18 = vadd.f32 %v8015_v20, %v8014_v21  ;;  %v8017_v6 = vpop.f32.mrb[186].mxu1  ;;  %8655 = vset.pattern.permute.xlu0 %v9481_v19  ;;  %8666 = vset.pattern.permute.xlu1 %v9481_v19 }
 0x272   : > { %v5016_v28 = vadd.f32 %v7922_v9, %v10548_v57  ;;  %v7925_v22 = vadd.f32 %v7924_v5, %v7923_v61  ;;  %v8018_v40 = vpop.f32.mrb[187].mxu1  ;;  %v7276_v61 = vld [vmem:[%s10761_s15 + $0x8] sm:$0xff]  }
 0x273   : > { %v8019_v55 = vadd.f32 %v8018_v40, %v8017_v6  ;;  %5566 = vmatmul.mubr.bf16.gmra.mrb[36].mxu0 %v9352_v16  ;;  %v7174_v5 = vunpack.c.l.bf16 %v7276_v61 }
 0x274   : > { %v5019_v27 = vadd.f32 %v7925_v22, %v10550_v32  ;;  %v10753_v29 = vadd.f32 %v8016_v18, %v5016_v28  ;;  %5702 = vmatmul.mubr.bf16.gmra.mrb[36].mxu1 %v9355_v7  ;;  %5573 = vmatprep.mubr.bf16.mxu0 %v9362_v34  ;;  %v7169_v32 = vld [vmem:[%s10761_s15] sm:$0xff]   ;;  %v7175_v18 = vunpack.c.h.bf16 %v7276_v61  ;;  %v9372_v28 = vld [vmem:[%s9649_s12 + $0x8c8] ss:$108 sps:$4 sm:$0xff]  }
 0x275   : > { %5709 = vmatprep.mubr.bf16.mxu1 %v9366_v23  ;;  %v7170_v17 = vunpack.c.l.bf16 %v7169_v32  ;;  %v7171_v62 = vunpack.c.h.bf16 %v7169_v32  ;;  %v9368_v34 = vld [vmem:[%s9649_s12 + $0x8c0] ss:$108 sps:$4 sm:$0xff]   ;;  %v9378_v22 = vld [vmem:[%s9649_s12 + $0x99c] ss:$108 sps:$4 sm:$0xff]  }
 0x276   : > { %v10763_v57 = vadd.f32 %v8019_v55, %v5019_v27  ;;  %v7926_v11 = vpop.f32.mrb[188].mxu0  ;;  %v8661_v32 = vpack.i.bf16 %v7175_v18, %v7174_v5 }
 0x277   : > { %v7927_v25 = vpop.f32.mrb[189].mxu0  ;;  %v8020_v30 = vpop.f32.mrb[188].mxu1  ;;  %v8656_v41 = vpack.i.bf16 %v7171_v62, %v7170_v17 }
 0x278   : > { %v7928_v43 = vadd.f32 %v7927_v25, %v7926_v11  ;;  %v7929_v37 = vpop.f32.mrb[190].mxu0  ;;  %v8021_v8 = vpop.f32.mrb[189].mxu1  ;;  %v9381_v11 = vld [vmem:[%s9649_s12 + $0x9a4] ss:$108 sps:$4 sm:$0xff]  }
 0x279   : > { %v7930_v59 = vpop.f32.mrb[191].mxu0  ;;  %v8022_v44 = vadd.f32 %v8021_v8, %v8020_v30  ;;  %v8023_v50 = vpop.f32.mrb[190].mxu1  ;;  %8657 = vperm.xlu0 %8655, %v8656_v41  }
 0x27a   : > { %v5024_v3 = vadd.f32 %v7928_v43, %v10558_v4  ;;  %v7931_v33 = vadd.f32 %v7930_v59, %v7929_v37  ;;  %v8024_v63 = vpop.f32.mrb[191].mxu1  ;;  %v650_v37 = vld [vmem:[%s9649_s12 + $0xa70] sm:$0xff] }
 0x27b   : > { %v8025_v46 = vadd.f32 %v8024_v63, %v8023_v50  ;;  %5574 = vmatmul.mubr.bf16.gmra.mrb[40].mxu0 %v9360_v51  ;;  %v9376_v50 = vld [vmem:[%s9649_s12 + $0x998] ss:$108 sps:$4 sm:$0xff]   ;;  %v9379_v63 = vld [vmem:[%s9649_s12 + $0x9a0] ss:$108 sps:$4 sm:$0xff]   ;;  %v6892_v19 = vcombine.high %v650_v37, %v650_v37 }
 0x27c   : > { %v5027_v21 = vadd.f32 %v7931_v33, %v10560_v36  ;;  %v10772_v16 = vadd.f32 %v8022_v44, %v5024_v3  ;;  %5710 = vmatmul.mubr.bf16.gmra.mrb[40].mxu1 %v9364_v12  ;;  %5581 = vmatprep.mubr.bf16.mxu0 %v9370_v56  ;;  %v651_v56 = vld [vmem:[%s9649_s12 + $0xa78] sm:$0xff] }
 0x27d   : > { %5717 = vmatprep.mubr.bf16.mxu1 %v9374_v53  ;;  %8662 = vperm.xlu0 %8655, %v8661_v32   ;;  %v6894_v61 = vcombine.high %v651_v56, %v651_v56 }
 0x27e   : > { %v10774_v4 = vadd.f32 %v8025_v46, %v5027_v21  ;;  %v7932_v9 = vpop.f32.mrb[192].mxu0 }
 0x27f   : > { %v7933_v20 = vpop.f32.mrb[193].mxu0  ;;  %v8026_v7 = vpop.f32.mrb[192].mxu1 }
 0x280   : > { %v7934_v6 = vadd.f32 %v7933_v20, %v7932_v9  ;;  %v7935_v23 = vpop.f32.mrb[194].mxu0  ;;  %v8027_v36 = vpop.f32.mrb[193].mxu1 }
 0x281   : > { %v7936_v40 = vpop.f32.mrb[195].mxu0  ;;  %v8028_v55 = vadd.f32 %v8027_v36, %v8026_v7  ;;  %v8029_v27 = vpop.f32.mrb[194].mxu1 }
 0x282   : > { %v5032_v25 = vadd.f32 %v7934_v6, %v10568_v49  ;;  %v7937_v30 = vadd.f32 %v7936_v40, %v7935_v23  ;;  %v8030_v51 = vpop.f32.mrb[195].mxu1  ;;  %v7277_v49 = vld [vmem:[%s10761_s15 + $0x10] sm:$0xff]  }
 0x283   : > { %v8031_v17 = vadd.f32 %v8030_v51, %v8029_v27  ;;  %5582 = vmatmul.mubr.bf16.gmra.mrb[44].mxu0 %v9368_v34  ;;  %v7178_v53 = vunpack.c.l.bf16 %v7277_v49  ;;  %v7179_v41 = vunpack.c.h.bf16 %v7277_v49  ;;  %v6893_v51 = vcombine.low %v651_v56, %v651_v56 }
 0x284   : > { %v5035_v62 = vadd.f32 %v7937_v30, %v10571_v48  ;;  %v10783_v43 = vadd.f32 %v8028_v55, %v5032_v25  ;;  %5718 = vmatmul.mubr.bf16.gmra.mrb[44].mxu1 %v9372_v28  ;;  %5589 = vmatprep.mubr.bf16.mxu0 %v9378_v22  ;;  %v7278_v22 = vld [vmem:[%s10761_s15 + $0x18] sm:$0xff]  }
 0x285   : > { %5725 = vmatprep.mubr.bf16.mxu1 %v9381_v11  ;;  %v8667_v20 = vpack.i.bf16 %v7179_v41, %v7178_v53  ;;  %v7182_v27 = vunpack.c.l.bf16 %v7278_v22  ;;  %v7183_v11 = vunpack.c.h.bf16 %v7278_v22 }
 0x286   : > { %v10786_v8 = vadd.f32 %v8031_v17, %v5035_v62  ;;  %v7938_v12 = vpop.f32.mrb[196].mxu0 }
 0x287   : > { %v7939_v59 = vpop.f32.mrb[197].mxu0  ;;  %v8032_v44 = vpop.f32.mrb[196].mxu1  ;;  %8668 = vperm.xlu1 %8666, %v8667_v20   ;;  %v8672_v49 = vpack.i.bf16 %v7183_v11, %v7182_v27  ;;  %v9395_v20 = vld [vmem:[%s9649_s12 + $0x13c] ss:$108 sps:$4 sm:$0xff]   ;;  %v9393_v11 = vld [vmem:[%s9649_s12 + $0x138] ss:$108 sps:$4 sm:$0xff]  }
 0x288   : > { %v7940_v3 = vadd.f32 %v7939_v59, %v7938_v12  ;;  %v7941_v33 = vpop.f32.mrb[198].mxu0  ;;  %v8033_v48 = vpop.f32.mrb[197].mxu1 }
 0x289   : > { %v7942_v46 = vpop.f32.mrb[199].mxu0  ;;  %v8034_v21 = vadd.f32 %v8033_v48, %v8032_v44  ;;  %v8035_v9 = vpop.f32.mrb[198].mxu1 }
 0x28a   : > { %v5040_v7 = vadd.f32 %v7940_v3, %v10578_v13  ;;  %v7943_v34 = vadd.f32 %v7942_v46, %v7941_v33  ;;  %v8036_v5 = vpop.f32.mrb[199].mxu1  ;;  %v6891_v13 = vcombine.low %v650_v37, %v650_v37  ;;  %v7279_v3 = vld [vmem:[%s10761_s15 + $0x20] sm:$0xff]  }
 0x28b   : > { %v8037_v18 = vadd.f32 %v8036_v5, %v8035_v9  ;;  %5590 = vmatmul.mubr.bf16.gmra.mrb[48].mxu0 %v9376_v50  ;;  %8673 = vperm.xlu1 %8666, %v8672_v49   ;;  %v7187_v46 = vunpack.c.h.bf16 %v7279_v3 }
 0x28c   : > { %v5043_v6 = vadd.f32 %v7943_v34, %v10580_v35  ;;  %v10794_v23 = vadd.f32 %v8034_v21, %v5040_v7  ;;  %5726 = vmatmul.mubr.bf16.gmra.mrb[48].mxu1 %v9379_v63  ;;  %5597 = vmatprep.mubr.bf16.mxu0 %v6892_v19  ;;  %v9391_v35 = vld [vmem:[%s9649_s12 + $0x64] ss:$108 sps:$4 sm:$0xff]   ;;  %v9389_v63 = vld [vmem:[%s9649_s12 + $0x60] ss:$108 sps:$4 sm:$0xff]   ;;  %v7186_v19 = vunpack.c.l.bf16 %v7279_v3 }
 0x28d   : > { %5733 = vmatprep.mubr.bf16.mxu1 %v6894_v61  ;;  %v9392_v61 = vld [vmem:[%s9649_s12 + $0x68] ss:$108 sps:$4 sm:$0xff]  }
 0x28e   : > { %v10796_v36 = vadd.f32 %v8037_v18, %v5043_v6  ;;  %v7944_v28 = vpop.f32.mrb[200].mxu0  ;;  %v8677_v18 = vpack.i.bf16 %v7187_v46, %v7186_v19  ;;  %v9397_v46 = vld [vmem:[%s9649_s12 + $0x210] ss:$108 sps:$4 sm:$0xff]  }
 0x28f   : > { %v7945_v40 = vpop.f32.mrb[201].mxu0  ;;  %v8038_v55 = vpop.f32.mrb[200].mxu1 }
 0x290   : > { %v7946_v32 = vadd.f32 %v7945_v40, %v7944_v28  ;;  %v7947_v25 = vpop.f32.mrb[202].mxu0  ;;  %v8039_v30 = vpop.f32.mrb[201].mxu1  ;;  %8678 = vperm.xlu0 %8655, %v8677_v18  }
 0x291   : > { %v7948_v17 = vpop.f32.mrb[203].mxu0  ;;  %v8040_v62 = vadd.f32 %v8039_v30, %v8038_v55  ;;  %v8041_v12 = vpop.f32.mrb[202].mxu1  ;;  %v7280_v55 = vld [vmem:[%s10761_s15 + $0x28] sm:$0xff]  }
 0x292   : > { %v5048_v59 = vadd.f32 %v7946_v32, %v10586_v31  ;;  %v7949_v44 = vadd.f32 %v7948_v17, %v7947_v25  ;;  %v8042_v50 = vpop.f32.mrb[203].mxu1  ;;  %v7190_v32 = vunpack.c.l.bf16 %v7280_v55  ;;  %v7191_v25 = vunpack.c.h.bf16 %v7280_v55  ;;  %v9399_v17 = vld [vmem:[%s9649_s12 + $0x214] ss:$108 sps:$4 sm:$0xff]  }
 0x293   : > { %v8043_v53 = vadd.f32 %v8042_v50, %v8041_v12  ;;  %5598 = vmatmul.mubr.bf16.gmra.mrb[52].mxu0 %v6891_v13 }
 0x294   : > { %v5051_v37 = vadd.f32 %v7949_v44, %v10588_v60  ;;  %v10802_v41 = vadd.f32 %v8040_v62, %v5048_v59  ;;  %5734 = vmatmul.mubr.bf16.gmra.mrb[52].mxu1 %v6893_v51  ;;  %5773 = vmatprep.mubr.bf16.mxu0 %v9391_v35  ;;  %v9396_v35 = vld [vmem:[%s9649_s12 + $0x140] ss:$108 sps:$4 sm:$0xff]   ;;  %v8682_v59 = vpack.i.bf16 %v7191_v25, %v7190_v32  ;;  %v7282_v25 = vld [vmem:[%s10761_s15 + $0x38] sm:$0xff]  }
 0x295   : > { %8557 = vmatprep.mubr.msk.bf16.mxu1 %vm9482_vm0, %v9480_v39 }
 0x296   : > { %v10806_v56 = vadd.f32 %v8043_v53, %v5051_v37  ;;  %v7950_v31 = vpop.f32.mrb[204].mxu0  ;;  %8683 = vperm.xlu1 %8666, %v8682_v59   ;;  %v9407_v59 = vld [vmem:[%s9649_s12 + $0x3c4] ss:$108 sps:$4 sm:$0xff]  }
 0x297   : > { %v7951_v33 = vpop.f32.mrb[205].mxu0  ;;  %v8044_v48 = vpop.f32.mrb[204].mxu1 }
 0x298   : > { %v7952_v60 = vadd.f32 %v7951_v33, %v7950_v31  ;;  %v7953_v21 = vpop.f32.mrb[206].mxu0  ;;  %v8045_v9 = vpop.f32.mrb[205].mxu1 }
 0x299   : > { %v7954_v7 = vpop.f32.mrb[207].mxu0  ;;  %v8046_v34 = vadd.f32 %v8045_v9, %v8044_v48  ;;  %v8047_v5 = vpop.f32.mrb[206].mxu1  ;;  %v7281_v48 = vld [vmem:[%s10761_s15 + $0x30] sm:$0xff]  }
 0x29a   : > { %v5056_v6 = vadd.f32 %v7952_v60, %v10604_v2  ;;  %v8048_v28 = vpop.f32.mrb[207].mxu1  ;;  %v7194_v60 = vunpack.c.l.bf16 %v7281_v48  ;;  %v7195_v21 = vunpack.c.h.bf16 %v7281_v48  ;;  %v9403_v7 = vld [vmem:[%s9649_s12 + $0x2ec] ss:$108 sps:$4 sm:$0xff]  }
 0x29b   : > { %5774 = vmatmul.mubr.bf16.vlgmr.msra.gmra.mrb[56].mxu0 %v9389_v63 }
 0x29c   : > { %v10813_v22 = vadd.f32 %v8046_v34, %v5056_v6  ;;  %8558 = vmatmul.mubr.bf16.vlgmr.msra.gmra.mrb[56].mxu1 %v9392_v61  ;;  %5781 = vmatprep.mubr.bf16.mxu0 %v9395_v20  ;;  %v9400_v20 = vld [vmem:[%s9649_s12 + $0x218] ss:$108 sps:$4 sm:$0xff]   ;;  %v8687_v6 = vpack.i.bf16 %v7195_v21, %v7194_v60 }
 0x29d   : > { %8561 = vmatprep.mubr.msk.bf16.mxu1 %vm9482_vm0, %v9480_v39  ;;  %v7283_v21 = vld [vmem:[%s10761_s15 + $0x40] sm:$0xff]  }
 0x29e   : > { %v8066_v40 = vpop.f32.mrb[208].mxu0  ;;  %8688 = vperm.xlu0 %8655, %v8687_v6   ;;  %v9411_v6 = vld [vmem:[%s9649_s12 + $0x49c] ss:$108 sps:$4 sm:$0xff]  }
 0x29f   : > { %v8067_v13 = vpop.f32.mrb[209].mxu0  ;;  %v8160_v27 = vpop.f32.mrb[208].mxu1 }
 0x2a0   : > { %v8068_v2 = vadd.f32 %v8067_v13, %v8066_v40  ;;  %v8069_v30 = vpop.f32.mrb[210].mxu0  ;;  %v8161_v51 = vpop.f32.mrb[209].mxu1 }
 0x2a1   : > { %v8070_v62 = vpop.f32.mrb[211].mxu0  ;;  %v8162_v12 = vadd.f32 %v8161_v51, %v8160_v27  ;;  %v8163_v49 = vpop.f32.mrb[210].mxu1  ;;  %v9401_v51 = vld [vmem:[%s9649_s12 + $0x2e8] ss:$108 sps:$4 sm:$0xff]  }
 0x2a2   : > { %v5232_v44 = vadd.f32 %v8068_v2, %v10632_v47  ;;  %v8071_v50 = vadd.f32 %v8070_v62, %v8069_v30  ;;  %v8164_v53 = vpop.f32.mrb[211].mxu1 }
 0x2a3   : > { %v8165_v37 = vadd.f32 %v8164_v53, %v8163_v49  ;;  %5782 = vmatmul.mubr.bf16.gmra.mrb[60].mxu0 %v9393_v11  ;;  %v9404_v49 = vld [vmem:[%s9649_s12 + $0x2f0] ss:$108 sps:$4 sm:$0xff]  }
 0x2a4   : > { %v5235_v31 = vadd.f32 %v8071_v50, %v10637_v54  ;;  %v10823_v3 = vadd.f32 %v8162_v12, %v5232_v44  ;;  %8562 = vmatmul.mubr.bf16.gmra.mrb[60].mxu1 %v9396_v35  ;;  %5789 = vmatprep.mubr.bf16.mxu0 %v9399_v17  ;;  %v7198_v35 = vunpack.c.l.bf16 %v7282_v25  ;;  %v7199_v17 = vunpack.c.h.bf16 %v7282_v25 }
 0x2a5   : > { %8565 = vmatprep.mubr.msk.bf16.mxu1 %vm9482_vm0, %v9480_v39 }
 0x2a6   : > { %v10827_v33 = vadd.f32 %v8165_v37, %v5235_v31  ;;  %v8072_v47 = vpop.f32.mrb[212].mxu0  ;;  %v8692_v37 = vpack.i.bf16 %v7199_v17, %v7198_v35  ;;  %v7285_v35 = vld [vmem:[%s10761_s15 + $0x50] sm:$0xff]  }
 0x2a7   : > { %v8073_v63 = vpop.f32.mrb[213].mxu0  ;;  %v8166_v19 = vpop.f32.mrb[212].mxu1  ;;  %v7211_v17 = vunpack.c.h.bf16 %v7285_v35 }
 0x2a8   : > { %v8074_v9 = vadd.f32 %v8073_v63, %v8072_v47  ;;  %v8075_v54 = vpop.f32.mrb[214].mxu0  ;;  %v8167_v61 = vpop.f32.mrb[213].mxu1  ;;  %8693 = vperm.xlu1 %8666, %v8692_v37  }
 0x2a9   : > { %v8076_v34 = vpop.f32.mrb[215].mxu0  ;;  %v8168_v5 = vadd.f32 %v8167_v61, %v8166_v19  ;;  %v8169_v18 = vpop.f32.mrb[214].mxu1  ;;  %v9405_v61 = vld [vmem:[%s9649_s12 + $0x3c0] ss:$108 sps:$4 sm:$0xff]  }
 0x2aa   : > { %v5240_v28 = vadd.f32 %v8074_v9, %v10662_v38  ;;  %v8077_v40 = vadd.f32 %v8076_v34, %v8075_v54  ;;  %v8170_v55 = vpop.f32.mrb[215].mxu1 }
 0x2ab   : > { %v8171_v13 = vadd.f32 %v8170_v55, %v8169_v18  ;;  %5790 = vmatmul.mubr.bf16.gmra.mrb[64].mxu0 %v9397_v46  ;;  %v9408_v18 = vld [vmem:[%s9649_s12 + $0x3c8] ss:$108 sps:$4 sm:$0xff]  }
 0x2ac   : > { %v5243_v27 = vadd.f32 %v8077_v40, %v10667_v10  ;;  %v10835_v11 = vadd.f32 %v8168_v5, %v5240_v28  ;;  %8566 = vmatmul.mubr.bf16.gmra.mrb[64].mxu1 %v9400_v20  ;;  %5797 = vmatprep.mubr.bf16.mxu0 %v9403_v7  ;;  %v7202_v20 = vunpack.c.l.bf16 %v7283_v21  ;;  %v7203_v7 = vunpack.c.h.bf16 %v7283_v21 }
 0x2ad   : > { %8569 = vmatprep.mubr.msk.bf16.mxu1 %vm9482_vm0, %v9480_v39 }
 0x2ae   : > { %v10839_v32 = vadd.f32 %v8171_v13, %v5243_v27  ;;  %v8078_v38 = vpop.f32.mrb[216].mxu0  ;;  %v8697_v13 = vpack.i.bf16 %v7203_v7, %v7202_v20  ;;  %v6126_v7 = vld [vmem:[%s10761_s15 + $0x60] sm:$0xf] }
 0x2af   : > { %v8079_v2 = vpop.f32.mrb[217].mxu0  ;;  %v8172_v30 = vpop.f32.mrb[216].mxu1 }
 0x2b0   : > { %v8080_v62 = vadd.f32 %v8079_v2, %v8078_v38  ;;  %v8081_v10 = vpop.f32.mrb[218].mxu0  ;;  %v8173_v12 = vpop.f32.mrb[217].mxu1  ;;  %8698 = vperm.xlu0 %8655, %v8697_v13  }
 0x2b1   : > { %v8082_v44 = vpop.f32.mrb[219].mxu0  ;;  %v8174_v50 = vadd.f32 %v8173_v12, %v8172_v30  ;;  %v8175_v53 = vpop.f32.mrb[218].mxu1  ;;  %v7284_v12 = vld [vmem:[%s10761_s15 + $0x48] sm:$0xff]  }
 0x2b2   : > { %v5248_v31 = vadd.f32 %v8080_v62, %v10692_v52  ;;  %v8083_v47 = vadd.f32 %v8082_v44, %v8081_v10  ;;  %v8176_v48 = vpop.f32.mrb[219].mxu1  ;;  %v9409_v44 = vld [vmem:[%s9649_s12 + $0x498] ss:$108 sps:$4 sm:$0xff]  }
 0x2b3   : > { %v8177_v63 = vadd.f32 %v8176_v48, %v8175_v53  ;;  %5798 = vmatmul.mubr.bf16.gmra.mrb[68].mxu0 %v9401_v51  ;;  %v7207_v53 = vunpack.c.h.bf16 %v7284_v12  ;;  %v9412_v48 = vld [vmem:[%s9649_s12 + $0x4a0] ss:$108 sps:$4 sm:$0xff]  }
 0x2b4   : > { %v5251_v19 = vadd.f32 %v8083_v47, %v10697_v58  ;;  %v10847_v46 = vadd.f32 %v8174_v50, %v5248_v31  ;;  %8570 = vmatmul.mubr.bf16.gmra.mrb[68].mxu1 %v9404_v49  ;;  %5805 = vmatprep.mubr.bf16.mxu0 %v9407_v59  ;;  %v7206_v50 = vunpack.c.l.bf16 %v7284_v12 }
 0x2b5   : > { %8573 = vmatprep.mubr.msk.bf16.mxu1 %vm9482_vm0, %v9480_v39 }
 0x2b6   : > { %v10851_v60 = vadd.f32 %v8177_v63, %v5251_v19  ;;  %v8084_v52 = vpop.f32.mrb[220].mxu0  ;;  %v9415_v63 = vld [vmem:[%s9649_s12 + $0x574] ss:$108 sps:$4 sm:$0xff]  }
 0x2b7   : > { %v8085_v9 = vpop.f32.mrb[221].mxu0  ;;  %v8178_v54 = vpop.f32.mrb[220].mxu1 }
 0x2b8   : > { %v8086_v34 = vadd.f32 %v8085_v9, %v8084_v52  ;;  %v8087_v58 = vpop.f32.mrb[222].mxu0  ;;  %v8179_v5 = vpop.f32.mrb[221].mxu1  ;;  %v8702_v9 = vpack.i.bf16 %v7207_v53, %v7206_v50 }
 0x2b9   : > { %v8088_v28 = vpop.f32.mrb[223].mxu0  ;;  %v8180_v40 = vadd.f32 %v8179_v5, %v8178_v54  ;;  %v8181_v55 = vpop.f32.mrb[222].mxu1  ;;  %v6151_v5 = vunpack.c.l.bf16 %v6126_v7 }
 0x2ba   : > { %v5256_v27 = vadd.f32 %v8086_v34, %v10709_v42  ;;  %v8089_v38 = vadd.f32 %v8088_v28, %v8087_v58  ;;  %v8182_v25 = vpop.f32.mrb[223].mxu1  ;;  %v7210_v42 = vunpack.c.l.bf16 %v7285_v35  ;;  %v7286_v34 = vld [vmem:[%s10761_s15 + $0x58] sm:$0xff]   ;;  %8703 = vperm.xlu1 %8666, %v8702_v9   ;;  %v9423_v9 = vld [vmem:[%s9649_s12 + $0x724] ss:$108 sps:$4 sm:$0xff]  }
 0x2bb   : > { %v8183_v2 = vadd.f32 %v8182_v25, %v8181_v55  ;;  %5806 = vmatmul.mubr.bf16.gmra.mrb[72].mxu0 %v9405_v61  ;;  %v9413_v25 = vld [vmem:[%s9649_s12 + $0x570] ss:$108 sps:$4 sm:$0xff]   ;;  %v9416_v35 = vld [vmem:[%s9649_s12 + $0x578] ss:$108 sps:$4 sm:$0xff]  }
 0x2bc   : > { %v5259_v30 = vadd.f32 %v8089_v38, %v10711_v26  ;;  %v10859_v51 = vadd.f32 %v8180_v40, %v5256_v27  ;;  %8574 = vmatmul.mubr.bf16.gmra.mrb[72].mxu1 %v9408_v18  ;;  %5813 = vmatprep.mubr.bf16.mxu0 %v9411_v6  ;;  %v8707_v26 = vpack.i.bf16 %v7211_v17, %v7210_v42  ;;  %v7214_v18 = vunpack.c.l.bf16 %v7286_v34  ;;  %v9419_v42 = vld [vmem:[%s9649_s12 + $0x64c] ss:$108 sps:$4 sm:$0xff]  }
 0x2bd   : > { %8577 = vmatprep.mubr.msk.bf16.mxu1 %vm9482_vm0, %v9480_v39  ;;  %v7215_v6 = vunpack.c.h.bf16 %v7286_v34 }
 0x2be   : > { %v10864_v62 = vadd.f32 %v8183_v2, %v5259_v30  ;;  %v8090_v10 = vpop.f32.mrb[224].mxu0  ;;  %8708 = vperm.xlu0 %8655, %v8707_v26  }
 0x2bf   : > { %v8091_v49 = vpop.f32.mrb[225].mxu0  ;;  %v8184_v59 = vpop.f32.mrb[224].mxu1 }
 0x2c0   : > { %v8092_v37 = vadd.f32 %v8091_v49, %v8090_v10  ;;  %v8093_v31 = vpop.f32.mrb[226].mxu0  ;;  %v8185_v47 = vpop.f32.mrb[225].mxu1 }
 0x2c1   : > { %v8094_v19 = vpop.f32.mrb[227].mxu0  ;;  %v8186_v52 = vadd.f32 %v8185_v47, %v8184_v59  ;;  %v8187_v21 = vpop.f32.mrb[226].mxu1 }
 0x2c2   : > { %v5264_v54 = vadd.f32 %v8092_v37, %v10719_v0  ;;  %v8095_v61 = vadd.f32 %v8094_v19, %v8093_v31  ;;  %v8188_v20 = vpop.f32.mrb[227].mxu1  ;;  %6274 = vperm.xlu0 %8655, %v6151_v5   ;;  %v8712_v0 = vpack.i.bf16 %v7215_v6, %v7214_v18 }
 0x2c3   : > { %v8189_v58 = vadd.f32 %v8188_v20, %v8187_v21  ;;  %5814 = vmatmul.mubr.bf16.gmra.mrb[76].mxu0 %v9409_v44  ;;  %v9420_v21 = vld [vmem:[%s9649_s12 + $0x650] ss:$108 sps:$4 sm:$0xff]  }
 0x2c4   : > { %v5267_v28 = vadd.f32 %v8095_v61, %v10721_v1  ;;  %v10874_v40 = vadd.f32 %v8186_v52, %v5264_v54  ;;  %8578 = vmatmul.mubr.bf16.gmra.mrb[76].mxu1 %v9412_v48  ;;  %5821 = vmatprep.mubr.bf16.mxu0 %v9415_v63  ;;  %v9417_v48 = vld [vmem:[%s9649_s12 + $0x648] ss:$108 sps:$4 sm:$0xff]  }
 0x2c5   : > { %8581 = vmatprep.mubr.msk.bf16.mxu1 %vm9482_vm0, %v9480_v39  ;;  %8713 = vperm.xlu1 %8666, %v8712_v0  }
 0x2c6   : > { %v10878_v55 = vadd.f32 %v8189_v58, %v5267_v28  ;;  %v8096_v13 = vpop.f32.mrb[228].mxu0 }
 0x2c7   : > { %v8097_v27 = vpop.f32.mrb[229].mxu0  ;;  %v8190_v38 = vpop.f32.mrb[228].mxu1 }
 0x2c8   : > { %v8098_v2 = vadd.f32 %v8097_v27, %v8096_v13  ;;  %v8099_v1 = vpop.f32.mrb[230].mxu0  ;;  %v8191_v30 = vpop.f32.mrb[229].mxu1  ;;  %v9421_v13 = vld [vmem:[%s9649_s12 + $0x720] ss:$108 sps:$4 sm:$0xff]  }
 0x2c9   : > { %v8100_v17 = vpop.f32.mrb[231].mxu0  ;;  %v8192_v10 = vadd.f32 %v8191_v30, %v8190_v38  ;;  %v8193_v12 = vpop.f32.mrb[230].mxu1 }
 0x2ca   : > { %v5272_v49 = vadd.f32 %v8098_v2, %v10729_v15  ;;  %v8101_v59 = vadd.f32 %v8100_v17, %v8099_v1  ;;  %v8194_v44 = vpop.f32.mrb[231].mxu1  ;;  %v9424_v2 = vld [vmem:[%s9649_s12 + $0x728] ss:$108 sps:$4 sm:$0xff]  }
 0x2cb   : > { %v8195_v26 = vadd.f32 %v8194_v44, %v8193_v12  ;;  %5822 = vmatmul.mubr.bf16.gmra.mrb[80].mxu0 %v9413_v25  ;;  %v9427_v1 = vld [vmem:[%s9649_s12 + $0x7fc] ss:$108 sps:$4 sm:$0xff]  }
 0x2cc   : > { %v5275_v50 = vadd.f32 %v8101_v59, %v10731_v24  ;;  %v10885_v53 = vadd.f32 %v8192_v10, %v5272_v49  ;;  %8582 = vmatmul.mubr.bf16.gmra.mrb[80].mxu1 %v9416_v35  ;;  %5829 = vmatprep.mubr.bf16.mxu0 %v9419_v42 }
 0x2cd   : > { %8585 = vmatprep.mubr.msk.bf16.mxu1 %vm9482_vm0, %v9480_v39 }
 0x2ce   : > { %v10889_v37 = vadd.f32 %v8195_v26, %v5275_v50  ;;  %v8102_v31 = vpop.f32.mrb[232].mxu0 }
 0x2cf   : > { %v8103_v47 = vpop.f32.mrb[233].mxu0  ;;  %v8196_v15 = vpop.f32.mrb[232].mxu1 }
 0x2d0   : > { %v8104_v63 = vadd.f32 %v8103_v47, %v8102_v31  ;;  %v8105_v19 = vpop.f32.mrb[234].mxu0  ;;  %v8197_v52 = vpop.f32.mrb[233].mxu1  ;;  %v9425_v31 = vld [vmem:[%s9649_s12 + $0x7f8] ss:$108 sps:$4 sm:$0xff]  }
 0x2d1   : > { %v8106_v54 = vpop.f32.mrb[235].mxu0  ;;  %v8198_v24 = vadd.f32 %v8197_v52, %v8196_v15  ;;  %v8199_v61 = vpop.f32.mrb[234].mxu1 }
 0x2d2   : > { %v5280_v20 = vadd.f32 %v8104_v63, %v10739_v14  ;;  %v8107_v7 = vadd.f32 %v8106_v54, %v8105_v19  ;;  %v8200_v34 = vpop.f32.mrb[235].mxu1  ;;  %v9428_v63 = vld [vmem:[%s9649_s12 + $0x800] ss:$108 sps:$4 sm:$0xff]  }
 0x2d3   : > { %v8201_v58 = vadd.f32 %v8200_v34, %v8199_v61  ;;  %5830 = vmatmul.mubr.bf16.gmra.mrb[84].mxu0 %v9417_v48  ;;  %v9431_v19 = vld [vmem:[%s9649_s12 + $0x8d4] ss:$108 sps:$4 sm:$0xff]  }
 0x2d4   : > { %v5283_v5 = vadd.f32 %v8107_v7, %v10741_v45  ;;  %v10896_v18 = vadd.f32 %v8198_v24, %v5280_v20  ;;  %8586 = vmatmul.mubr.bf16.gmra.mrb[84].mxu1 %v9420_v21  ;;  %5837 = vmatprep.mubr.bf16.mxu0 %v9423_v9 }
 0x2d5   : > { %8589 = vmatprep.mubr.msk.bf16.mxu1 %vm9482_vm0, %v9480_v39 }
 0x2d6   : > { %v10900_v6 = vadd.f32 %v8201_v58, %v5283_v5  ;;  %v8108_v28 = vpop.f32.mrb[236].mxu0 }
 0x2d7   : > { %v8109_v0 = vpop.f32.mrb[237].mxu0  ;;  %v8202_v14 = vpop.f32.mrb[236].mxu1 }
 0x2d8   : > { %v8110_v27 = vadd.f32 %v8109_v0, %v8108_v28  ;;  %v8111_v38 = vpop.f32.mrb[238].mxu0  ;;  %v8203_v25 = vpop.f32.mrb[237].mxu1  ;;  %v9429_v28 = vld [vmem:[%s9649_s12 + $0x8d0] ss:$108 sps:$4 sm:$0xff]  }
 0x2d9   : > { %v8112_v30 = vpop.f32.mrb[239].mxu0  ;;  %v8204_v45 = vadd.f32 %v8203_v25, %v8202_v14  ;;  %v8205_v35 = vpop.f32.mrb[238].mxu1 }
 0x2da   : > { %v5288_v42 = vadd.f32 %v8110_v27, %v10753_v29  ;;  %v8113_v17 = vadd.f32 %v8112_v30, %v8111_v38  ;;  %v8206_v10 = vpop.f32.mrb[239].mxu1  ;;  %v9432_v27 = vld [vmem:[%s9649_s12 + $0x8d8] ss:$108 sps:$4 sm:$0xff]  }
 0x2db   : > { %v8207_v12 = vadd.f32 %v8206_v10, %v8205_v35  ;;  %5838 = vmatmul.mubr.bf16.gmra.mrb[88].mxu0 %v9421_v13  ;;  %v9435_v38 = vld [vmem:[%s9649_s12 + $0x9ac] ss:$108 sps:$4 sm:$0xff]   ;;  %v652_v10 = vld [vmem:[%s9649_s12 + $0xa80] sm:$0xff] }
 0x2dc   : > { %v5291_v49 = vadd.f32 %v8113_v17, %v10763_v57  ;;  %v10907_v59 = vadd.f32 %v8204_v45, %v5288_v42  ;;  %8590 = vmatmul.mubr.bf16.gmra.mrb[88].mxu1 %v9424_v2  ;;  %5845 = vmatprep.mubr.bf16.mxu0 %v9427_v1 }
 0x2dd   : > { %8593 = vmatprep.mubr.msk.bf16.mxu1 %vm9482_vm0, %v9480_v39 }
 0x2de   : > { %v10911_v44 = vadd.f32 %v8207_v12, %v5291_v49  ;;  %v8114_v26 = vpop.f32.mrb[240].mxu0 }
 0x2df   : > { %v8115_v50 = vpop.f32.mrb[241].mxu0  ;;  %v8208_v29 = vpop.f32.mrb[240].mxu1 }
 0x2e0   : > { %v8116_v47 = vadd.f32 %v8115_v50, %v8114_v26  ;;  %v8117_v15 = vpop.f32.mrb[242].mxu0  ;;  %v8209_v48 = vpop.f32.mrb[241].mxu1  ;;  %v9433_v50 = vld [vmem:[%s9649_s12 + $0x9a8] ss:$108 sps:$4 sm:$0xff]  }
 0x2e1   : > { %v8118_v52 = vpop.f32.mrb[243].mxu0  ;;  %v8210_v57 = vadd.f32 %v8209_v48, %v8208_v29  ;;  %v8211_v21 = vpop.f32.mrb[242].mxu1  ;;  %v6896_v48 = vcombine.high %v652_v10, %v652_v10 }
 0x2e2   : > { %v5296_v9 = vadd.f32 %v8116_v47, %v10772_v16  ;;  %v8119_v54 = vadd.f32 %v8118_v52, %v8117_v15  ;;  %v8212_v24 = vpop.f32.mrb[243].mxu1  ;;  %v9436_v15 = vld [vmem:[%s9649_s12 + $0x9b0] ss:$108 sps:$4 sm:$0xff]  }
 0x2e3   : > { %v8213_v61 = vadd.f32 %v8212_v24, %v8211_v21  ;;  %5846 = vmatmul.mubr.bf16.gmra.mrb[92].mxu0 %v9425_v31 }
 0x2e4   : > { %v5299_v20 = vadd.f32 %v8119_v54, %v10774_v4  ;;  %v10918_v7 = vadd.f32 %v8210_v57, %v5296_v9  ;;  %8594 = vmatmul.mubr.bf16.gmra.mrb[92].mxu1 %v9428_v63  ;;  %5853 = vmatprep.mubr.bf16.mxu0 %v9431_v19 }
 0x2e5   : > { %8597 = vmatprep.mubr.msk.bf16.mxu1 %vm9482_vm0, %v9480_v39 }
 0x2e6   : > { %v10922_v34 = vadd.f32 %v8213_v61, %v5299_v20  ;;  %v8120_v58 = vpop.f32.mrb[244].mxu0 }
 0x2e7   : > { %v8121_v5 = vpop.f32.mrb[245].mxu0  ;;  %v8214_v16 = vpop.f32.mrb[244].mxu1 }
 0x2e8   : > { %v8122_v0 = vadd.f32 %v8121_v5, %v8120_v58  ;;  %v8123_v14 = vpop.f32.mrb[246].mxu0  ;;  %v8215_v13 = vpop.f32.mrb[245].mxu1 }
 0x2e9   : > { %v8124_v4 = vpop.f32.mrb[247].mxu0  ;;  %v8216_v25 = vadd.f32 %v8215_v13, %v8214_v16  ;;  %v8217_v2 = vpop.f32.mrb[246].mxu1 }
 0x2ea   : > { %v5304_v1 = vadd.f32 %v8122_v0, %v10783_v43  ;;  %v8125_v30 = vadd.f32 %v8124_v4, %v8123_v14  ;;  %v8218_v45 = vpop.f32.mrb[247].mxu1  ;;  %v9439_v14 = vld [vmem:[%s9649_s12 + $0xa88] ss:$0 sps:$4 sm:$0xff]  }
 0x2eb   : > { %v8219_v35 = vadd.f32 %v8218_v45, %v8217_v2  ;;  %5854 = vmatmul.mubr.bf16.gmra.mrb[96].mxu0 %v9429_v28 }
 0x2ec   : > { %v5307_v42 = vadd.f32 %v8125_v30, %v10786_v8  ;;  %v10929_v17 = vadd.f32 %v8216_v25, %v5304_v1  ;;  %8598 = vmatmul.mubr.bf16.gmra.mrb[96].mxu1 %v9432_v27  ;;  %5861 = vmatprep.mubr.bf16.mxu0 %v9435_v38 }
 0x2ed   : > { %8601 = vmatprep.mubr.msk.bf16.mxu1 %vm9482_vm0, %v9480_v39 }
 0x2ee   : > { %v10934_v12 = vadd.f32 %v8219_v35, %v5307_v42  ;;  %v8126_v49 = vpop.f32.mrb[248].mxu0 }
 0x2ef   : > { %v8127_v26 = vpop.f32.mrb[249].mxu0  ;;  %v8220_v43 = vpop.f32.mrb[248].mxu1 }
 0x2f0   : > { %v8128_v29 = vadd.f32 %v8127_v26, %v8126_v49  ;;  %v8129_v31 = vpop.f32.mrb[250].mxu0  ;;  %v8221_v47 = vpop.f32.mrb[249].mxu1 }
 0x2f1   : > { %v8130_v8 = vpop.f32.mrb[251].mxu0  ;;  %v8222_v63 = vadd.f32 %v8221_v47, %v8220_v43  ;;  %v8223_v19 = vpop.f32.mrb[250].mxu1 }
 0x2f2   : > { %v5312_v52 = vadd.f32 %v8128_v29, %v10794_v23  ;;  %v8131_v57 = vadd.f32 %v8130_v8, %v8129_v31  ;;  %v8224_v21 = vpop.f32.mrb[251].mxu1  ;;  %v6895_v23 = vcombine.low %v652_v10, %v652_v10 }
 0x2f3   : > { %v8225_v9 = vadd.f32 %v8224_v21, %v8223_v19  ;;  %5862 = vmatmul.mubr.bf16.gmra.mrb[100].mxu0 %v9433_v50 }
 0x2f4   : > { %v5315_v54 = vadd.f32 %v8131_v57, %v10796_v36  ;;  %v10940_v24 = vadd.f32 %v8222_v63, %v5312_v52  ;;  %8602 = vmatmul.mubr.bf16.gmra.mrb[100].mxu1 %v9436_v15  ;;  %5869 = vmatprep.mubr.bf16.mxu0 %v6896_v48 }
 0x2f5   : > { %8605 = vmatprep.mubr.msk.bf16.mxu1 %vm9482_vm0, %v9480_v39 }
 0x2f6   : > { %v10944_v61 = vadd.f32 %v8225_v9, %v5315_v54  ;;  %v8132_v20 = vpop.f32.mrb[252].mxu0 }
 0x2f7   : > { %v8133_v58 = vpop.f32.mrb[253].mxu0  ;;  %v8226_v5 = vpop.f32.mrb[252].mxu1 }
 0x2f8   : > { %v8134_v16 = vadd.f32 %v8133_v58, %v8132_v20  ;;  %v8135_v28 = vpop.f32.mrb[254].mxu0  ;;  %v8227_v0 = vpop.f32.mrb[253].mxu1 }
 0x2f9   : > { %v8136_v13 = vpop.f32.mrb[255].mxu0  ;;  %v8228_v27 = vadd.f32 %v8227_v0, %v8226_v5  ;;  %v8229_v36 = vpop.f32.mrb[254].mxu1 }
 0x2fa   : > { %v5320_v38 = vadd.f32 %v8134_v16, %v10802_v41  ;;  %v8137_v4 = vadd.f32 %v8136_v13, %v8135_v28  ;;  %v8230_v25 = vpop.f32.mrb[255].mxu1 }
 0x2fb   : > { %v8231_v2 = vadd.f32 %v8230_v25, %v8229_v36  ;;  %5870 = vmatmul.mubr.bf16.gmra.mrb[104].mxu0 %v6895_v23 }
 0x2fc   : > { %v5323_v39 = vadd.f32 %v8137_v4, %v10806_v56  ;;  %v10949_v1 = vadd.f32 %v8228_v27, %v5320_v38  ;;  %8606 = vmatmul.mubr.bf16.gmra.mrb[104].mxu1 %v9439_v14 }
 0x2fe   : > { %v10951_v30 = vadd.f32 %v8231_v2, %v5323_v39  ;;  %v8138_v45 = vpop.f32.mrb[0].mxu0 }
 0x2ff   : > { %v8139_v35 = vpop.f32.mrb[1].mxu0  ;;  %v8232_v42 = vpop.f32.mrb[0].mxu1 }
 0x300   : > { %v8140_v10 = vadd.f32 %v8139_v35, %v8138_v45  ;;  %v8141_v49 = vpop.f32.mrb[2].mxu0  ;;  %v8233_v26 = vpop.f32.mrb[1].mxu1 }
 0x301   : > { %v8142_v43 = vpop.f32.mrb[3].mxu0  ;;  %v8234_v50 = vadd.f32 %v8233_v26, %v8232_v42  ;;  %v8235_v41 = vpop.f32.mrb[2].mxu1 }
 0x302   : > { %v5328_v29 = vadd.f32 %v8140_v10, %v10813_v22  ;;  %v8236_v31 = vpop.f32.mrb[3].mxu1 }
 0x304   : > { %v10954_v47 = vadd.f32 %v8234_v50, %v5328_v29 }
 0x306   : > { %v8254_v56 = vpop.f32.mrb[4].mxu0 }
 0x307   : > { %v8255_v15 = vpop.f32.mrb[5].mxu0  ;;  %v8348_v48 = vpop.f32.mrb[4].mxu1 }
 0x308   : > { %v8256_v8 = vadd.f32 %v8255_v15, %v8254_v56  ;;  %v8257_v63 = vpop.f32.mrb[6].mxu0  ;;  %v8349_v19 = vpop.f32.mrb[5].mxu1 }
 0x309   : > { %v8258_v52 = vpop.f32.mrb[7].mxu0  ;;  %v8350_v57 = vadd.f32 %v8349_v19, %v8348_v48  ;;  %v8351_v21 = vpop.f32.mrb[6].mxu1 }
 0x30a   : > { %v5504_v9 = vadd.f32 %v8256_v8, %v10823_v3  ;;  %v8259_v54 = vadd.f32 %v8258_v52, %v8257_v63  ;;  %v8352_v20 = vpop.f32.mrb[7].mxu1 }
 0x30b   : > { %v8353_v58 = vadd.f32 %v8352_v20, %v8351_v21 }
 0x30c   : > { %v5507_v5 = vadd.f32 %v8259_v54, %v10827_v33  ;;  %v10958_v22 = vadd.f32 %v8350_v57, %v5504_v9 }
 0x30e   : > { %v10960_v23 = vadd.f32 %v8353_v58, %v5507_v5  ;;  %v8260_v16 = vpop.f32.mrb[8].mxu0 }
 0x30f   : > { %v8261_v28 = vpop.f32.mrb[9].mxu0  ;;  %v8354_v0 = vpop.f32.mrb[8].mxu1 }
 0x310   : > { %v8262_v14 = vadd.f32 %v8261_v28, %v8260_v16  ;;  %v8263_v13 = vpop.f32.mrb[10].mxu0  ;;  %v8355_v27 = vpop.f32.mrb[9].mxu1 }
 0x311   : > { %v8264_v36 = vpop.f32.mrb[11].mxu0  ;;  %v8356_v38 = vadd.f32 %v8355_v27, %v8354_v0  ;;  %v8357_v4 = vpop.f32.mrb[10].mxu1 }
 0x312   : > { %v5512_v3 = vadd.f32 %v8262_v14, %v10835_v11  ;;  %v8265_v25 = vadd.f32 %v8264_v36, %v8263_v13  ;;  %v8358_v2 = vpop.f32.mrb[11].mxu1 }
 0x313   : > { %v8359_v39 = vadd.f32 %v8358_v2, %v8357_v4 }
 0x314   : > { %v5515_v33 = vadd.f32 %v8265_v25, %v10839_v32  ;;  %v10964_v45 = vadd.f32 %v8356_v38, %v5512_v3 }
 0x316   : > { %v10966_v35 = vadd.f32 %v8359_v39, %v5515_v33  ;;  %v8266_v42 = vpop.f32.mrb[12].mxu0 }
 0x317   : > { %v8267_v10 = vpop.f32.mrb[13].mxu0  ;;  %v8360_v49 = vpop.f32.mrb[12].mxu1 }
 0x318   : > { %v8268_v26 = vadd.f32 %v8267_v10, %v8266_v42  ;;  %v8269_v43 = vpop.f32.mrb[14].mxu0  ;;  %v8361_v50 = vpop.f32.mrb[13].mxu1 }
 0x319   : > { %v8270_v41 = vpop.f32.mrb[15].mxu0  ;;  %v8362_v29 = vadd.f32 %v8361_v50, %v8360_v49  ;;  %v8363_v31 = vpop.f32.mrb[14].mxu1 }
 0x31a   : > { %v5520_v11 = vadd.f32 %v8268_v26, %v10847_v46  ;;  %v8271_v56 = vadd.f32 %v8270_v41, %v8269_v43  ;;  %v8364_v15 = vpop.f32.mrb[15].mxu1 }
 0x31b   : > { %v8365_v48 = vadd.f32 %v8364_v15, %v8363_v31 }
 0x31c   : > { %v5523_v32 = vadd.f32 %v8271_v56, %v10851_v60  ;;  %v10970_v8 = vadd.f32 %v8362_v29, %v5520_v11 }
 0x31e   : > { %v10972_v63 = vadd.f32 %v8365_v48, %v5523_v32  ;;  %v8272_v19 = vpop.f32.mrb[16].mxu0 }
 0x31f   : > { %v8273_v52 = vpop.f32.mrb[17].mxu0  ;;  %v8366_v57 = vpop.f32.mrb[16].mxu1 }
 0x320   : > { %v8274_v21 = vadd.f32 %v8273_v52, %v8272_v19  ;;  %v8275_v9 = vpop.f32.mrb[18].mxu0  ;;  %v8367_v54 = vpop.f32.mrb[17].mxu1 }
 0x321   : > { %v8276_v20 = vpop.f32.mrb[19].mxu0  ;;  %v8368_v58 = vadd.f32 %v8367_v54, %v8366_v57  ;;  %v8369_v5 = vpop.f32.mrb[18].mxu1 }
 0x322   : > { %v5528_v46 = vadd.f32 %v8274_v21, %v10859_v51  ;;  %v8277_v16 = vadd.f32 %v8276_v20, %v8275_v9  ;;  %v8370_v28 = vpop.f32.mrb[19].mxu1 }
 0x323   : > { %v8371_v0 = vadd.f32 %v8370_v28, %v8369_v5 }
 0x324   : > { %v5531_v60 = vadd.f32 %v8277_v16, %v10864_v62  ;;  %v10976_v14 = vadd.f32 %v8368_v58, %v5528_v46 }
 0x326   : > { %v10978_v13 = vadd.f32 %v8371_v0, %v5531_v60  ;;  %v8278_v27 = vpop.f32.mrb[20].mxu0 }
 0x327   : > { %v8279_v36 = vpop.f32.mrb[21].mxu0  ;;  %v8372_v38 = vpop.f32.mrb[20].mxu1 }
 0x328   : > { %v8280_v4 = vadd.f32 %v8279_v36, %v8278_v27  ;;  %v8281_v3 = vpop.f32.mrb[22].mxu0  ;;  %v8373_v25 = vpop.f32.mrb[21].mxu1 }
 0x329   : > { %v8282_v2 = vpop.f32.mrb[23].mxu0  ;;  %v8374_v39 = vadd.f32 %v8373_v25, %v8372_v38  ;;  %v8375_v33 = vpop.f32.mrb[22].mxu1 }
 0x32a   : > { %v5536_v51 = vadd.f32 %v8280_v4, %v10874_v40  ;;  %v8283_v42 = vadd.f32 %v8282_v2, %v8281_v3  ;;  %v8376_v10 = vpop.f32.mrb[23].mxu1 }
 0x32b   : > { %v8377_v49 = vadd.f32 %v8376_v10, %v8375_v33 }
 0x32c   : > { %v5539_v62 = vadd.f32 %v8283_v42, %v10878_v55  ;;  %v10982_v26 = vadd.f32 %v8374_v39, %v5536_v51 }
 0x32e   : > { %v10984_v43 = vadd.f32 %v8377_v49, %v5539_v62  ;;  %v8284_v50 = vpop.f32.mrb[24].mxu0 }
 0x32f   : > { %v8285_v41 = vpop.f32.mrb[25].mxu0  ;;  %v8378_v29 = vpop.f32.mrb[24].mxu1 }
 0x330   : > { %v8286_v31 = vadd.f32 %v8285_v41, %v8284_v50  ;;  %v8287_v11 = vpop.f32.mrb[26].mxu0  ;;  %v8379_v56 = vpop.f32.mrb[25].mxu1 }
 0x331   : > { %v8288_v15 = vpop.f32.mrb[27].mxu0  ;;  %v8380_v48 = vadd.f32 %v8379_v56, %v8378_v29  ;;  %v8381_v32 = vpop.f32.mrb[26].mxu1 }
 0x332   : > { %v5544_v40 = vadd.f32 %v8286_v31, %v10885_v53  ;;  %v8289_v19 = vadd.f32 %v8288_v15, %v8287_v11  ;;  %v8382_v52 = vpop.f32.mrb[27].mxu1 }
 0x333   : > { %v8383_v57 = vadd.f32 %v8382_v52, %v8381_v32 }
 0x334   : > { %v5547_v55 = vadd.f32 %v8289_v19, %v10889_v37  ;;  %v10988_v21 = vadd.f32 %v8380_v48, %v5544_v40 }
 0x336   : > { %v10990_v9 = vadd.f32 %v8383_v57, %v5547_v55  ;;  %v8290_v54 = vpop.f32.mrb[28].mxu0 }
 0x337   : > { %v8291_v20 = vpop.f32.mrb[29].mxu0  ;;  %v8384_v58 = vpop.f32.mrb[28].mxu1 }
 0x338   : > { %v8292_v5 = vadd.f32 %v8291_v20, %v8290_v54  ;;  %v8293_v46 = vpop.f32.mrb[30].mxu0  ;;  %v8385_v16 = vpop.f32.mrb[29].mxu1 }
 0x339   : > { %v8294_v28 = vpop.f32.mrb[31].mxu0  ;;  %v8386_v0 = vadd.f32 %v8385_v16, %v8384_v58  ;;  %v8387_v60 = vpop.f32.mrb[30].mxu1 }
 0x33a   : > { %v5552_v53 = vadd.f32 %v8292_v5, %v10896_v18  ;;  %v8295_v27 = vadd.f32 %v8294_v28, %v8293_v46  ;;  %v8388_v36 = vpop.f32.mrb[31].mxu1 }
 0x33b   : > { %v8389_v38 = vadd.f32 %v8388_v36, %v8387_v60 }
 0x33c   : > { %v5555_v37 = vadd.f32 %v8295_v27, %v10900_v6  ;;  %v10994_v4 = vadd.f32 %v8386_v0, %v5552_v53 }
 0x33e   : > { %v10996_v3 = vadd.f32 %v8389_v38, %v5555_v37  ;;  %v8296_v25 = vpop.f32.mrb[32].mxu0 }
 0x33f   : > { %v8297_v2 = vpop.f32.mrb[33].mxu0  ;;  %v8390_v39 = vpop.f32.mrb[32].mxu1 }
 0x340   : > { %v8298_v33 = vadd.f32 %v8297_v2, %v8296_v25  ;;  %v8299_v51 = vpop.f32.mrb[34].mxu0  ;;  %v8391_v42 = vpop.f32.mrb[33].mxu1 }
 0x341   : > { %v8300_v10 = vpop.f32.mrb[35].mxu0  ;;  %v8392_v49 = vadd.f32 %v8391_v42, %v8390_v39  ;;  %v8393_v62 = vpop.f32.mrb[34].mxu1 }
 0x342   : > { %v5560_v18 = vadd.f32 %v8298_v33, %v10907_v59  ;;  %v8301_v50 = vadd.f32 %v8300_v10, %v8299_v51  ;;  %v8394_v41 = vpop.f32.mrb[35].mxu1 }
 0x343   : > { %v8395_v29 = vadd.f32 %v8394_v41, %v8393_v62 }
 0x344   : > { %v5563_v6 = vadd.f32 %v8301_v50, %v10911_v44  ;;  %v11000_v31 = vadd.f32 %v8392_v49, %v5560_v18 }
 0x346   : > { %v11002_v11 = vadd.f32 %v8395_v29, %v5563_v6  ;;  %v8302_v56 = vpop.f32.mrb[36].mxu0 }
 0x347   : > { %v8303_v15 = vpop.f32.mrb[37].mxu0  ;;  %v8396_v48 = vpop.f32.mrb[36].mxu1 }
 0x348   : > { %v8304_v32 = vadd.f32 %v8303_v15, %v8302_v56  ;;  %v8305_v40 = vpop.f32.mrb[38].mxu0  ;;  %v8397_v19 = vpop.f32.mrb[37].mxu1 }
 0x349   : > { %v8306_v52 = vpop.f32.mrb[39].mxu0  ;;  %v8398_v57 = vadd.f32 %v8397_v19, %v8396_v48  ;;  %v8399_v55 = vpop.f32.mrb[38].mxu1 }
 0x34a   : > { %v5568_v59 = vadd.f32 %v8304_v32, %v10918_v7  ;;  %v8307_v54 = vadd.f32 %v8306_v52, %v8305_v40  ;;  %v8400_v20 = vpop.f32.mrb[39].mxu1 }
 0x34b   : > { %v8401_v58 = vadd.f32 %v8400_v20, %v8399_v55 }
 0x34c   : > { %v5571_v44 = vadd.f32 %v8307_v54, %v10922_v34  ;;  %v11006_v5 = vadd.f32 %v8398_v57, %v5568_v59 }
 0x34e   : > { %v11008_v46 = vadd.f32 %v8401_v58, %v5571_v44  ;;  %v8308_v16 = vpop.f32.mrb[40].mxu0 }
 0x34f   : > { %v8309_v28 = vpop.f32.mrb[41].mxu0  ;;  %v8402_v0 = vpop.f32.mrb[40].mxu1 }
 0x350   : > { %v8310_v60 = vadd.f32 %v8309_v28, %v8308_v16  ;;  %v8311_v53 = vpop.f32.mrb[42].mxu0  ;;  %v8403_v27 = vpop.f32.mrb[41].mxu1 }
 0x351   : > { %v8312_v36 = vpop.f32.mrb[43].mxu0  ;;  %v8404_v38 = vadd.f32 %v8403_v27, %v8402_v0  ;;  %v8405_v37 = vpop.f32.mrb[42].mxu1 }
 0x352   : > { %v5576_v7 = vadd.f32 %v8310_v60, %v10929_v17  ;;  %v8313_v25 = vadd.f32 %v8312_v36, %v8311_v53  ;;  %v8406_v2 = vpop.f32.mrb[43].mxu1 }
 0x353   : > { %v8407_v39 = vadd.f32 %v8406_v2, %v8405_v37 }
 0x354   : > { %v5579_v34 = vadd.f32 %v8313_v25, %v10934_v12  ;;  %v11012_v33 = vadd.f32 %v8404_v38, %v5576_v7 }
 0x356   : > { %v11014_v51 = vadd.f32 %v8407_v39, %v5579_v34  ;;  %v8314_v42 = vpop.f32.mrb[44].mxu0 }
 0x357   : > { %v8315_v10 = vpop.f32.mrb[45].mxu0  ;;  %v8408_v49 = vpop.f32.mrb[44].mxu1 }
 0x358   : > { %v8316_v62 = vadd.f32 %v8315_v10, %v8314_v42  ;;  %v8317_v18 = vpop.f32.mrb[46].mxu0  ;;  %v8409_v50 = vpop.f32.mrb[45].mxu1 }
 0x359   : > { %v8318_v41 = vpop.f32.mrb[47].mxu0  ;;  %v8410_v29 = vadd.f32 %v8409_v50, %v8408_v49  ;;  %v8411_v6 = vpop.f32.mrb[46].mxu1 }
 0x35a   : > { %v5584_v17 = vadd.f32 %v8316_v62, %v10940_v24  ;;  %v8319_v56 = vadd.f32 %v8318_v41, %v8317_v18  ;;  %v8412_v15 = vpop.f32.mrb[47].mxu1 }
 0x35b   : > { %v8413_v48 = vadd.f32 %v8412_v15, %v8411_v6 }
 0x35c   : > { %v5587_v12 = vadd.f32 %v8319_v56, %v10944_v61  ;;  %v11018_v32 = vadd.f32 %v8410_v29, %v5584_v17 }
 0x35e   : > { %v11020_v40 = vadd.f32 %v8413_v48, %v5587_v12  ;;  %v8320_v19 = vpop.f32.mrb[48].mxu0  ;;  %v11035_v48 = vld [vmem:[%s11153_s2] ss:$0 sm:$0xff] }
 0x35f   : > { %v8321_v52 = vpop.f32.mrb[49].mxu0  ;;  %v8414_v57 = vpop.f32.mrb[48].mxu1 }
 0x360   : > { %v8322_v55 = vadd.f32 %v8321_v52, %v8320_v19  ;;  %v8323_v59 = vpop.f32.mrb[50].mxu0  ;;  %v8415_v54 = vpop.f32.mrb[49].mxu1  ;;  %v11041_v19 = vld [vmem:[%s11154_s3] ss:$0 sm:$0xff] }
 0x361   : > { %v8324_v20 = vpop.f32.mrb[51].mxu0  ;;  %v8416_v58 = vadd.f32 %v8415_v54, %v8414_v57  ;;  %v8417_v44 = vpop.f32.mrb[50].mxu1 }
 0x362   : > { %v5592_v24 = vadd.f32 %v8322_v55, %v10949_v1  ;;  %v8325_v16 = vadd.f32 %v8324_v20, %v8323_v59  ;;  %v8418_v28 = vpop.f32.mrb[51].mxu1  ;;  %v8658_v59 = vpop.permute.xlu0 %8657 }
 0x363   : > { %v8419_v0 = vadd.f32 %v8418_v28, %v8417_v44  ;;  %v8659_v28 = vunpack.i.l.bf16 %v8658_v59 }
 0x364   : > { %v5595_v61 = vadd.f32 %v8325_v16, %v10951_v30  ;;  %v11024_v60 = vadd.f32 %v8416_v58, %v5592_v24 }
 0x366   : > { %v11026_v53 = vadd.f32 %v8419_v0, %v5595_v61  ;;  %v8326_v27 = vpop.f32.mrb[52].mxu0 }
 0x367   : > { %v8327_v36 = vpop.f32.mrb[53].mxu0  ;;  %v8420_v38 = vpop.f32.mrb[52].mxu1 }
 0x368   : > { %v8328_v37 = vadd.f32 %v8327_v36, %v8326_v27  ;;  %v8329_v7 = vpop.f32.mrb[54].mxu0  ;;  %v8421_v25 = vpop.f32.mrb[53].mxu1 }
 0x369   : > { %v8330_v2 = vpop.f32.mrb[55].mxu0  ;;  %v8422_v39 = vadd.f32 %v8421_v25, %v8420_v38  ;;  %v8423_v34 = vpop.f32.mrb[54].mxu1 }
 0x36a   : > { %v5600_v1 = vadd.f32 %v8328_v37, %v10954_v47  ;;  %v8424_v42 = vpop.f32.mrb[55].mxu1 }
 0x36c   : > { %v11029_v10 = vadd.f32 %v8422_v39, %v5600_v1 }
 0x36e   : > { %v8442_v49 = vpop.f32.mrb[56].mxu0 }
 0x36f   : > { %v8443_v30 = vpop.f32.mrb[57].mxu0  ;;  %v5911_v62 = vpop.f32.mrb[56].mxu1 }
 0x370   : > { %v8444_v18 = vadd.f32 %v8443_v30, %v8442_v49  ;;  %v8445_v50 = vpop.f32.mrb[58].mxu0  ;;  %v8559_v41 = vpop.f32.mrb[57].mxu1 }
 0x371   : > { %v8446_v29 = vpop.f32.mrb[59].mxu0  ;;  %v5914_v6 = vpop.f32.mrb[58].mxu1 }
 0x372   : > { %v8447_v17 = vadd.f32 %v8446_v29, %v8445_v50  ;;  %v5776_v56 = vadd.f32 %v8444_v18, %v10958_v22  ;;  %v8560_v15 = vpop.f32.mrb[59].mxu1 }
 0x374   : > { %v5912_v47 = vadd.f32 %v5911_v62, %v5776_v56  ;;  %v5779_v12 = vadd.f32 %v8447_v17, %v10960_v23  ;;  %v8660_v23 = vunpack.i.h.bf16 %v8658_v59  ;;  %v8663_v62 = vpop.permute.xlu0 %8662 }
 0x375   : > { %v8665_v56 = vunpack.i.h.bf16 %v8663_v62  ;;  %v8664_v15 = vunpack.i.l.bf16 %v8663_v62 }
 0x376   : > { %v6020_v52 = vmul.f32 %v11035_v48, %v5912_v47  ;;  %v5915_v57 = vadd.f32 %v5914_v6, %v5779_v12  ;;  %v8448_v55 = vpop.f32.mrb[60].mxu0 }
 0x377   : > { %v8449_v22 = vpop.f32.mrb[61].mxu0  ;;  %v5919_v54 = vpop.f32.mrb[60].mxu1 }
 0x378   : > { %v6052_v20 = vadd.f32 %v11041_v19, %v6020_v52  ;;  %v6021_v58 = vmul.f32 %v11035_v48, %v5915_v57  ;;  %v8450_v44 = vadd.f32 %v8449_v22, %v8448_v55  ;;  %v8451_v24 = vpop.f32.mrb[62].mxu0  ;;  %v8563_v16 = vpop.f32.mrb[61].mxu1 }
 0x379   : > { %v8452_v0 = vpop.f32.mrb[63].mxu0  ;;  %v5922_v61 = vpop.f32.mrb[62].mxu1 }
 0x37a   : > { %v6077_v27 = vmax.f32 %v6052_v20, 0.0  ;;  %v6053_v36 = vadd.f32 %v11041_v19, %v6021_v58  ;;  %v8453_v38 = vadd.f32 %v8452_v0, %v8451_v24  ;;  %v5784_v37 = vadd.f32 %v8450_v44, %v10964_v45  ;;  %v8564_v7 = vpop.f32.mrb[63].mxu1  ;;  %v8669_v0 = vpop.permute.xlu1 %8668 }
 0x37c   : > { %v6078_v25 = vmax.f32 %v6053_v36, 0.0  ;;  %v5920_v2 = vadd.f32 %v5919_v54, %v5784_v37  ;;  %v5787_v39 = vadd.f32 %v8453_v38, %v10966_v35  ;;  %v6277_v34 = vmul.f32 %v8659_v28, %v6077_v27 }
 0x37e   : > { %v6278_v1 = vmul.f32 %v8660_v23, %v6078_v25  ;;  %v6022_v42 = vmul.f32 %v11035_v48, %v5920_v2  ;;  %v5923_v49 = vadd.f32 %v5922_v61, %v5787_v39  ;;  %v8454_v30 = vpop.f32.mrb[64].mxu0  ;;  %v8671_v2 = vunpack.i.h.bf16 %v8669_v0 }
 0x37f   : > { %v8455_v45 = vpop.f32.mrb[65].mxu0  ;;  %v5927_v18 = vpop.f32.mrb[64].mxu1 }
 0x380   : > { %v7219_v50 = vpack.c.bf16 %v6278_v1, %v6277_v34  ;;  %v6054_v41 = vadd.f32 %v11041_v19, %v6022_v42  ;;  %v6023_v35 = vmul.f32 %v11035_v48, %v5923_v49  ;;  %v8456_v29 = vadd.f32 %v8455_v45, %v8454_v30  ;;  %v8457_v6 = vpop.f32.mrb[66].mxu0  ;;  %v8567_v17 = vpop.f32.mrb[65].mxu1 }
 0x381   : > { %v8458_v47 = vpop.f32.mrb[67].mxu0  ;;  %v5930_v12 = vpop.f32.mrb[66].mxu1 }
 0x382   : > { %7220 = vst [vmem:[%s11055_s29] sm:$0xff] %v7219_v50   ;;  %v6079_v52 = vmax.f32 %v6054_v41, 0.0  ;;  %v6055_v57 = vadd.f32 %v11041_v19, %v6023_v35  ;;  %v8459_v55 = vadd.f32 %v8458_v47, %v8457_v6  ;;  %v5792_v59 = vadd.f32 %v8456_v29, %v10970_v8  ;;  %v8568_v22 = vpop.f32.mrb[67].mxu1 }
 0x384   : > { %v6080_v54 = vmax.f32 %v6055_v57, 0.0  ;;  %v5928_v20 = vadd.f32 %v5927_v18, %v5792_v59  ;;  %v5795_v58 = vadd.f32 %v8459_v55, %v10972_v63  ;;  %v6279_v44 = vmul.f32 %v8664_v15, %v6079_v52 }
 0x385   : > { %v8670_v63 = vunpack.i.l.bf16 %v8669_v0 }
 0x386   : > { %v6280_v24 = vmul.f32 %v8665_v56, %v6080_v54  ;;  %v6024_v16 = vmul.f32 %v11035_v48, %v5928_v20  ;;  %v5931_v23 = vadd.f32 %v5930_v12, %v5795_v58  ;;  %v8460_v28 = vpop.f32.mrb[68].mxu0  ;;  %v8674_v56 = vpop.permute.xlu1 %8673 }
 0x387   : > { %v8461_v61 = vpop.f32.mrb[69].mxu0  ;;  %v5935_v27 = vpop.f32.mrb[68].mxu1  ;;  %v8676_v22 = vunpack.i.h.bf16 %v8674_v56 }
 0x388   : > { %v7224_v36 = vpack.c.bf16 %v6280_v24, %v6279_v44  ;;  %v6056_v38 = vadd.f32 %v11041_v19, %v6024_v16  ;;  %v6025_v8 = vmul.f32 %v11035_v48, %v5931_v23  ;;  %v8462_v37 = vadd.f32 %v8461_v61, %v8460_v28  ;;  %v8463_v7 = vpop.f32.mrb[70].mxu0  ;;  %v8571_v25 = vpop.f32.mrb[69].mxu1 }
 0x389   : > { %v8464_v39 = vpop.f32.mrb[71].mxu0  ;;  %v5938_v34 = vpop.f32.mrb[70].mxu1 }
 0x38a   : > { %7287 = vst [vmem:[%s11055_s29 + $0x8] sm:$0xff] %v7224_v36   ;;  %v6081_v1 = vmax.f32 %v6056_v38, 0.0  ;;  %v6057_v42 = vadd.f32 %v11041_v19, %v6025_v8  ;;  %v8465_v49 = vadd.f32 %v8464_v39, %v8463_v7  ;;  %v5800_v30 = vadd.f32 %v8462_v37, %v10976_v14  ;;  %v8572_v62 = vpop.f32.mrb[71].mxu1  ;;  %v8679_v7 = vpop.permute.xlu0 %8678 }
 0x38c   : > { %v6082_v45 = vmax.f32 %v6057_v42, 0.0  ;;  %v5936_v18 = vadd.f32 %v5935_v27, %v5800_v30  ;;  %v5803_v50 = vadd.f32 %v8465_v49, %v10978_v13  ;;  %v6281_v41 = vmul.f32 %v8670_v63, %v6081_v1 }
 0x38d   : > { %v8675_v13 = vunpack.i.l.bf16 %v8674_v56  ;;  %v8681_v49 = vunpack.i.h.bf16 %v8679_v7 }
 0x38e   : > { %v6282_v35 = vmul.f32 %v8671_v2, %v6082_v45  ;;  %v6026_v29 = vmul.f32 %v11035_v48, %v5936_v18  ;;  %v5939_v6 = vadd.f32 %v5938_v34, %v5803_v50  ;;  %v8466_v17 = vpop.f32.mrb[72].mxu0 }
 0x38f   : > { %v8467_v15 = vpop.f32.mrb[73].mxu0  ;;  %v5943_v47 = vpop.f32.mrb[72].mxu1 }
 0x390   : > { %v7229_v12 = vpack.c.bf16 %v6282_v35, %v6281_v41  ;;  %v6058_v52 = vadd.f32 %v11041_v19, %v6026_v29  ;;  %v6027_v14 = vmul.f32 %v11035_v48, %v5939_v6  ;;  %v8468_v57 = vadd.f32 %v8467_v15, %v8466_v17  ;;  %v8469_v55 = vpop.f32.mrb[74].mxu0  ;;  %v8575_v59 = vpop.f32.mrb[73].mxu1 }
 0x391   : > { %v8470_v54 = vpop.f32.mrb[75].mxu0  ;;  %v5946_v20 = vpop.f32.mrb[74].mxu1 }
 0x392   : > { %7288 = vst [vmem:[%s11055_s29 + $0x10] sm:$0xff] %v7229_v12   ;;  %v6083_v58 = vmax.f32 %v6058_v52, 0.0  ;;  %v6059_v44 = vadd.f32 %v11041_v19, %v6027_v14  ;;  %v8471_v24 = vadd.f32 %v8470_v54, %v8469_v55  ;;  %v5808_v16 = vadd.f32 %v8468_v57, %v10982_v26  ;;  %v8576_v23 = vpop.f32.mrb[75].mxu1  ;;  %v8684_v14 = vpop.permute.xlu1 %8683 }
 0x394   : > { %v6084_v28 = vmax.f32 %v6059_v44, 0.0  ;;  %v5944_v0 = vadd.f32 %v5943_v47, %v5808_v16  ;;  %v5811_v61 = vadd.f32 %v8471_v24, %v10984_v43  ;;  %v6283_v27 = vmul.f32 %v8675_v13, %v6083_v58 }
 0x395   : > { %v8680_v43 = vunpack.i.l.bf16 %v8679_v7  ;;  %v8686_v58 = vunpack.i.h.bf16 %v8684_v14 }
 0x396   : > { %v6284_v36 = vmul.f32 %v8676_v22, %v6084_v28  ;;  %v6028_v38 = vmul.f32 %v11035_v48, %v5944_v0  ;;  %v5947_v8 = vadd.f32 %v5946_v20, %v5811_v61  ;;  %v8472_v37 = vpop.f32.mrb[76].mxu0 }
 0x397   : > { %v8473_v25 = vpop.f32.mrb[77].mxu0  ;;  %v5951_v2 = vpop.f32.mrb[76].mxu1 }
 0x398   : > { %v7234_v63 = vpack.c.bf16 %v6284_v36, %v6283_v27  ;;  %v6060_v39 = vadd.f32 %v11041_v19, %v6028_v38  ;;  %v6029_v26 = vmul.f32 %v11035_v48, %v5947_v8  ;;  %v8474_v34 = vadd.f32 %v8473_v25, %v8472_v37  ;;  %v8475_v1 = vpop.f32.mrb[78].mxu0  ;;  %v8579_v42 = vpop.f32.mrb[77].mxu1 }
 0x399   : > { %v8476_v30 = vpop.f32.mrb[79].mxu0  ;;  %v5954_v62 = vpop.f32.mrb[78].mxu1 }
 0x39a   : > { %7289 = vst [vmem:[%s11055_s29 + $0x18] sm:$0xff] %v7234_v63   ;;  %v6085_v45 = vmax.f32 %v6060_v39, 0.0  ;;  %v6061_v18 = vadd.f32 %v11041_v19, %v6029_v26  ;;  %v8477_v50 = vadd.f32 %v8476_v30, %v8475_v1  ;;  %v5816_v41 = vadd.f32 %v8474_v34, %v10988_v21  ;;  %v8580_v35 = vpop.f32.mrb[79].mxu1  ;;  %v8689_v63 = vpop.permute.xlu0 %8688 }
 0x39b   : > { %v8691_v30 = vunpack.i.h.bf16 %v8689_v63 }
 0x39c   : > { %v6086_v29 = vmax.f32 %v6061_v18, 0.0  ;;  %v5952_v6 = vadd.f32 %v5951_v2, %v5816_v41  ;;  %v5819_v17 = vadd.f32 %v8477_v50, %v10990_v9  ;;  %v6285_v56 = vmul.f32 %v8680_v43, %v6085_v45 }
 0x39d   : > { %v8685_v9 = vunpack.i.l.bf16 %v8684_v14 }
 0x39e   : > { %v6286_v15 = vmul.f32 %v8681_v49, %v6086_v29  ;;  %v6030_v47 = vmul.f32 %v11035_v48, %v5952_v6  ;;  %v5955_v12 = vadd.f32 %v5954_v62, %v5819_v17  ;;  %v8478_v52 = vpop.f32.mrb[80].mxu0 }
 0x39f   : > { %v8479_v57 = vpop.f32.mrb[81].mxu0  ;;  %v5959_v55 = vpop.f32.mrb[80].mxu1 }
 0x3a0   : > { %v7239_v59 = vpack.c.bf16 %v6286_v15, %v6285_v56  ;;  %v6062_v22 = vadd.f32 %v11041_v19, %v6030_v47  ;;  %v6031_v21 = vmul.f32 %v11035_v48, %v5955_v12  ;;  %v8480_v13 = vadd.f32 %v8479_v57, %v8478_v52  ;;  %v8481_v54 = vpop.f32.mrb[82].mxu0  ;;  %v8583_v20 = vpop.f32.mrb[81].mxu1 }
 0x3a1   : > { %v8482_v44 = vpop.f32.mrb[83].mxu0  ;;  %v5962_v24 = vpop.f32.mrb[82].mxu1 }
 0x3a2   : > { %7290 = vst [vmem:[%s11055_s29 + $0x20] sm:$0xff] %v7239_v59   ;;  %v6087_v16 = vmax.f32 %v6062_v22, 0.0  ;;  %v6063_v23 = vadd.f32 %v11041_v19, %v6031_v21  ;;  %v8483_v28 = vadd.f32 %v8482_v44, %v8481_v54  ;;  %v5824_v0 = vadd.f32 %v8480_v13, %v10994_v4  ;;  %v8584_v61 = vpop.f32.mrb[83].mxu1  ;;  %v8694_v57 = vpop.permute.xlu1 %8693 }
 0x3a4   : > { %v6088_v27 = vmax.f32 %v6063_v23, 0.0  ;;  %v5960_v36 = vadd.f32 %v5959_v55, %v5824_v0  ;;  %v5827_v38 = vadd.f32 %v8483_v28, %v10996_v3  ;;  %v6287_v8 = vmul.f32 %v8685_v9, %v6087_v16 }
 0x3a5   : > { %v8690_v3 = vunpack.i.l.bf16 %v8689_v63 }
 0x3a6   : > { %v6288_v37 = vmul.f32 %v8686_v58, %v6088_v27  ;;  %v6032_v7 = vmul.f32 %v11035_v48, %v5960_v36  ;;  %v5963_v25 = vadd.f32 %v5962_v24, %v5827_v38  ;;  %v8484_v2 = vpop.f32.mrb[84].mxu0  ;;  %v8696_v58 = vunpack.i.h.bf16 %v8694_v57 }
 0x3a7   : > { %v8485_v39 = vpop.f32.mrb[85].mxu0  ;;  %v5967_v26 = vpop.f32.mrb[84].mxu1 }
 0x3a8   : > { %v7244_v34 = vpack.c.bf16 %v6288_v37, %v6287_v8  ;;  %v6064_v1 = vadd.f32 %v11041_v19, %v6032_v7  ;;  %v6033_v4 = vmul.f32 %v11035_v48, %v5963_v25  ;;  %v8486_v42 = vadd.f32 %v8485_v39, %v8484_v2  ;;  %v8487_v49 = vpop.f32.mrb[86].mxu0  ;;  %v8587_v43 = vpop.f32.mrb[85].mxu1 }
 0x3a9   : > { %v8488_v62 = vpop.f32.mrb[87].mxu0  ;;  %v5970_v45 = vpop.f32.mrb[86].mxu1 }
 0x3aa   : > { %7291 = vst [vmem:[%s11055_s29 + $0x28] sm:$0xff] %v7244_v34   ;;  %v6089_v18 = vmax.f32 %v6064_v1, 0.0  ;;  %v6065_v50 = vadd.f32 %v11041_v19, %v6033_v4  ;;  %v8489_v41 = vadd.f32 %v8488_v62, %v8487_v49  ;;  %v5832_v35 = vadd.f32 %v8486_v42, %v11000_v31  ;;  %v8588_v29 = vpop.f32.mrb[87].mxu1  ;;  %v8699_v2 = vpop.permute.xlu0 %8698 }
 0x3ab   : > { %v8701_v49 = vunpack.i.h.bf16 %v8699_v2 }
 0x3ac   : > { %v6090_v6 = vmax.f32 %v6065_v50, 0.0  ;;  %v5968_v17 = vadd.f32 %v5967_v26, %v5832_v35  ;;  %v5835_v56 = vadd.f32 %v8489_v41, %v11002_v11  ;;  %v6289_v15 = vmul.f32 %v8690_v3, %v6089_v18 }
 0x3ad   : > { %v8695_v11 = vunpack.i.l.bf16 %v8694_v57 }
 0x3ae   : > { %v6290_v47 = vmul.f32 %v8691_v30, %v6090_v6  ;;  %v6034_v12 = vmul.f32 %v11035_v48, %v5968_v17  ;;  %v5971_v52 = vadd.f32 %v5970_v45, %v5835_v56  ;;  %v8490_v14 = vpop.f32.mrb[88].mxu0 }
 0x3af   : > { %v8491_v55 = vpop.f32.mrb[89].mxu0  ;;  %v5975_v59 = vpop.f32.mrb[88].mxu1 }
 0x3b0   : > { %v7249_v22 = vpack.c.bf16 %v6290_v47, %v6289_v15  ;;  %v6066_v21 = vadd.f32 %v11041_v19, %v6034_v12  ;;  %v6035_v31 = vmul.f32 %v11035_v48, %v5971_v52  ;;  %v8492_v13 = vadd.f32 %v8491_v55, %v8490_v14  ;;  %v8493_v54 = vpop.f32.mrb[90].mxu0  ;;  %v8591_v20 = vpop.f32.mrb[89].mxu1 }
 0x3b1   : > { %v8494_v9 = vpop.f32.mrb[91].mxu0  ;;  %v5978_v44 = vpop.f32.mrb[90].mxu1 }
 0x3b2   : > { %7292 = vst [vmem:[%s11055_s29 + $0x30] sm:$0xff] %v7249_v22   ;;  %v6091_v24 = vmax.f32 %v6066_v21, 0.0  ;;  %v6067_v16 = vadd.f32 %v11041_v19, %v6035_v31  ;;  %v8495_v23 = vadd.f32 %v8494_v9, %v8493_v54  ;;  %v5840_v28 = vadd.f32 %v8492_v13, %v11006_v5  ;;  %v8592_v0 = vpop.f32.mrb[91].mxu1  ;;  %v8704_v12 = vpop.permute.xlu1 %8703 }
 0x3b3   : > { %v8706_v31 = vunpack.i.h.bf16 %v8704_v12 }
 0x3b4   : > { %v6092_v61 = vmax.f32 %v6067_v16, 0.0  ;;  %v5976_v27 = vadd.f32 %v5975_v59, %v5840_v28  ;;  %v5843_v36 = vadd.f32 %v8495_v23, %v11008_v46  ;;  %v6291_v38 = vmul.f32 %v8695_v11, %v6091_v24 }
 0x3b5   : > { %v8700_v46 = vunpack.i.l.bf16 %v8699_v2 }
 0x3b6   : > { %v6292_v8 = vmul.f32 %v8696_v58, %v6092_v61  ;;  %v6036_v37 = vmul.f32 %v11035_v48, %v5976_v27  ;;  %v5979_v7 = vadd.f32 %v5978_v44, %v5843_v36  ;;  %v8496_v25 = vpop.f32.mrb[92].mxu0 }
 0x3b7   : > { %v8497_v63 = vpop.f32.mrb[93].mxu0  ;;  %v5983_v39 = vpop.f32.mrb[92].mxu1 }
 0x3b8   : > { %v7254_v26 = vpack.c.bf16 %v6292_v8, %v6291_v38  ;;  %v6068_v34 = vadd.f32 %v11041_v19, %v6036_v37  ;;  %v6037_v5 = vmul.f32 %v11035_v48, %v5979_v7  ;;  %v8498_v1 = vadd.f32 %v8497_v63, %v8496_v25  ;;  %v8499_v4 = vpop.f32.mrb[94].mxu0  ;;  %v8595_v42 = vpop.f32.mrb[93].mxu1 }
 0x3b9   : > { %v8500_v43 = vpop.f32.mrb[95].mxu0  ;;  %v5986_v30 = vpop.f32.mrb[94].mxu1 }
 0x3ba   : > { %7293 = vst [vmem:[%s11055_s29 + $0x38] sm:$0xff] %v7254_v26   ;;  %v6093_v3 = vmax.f32 %v6068_v34, 0.0  ;;  %v6069_v62 = vadd.f32 %v11041_v19, %v6037_v5  ;;  %v8501_v45 = vadd.f32 %v8500_v43, %v8499_v4  ;;  %v5848_v18 = vadd.f32 %v8498_v1, %v11012_v33  ;;  %v8596_v50 = vpop.f32.mrb[95].mxu1 }
 0x3bc   : > { %v6094_v41 = vmax.f32 %v6069_v62, 0.0  ;;  %v5984_v35 = vadd.f32 %v5983_v39, %v5848_v18  ;;  %v5851_v29 = vadd.f32 %v8501_v45, %v11014_v51  ;;  %v6293_v6 = vmul.f32 %v8700_v46, %v6093_v3  ;;  %v8714_v18 = vpop.permute.xlu1 %8713 }
 0x3bd   : > { %v8705_v51 = vunpack.i.l.bf16 %v8704_v12 }
 0x3be   : > { %v6294_v17 = vmul.f32 %v8701_v49, %v6094_v41  ;;  %v6038_v56 = vmul.f32 %v11035_v48, %v5984_v35  ;;  %v5987_v15 = vadd.f32 %v5986_v30, %v5851_v29  ;;  %v8502_v47 = vpop.f32.mrb[96].mxu0 }
 0x3bf   : > { %v8503_v52 = vpop.f32.mrb[97].mxu0  ;;  %v5991_v14 = vpop.f32.mrb[96].mxu1 }
 0x3c0   : > { %v7259_v57 = vpack.c.bf16 %v6294_v17, %v6293_v6  ;;  %v6070_v55 = vadd.f32 %v11041_v19, %v6038_v56  ;;  %v6039_v33 = vmul.f32 %v11035_v48, %v5987_v15  ;;  %v8504_v59 = vadd.f32 %v8503_v52, %v8502_v47  ;;  %v8505_v22 = vpop.f32.mrb[98].mxu0  ;;  %v8599_v21 = vpop.f32.mrb[97].mxu1 }
 0x3c1   : > { %v8506_v13 = vpop.f32.mrb[99].mxu0  ;;  %v5994_v54 = vpop.f32.mrb[98].mxu1 }
 0x3c2   : > { %7294 = vst [vmem:[%s11055_s29 + $0x40] sm:$0xff] %v7259_v57   ;;  %v6095_v20 = vmax.f32 %v6070_v55, 0.0  ;;  %v6071_v58 = vadd.f32 %v11041_v19, %v6039_v33  ;;  %v8507_v11 = vadd.f32 %v8506_v13, %v8505_v22  ;;  %v5856_v9 = vadd.f32 %v8504_v59, %v11018_v32  ;;  %v8600_v44 = vpop.f32.mrb[99].mxu1 }
 0x3c3   : > { %v8716_v59 = vunpack.i.h.bf16 %v8714_v18  ;;  %v8715_v22 = vunpack.i.l.bf16 %v8714_v18 }
 0x3c4   : > { %v6096_v24 = vmax.f32 %v6071_v58, 0.0  ;;  %v5992_v16 = vadd.f32 %v5991_v14, %v5856_v9  ;;  %v5859_v23 = vadd.f32 %v8507_v11, %v11020_v40  ;;  %v6295_v28 = vmul.f32 %v8705_v51, %v6095_v20  ;;  %v8709_v40 = vpop.permute.xlu0 %8708 }
 0x3c5   : > { %v8711_v49 = vunpack.i.h.bf16 %v8709_v40  ;;  %v8710_v46 = vunpack.i.l.bf16 %v8709_v40 }
 0x3c6   : > { %v6296_v0 = vmul.f32 %v8706_v31, %v6096_v24  ;;  %v6040_v61 = vmul.f32 %v11035_v48, %v5992_v16  ;;  %v5995_v27 = vadd.f32 %v5994_v54, %v5859_v23  ;;  %v8508_v36 = vpop.f32.mrb[100].mxu0 }
 0x3c7   : > { %v8509_v38 = vpop.f32.mrb[101].mxu0  ;;  %v5999_v8 = vpop.f32.mrb[100].mxu1 }
 0x3c8   : > { %v7264_v37 = vpack.c.bf16 %v6296_v0, %v6295_v28  ;;  %v6072_v7 = vadd.f32 %v11041_v19, %v6040_v61  ;;  %v6041_v25 = vmul.f32 %v11035_v48, %v5995_v27  ;;  %v8510_v32 = vadd.f32 %v8509_v38, %v8508_v36  ;;  %v8511_v2 = vpop.f32.mrb[102].mxu0  ;;  %v8603_v63 = vpop.f32.mrb[101].mxu1 }
 0x3c9   : > { %v8512_v39 = vpop.f32.mrb[103].mxu0  ;;  %v6002_v26 = vpop.f32.mrb[102].mxu1 }
 0x3ca   : > { %7295 = vst [vmem:[%s11055_s29 + $0x48] sm:$0xff] %v7264_v37   ;;  %v6097_v34 = vmax.f32 %v6072_v7, 0.0  ;;  %v6073_v5 = vadd.f32 %v11041_v19, %v6041_v25  ;;  %v8513_v1 = vadd.f32 %v8512_v39, %v8511_v2  ;;  %v5864_v4 = vadd.f32 %v8510_v32, %v11024_v60  ;;  %v8604_v42 = vpop.f32.mrb[103].mxu1  ;;  %v6275_v9 = vpop.permute.xlu0 %6274 }
 0x3cc   : > { %v6098_v43 = vmax.f32 %v6073_v5, 0.0  ;;  %v6000_v30 = vadd.f32 %v5999_v8, %v5864_v4  ;;  %v5867_v3 = vadd.f32 %v8513_v1, %v11026_v53  ;;  %v6297_v62 = vmul.f32 %v8710_v46, %v6097_v34 }
 0x3ce   : > { %v6298_v45 = vmul.f32 %v8711_v49, %v6098_v43  ;;  %v6042_v50 = vmul.f32 %v11035_v48, %v6000_v30  ;;  %v6003_v41 = vadd.f32 %v6002_v26, %v5867_v3  ;;  %v8514_v35 = vpop.f32.mrb[104].mxu0 }
 0x3cf   : > { %v8515_v29 = vpop.f32.mrb[105].mxu0  ;;  %v6007_v6 = vpop.f32.mrb[104].mxu1 }
 0x3d0   : > { %v7269_v17 = vpack.c.bf16 %v6298_v45, %v6297_v62  ;;  %v6074_v60 = vadd.f32 %v11041_v19, %v6042_v50  ;;  %v6043_v56 = vmul.f32 %v11035_v48, %v6003_v41  ;;  %v8516_v15 = vadd.f32 %v8515_v29, %v8514_v35  ;;  %v8517_v47 = vpop.f32.mrb[106].mxu0  ;;  %v8607_v12 = vpop.f32.mrb[105].mxu1 }
 0x3d1   : > { %v8518_v52 = vpop.f32.mrb[107].mxu0  ;;  %v6010_v53 = vpop.f32.mrb[106].mxu1 }
 0x3d2   : > { %7296 = vst [vmem:[%s11055_s29 + $0x50] sm:$0xff] %v7269_v17   ;;  %v6099_v14 = vmax.f32 %v6074_v60, 0.0  ;;  %v6075_v57 = vadd.f32 %v11041_v19, %v6043_v56  ;;  %v5872_v55 = vadd.f32 %v8516_v15, %v11029_v10  ;;  %v8608_v33 = vpop.f32.mrb[107].mxu1 }
 0x3d4   : > { %v6100_v21 = vmax.f32 %v6075_v57, 0.0  ;;  %v6008_v31 = vadd.f32 %v6007_v6, %v5872_v55  ;;  %v6299_v51 = vmul.f32 %v8715_v22, %v6099_v14 }
 0x3d6   : > { %v6300_v13 = vmul.f32 %v8716_v59, %v6100_v21  ;;  %v6044_v54 = vmul.f32 %v11035_v48, %v6008_v31 }
 0x3d8   : > { %v7274_v20 = vpack.c.bf16 %v6300_v13, %v6299_v51  ;;  %v6076_v58 = vadd.f32 %v11041_v19, %v6044_v54 }
 0x3da   : > { %7297 = vst [vmem:[%s11055_s29 + $0x58] sm:$0xff] %v7274_v20   ;;  %v6101_v11 = vmax.f32 %v6076_v58, 0.0 }
 0x3dc   : > { %v6301_v44 = vmul.f32 %v6275_v9, %v6101_v11 }
 0x3de   : > { %v7167_v24 = vpack.c.bf16 %v6301_v44, %v6301_v44 }
 0x3e0   : > { %6427 = vst [vmem:[%s11055_s29 + $0x60] sm:$0xf] %v7167_v24 }
 0x3e1 PF: > { %s15_s22 = sadd.s32 1, %s9478_s22   ;;  %s11157_s18 = smov %s9470_s20 }
 0x3e2   : > { %p12_p7 = scmp.ge.s32.totalorder %s15_s22, 6   ;;  %s11158_s19 = smov %s9474_s21 }
 0x3e3   : > { %s11159_s20 = smov %s11162_s23  ;;  %s11160_s21 = smov %s11166_s24 }
 0x3e4   :  { %14 = sbr.rel (!%p12_p7) target bundleno = 3 (0x3), region = 73 }

// kernel: scmb_forward.7
= control target key start
LH: loop header
LB: loop body
LE: loop exit
PB: predicated region body
PF: predicated region fallthrough
CT: control target
= control target key end

     0   :  { %s3932_s18 = smov 0   ;;  %s3934_s19 = smov 0   ;;  %s4626_s0 = inlined_call_operand.vmem [shape: bf16[2,128,1728], index: 0, kind: input, shape index: {}]   ;;  %s4627_s1 = inlined_call_operand.vmem [shape: bf16[1728,128], index: 1, kind: input, shape index: {}]   ;;  %s4628_s2 = inlined_call_operand.vmem [shape: f32[1,128], index: 2, kind: input, shape index: {}]   ;;  %s4629_s3 = inlined_call_operand.vmem [shape: f32[1,128], index: 3, kind: input, shape index: {}]   ;;  %s4630_s4 = inlined_call_operand.vmem [shape: bf16[2,128,1], index: 4, kind: input, shape index: {}]   ;;  %s4631_s5 = inlined_call_operand.vmem [shape: f32[2,128,128], index: 5, kind: output, shape index: {}]  }
   0x1   :  { %s3936_s20 = smov 0  }
   0x2 LB: > { %s27_s21 = sadd.s32 1, %s3895_s19  ;;  %p2854_p0 = scmp.ge.s32.totalorder %s3899_s20, 1  ;;  %s3899_s20 = sphi %s3936_s20, %s15_s20   ;;  %s3895_s19 = sphi %s3934_s19, %s4633_s19   ;;  %s3891_s18 = sphi %s3932_s18, %s4632_s18  }
   0x3   : > { %p29_p1 = scmp.ge.s32.totalorder %s27_s21, 2  ;;  %p226_p2 = scmp.lt.s32.totalorder %s3899_s20, 3 }
   0x5   : > { %s4635_s21 = smov (%p29_p1, %s27_s21), 0  ;;  %p227_p3 = pnand %p2854_p0, %p226_p2 }
   0x6   : > { %v3601_v0 = vld [vmem:[%s4627_s1 + $0x40] sm:$0xff] (!%p227_p3)   ;;  %v3603_v2 = vld [vmem:[%s4627_s1 + $0x48] sm:$0xff] (!%p227_p3)   ;;  %p273_p4 = scmp.lt.s32.totalorder (!%p227_p3), %s3891_s18, 1  ;;  %v3605_v4 = vld [vmem:[%s4627_s1 + $0x50] sm:$0xff] (!%p227_p3)   ;;  %v3901_v5 = vmov (!%p227_p3), 0   ;;  %vm1832_vm0 = vcmask (!%p227_p3), 523264  }
   0x7   : > { %230 = sbr.rel (%p227_p3) target bundleno = 485 (0x1e5), region = 40  ;;  %v3602_v1 = vld [vmem:[%s4627_s1] sm:$0xff] (!%p227_p3)   ;;  %3517 = vmatprep.subr.bf16.mxu1 (!%p227_p3), %v3601_v0  ;;  %3133 = vmatprep.subr.bf16.mxu0 (!%p227_p3), %v3601_v0  ;;  %v3604_v3 = vld [vmem:[%s4627_s1 + $0x8] sm:$0xff] (!%p227_p3)   ;;  %v3606_v6 = vld [vmem:[%s4627_s1 + $0x10] sm:$0xff] (!%p227_p3)  }
   0x8   : > { %3525 = vmatpush3.bf16.msra.mxu1 (!%p227_p3), %v3602_v1  ;;  %3134 = vmatpush3.bf16.msra.mxu0 (!%p227_p3), %v3602_v1  ;;  %v3607_v7 = vld [vmem:[%s4627_s1 + $0x58] sm:$0xff] (!%p227_p3)   ;;  %v3609_v9 = vld [vmem:[%s4627_s1 + $0x60] sm:$0xff] (!%p227_p3)   ;;  %v3611_v11 = vld [vmem:[%s4627_s1 + $0x68] sm:$0xff] (!%p227_p3)  }
   0x9   : > { %3518 = vmatprep.subr.bf16.mxu1 (!%p227_p3), %v3603_v2  ;;  %3135 = vmatprep.subr.bf16.mxu0 (!%p227_p3), %v3603_v2  ;;  %v3608_v8 = vld [vmem:[%s4627_s1 + $0x18] sm:$0xff] (!%p227_p3)   ;;  %v3610_v10 = vld [vmem:[%s4627_s1 + $0x20] sm:$0xff] (!%p227_p3)   ;;  %v3612_v13 = vld [vmem:[%s4627_s1 + $0x28] sm:$0xff] (!%p227_p3)  }
   0xa   : > { %3559 = vset.pattern.permute.xlu0 (!%p227_p3), %v3901_v5  ;;  %3570 = vset.pattern.permute.xlu1 (!%p227_p3), %v3901_v5  ;;  %v3613_v15 = vld [vmem:[%s4627_s1 + $0x70] sm:$0xff] (!%p227_p3)   ;;  %v3615_v17 = vld [vmem:[%s4627_s1 + $0x78] sm:$0xff] (!%p227_p3)   ;;  %v3620_v19 = vld [vmem:[%s4627_s1 + $0xc0] sm:$0xff] (!%p227_p3)  }
   0xb   : > { %v3614_v16 = vld [vmem:[%s4627_s1 + $0x30] sm:$0xff] (!%p227_p3)   ;;  %v3616_v18 = vld [vmem:[%s4627_s1 + $0x38] sm:$0xff] (!%p227_p3)   ;;  %v3625_v22 = vld [vmem:[%s4627_s1 + $0x140] sm:$0xff] (!%p227_p3)  }
   0xc   : > { %3526 = vmatpush3.bf16.msra.mxu1 (!%p227_p3), %v3604_v3  ;;  %3136 = vmatpush3.bf16.msra.mxu0 (!%p227_p3), %v3604_v3  ;;  %v3624_v23 = vld [vmem:[%s4627_s1 + $0x80] sm:$0xff] (!%p227_p3)   ;;  %v3627_v25 = vld [vmem:[%s4627_s1 + $0xc8] sm:$0xff] (!%p227_p3)   ;;  %v3634_v31 = vld [vmem:[%s4627_s1 + $0xd0] sm:$0xff] (!%p227_p3)  }
   0xd   : > { %3519 = vmatprep.subr.bf16.mxu1 (!%p227_p3), %v3605_v4  ;;  %3137 = vmatprep.subr.bf16.mxu0 (!%p227_p3), %v3605_v4  ;;  %v3626_v24 = vld [vmem:[%s4627_s1 + $0x100] sm:$0xff] (!%p227_p3)   ;;  %v3629_v26 = vld [vmem:[%s4627_s1 + $0x148] sm:$0xff] (!%p227_p3)   ;;  %v3639_v33 = vld [vmem:[%s4627_s1 + $0x150] sm:$0xff] (!%p227_p3)  }
   0xe   : > { %s4637_s18 = smov (!%p273_p4, %s3891_s18), 1  ;;  %v3628_v28 = vld [vmem:[%s4627_s1 + $0x88] sm:$0xff]   ;;  %v3637_v34 = vld [vmem:[%s4627_s1 + $0x90] sm:$0xff]   ;;  %v3641_v37 = vld [vmem:[%s4627_s1 + $0xd8] sm:$0xff]  }
   0xf   : > { %s3533_s11 = smul.u32 896, %s4637_s18  ;;  %v3632_v30 = vld [vmem:[%s4627_s1 + $0x108] sm:$0xff]   ;;  %v3640_v36 = vld [vmem:[%s4627_s1 + $0x110] sm:$0xff]   ;;  %v3643_v38 = vld [vmem:[%s4627_s1 + $0x158] sm:$0xff]   ;;  %s3092_s16 = sshll.u32 %s4637_s18, 6 }
  0x10   : > { %3527 = vmatpush3.bf16.msra.mxu1 %v3606_v6  ;;  %3138 = vmatpush3.bf16.msra.mxu0 %v3606_v6  ;;  %v3642_v39 = vld [vmem:[%s4627_s1 + $0x98] sm:$0xff]   ;;  %v3648_v43 = vld [vmem:[%s4627_s1 + $0xe0] sm:$0xff]   ;;  %v3655_v49 = vld [vmem:[%s4627_s1 + $0xe8] sm:$0xff]   ;;  %s4378_s24 = scalar_lea.vmem %s4630_s4, %s3092_s16  ;;  %s3093_s28 = sshll.u32 %s4637_s18, 7 }
  0x11   : > { %3520 = vmatprep.subr.bf16.mxu1 %v3607_v7  ;;  %3139 = vmatprep.subr.bf16.mxu0 %v3607_v7  ;;  %s3985_s22 = scalar_lea.vmem %s4626_s0, %s3533_s11  ;;  %v3646_v42 = vld [vmem:[%s4627_s1 + $0x118] sm:$0xff]   ;;  %v3653_v45 = vld [vmem:[%s4627_s1 + $0x160] sm:$0xff]   ;;  %v3657_v50 = vld [vmem:[%s4627_s1 + $0x168] sm:$0xff]   ;;  %s4558_s6 = scalar_lea.vmem %s4631_s5, %s3093_s28 }
  0x12   : > { %v3619_v12 = vld [vmem:[%s3985_s22 + $0x1c4] ss:$56 sps:$4 sm:$0xff]   ;;  %v3617_v20 = vld [vmem:[%s3985_s22 + $0x1c0] ss:$56 sps:$4 sm:$0xff]   ;;  %v3630_v27 = vld [vmem:[%s3985_s22 + $0x234] ss:$56 sps:$4 sm:$0xff]  }
  0x13   : > { %v3623_v14 = vld [vmem:[%s3985_s22 + $0x4] ss:$56 sps:$4 sm:$0xff]   ;;  %1921 = vmatprep.mubr.bf16.mxu1 %v3619_v12  ;;  %v3621_v21 = vld [vmem:[%s3985_s22] ss:$56 sps:$4 sm:$0xff]   ;;  %v3635_v29 = vld [vmem:[%s3985_s22 + $0x74] ss:$56 sps:$4 sm:$0xff]  }
  0x14   : > { %3528 = vmatpush3.bf16.msra.mxu1 %v3608_v8  ;;  %3140 = vmatpush3.bf16.msra.mxu0 %v3608_v8  ;;  %v3633_v32 = vld [vmem:[%s3985_s22 + $0x230] ss:$56 sps:$4 sm:$0xff]   ;;  %v3644_v40 = vld [vmem:[%s3985_s22 + $0x2a4] ss:$56 sps:$4 sm:$0xff]   ;;  %v3647_v44 = vld [vmem:[%s3985_s22 + $0x2a0] ss:$56 sps:$4 sm:$0xff]  }
  0x15   : > { %3521 = vmatprep.subr.bf16.mxu1 %v3609_v9  ;;  %3141 = vmatprep.subr.bf16.mxu0 %v3609_v9  ;;  %v3638_v35 = vld [vmem:[%s3985_s22 + $0x70] ss:$56 sps:$4 sm:$0xff]   ;;  %v3649_v41 = vld [vmem:[%s3985_s22 + $0xe4] ss:$56 sps:$4 sm:$0xff]   ;;  %v3652_v47 = vld [vmem:[%s3985_s22 + $0xe0] ss:$56 sps:$4 sm:$0xff]  }
  0x16   : > { %1889 = vmatprep.mubr.bf16.mxu0 %v3623_v14  ;;  %v3651_v46 = vld [vmem:[%s4627_s1 + $0xa0] sm:$0xff]   ;;  %v3656_v51 = vld [vmem:[%s4627_s1 + $0xa8] sm:$0xff]   ;;  %v3662_v56 = vld [vmem:[%s4627_s1 + $0xf0] sm:$0xff]  }
  0x17   : > { %v3654_v48 = vld [vmem:[%s4627_s1 + $0x120] sm:$0xff]   ;;  %v3658_v52 = vld [vmem:[%s3985_s22 + $0x314] ss:$56 sps:$4 sm:$0xff]   ;;  %v3661_v55 = vld [vmem:[%s3985_s22 + $0x310] ss:$56 sps:$4 sm:$0xff]  }
  0x18   : > { %3529 = vmatpush3.bf16.msra.mxu1 %v3610_v10  ;;  %3142 = vmatpush3.bf16.msra.mxu0 %v3610_v10  ;;  %v3660_v53 = vld [vmem:[%s4627_s1 + $0x128] sm:$0xff]   ;;  %v3665_v57 = vld [vmem:[%s4627_s1 + $0xb0] sm:$0xff]   ;;  %v3669_v61 = vld [vmem:[%s4627_s1 + $0xf8] sm:$0xff]  }
  0x19   : > { %3522 = vmatprep.subr.bf16.mxu1 %v3611_v11  ;;  %3143 = vmatprep.subr.bf16.mxu0 %v3611_v11  ;;  %v3663_v54 = vld [vmem:[%s3985_s22 + $0x154] ss:$56 sps:$4 sm:$0xff]   ;;  %v3666_v59 = vld [vmem:[%s3985_s22 + $0x150] ss:$56 sps:$4 sm:$0xff]   ;;  %v3671_v62 = vld [vmem:[%s4627_s1 + $0x178] sm:$0xff]  }
  0x1a   : > { %v3667_v58 = vld [vmem:[%s4627_s1 + $0x170] sm:$0xff]   ;;  %v3670_v63 = vld [vmem:[%s4627_s1 + $0xb8] sm:$0xff]   ;;  %v3674_v0 = vld [vmem:[%s3985_s22 + $0xc] ss:$56 sps:$4 sm:$0xff]  }
  0x1b   : > { %v3668_v60 = vld [vmem:[%s4627_s1 + $0x130] sm:$0xff]   ;;  %v3675_v1 = vld [vmem:[%s4627_s1 + $0x138] sm:$0xff]   ;;  %v3672_v2 = vld [vmem:[%s3985_s22 + $0x8] ss:$56 sps:$4 sm:$0xff]  }
  0x1c   : > { %3530 = vmatpush3.bf16.msra.mxu1 %v3612_v13  ;;  %3144 = vmatpush3.bf16.msra.mxu0 %v3612_v13  ;;  %v3676_v3 = vld [vmem:[%s4627_s1 + $0x1c0] sm:$0xff]   ;;  %v3677_v4 = vld [vmem:[%s3985_s22 + $0x10] ss:$56 sps:$4 sm:$0xff]   ;;  %v3679_v6 = vld [vmem:[%s3985_s22 + $0x14] ss:$56 sps:$4 sm:$0xff]  }
  0x1d   : > { %3523 = vmatprep.subr.bf16.mxu1 %v3613_v15  ;;  %3145 = vmatprep.subr.bf16.mxu0 %v3613_v15  ;;  %v3680_v7 = vld [vmem:[%s4627_s1 + $0x180] sm:$0xff]   ;;  %v3683_v10 = vld [vmem:[%s3985_s22 + $0x7c] ss:$56 sps:$4 sm:$0xff]   ;;  %v3686_v11 = vld [vmem:[%s4627_s1 + $0x1c8] sm:$0xff]  }
  0x1e   : > { %v3681_v8 = vld [vmem:[%s4627_s1 + $0x240] sm:$0xff]   ;;  %v3685_v12 = vld [vmem:[%s3985_s22 + $0x78] ss:$56 sps:$4 sm:$0xff]   ;;  %v3689_v14 = vld [vmem:[%s4627_s1 + $0x188] sm:$0xff]  }
  0x1f   : > { %v3682_v9 = vld [vmem:[%s4627_s1 + $0x200] sm:$0xff]  }
  0x20   : > { %3531 = vmatpush3.bf16.msra.mxu1 %v3614_v16  ;;  %3146 = vmatpush3.bf16.msra.mxu0 %v3614_v16  ;;  %v3687_v13 = vld [vmem:[%s3985_s22 + $0x84] ss:$56 sps:$4 sm:$0xff]   ;;  %v3690_v15 = vld [vmem:[%s3985_s22 + $0x80] ss:$56 sps:$4 sm:$0xff]   ;;  %v3691_v16 = vld [vmem:[%s4627_s1 + $0x248] sm:$0xff]  }
  0x21   : > { %3524 = vmatprep.subr.bf16.mxu1 %v3615_v17  ;;  %3147 = vmatprep.subr.bf16.mxu0 %v3615_v17  ;;  %v3692_v17 = vld [vmem:[%s4627_s1 + $0x208] sm:$0xff]  }
  0x24   : > { %3532 = vmatpush3.bf16.msra.mxu1 %v3616_v18  ;;  %3148 = vmatpush3.bf16.msra.mxu0 %v3616_v18  ;;  %v3693_v18 = vld [vmem:[%s3985_s22 + $0xec] ss:$56 sps:$4 sm:$0xff]  }
  0x25   : > { %3197 = vmatprep.subr.bf16.mxu1 %v3620_v19  ;;  %3261 = vmatprep.subr.bf16.mxu0 %v3625_v22  ;;  %v3696_v19 = vld [vmem:[%s4627_s1 + $0x1d0] sm:$0xff]  }
  0x26   : > { %v3699_v22 = vld [vmem:[%s4627_s1 + $0x190] sm:$0xff]  }
  0x27   : > { %1922 = vmatmul.mubr.bf16.vlgmr.msra.gmra.mrb[0].mxu1 %v3617_v20  ;;  %1890 = vmatmul.mubr.bf16.vlgmr.msra.gmra.mrb[0].mxu0 %v3621_v21  ;;  %v3697_v20 = vld [vmem:[%s3985_s22 + $0xf4] ss:$56 sps:$4 sm:$0xff]   ;;  %v3695_v21 = vld [vmem:[%s3985_s22 + $0xe8] ss:$56 sps:$4 sm:$0xff]  }
  0x28   : > { %3198 = vmatpush3.bf16.msra.mxu1 %v3624_v23  ;;  %3262 = vmatpush3.bf16.msra.mxu0 %v3626_v24  ;;  %v3700_v23 = vld [vmem:[%s3985_s22 + $0xf0] ss:$56 sps:$4 sm:$0xff]  }
  0x29   : > { %3199 = vmatprep.subr.bf16.mxu1 %v3627_v25  ;;  %3263 = vmatprep.subr.bf16.mxu0 %v3629_v26  ;;  %v3701_v24 = vld [vmem:[%s4627_s1 + $0x250] sm:$0xff]  }
  0x2a   : > { %1929 = vmatprep.mubr.bf16.mxu1 %v3630_v27  ;;  %1897 = vmatprep.mubr.bf16.mxu0 %v3635_v29  ;;  %v3702_v25 = vld [vmem:[%s4627_s1 + $0x210] sm:$0xff]   ;;  %v3706_v27 = vld [vmem:[%s4627_s1 + $0x1d8] sm:$0xff]  }
  0x2b   : > { %v3703_v26 = vld [vmem:[%s3985_s22 + $0x15c] ss:$56 sps:$4 sm:$0xff]  }
  0x2c   : > { %3200 = vmatpush3.bf16.msra.mxu1 %v3628_v28  ;;  %3264 = vmatpush3.bf16.msra.mxu0 %v3632_v30  ;;  %v3707_v28 = vld [vmem:[%s3985_s22 + $0x164] ss:$56 sps:$4 sm:$0xff]   ;;  %v3705_v30 = vld [vmem:[%s3985_s22 + $0x158] ss:$56 sps:$4 sm:$0xff]  }
  0x2d   : > { %3201 = vmatprep.subr.bf16.mxu1 %v3634_v31  ;;  %3265 = vmatprep.subr.bf16.mxu0 %v3639_v33  ;;  %v3709_v29 = vld [vmem:[%s4627_s1 + $0x198] sm:$0xff]  }
  0x2e   : > { %v3711_v31 = vld [vmem:[%s4627_s1 + $0x258] sm:$0xff]  }
  0x2f   : > { %1930 = vmatmul.mubr.bf16.gmra.mrb[4].mxu1 %v3633_v32  ;;  %1898 = vmatmul.mubr.bf16.gmra.mrb[4].mxu0 %v3638_v35  ;;  %v3712_v32 = vld [vmem:[%s4627_s1 + $0x218] sm:$0xff]   ;;  %v3716_v35 = vld [vmem:[%s4627_s1 + $0x1e0] sm:$0xff]  }
  0x30   : > { %3202 = vmatpush3.bf16.msra.mxu1 %v3637_v34  ;;  %3266 = vmatpush3.bf16.msra.mxu0 %v3640_v36  ;;  %v3710_v33 = vld [vmem:[%s3985_s22 + $0x160] ss:$56 sps:$4 sm:$0xff]   ;;  %v3713_v34 = vld [vmem:[%s3985_s22 + $0x1cc] ss:$56 sps:$4 sm:$0xff]  }
  0x31   : > { %3203 = vmatprep.subr.bf16.mxu1 %v3641_v37  ;;  %3267 = vmatprep.subr.bf16.mxu0 %v3643_v38  ;;  %v3717_v36 = vld [vmem:[%s3985_s22 + $0x1d4] ss:$56 sps:$4 sm:$0xff]   ;;  %v3719_v37 = vld [vmem:[%s4627_s1 + $0x1a0] sm:$0xff]  }
  0x32   : > { %1937 = vmatprep.mubr.bf16.mxu1 %v3644_v40  ;;  %1905 = vmatprep.mubr.bf16.mxu0 %v3649_v41  ;;  %v3721_v38 = vld [vmem:[%s4627_s1 + $0x260] sm:$0xff]   ;;  %v3720_v41 = vld [vmem:[%s3985_s22 + $0x1d0] ss:$56 sps:$4 sm:$0xff]  }
  0x33   : > { %v3715_v40 = vld [vmem:[%s3985_s22 + $0x1c8] ss:$56 sps:$4 sm:$0xff]  }
  0x34   : > { %3204 = vmatpush3.bf16.msra.mxu1 %v3642_v39  ;;  %3268 = vmatpush3.bf16.msra.mxu0 %v3646_v42  ;;  %v3722_v39 = vld [vmem:[%s4627_s1 + $0x220] sm:$0xff]   ;;  %v3723_v42 = vld [vmem:[%s3985_s22 + $0x23c] ss:$56 sps:$4 sm:$0xff]  }
  0x35   : > { %3205 = vmatprep.subr.bf16.mxu1 %v3648_v43  ;;  %3269 = vmatprep.subr.bf16.mxu0 %v3653_v45  ;;  %v3726_v43 = vld [vmem:[%s4627_s1 + $0x1e8] sm:$0xff]  }
  0x36   : > { %v3729_v45 = vld [vmem:[%s4627_s1 + $0x1a8] sm:$0xff]  }
  0x37   : > { %1938 = vmatmul.mubr.bf16.gmra.mrb[8].mxu1 %v3647_v44  ;;  %1906 = vmatmul.mubr.bf16.gmra.mrb[8].mxu0 %v3652_v47  ;;  %v3727_v44 = vld [vmem:[%s3985_s22 + $0x244] ss:$56 sps:$4 sm:$0xff]   ;;  %v3732_v47 = vld [vmem:[%s4627_s1 + $0x228] sm:$0xff]  }
  0x38   : > { %3206 = vmatpush3.bf16.msra.mxu1 %v3651_v46  ;;  %3270 = vmatpush3.bf16.msra.mxu0 %v3654_v48  ;;  %v3731_v46 = vld [vmem:[%s4627_s1 + $0x268] sm:$0xff]   ;;  %v3725_v48 = vld [vmem:[%s3985_s22 + $0x238] ss:$56 sps:$4 sm:$0xff]  }
  0x39   : > { %3207 = vmatprep.subr.bf16.mxu1 %v3655_v49  ;;  %3271 = vmatprep.subr.bf16.mxu0 %v3657_v50  ;;  %v3730_v49 = vld [vmem:[%s3985_s22 + $0x240] ss:$56 sps:$4 sm:$0xff]   ;;  %v3736_v50 = vld [vmem:[%s4627_s1 + $0x1f0] sm:$0xff]  }
  0x3a   : > { %1945 = vmatprep.mubr.bf16.mxu1 %v3658_v52  ;;  %1913 = vmatprep.mubr.bf16.mxu0 %v3663_v54  ;;  %v3739_v52 = vld [vmem:[%s4627_s1 + $0x1b0] sm:$0xff]  }
  0x3b   : > { %v3741_v54 = vld [vmem:[%s4627_s1 + $0x270] sm:$0xff]  }
  0x3c   : > { %3208 = vmatpush3.bf16.msra.mxu1 %v3656_v51  ;;  %3272 = vmatpush3.bf16.msra.mxu0 %v3660_v53  ;;  %v3733_v51 = vld [vmem:[%s3985_s22 + $0x2ac] ss:$56 sps:$4 sm:$0xff]  }
  0x3d   : > { %3209 = vmatprep.subr.bf16.mxu1 %v3662_v56  ;;  %3273 = vmatprep.subr.bf16.mxu0 %v3667_v58  ;;  %v3737_v53 = vld [vmem:[%s3985_s22 + $0x2b4] ss:$56 sps:$4 sm:$0xff]   ;;  %v3746_v56 = vld [vmem:[%s4627_s1 + $0x1f8] sm:$0xff]   ;;  %v3740_v58 = vld [vmem:[%s3985_s22 + $0x2b0] ss:$56 sps:$4 sm:$0xff]  }
  0x3f   : > { %1946 = vmatmul.mubr.bf16.gmra.mrb[12].mxu1 %v3661_v55  ;;  %1914 = vmatmul.mubr.bf16.gmra.mrb[12].mxu0 %v3666_v59  ;;  %v3742_v55 = vld [vmem:[%s4627_s1 + $0x230] sm:$0xff]  }
  0x40   : > { %3210 = vmatpush3.bf16.msra.mxu1 %v3665_v57  ;;  %3274 = vmatpush3.bf16.msra.mxu0 %v3668_v60  ;;  %v3735_v57 = vld [vmem:[%s3985_s22 + $0x2a8] ss:$56 sps:$4 sm:$0xff]   ;;  %v3743_v59 = vld [vmem:[%s3985_s22 + $0x31c] ss:$56 sps:$4 sm:$0xff]  }
  0x41   : > { %3211 = vmatprep.subr.bf16.mxu1 %v3669_v61  ;;  %3275 = vmatprep.subr.bf16.mxu0 %v3671_v62  ;;  %v3747_v60 = vld [vmem:[%s3985_s22 + $0x324] ss:$56 sps:$4 sm:$0xff]  }
  0x42   : > { %1986 = vmatprep.mubr.bf16.mxu1 %v3674_v0  ;;  %2083 = vmatprep.mubr.bf16.mxu0 %v3679_v6  ;;  %v3749_v61 = vld [vmem:[%s4627_s1 + $0x1b8] sm:$0xff]   ;;  %v3756_v0 = vld [vmem:[%s4627_s1 + $0x2c0] sm:$0xff]  }
  0x43   : > { %v3751_v62 = vld [vmem:[%s4627_s1 + $0x278] sm:$0xff]  }
  0x44   : > { %3212 = vmatpush3.bf16.msra.mxu1 %v3670_v63  ;;  %3276 = vmatpush3.bf16.msra.mxu0 %v3675_v1  ;;  %v3752_v63 = vld [vmem:[%s4627_s1 + $0x238] sm:$0xff]  }
  0x45   : > { %3325 = vmatprep.subr.bf16.mxu1 %v3676_v3  ;;  %3389 = vmatprep.subr.bf16.mxu0 %v3681_v8  ;;  %v3745_v1 = vld [vmem:[%s3985_s22 + $0x318] ss:$56 sps:$4 sm:$0xff]   ;;  %v3755_v3 = vld [vmem:[%s3985_s22 + $0x1c] ss:$56 sps:$4 sm:$0xff]   ;;  %v3760_v8 = vld [vmem:[%s4627_s1 + $0x280] sm:$0xff]  }
  0x46   : > { %v3753_v6 = vld [vmem:[%s3985_s22 + $0x18] ss:$56 sps:$4 sm:$0xff]  }
  0x47   : > { %1987 = vmatmul.mubr.bf16.vlgmr.msra.gmra.mrb[16].mxu1 %v3672_v2  ;;  %2084 = vmatmul.mubr.bf16.vlgmr.msra.gmra.mrb[16].mxu0 %v3677_v4  ;;  %v3750_v2 = vld [vmem:[%s3985_s22 + $0x320] ss:$56 sps:$4 sm:$0xff]   ;;  %v3759_v4 = vld [vmem:[%s3985_s22 + $0x24] ss:$56 sps:$4 sm:$0xff]  }
  0x48   : > { %3326 = vmatpush3.bf16.msra.mxu1 %v3680_v7  ;;  %3390 = vmatpush3.bf16.msra.mxu0 %v3682_v9  ;;  %v3757_v7 = vld [vmem:[%s3985_s22 + $0x20] ss:$56 sps:$4 sm:$0xff]  }
  0x49   : > { %1994 = vmatprep.mubr.bf16.mxu1 %v3683_v10  ;;  %3327 = vmatprep.subr.bf16.mxu1 %v3686_v11  ;;  %v3761_v9 = vld [vmem:[%s4627_s1 + $0x300] sm:$0xff]   ;;  %v3765_v11 = vld [vmem:[%s4627_s1 + $0x2c8] sm:$0xff]  }
  0x4a   : > { %2091 = vmatprep.mubr.bf16.mxu0 %v3687_v13  ;;  %3391 = vmatprep.subr.bf16.mxu0 %v3691_v16  ;;  %v3762_v10 = vld [vmem:[%s3985_s22 + $0x8c] ss:$56 sps:$4 sm:$0xff]   ;;  %v3764_v16 = vld [vmem:[%s3985_s22 + $0x88] ss:$56 sps:$4 sm:$0xff]  }
  0x4b   : > { %v3768_v13 = vld [vmem:[%s4627_s1 + $0x288] sm:$0xff]  }
  0x4c   : > { %3328 = vmatpush3.bf16.msra.mxu1 %v3689_v14  ;;  %3392 = vmatpush3.bf16.msra.mxu0 %v3692_v17  ;;  %v3770_v14 = vld [vmem:[%s4627_s1 + $0x308] sm:$0xff]  }
  0x4d   : > { %3329 = vmatprep.subr.bf16.mxu1 %v3696_v19  ;;  %3393 = vmatprep.subr.bf16.mxu0 %v3701_v24  ;;  %v3769_v17 = vld [vmem:[%s3985_s22 + $0x90] ss:$56 sps:$4 sm:$0xff]   ;;  %v3775_v19 = vld [vmem:[%s3985_s22 + $0x104] ss:$56 sps:$4 sm:$0xff]  }
  0x4e   : > { %v3773_v24 = vld [vmem:[%s3985_s22 + $0xf8] ss:$56 sps:$4 sm:$0xff]  }
  0x4f   : > { %1995 = vmatmul.mubr.bf16.gmra.mrb[20].mxu1 %v3685_v12  ;;  %2092 = vmatmul.mubr.bf16.gmra.mrb[20].mxu0 %v3690_v15  ;;  %v3766_v12 = vld [vmem:[%s3985_s22 + $0x94] ss:$56 sps:$4 sm:$0xff]  }
  0x50   : > { %2002 = vmatprep.mubr.bf16.mxu1 %v3693_v18  ;;  %2099 = vmatprep.mubr.bf16.mxu0 %v3697_v20  ;;  %v3774_v15 = vld [vmem:[%s4627_s1 + $0x2d0] sm:$0xff]  }
  0x51   : > { %3330 = vmatpush3.bf16.msra.mxu1 %v3699_v22  ;;  %3394 = vmatpush3.bf16.msra.mxu0 %v3702_v25  ;;  %v3771_v18 = vld [vmem:[%s3985_s22 + $0xfc] ss:$56 sps:$4 sm:$0xff]   ;;  %v3779_v25 = vld [vmem:[%s3985_s22 + $0x100] ss:$56 sps:$4 sm:$0xff]  }
  0x52   : > { %3331 = vmatprep.subr.bf16.mxu1 %v3706_v27  ;;  %3395 = vmatprep.subr.bf16.mxu0 %v3711_v31  ;;  %v3777_v20 = vld [vmem:[%s4627_s1 + $0x290] sm:$0xff]   ;;  %v3784_v22 = vld [vmem:[%s4627_s1 + $0x2d8] sm:$0xff]   ;;  %v3793_v27 = vld [vmem:[%s4627_s1 + $0x2e0] sm:$0xff]  }
  0x53   : > { %v3796_v31 = vld [vmem:[%s4627_s1 + $0x2a0] sm:$0xff]  }
  0x55   : > { %3332 = vmatpush3.bf16.msra.mxu1 %v3709_v29  ;;  %3396 = vmatpush3.bf16.msra.mxu0 %v3712_v32  ;;  %v3785_v29 = vld [vmem:[%s3985_s22 + $0x174] ss:$56 sps:$4 sm:$0xff]  }
  0x56   : > { %3333 = vmatprep.subr.bf16.mxu1 %v3716_v35  ;;  %3397 = vmatprep.subr.bf16.mxu0 %v3721_v38  ;;  %v3803_v32 = vld [vmem:[%s4627_s1 + $0x2e8] sm:$0xff]   ;;  %v3794_v38 = vld [vmem:[%s3985_s22 + $0x1e4] ss:$56 sps:$4 sm:$0xff]  }
  0x57   : > { %2003 = vmatmul.mubr.bf16.gmra.mrb[24].mxu1 %v3695_v21  ;;  %2100 = vmatmul.mubr.bf16.gmra.mrb[24].mxu0 %v3700_v23  ;;  %v3778_v21 = vld [vmem:[%s4627_s1 + $0x310] sm:$0xff]   ;;  %v3780_v23 = vld [vmem:[%s4627_s1 + $0x318] sm:$0xff]  }
  0x58   : > { %2010 = vmatprep.mubr.bf16.mxu1 %v3703_v26  ;;  %2107 = vmatprep.mubr.bf16.mxu0 %v3707_v28  ;;  %v3787_v26 = vld [vmem:[%s4627_s1 + $0x298] sm:$0xff]   ;;  %v3781_v28 = vld [vmem:[%s3985_s22 + $0x16c] ss:$56 sps:$4 sm:$0xff]   ;;  %v3788_v35 = vld [vmem:[%s3985_s22 + $0x170] ss:$56 sps:$4 sm:$0xff]  }
  0x59   : > { %3334 = vmatpush3.bf16.msra.mxu1 %v3719_v37  ;;  %3398 = vmatpush3.bf16.msra.mxu0 %v3722_v39  ;;  %v3790_v37 = vld [vmem:[%s3985_s22 + $0x1dc] ss:$56 sps:$4 sm:$0xff]  }
  0x5a   : > { %3335 = vmatprep.subr.bf16.mxu1 %v3726_v43  ;;  %3399 = vmatprep.subr.bf16.mxu0 %v3731_v46  ;;  %v3812_v39 = vld [vmem:[%s4627_s1 + $0x2f0] sm:$0xff]   ;;  %v3800_v46 = vld [vmem:[%s3985_s22 + $0x24c] ss:$56 sps:$4 sm:$0xff]  }
  0x5b   : > { %v3792_v43 = vld [vmem:[%s3985_s22 + $0x1d8] ss:$56 sps:$4 sm:$0xff]  }
  0x5d   : > { %3336 = vmatpush3.bf16.msra.mxu1 %v3729_v45  ;;  %3400 = vmatpush3.bf16.msra.mxu0 %v3732_v47  ;;  %v3822_v45 = vld [vmem:[%s4627_s1 + $0x2f8] sm:$0xff]  }
  0x5e   : > { %3337 = vmatprep.subr.bf16.mxu1 %v3736_v50  ;;  %3401 = vmatprep.subr.bf16.mxu0 %v3741_v54  ;;  %v3825_v47 = vld [vmem:[%s4627_s1 + $0x2b8] sm:$0xff]   ;;  %v3818_v50 = vld [vmem:[%s4627_s1 + $0x348] sm:$0xff]  }
  0x5f   : > { %2011 = vmatmul.mubr.bf16.gmra.mrb[28].mxu1 %v3705_v30  ;;  %2108 = vmatmul.mubr.bf16.gmra.mrb[28].mxu0 %v3710_v33  ;;  %v3789_v30 = vld [vmem:[%s4627_s1 + $0x320] sm:$0xff]   ;;  %v3797_v33 = vld [vmem:[%s4627_s1 + $0x328] sm:$0xff]  }
  0x60   : > { %2018 = vmatprep.mubr.bf16.mxu1 %v3713_v34  ;;  %2115 = vmatprep.mubr.bf16.mxu0 %v3717_v36  ;;  %v3783_v34 = vld [vmem:[%s3985_s22 + $0x168] ss:$56 sps:$4 sm:$0xff]   ;;  %v3813_v54 = vld [vmem:[%s3985_s22 + $0x2c4] ss:$56 sps:$4 sm:$0xff]  }
  0x61   : > { %3338 = vmatpush3.bf16.msra.mxu1 %v3739_v52  ;;  %3402 = vmatpush3.bf16.msra.mxu0 %v3742_v55  ;;  %v3806_v36 = vld [vmem:[%s4627_s1 + $0x2a8] sm:$0xff]   ;;  %v3827_v55 = vld [vmem:[%s4627_s1 + $0x350] sm:$0xff]  }
  0x62   : > { %3339 = vmatprep.subr.bf16.mxu1 %v3746_v56  ;;  %3403 = vmatprep.subr.bf16.mxu0 %v3751_v62  ;;  %v3807_v52 = vld [vmem:[%s3985_s22 + $0x250] ss:$56 sps:$4 sm:$0xff]   ;;  %v3831_v56 = vld [vmem:[%s4627_s1 + $0x358] sm:$0xff]   ;;  %v3830_v62 = vld [vmem:[%s3985_s22 + $0x2c] ss:$56 sps:$4 sm:$0xff]  }
  0x65   : > { %3340 = vmatpush3.bf16.msra.mxu1 %v3749_v61  ;;  %3404 = vmatpush3.bf16.msra.mxu0 %v3752_v63  ;;  %v3826_v61 = vld [vmem:[%s3985_s22 + $0x330] ss:$56 sps:$4 sm:$0xff]   ;;  %v3834_v63 = vld [vmem:[%s3985_s22 + $0x34] ss:$56 sps:$4 sm:$0xff]  }
  0x66   : > { %3453 = vmatprep.subr.bf16.mxu1 %v3756_v0  ;;  %2439 = vmatprep.subr.bf16.mxu0 %v3901_v5  ;;  %v3095_v0 = vld [vmem:[%s4378_s24] sm:$0xff]  }
  0x67   : > { %2019 = vmatmul.mubr.bf16.gmra.mrb[32].mxu1 %v3715_v40  ;;  %2116 = vmatmul.mubr.bf16.gmra.mrb[32].mxu0 %v3720_v41  ;;  %v3799_v40 = vld [vmem:[%s4627_s1 + $0x330] sm:$0xff]  }
  0x68   : > { %2026 = vmatprep.mubr.bf16.mxu1 %v3723_v42  ;;  %2123 = vmatprep.mubr.bf16.mxu0 %v3727_v44  ;;  %v3815_v41 = vld [vmem:[%s4627_s1 + $0x2b0] sm:$0xff]   ;;  %v3808_v42 = vld [vmem:[%s4627_s1 + $0x338] sm:$0xff]  }
  0x69   : > { %v3798_v44 = vld [vmem:[%s3985_s22 + $0x1e0] ss:$56 sps:$4 sm:$0xff]  }
  0x6f   : > { %2027 = vmatmul.mubr.bf16.gmra.mrb[36].mxu1 %v3725_v48  ;;  %2124 = vmatmul.mubr.bf16.gmra.mrb[36].mxu0 %v3730_v49  ;;  %v3804_v48 = vld [vmem:[%s3985_s22 + $0x254] ss:$56 sps:$4 sm:$0xff]   ;;  %v3816_v49 = vld [vmem:[%s4627_s1 + $0x340] sm:$0xff]  }
  0x70   : > { %2034 = vmatprep.mubr.bf16.mxu1 %v3733_v51  ;;  %2131 = vmatprep.mubr.bf16.mxu0 %v3737_v53  ;;  %v3802_v51 = vld [vmem:[%s3985_s22 + $0x248] ss:$56 sps:$4 sm:$0xff]   ;;  %v3809_v53 = vld [vmem:[%s3985_s22 + $0x2bc] ss:$56 sps:$4 sm:$0xff]  }
  0x77   : > { %2035 = vmatmul.mubr.bf16.gmra.mrb[40].mxu1 %v3735_v57  ;;  %2132 = vmatmul.mubr.bf16.gmra.mrb[40].mxu0 %v3740_v58  ;;  %v3811_v57 = vld [vmem:[%s3985_s22 + $0x2b8] ss:$56 sps:$4 sm:$0xff]  }
  0x78   : > { %2042 = vmatprep.mubr.bf16.mxu1 %v3743_v59  ;;  %2139 = vmatprep.mubr.bf16.mxu0 %v3747_v60  ;;  %v3817_v58 = vld [vmem:[%s3985_s22 + $0x2c0] ss:$56 sps:$4 sm:$0xff]   ;;  %v3819_v59 = vld [vmem:[%s3985_s22 + $0x32c] ss:$56 sps:$4 sm:$0xff]  }
  0x79   : > { %v3823_v60 = vld [vmem:[%s3985_s22 + $0x334] ss:$56 sps:$4 sm:$0xff]  }
  0x7f   : > { %2043 = vmatmul.mubr.bf16.gmra.mrb[44].mxu1 %v3745_v1  ;;  %2140 = vmatmul.mubr.bf16.gmra.mrb[44].mxu0 %v3750_v2  ;;  %v3096_v1 = vunpack.c.l.bf16 %v3095_v0  ;;  %v3097_v2 = vunpack.c.h.bf16 %v3095_v0  ;;  %v3873_v0 = vld [vmem:[%s3985_s22 + $0x338] ss:$56 sps:$4 sm:$0xff]  }
  0x80   : > { %2180 = vmatprep.mubr.bf16.mxu1 %v3755_v3  ;;  %2277 = vmatprep.mubr.bf16.mxu0 %v3759_v4  ;;  %v3126_v3 = vld [vmem:[%s4378_s24 + $0x8] sm:$0xff]   ;;  %v3127_v4 = vld [vmem:[%s4378_s24 + $0x10] sm:$0xff]  }
  0x87   : > { %2181 = vmatmul.mubr.bf16.vlgmr.msra.gmra.mrb[48].mxu1 %v3753_v6  ;;  %2278 = vmatmul.mubr.bf16.vlgmr.msra.gmra.mrb[48].mxu0 %v3757_v7  ;;  %v3128_v6 = vld [vmem:[%s4378_s24 + $0x18] sm:$0xff]   ;;  %v3100_v7 = vunpack.c.l.bf16 %v3126_v3 }
  0x88   : > { %3454 = vmatpush3.bf16.msra.mxu1 %v3760_v8  ;;  %2440 = vmatpush1.bf16.msra.mxu0 %v3761_v9  ;;  %v3101_v8 = vunpack.c.h.bf16 %v3126_v3  ;;  %v3104_v9 = vunpack.c.l.bf16 %v3127_v4 }
  0x89   : > { %2188 = vmatprep.mubr.bf16.mxu1 %v3762_v10  ;;  %3455 = vmatprep.subr.bf16.mxu1 %v3765_v11  ;;  %v3105_v10 = vunpack.c.h.bf16 %v3127_v4  ;;  %v3560_v11 = vpack.i.bf16 %v3097_v2, %v3096_v1  ;;  %v3876_v1 = vld [vmem:[%s3985_s22 + $0x340] ss:$56 sps:$4 sm:$0xff]  }
  0x8a   : > { %2285 = vmatprep.mubr.bf16.mxu0 %v3766_v12  ;;  %2441 = vmatprep.subr.bf16.mxu0 %v3901_v5  ;;  %v3108_v12 = vunpack.c.l.bf16 %v3128_v6 }
  0x8b   : > { %3561 = vperm.xlu0 %3559, %v3560_v11  }
  0x8c   : > { %3456 = vmatpush3.bf16.msra.mxu1 %v3768_v13  ;;  %2442 = vmatpush1.bf16.msra.mxu0 %v3770_v14  ;;  %v3109_v13 = vunpack.c.h.bf16 %v3128_v6  ;;  %v3571_v14 = vpack.i.bf16 %v3105_v10, %v3104_v9 }
  0x8d   : > { %3457 = vmatprep.subr.bf16.mxu1 %v3774_v15  ;;  %2443 = vmatprep.subr.bf16.mxu0 %v3901_v5  ;;  %v3565_v15 = vpack.i.bf16 %v3101_v8, %v3100_v7 }
  0x8e   : > { %3572 = vperm.xlu1 %3570, %v3571_v14  }
  0x8f   : > { %2189 = vmatmul.mubr.bf16.gmra.mrb[52].mxu1 %v3764_v16  ;;  %2286 = vmatmul.mubr.bf16.gmra.mrb[52].mxu0 %v3769_v17  ;;  %v3576_v16 = vpack.i.bf16 %v3109_v13, %v3108_v12  ;;  %v3129_v17 = vld [vmem:[%s4378_s24 + $0x20] sm:$0xff]  }
  0x90   : > { %2196 = vmatprep.mubr.bf16.mxu1 %v3771_v18  ;;  %2293 = vmatprep.mubr.bf16.mxu0 %v3775_v19  ;;  %v3112_v18 = vunpack.c.l.bf16 %v3129_v17  ;;  %v3113_v19 = vunpack.c.h.bf16 %v3129_v17 }
  0x91   : > { %3458 = vmatpush3.bf16.msra.mxu1 %v3777_v20  ;;  %2444 = vmatpush1.bf16.msra.mxu0 %v3778_v21  ;;  %v3828_v20 = vld [vmem:[%s3985_s22 + $0x28] ss:$56 sps:$4 sm:$0xff]  }
  0x92   : > { %2445 = vmatprep.subr.bf16.mxu0 %v3901_v5  ;;  %3459 = vmatprep.subr.bf16.mxu1 %v3784_v22  ;;  %v3832_v21 = vld [vmem:[%s3985_s22 + $0x30] ss:$56 sps:$4 sm:$0xff]   ;;  %v3835_v22 = vld [vmem:[%s3985_s22 + $0x9c] ss:$56 sps:$4 sm:$0xff]  }
  0x93   : > { %3566 = vperm.xlu0 %3559, %v3565_v15   ;;  %3577 = vperm.xlu1 %3570, %v3576_v16  }
  0x95   : > { %2446 = vmatpush1.bf16.msra.mxu0 %v3780_v23  ;;  %3460 = vmatpush3.bf16.msra.mxu1 %v3787_v26  ;;  %v3838_v23 = vld [vmem:[%s3985_s22 + $0xa4] ss:$56 sps:$4 sm:$0xff]  }
  0x96   : > { %2447 = vmatprep.subr.bf16.mxu0 %v3901_v5  ;;  %3461 = vmatprep.subr.bf16.mxu1 %v3793_v27 }
  0x97   : > { %2197 = vmatmul.mubr.bf16.gmra.mrb[56].mxu1 %v3773_v24  ;;  %2294 = vmatmul.mubr.bf16.gmra.mrb[56].mxu0 %v3779_v25  ;;  %v3581_v24 = vpack.i.bf16 %v3113_v19, %v3112_v18  ;;  %v3130_v25 = vld [vmem:[%s4378_s24 + $0x28] sm:$0xff]  }
  0x98   : > { %2204 = vmatprep.mubr.bf16.mxu1 %v3781_v28  ;;  %2301 = vmatprep.mubr.bf16.mxu0 %v3785_v29  ;;  %v3116_v26 = vunpack.c.l.bf16 %v3130_v25  ;;  %v3117_v27 = vunpack.c.h.bf16 %v3130_v25  ;;  %v3837_v28 = vld [vmem:[%s3985_s22 + $0x98] ss:$56 sps:$4 sm:$0xff]  }
  0x99   : > { %2448 = vmatpush1.bf16.msra.mxu0 %v3789_v30  ;;  %3462 = vmatpush3.bf16.msra.mxu1 %v3796_v31  ;;  %v3840_v29 = vld [vmem:[%s3985_s22 + $0xa0] ss:$56 sps:$4 sm:$0xff]   ;;  %v3841_v30 = vld [vmem:[%s3985_s22 + $0x10c] ss:$56 sps:$4 sm:$0xff]  }
  0x9a   : > { %2449 = vmatprep.subr.bf16.mxu0 %v3901_v5  ;;  %3463 = vmatprep.subr.bf16.mxu1 %v3803_v32  ;;  %v3844_v31 = vld [vmem:[%s3985_s22 + $0x114] ss:$56 sps:$4 sm:$0xff]   ;;  %v3586_v32 = vpack.i.bf16 %v3117_v27, %v3116_v26 }
  0x9b   : > { %3582 = vperm.xlu0 %3559, %v3581_v24  }
  0x9c   : > { %3587 = vperm.xlu1 %3570, %v3586_v32  }
  0x9d   : > { %2450 = vmatpush1.bf16.msra.mxu0 %v3797_v33  ;;  %3464 = vmatpush3.bf16.msra.mxu1 %v3806_v36  ;;  %v3132_v33 = vld [vmem:[%s4378_s24 + $0x38] sm:$0xff]  }
  0x9e   : > { %2451 = vmatprep.subr.bf16.mxu0 %v3901_v5  ;;  %3465 = vmatprep.subr.bf16.mxu1 %v3812_v39  ;;  %v3125_v36 = vunpack.c.h.bf16 %v3132_v33 }
  0x9f   : > { %2205 = vmatmul.mubr.bf16.gmra.mrb[60].mxu1 %v3783_v34  ;;  %2302 = vmatmul.mubr.bf16.gmra.mrb[60].mxu0 %v3788_v35  ;;  %v3131_v34 = vld [vmem:[%s4378_s24 + $0x30] sm:$0xff]   ;;  %v3124_v35 = vunpack.c.l.bf16 %v3132_v33 }
  0xa0   : > { %2212 = vmatprep.mubr.bf16.mxu1 %v3790_v37  ;;  %2309 = vmatprep.mubr.bf16.mxu0 %v3794_v38  ;;  %v3120_v37 = vunpack.c.l.bf16 %v3131_v34  ;;  %v3121_v38 = vunpack.c.h.bf16 %v3131_v34 }
  0xa1   : > { %2452 = vmatpush1.bf16.msra.mxu0 %v3799_v40  ;;  %3466 = vmatpush3.bf16.msra.mxu1 %v3815_v41  ;;  %v3596_v39 = vpack.i.bf16 %v3125_v36, %v3124_v35  ;;  %v3843_v41 = vld [vmem:[%s3985_s22 + $0x108] ss:$56 sps:$4 sm:$0xff]  }
  0xa2   : > { %2453 = vmatprep.subr.bf16.mxu0 %v3901_v5  ;;  %3467 = vmatprep.subr.bf16.mxu1 %v3822_v45  ;;  %v3591_v40 = vpack.i.bf16 %v3121_v38, %v3120_v37  ;;  %v3849_v45 = vld [vmem:[%s3985_s22 + $0x178] ss:$56 sps:$4 sm:$0xff]  }
  0xa3   : > { %3597 = vperm.xlu1 %3570, %v3596_v39  }
  0xa4   : > { %3592 = vperm.xlu0 %3559, %v3591_v40  }
  0xa5   : > { %2454 = vmatpush1.bf16.msra.mxu0 %v3808_v42  ;;  %3468 = vmatpush3.bf16.msra.mxu1 %v3825_v47  ;;  %v3846_v42 = vld [vmem:[%s3985_s22 + $0x110] ss:$56 sps:$4 sm:$0xff]   ;;  %v3853_v47 = vld [vmem:[%s3985_s22 + $0x1ec] ss:$56 sps:$4 sm:$0xff]  }
  0xa6   : > { %2455 = vmatprep.subr.bf16.mxu0 %v3901_v5 }
  0xa7   : > { %2213 = vmatmul.mubr.bf16.gmra.mrb[64].mxu1 %v3792_v43  ;;  %2310 = vmatmul.mubr.bf16.gmra.mrb[64].mxu0 %v3798_v44  ;;  %v3847_v43 = vld [vmem:[%s3985_s22 + $0x17c] ss:$56 sps:$4 sm:$0xff]  }
  0xa8   : > { %2220 = vmatprep.mubr.bf16.mxu1 %v3800_v46  ;;  %2317 = vmatprep.mubr.bf16.mxu0 %v3804_v48  ;;  %v3850_v44 = vld [vmem:[%s3985_s22 + $0x184] ss:$56 sps:$4 sm:$0xff]   ;;  %v3852_v46 = vld [vmem:[%s3985_s22 + $0x180] ss:$56 sps:$4 sm:$0xff]   ;;  %v3856_v48 = vld [vmem:[%s3985_s22 + $0x1f4] ss:$56 sps:$4 sm:$0xff]  }
  0xa9   : > { %2456 = vmatpush1.bf16.msra.mxu0 %v3816_v49  ;;  %v3855_v49 = vld [vmem:[%s3985_s22 + $0x1e8] ss:$56 sps:$4 sm:$0xff]  }
  0xaa   : > { %2457 = vmatprep.subr.bf16.mxu0 %v3901_v5 }
  0xad   : > { %2458 = vmatpush1.bf16.msra.mxu0 %v3818_v50  ;;  %v3858_v50 = vld [vmem:[%s3985_s22 + $0x1f0] ss:$56 sps:$4 sm:$0xff]  }
  0xae   : > { %2459 = vmatprep.subr.bf16.mxu0 %v3901_v5 }
  0xaf   : > { %2221 = vmatmul.mubr.bf16.gmra.mrb[68].mxu1 %v3802_v51  ;;  %2318 = vmatmul.mubr.bf16.gmra.mrb[68].mxu0 %v3807_v52  ;;  %v3859_v51 = vld [vmem:[%s3985_s22 + $0x25c] ss:$56 sps:$4 sm:$0xff]  }
  0xb0   : > { %2228 = vmatprep.mubr.bf16.mxu1 %v3809_v53  ;;  %2325 = vmatprep.mubr.bf16.mxu0 %v3813_v54  ;;  %v3862_v52 = vld [vmem:[%s3985_s22 + $0x264] ss:$56 sps:$4 sm:$0xff]   ;;  %v3861_v53 = vld [vmem:[%s3985_s22 + $0x258] ss:$56 sps:$4 sm:$0xff]  }
  0xb1   : > { %2460 = vmatpush1.bf16.msra.mxu0 %v3827_v55  ;;  %v3864_v54 = vld [vmem:[%s3985_s22 + $0x260] ss:$56 sps:$4 sm:$0xff]   ;;  %v3865_v55 = vld [vmem:[%s3985_s22 + $0x2cc] ss:$56 sps:$4 sm:$0xff]  }
  0xb2   : > { %2461 = vmatprep.subr.bf16.mxu0 %v3901_v5  ;;  %v3821_v5 = vld [vmem:[%s3985_s22 + $0x328] ss:$56 sps:$4 sm:$0xff]  }
  0xb5   : > { %2462 = vmatpush1.bf16.msra.mxu0 %v3831_v56  ;;  %v3868_v56 = vld [vmem:[%s3985_s22 + $0x2d4] ss:$56 sps:$4 sm:$0xff]  }
  0xb7   : > { %2229 = vmatmul.mubr.bf16.gmra.mrb[72].mxu1 %v3811_v57  ;;  %2326 = vmatmul.mubr.bf16.gmra.mrb[72].mxu0 %v3817_v58  ;;  %v3867_v57 = vld [vmem:[%s3985_s22 + $0x2c8] ss:$56 sps:$4 sm:$0xff]  }
  0xb8   : > { %2236 = vmatprep.mubr.bf16.mxu1 %v3819_v59  ;;  %2333 = vmatprep.mubr.bf16.mxu0 %v3823_v60  ;;  %v3870_v58 = vld [vmem:[%s3985_s22 + $0x2d0] ss:$56 sps:$4 sm:$0xff]   ;;  %v3871_v59 = vld [vmem:[%s3985_s22 + $0x33c] ss:$56 sps:$4 sm:$0xff]  }
  0xb9   : > { %v3874_v60 = vld [vmem:[%s3985_s22 + $0x344] ss:$56 sps:$4 sm:$0xff]  }
  0xbf   : > { %2237 = vmatmul.mubr.bf16.gmra.mrb[76].mxu1 %v3821_v5  ;;  %2334 = vmatmul.mubr.bf16.gmra.mrb[76].mxu0 %v3826_v61 }
  0xc0   : > { %2374 = vmatprep.mubr.bf16.mxu1 %v3830_v62  ;;  %3080 = vmatprep.mubr.msk.bf16.mxu0 %vm1832_vm0, %v3834_v63 }
  0xc7   : > { %2375 = vmatmul.mubr.bf16.vlgmr.msra.gmra.mrb[80].mxu1 %v3828_v20  ;;  %2472 = vmatmul.mubr.bf16.vlgmr.msra.gmra.mrb[80].mxu0 %v3832_v21 }
  0xc8   : > { %2382 = vmatprep.mubr.bf16.mxu1 %v3835_v22  ;;  %3081 = vmatprep.mubr.msk.bf16.mxu0 %vm1832_vm0, %v3838_v23 }
  0xcf   : > { %2383 = vmatmul.mubr.bf16.gmra.mrb[84].mxu1 %v3837_v28  ;;  %2480 = vmatmul.mubr.bf16.gmra.mrb[84].mxu0 %v3840_v29 }
  0xd0   : > { %2390 = vmatprep.mubr.bf16.mxu1 %v3841_v30  ;;  %3082 = vmatprep.mubr.msk.bf16.mxu0 %vm1832_vm0, %v3844_v31 }
  0xd7   : > { %2391 = vmatmul.mubr.bf16.gmra.mrb[88].mxu1 %v3843_v41  ;;  %2488 = vmatmul.mubr.bf16.gmra.mrb[88].mxu0 %v3846_v42 }
  0xd8   : > { %2398 = vmatprep.mubr.bf16.mxu1 %v3847_v43  ;;  %3083 = vmatprep.mubr.msk.bf16.mxu0 %vm1832_vm0, %v3850_v44 }
  0xdf   : > { %2399 = vmatmul.mubr.bf16.gmra.mrb[92].mxu1 %v3849_v45  ;;  %2496 = vmatmul.mubr.bf16.gmra.mrb[92].mxu0 %v3852_v46 }
  0xe0   : > { %2406 = vmatprep.mubr.bf16.mxu1 %v3853_v47  ;;  %3084 = vmatprep.mubr.msk.bf16.mxu0 %vm1832_vm0, %v3856_v48 }
  0xe7   : > { %2407 = vmatmul.mubr.bf16.gmra.mrb[96].mxu1 %v3855_v49  ;;  %2504 = vmatmul.mubr.bf16.gmra.mrb[96].mxu0 %v3858_v50 }
  0xe8   : > { %2414 = vmatprep.mubr.bf16.mxu1 %v3859_v51  ;;  %3085 = vmatprep.mubr.msk.bf16.mxu0 %vm1832_vm0, %v3862_v52 }
  0xef   : > { %2415 = vmatmul.mubr.bf16.gmra.mrb[100].mxu1 %v3861_v53  ;;  %2512 = vmatmul.mubr.bf16.gmra.mrb[100].mxu0 %v3864_v54 }
  0xf0   : > { %2422 = vmatprep.mubr.bf16.mxu1 %v3865_v55  ;;  %3086 = vmatprep.mubr.msk.bf16.mxu0 %vm1832_vm0, %v3868_v56 }
  0xf7   : > { %2423 = vmatmul.mubr.bf16.gmra.mrb[104].mxu1 %v3867_v57  ;;  %2520 = vmatmul.mubr.bf16.gmra.mrb[104].mxu0 %v3870_v58 }
  0xf8   : > { %2430 = vmatprep.mubr.bf16.mxu1 %v3871_v59  ;;  %3087 = vmatprep.mubr.msk.bf16.mxu0 %vm1832_vm0, %v3874_v60 }
  0xfa   : > { %v3173_v5 = vpop.f32.mrb[0].mxu1  ;;  %v3149_v61 = vpop.f32.mrb[0].mxu0 }
  0xfb   : > { %v3174_v62 = vpop.f32.mrb[1].mxu1  ;;  %v3150_v63 = vpop.f32.mrb[1].mxu0 }
  0xfc   : > { %v4430_v2 = vadd.f32 %v3174_v62, %v3173_v5  ;;  %v3176_v3 = vpop.f32.mrb[2].mxu1  ;;  %v3151_v4 = vadd.f32 %v3150_v63, %v3149_v61  ;;  %v3152_v6 = vpop.f32.mrb[2].mxu0 }
  0xfd   : > { %v3177_v7 = vpop.f32.mrb[3].mxu1  ;;  %v3153_v8 = vpop.f32.mrb[3].mxu0 }
  0xfe   : > { %v4432_v9 = vadd.f32 %v3177_v7, %v3176_v3  ;;  %v3154_v10 = vadd.f32 %v3153_v8, %v3152_v6 }
  0xff   : > { %2431 = vmatmul.mubr.bf16.gmra.mrb[108].mxu1 %v3873_v0  ;;  %2528 = vmatmul.mubr.bf16.gmra.mrb[108].mxu0 %v3876_v1 }
 0x102   : > { %v3179_v11 = vpop.f32.mrb[4].mxu1  ;;  %v3155_v12 = vpop.f32.mrb[4].mxu0 }
 0x103   : > { %v3180_v13 = vpop.f32.mrb[5].mxu1  ;;  %v3156_v14 = vpop.f32.mrb[5].mxu0 }
 0x104   : > { %v4434_v15 = vadd.f32 %v3180_v13, %v3179_v11  ;;  %v3182_v16 = vpop.f32.mrb[6].mxu1  ;;  %v3157_v17 = vadd.f32 %v3156_v14, %v3155_v12  ;;  %v3158_v18 = vpop.f32.mrb[6].mxu0 }
 0x105   : > { %v3183_v19 = vpop.f32.mrb[7].mxu1  ;;  %v3159_v20 = vpop.f32.mrb[7].mxu0 }
 0x106   : > { %v4436_v21 = vadd.f32 %v3183_v19, %v3182_v16  ;;  %v3160_v22 = vadd.f32 %v3159_v20, %v3158_v18 }
 0x10a   : > { %v3185_v23 = vpop.f32.mrb[8].mxu1  ;;  %v3161_v24 = vpop.f32.mrb[8].mxu0 }
 0x10b   : > { %v3186_v25 = vpop.f32.mrb[9].mxu1  ;;  %v3162_v26 = vpop.f32.mrb[9].mxu0 }
 0x10c   : > { %v4438_v27 = vadd.f32 %v3186_v25, %v3185_v23  ;;  %v3188_v28 = vpop.f32.mrb[10].mxu1  ;;  %v3163_v29 = vadd.f32 %v3162_v26, %v3161_v24  ;;  %v3164_v30 = vpop.f32.mrb[10].mxu0 }
 0x10d   : > { %v3189_v31 = vpop.f32.mrb[11].mxu1  ;;  %v3165_v32 = vpop.f32.mrb[11].mxu0 }
 0x10e   : > { %v4440_v33 = vadd.f32 %v3189_v31, %v3188_v28  ;;  %v3166_v34 = vadd.f32 %v3165_v32, %v3164_v30 }
 0x112   : > { %v3191_v35 = vpop.f32.mrb[12].mxu1  ;;  %v3167_v36 = vpop.f32.mrb[12].mxu0 }
 0x113   : > { %v3192_v37 = vpop.f32.mrb[13].mxu1  ;;  %v3168_v38 = vpop.f32.mrb[13].mxu0 }
 0x114   : > { %v4442_v39 = vadd.f32 %v3192_v37, %v3191_v35  ;;  %v3194_v40 = vpop.f32.mrb[14].mxu1  ;;  %v4444_v41 = vadd.f32 %v3168_v38, %v3167_v36  ;;  %v3170_v42 = vpop.f32.mrb[14].mxu0 }
 0x115   : > { %v3195_v43 = vpop.f32.mrb[15].mxu1  ;;  %v3171_v44 = vpop.f32.mrb[15].mxu0 }
 0x116   : > { %v4446_v45 = vadd.f32 %v3195_v43, %v3194_v40  ;;  %v3172_v46 = vadd.f32 %v3171_v44, %v3170_v42 }
 0x11a   : > { %v3213_v47 = vpop.f32.mrb[16].mxu1  ;;  %v3277_v48 = vpop.f32.mrb[16].mxu0 }
 0x11b   : > { %v3214_v49 = vpop.f32.mrb[17].mxu1  ;;  %v3278_v50 = vpop.f32.mrb[17].mxu0 }
 0x11c   : > { %v3215_v51 = vadd.f32 %v3214_v49, %v3213_v47  ;;  %v3216_v52 = vpop.f32.mrb[18].mxu1  ;;  %v3279_v53 = vadd.f32 %v3278_v50, %v3277_v48  ;;  %v3280_v54 = vpop.f32.mrb[18].mxu0 }
 0x11d   : > { %v3217_v55 = vpop.f32.mrb[19].mxu1  ;;  %v3281_v56 = vpop.f32.mrb[19].mxu0 }
 0x11e   : > { %v1989_v57 = vadd.f32 %v3215_v51, %v3151_v4  ;;  %v3218_v58 = vadd.f32 %v3217_v55, %v3216_v52  ;;  %v3282_v59 = vadd.f32 %v3281_v56, %v3280_v54 }
 0x120   : > { %v1992_v60 = vadd.f32 %v3218_v58, %v3154_v10  ;;  %v4448_v5 = vadd.f32 %v3279_v53, %v1989_v57 }
 0x122   : > { %v4450_v61 = vadd.f32 %v3282_v59, %v1992_v60  ;;  %v3219_v62 = vpop.f32.mrb[20].mxu1  ;;  %v3283_v63 = vpop.f32.mrb[20].mxu0 }
 0x123   : > { %v3220_v0 = vpop.f32.mrb[21].mxu1  ;;  %v3284_v1 = vpop.f32.mrb[21].mxu0 }
 0x124   : > { %v3221_v3 = vadd.f32 %v3220_v0, %v3219_v62  ;;  %v3222_v6 = vpop.f32.mrb[22].mxu1  ;;  %v3285_v7 = vadd.f32 %v3284_v1, %v3283_v63  ;;  %v3286_v8 = vpop.f32.mrb[22].mxu0 }
 0x125   : > { %v3223_v11 = vpop.f32.mrb[23].mxu1  ;;  %v3287_v12 = vpop.f32.mrb[23].mxu0 }
 0x126   : > { %v1997_v13 = vadd.f32 %v3221_v3, %v3157_v17  ;;  %v3224_v14 = vadd.f32 %v3223_v11, %v3222_v6  ;;  %v3288_v4 = vadd.f32 %v3287_v12, %v3286_v8 }
 0x128   : > { %v2000_v16 = vadd.f32 %v3224_v14, %v3160_v22  ;;  %v4452_v18 = vadd.f32 %v3285_v7, %v1997_v13 }
 0x12a   : > { %v4454_v10 = vadd.f32 %v3288_v4, %v2000_v16  ;;  %v3225_v19 = vpop.f32.mrb[24].mxu1  ;;  %v3289_v20 = vpop.f32.mrb[24].mxu0 }
 0x12b   : > { %v3226_v23 = vpop.f32.mrb[25].mxu1  ;;  %v3290_v24 = vpop.f32.mrb[25].mxu0 }
 0x12c   : > { %v3227_v25 = vadd.f32 %v3226_v23, %v3225_v19  ;;  %v3228_v26 = vpop.f32.mrb[26].mxu1  ;;  %v3291_v28 = vadd.f32 %v3290_v24, %v3289_v20  ;;  %v3292_v30 = vpop.f32.mrb[26].mxu0 }
 0x12d   : > { %v3229_v31 = vpop.f32.mrb[27].mxu1  ;;  %v3293_v32 = vpop.f32.mrb[27].mxu0 }
 0x12e   : > { %v2005_v35 = vadd.f32 %v3227_v25, %v3163_v29  ;;  %v3230_v36 = vadd.f32 %v3229_v31, %v3228_v26  ;;  %v3294_v17 = vadd.f32 %v3293_v32, %v3292_v30 }
 0x130   : > { %v2008_v37 = vadd.f32 %v3230_v36, %v3166_v34  ;;  %v4456_v38 = vadd.f32 %v3291_v28, %v2005_v35 }
 0x132   : > { %v4458_v22 = vadd.f32 %v3294_v17, %v2008_v37  ;;  %v3231_v40 = vpop.f32.mrb[28].mxu1  ;;  %v3295_v42 = vpop.f32.mrb[28].mxu0 }
 0x133   : > { %v3232_v43 = vpop.f32.mrb[29].mxu1  ;;  %v3296_v44 = vpop.f32.mrb[29].mxu0 }
 0x134   : > { %v3233_v47 = vadd.f32 %v3232_v43, %v3231_v40  ;;  %v3234_v48 = vpop.f32.mrb[30].mxu1  ;;  %v3297_v49 = vadd.f32 %v3296_v44, %v3295_v42  ;;  %v3298_v50 = vpop.f32.mrb[30].mxu0 }
 0x135   : > { %v3235_v51 = vpop.f32.mrb[31].mxu1  ;;  %v3299_v52 = vpop.f32.mrb[31].mxu0 }
 0x136   : > { %v2013_v53 = vadd.f32 %v3233_v47, %v4444_v41  ;;  %v3236_v29 = vadd.f32 %v3235_v51, %v3234_v48  ;;  %v3300_v54 = vadd.f32 %v3299_v52, %v3298_v50 }
 0x138   : > { %v2016_v55 = vadd.f32 %v3236_v29, %v3172_v46  ;;  %v4461_v34 = vadd.f32 %v3297_v49, %v2013_v53 }
 0x13a   : > { %v4463_v56 = vadd.f32 %v3300_v54, %v2016_v55  ;;  %v3237_v57 = vpop.f32.mrb[32].mxu1  ;;  %v3301_v58 = vpop.f32.mrb[32].mxu0 }
 0x13b   : > { %v3238_v59 = vpop.f32.mrb[33].mxu1  ;;  %v3302_v60 = vpop.f32.mrb[33].mxu0 }
 0x13c   : > { %v3239_v62 = vadd.f32 %v3238_v59, %v3237_v57  ;;  %v3240_v63 = vpop.f32.mrb[34].mxu1  ;;  %v3303_v0 = vadd.f32 %v3302_v60, %v3301_v58  ;;  %v3304_v1 = vpop.f32.mrb[34].mxu0 }
 0x13d   : > { %v3241_v3 = vpop.f32.mrb[35].mxu1  ;;  %v3305_v6 = vpop.f32.mrb[35].mxu0 }
 0x13e   : > { %v2021_v7 = vadd.f32 %v3239_v62, %v4430_v2  ;;  %v3242_v41 = vadd.f32 %v3241_v3, %v3240_v63  ;;  %v3306_v8 = vadd.f32 %v3305_v6, %v3304_v1 }
 0x140   : > { %v2024_v46 = vadd.f32 %v3242_v41, %v4432_v9  ;;  %v4467_v11 = vadd.f32 %v3303_v0, %v2021_v7 }
 0x142   : > { %v4469_v12 = vadd.f32 %v3306_v8, %v2024_v46  ;;  %v3243_v13 = vpop.f32.mrb[36].mxu1  ;;  %v3307_v14 = vpop.f32.mrb[36].mxu0 }
 0x143   : > { %v3244_v4 = vpop.f32.mrb[37].mxu1  ;;  %v3308_v16 = vpop.f32.mrb[37].mxu0 }
 0x144   : > { %v3245_v19 = vadd.f32 %v3244_v4, %v3243_v13  ;;  %v3246_v20 = vpop.f32.mrb[38].mxu1  ;;  %v3309_v23 = vadd.f32 %v3308_v16, %v3307_v14  ;;  %v3310_v24 = vpop.f32.mrb[38].mxu0 }
 0x145   : > { %v3247_v25 = vpop.f32.mrb[39].mxu1  ;;  %v3311_v26 = vpop.f32.mrb[39].mxu0 }
 0x146   : > { %v2029_v2 = vadd.f32 %v3245_v19, %v4434_v15  ;;  %v3248_v28 = vadd.f32 %v3247_v25, %v3246_v20  ;;  %v3312_v30 = vadd.f32 %v3311_v26, %v3310_v24 }
 0x148   : > { %v2032_v9 = vadd.f32 %v3248_v28, %v4436_v21  ;;  %v4473_v31 = vadd.f32 %v3309_v23, %v2029_v2 }
 0x14a   : > { %v4475_v32 = vadd.f32 %v3312_v30, %v2032_v9  ;;  %v3249_v35 = vpop.f32.mrb[40].mxu1  ;;  %v3313_v36 = vpop.f32.mrb[40].mxu0 }
 0x14b   : > { %v3250_v17 = vpop.f32.mrb[41].mxu1  ;;  %v3314_v37 = vpop.f32.mrb[41].mxu0 }
 0x14c   : > { %v3251_v40 = vadd.f32 %v3250_v17, %v3249_v35  ;;  %v3252_v42 = vpop.f32.mrb[42].mxu1  ;;  %v3315_v43 = vadd.f32 %v3314_v37, %v3313_v36  ;;  %v3316_v44 = vpop.f32.mrb[42].mxu0 }
 0x14d   : > { %v3253_v47 = vpop.f32.mrb[43].mxu1  ;;  %v3317_v48 = vpop.f32.mrb[43].mxu0 }
 0x14e   : > { %v2037_v15 = vadd.f32 %v3251_v40, %v4438_v27  ;;  %v3254_v49 = vadd.f32 %v3253_v47, %v3252_v42  ;;  %v3318_v50 = vadd.f32 %v3317_v48, %v3316_v44 }
 0x150   : > { %v2040_v21 = vadd.f32 %v3254_v49, %v4440_v33  ;;  %v4479_v51 = vadd.f32 %v3315_v43, %v2037_v15 }
 0x152   : > { %v4481_v52 = vadd.f32 %v3318_v50, %v2040_v21  ;;  %v3255_v53 = vpop.f32.mrb[44].mxu1  ;;  %v3319_v29 = vpop.f32.mrb[44].mxu0 }
 0x153   : > { %v3256_v54 = vpop.f32.mrb[45].mxu1  ;;  %v3320_v55 = vpop.f32.mrb[45].mxu0 }
 0x154   : > { %v3257_v57 = vadd.f32 %v3256_v54, %v3255_v53  ;;  %v3258_v58 = vpop.f32.mrb[46].mxu1  ;;  %v3321_v59 = vadd.f32 %v3320_v55, %v3319_v29  ;;  %v3322_v60 = vpop.f32.mrb[46].mxu0 }
 0x155   : > { %v3259_v62 = vpop.f32.mrb[47].mxu1  ;;  %v3323_v63 = vpop.f32.mrb[47].mxu0 }
 0x156   : > { %v2045_v27 = vadd.f32 %v3257_v57, %v4442_v39  ;;  %v3260_v0 = vadd.f32 %v3259_v62, %v3258_v58  ;;  %v3324_v1 = vadd.f32 %v3323_v63, %v3322_v60 }
 0x158   : > { %v2048_v33 = vadd.f32 %v3260_v0, %v4446_v45  ;;  %v4485_v3 = vadd.f32 %v3321_v59, %v2045_v27 }
 0x15a   : > { %v4487_v6 = vadd.f32 %v3324_v1, %v2048_v33  ;;  %v3341_v7 = vpop.f32.mrb[48].mxu1  ;;  %v3405_v41 = vpop.f32.mrb[48].mxu0 }
 0x15b   : > { %v3342_v8 = vpop.f32.mrb[49].mxu1  ;;  %v3406_v46 = vpop.f32.mrb[49].mxu0 }
 0x15c   : > { %v3343_v13 = vadd.f32 %v3342_v8, %v3341_v7  ;;  %v3344_v14 = vpop.f32.mrb[50].mxu1  ;;  %v3407_v4 = vadd.f32 %v3406_v46, %v3405_v41  ;;  %v3408_v16 = vpop.f32.mrb[50].mxu0 }
 0x15d   : > { %v3345_v19 = vpop.f32.mrb[51].mxu1  ;;  %v3409_v20 = vpop.f32.mrb[51].mxu0 }
 0x15e   : > { %v2183_v39 = vadd.f32 %v3343_v13, %v4448_v5  ;;  %v3346_v23 = vadd.f32 %v3345_v19, %v3344_v14  ;;  %v3410_v24 = vadd.f32 %v3409_v20, %v3408_v16 }
 0x160   : > { %v2186_v45 = vadd.f32 %v3346_v23, %v4450_v61  ;;  %v4491_v25 = vadd.f32 %v3407_v4, %v2183_v39 }
 0x162   : > { %v4493_v26 = vadd.f32 %v3410_v24, %v2186_v45  ;;  %v3347_v2 = vpop.f32.mrb[52].mxu1  ;;  %v3411_v28 = vpop.f32.mrb[52].mxu0 }
 0x163   : > { %v3348_v30 = vpop.f32.mrb[53].mxu1  ;;  %v3412_v9 = vpop.f32.mrb[53].mxu0 }
 0x164   : > { %v3349_v35 = vadd.f32 %v3348_v30, %v3347_v2  ;;  %v3350_v36 = vpop.f32.mrb[54].mxu1  ;;  %v3413_v17 = vadd.f32 %v3412_v9, %v3411_v28  ;;  %v3414_v37 = vpop.f32.mrb[54].mxu0 }
 0x165   : > { %v3351_v40 = vpop.f32.mrb[55].mxu1  ;;  %v3415_v42 = vpop.f32.mrb[55].mxu0 }
 0x166   : > { %v2191_v5 = vadd.f32 %v3349_v35, %v4452_v18  ;;  %v3352_v43 = vadd.f32 %v3351_v40, %v3350_v36  ;;  %v3416_v44 = vadd.f32 %v3415_v42, %v3414_v37 }
 0x168   : > { %v2194_v61 = vadd.f32 %v3352_v43, %v4454_v10  ;;  %v4497_v47 = vadd.f32 %v3413_v17, %v2191_v5 }
 0x16a   : > { %v4499_v48 = vadd.f32 %v3416_v44, %v2194_v61  ;;  %v3353_v15 = vpop.f32.mrb[56].mxu1  ;;  %v3417_v49 = vpop.f32.mrb[56].mxu0 }
 0x16b   : > { %v3354_v50 = vpop.f32.mrb[57].mxu1  ;;  %v3418_v21 = vpop.f32.mrb[57].mxu0 }
 0x16c   : > { %v3355_v53 = vadd.f32 %v3354_v50, %v3353_v15  ;;  %v3356_v29 = vpop.f32.mrb[58].mxu1  ;;  %v3419_v54 = vadd.f32 %v3418_v21, %v3417_v49  ;;  %v3420_v55 = vpop.f32.mrb[58].mxu0 }
 0x16d   : > { %v3357_v57 = vpop.f32.mrb[59].mxu1  ;;  %v3421_v58 = vpop.f32.mrb[59].mxu0 }
 0x16e   : > { %v2199_v18 = vadd.f32 %v3355_v53, %v4456_v38  ;;  %v3358_v59 = vadd.f32 %v3357_v57, %v3356_v29  ;;  %v3422_v60 = vadd.f32 %v3421_v58, %v3420_v55 }
 0x170   : > { %v2202_v10 = vadd.f32 %v3358_v59, %v4458_v22  ;;  %v4503_v62 = vadd.f32 %v3419_v54, %v2199_v18 }
 0x172   : > { %v4505_v63 = vadd.f32 %v3422_v60, %v2202_v10  ;;  %v3359_v27 = vpop.f32.mrb[60].mxu1  ;;  %v3423_v0 = vpop.f32.mrb[60].mxu0 }
 0x173   : > { %v3360_v1 = vpop.f32.mrb[61].mxu1  ;;  %v3424_v33 = vpop.f32.mrb[61].mxu0 }
 0x174   : > { %v3361_v7 = vadd.f32 %v3360_v1, %v3359_v27  ;;  %v3362_v41 = vpop.f32.mrb[62].mxu1  ;;  %v3425_v8 = vadd.f32 %v3424_v33, %v3423_v0  ;;  %v3426_v46 = vpop.f32.mrb[62].mxu0 }
 0x175   : > { %v3363_v13 = vpop.f32.mrb[63].mxu1  ;;  %v3427_v14 = vpop.f32.mrb[63].mxu0 }
 0x176   : > { %v2207_v38 = vadd.f32 %v3361_v7, %v4461_v34  ;;  %v3364_v4 = vadd.f32 %v3363_v13, %v3362_v41  ;;  %v3428_v16 = vadd.f32 %v3427_v14, %v3426_v46 }
 0x178   : > { %v2210_v22 = vadd.f32 %v3364_v4, %v4463_v56  ;;  %v4509_v19 = vadd.f32 %v3425_v8, %v2207_v38 }
 0x17a   : > { %v4511_v20 = vadd.f32 %v3428_v16, %v2210_v22  ;;  %v3365_v39 = vpop.f32.mrb[64].mxu1  ;;  %v3429_v23 = vpop.f32.mrb[64].mxu0 }
 0x17b   : > { %v3366_v24 = vpop.f32.mrb[65].mxu1  ;;  %v3430_v45 = vpop.f32.mrb[65].mxu0 }
 0x17c   : > { %v3367_v2 = vadd.f32 %v3366_v24, %v3365_v39  ;;  %v3368_v28 = vpop.f32.mrb[66].mxu1  ;;  %v3431_v30 = vadd.f32 %v3430_v45, %v3429_v23  ;;  %v3432_v9 = vpop.f32.mrb[66].mxu0 }
 0x17d   : > { %v3369_v35 = vpop.f32.mrb[67].mxu1  ;;  %v3433_v36 = vpop.f32.mrb[67].mxu0 }
 0x17e   : > { %v2215_v34 = vadd.f32 %v3367_v2, %v4467_v11  ;;  %v3370_v17 = vadd.f32 %v3369_v35, %v3368_v28  ;;  %v3434_v37 = vadd.f32 %v3433_v36, %v3432_v9 }
 0x180   : > { %v2218_v56 = vadd.f32 %v3370_v17, %v4469_v12  ;;  %v4515_v40 = vadd.f32 %v3431_v30, %v2215_v34 }
 0x182   : > { %v4517_v42 = vadd.f32 %v3434_v37, %v2218_v56  ;;  %v3371_v5 = vpop.f32.mrb[68].mxu1  ;;  %v3435_v43 = vpop.f32.mrb[68].mxu0 }
 0x183   : > { %v3372_v44 = vpop.f32.mrb[69].mxu1  ;;  %v3436_v61 = vpop.f32.mrb[69].mxu0 }
 0x184   : > { %v3373_v15 = vadd.f32 %v3372_v44, %v3371_v5  ;;  %v3374_v49 = vpop.f32.mrb[70].mxu1  ;;  %v3437_v50 = vadd.f32 %v3436_v61, %v3435_v43  ;;  %v3438_v21 = vpop.f32.mrb[70].mxu0 }
 0x185   : > { %v3375_v53 = vpop.f32.mrb[71].mxu1  ;;  %v3439_v29 = vpop.f32.mrb[71].mxu0 }
 0x186   : > { %v2223_v11 = vadd.f32 %v3373_v15, %v4473_v31  ;;  %v3376_v54 = vadd.f32 %v3375_v53, %v3374_v49  ;;  %v3440_v55 = vadd.f32 %v3439_v29, %v3438_v21  ;;  %v4547_v53 = vld [vmem:[%s4629_s3] ss:$0 sm:$0xff]  ;;  %v3562_v29 = vpop.permute.xlu0 %3561 }
 0x188   : > { %v2226_v12 = vadd.f32 %v3376_v54, %v4475_v32  ;;  %v4521_v57 = vadd.f32 %v3437_v50, %v2223_v11 }
 0x18a   : > { %v4523_v58 = vadd.f32 %v3440_v55, %v2226_v12  ;;  %v3377_v18 = vpop.f32.mrb[72].mxu1  ;;  %v3441_v59 = vpop.f32.mrb[72].mxu0 }
 0x18b   : > { %v3378_v60 = vpop.f32.mrb[73].mxu1  ;;  %v3442_v10 = vpop.f32.mrb[73].mxu0 }
 0x18c   : > { %v3379_v27 = vadd.f32 %v3378_v60, %v3377_v18  ;;  %v3380_v0 = vpop.f32.mrb[74].mxu1  ;;  %v3443_v1 = vadd.f32 %v3442_v10, %v3441_v59  ;;  %v3444_v33 = vpop.f32.mrb[74].mxu0 }
 0x18d   : > { %v3381_v7 = vpop.f32.mrb[75].mxu1  ;;  %v3445_v41 = vpop.f32.mrb[75].mxu0 }
 0x18e   : > { %v2231_v31 = vadd.f32 %v3379_v27, %v4479_v51  ;;  %v3382_v8 = vadd.f32 %v3381_v7, %v3380_v0  ;;  %v3446_v46 = vadd.f32 %v3445_v41, %v3444_v33 }
 0x190   : > { %v2234_v32 = vadd.f32 %v3382_v8, %v4481_v52  ;;  %v4527_v13 = vadd.f32 %v3443_v1, %v2231_v31  ;;  %v3564_v1 = vunpack.i.h.bf16 %v3562_v29 }
 0x192   : > { %v4529_v14 = vadd.f32 %v3446_v46, %v2234_v32  ;;  %v3383_v38 = vpop.f32.mrb[76].mxu1  ;;  %v3447_v4 = vpop.f32.mrb[76].mxu0 }
 0x193   : > { %v3384_v16 = vpop.f32.mrb[77].mxu1  ;;  %v3448_v22 = vpop.f32.mrb[77].mxu0 }
 0x194   : > { %v3385_v39 = vadd.f32 %v3384_v16, %v3383_v38  ;;  %v3386_v23 = vpop.f32.mrb[78].mxu1  ;;  %v3449_v24 = vadd.f32 %v3448_v22, %v3447_v4  ;;  %v3450_v45 = vpop.f32.mrb[78].mxu0 }
 0x195   : > { %v3387_v2 = vpop.f32.mrb[79].mxu1  ;;  %v3451_v28 = vpop.f32.mrb[79].mxu0 }
 0x196   : > { %v2239_v51 = vadd.f32 %v3385_v39, %v4485_v3  ;;  %v3388_v30 = vadd.f32 %v3387_v2, %v3386_v23  ;;  %v3452_v9 = vadd.f32 %v3451_v28, %v3450_v45  ;;  %v3567_v22 = vpop.permute.xlu0 %3566 }
 0x198   : > { %v2242_v52 = vadd.f32 %v3388_v30, %v4487_v6  ;;  %v4533_v35 = vadd.f32 %v3449_v24, %v2239_v51  ;;  %v4541_v6 = vld [vmem:[%s4628_s2] ss:$0 sm:$0xff] }
 0x19a   : > { %v4535_v36 = vadd.f32 %v3452_v9, %v2242_v52  ;;  %v3469_v34 = vpop.f32.mrb[80].mxu1  ;;  %v2473_v17 = vpop.f32.mrb[80].mxu0 }
 0x19b   : > { %v3470_v37 = vpop.f32.mrb[81].mxu1  ;;  %v2475_v56 = vpop.f32.mrb[81].mxu0 }
 0x19c   : > { %v3471_v5 = vadd.f32 %v3470_v37, %v3469_v34  ;;  %v3472_v43 = vpop.f32.mrb[82].mxu1  ;;  %v2476_v44 = vpop.f32.mrb[82].mxu0  ;;  %v3568_v34 = vunpack.i.l.bf16 %v3567_v22 }
 0x19d   : > { %v3473_v61 = vpop.f32.mrb[83].mxu1  ;;  %v2478_v15 = vpop.f32.mrb[83].mxu0 }
 0x19e   : > { %v3474_v49 = vadd.f32 %v3473_v61, %v3472_v43  ;;  %v2377_v3 = vadd.f32 %v3471_v5, %v4491_v25 }
 0x1a0   : > { %v2474_v50 = vadd.f32 %v2473_v17, %v2377_v3  ;;  %v2380_v21 = vadd.f32 %v3474_v49, %v4493_v26  ;;  %v3563_v26 = vunpack.i.l.bf16 %v3562_v29  ;;  %v3569_v17 = vunpack.i.h.bf16 %v3567_v22 }
 0x1a2   : > { %v2543_v11 = vmul.f32 %v4541_v6, %v2474_v50  ;;  %v2477_v54 = vadd.f32 %v2476_v44, %v2380_v21  ;;  %v3475_v55 = vpop.f32.mrb[84].mxu1  ;;  %v2481_v25 = vpop.f32.mrb[84].mxu0 }
 0x1a3   : > { %v3476_v12 = vpop.f32.mrb[85].mxu1  ;;  %v2483_v18 = vpop.f32.mrb[85].mxu0 }
 0x1a4   : > { %v2566_v59 = vadd.f32 %v4547_v53, %v2543_v11  ;;  %v2544_v60 = vmul.f32 %v4541_v6, %v2477_v54  ;;  %v3477_v10 = vadd.f32 %v3476_v12, %v3475_v55  ;;  %v3478_v27 = vpop.f32.mrb[86].mxu1  ;;  %v2484_v0 = vpop.f32.mrb[86].mxu0 }
 0x1a5   : > { %v3479_v33 = vpop.f32.mrb[87].mxu1  ;;  %v2486_v7 = vpop.f32.mrb[87].mxu0 }
 0x1a6   : > { %v2582_v41 = vmax.f32 %v2566_v59, 0.0  ;;  %v2567_v31 = vadd.f32 %v4547_v53, %v2544_v60  ;;  %v3480_v8 = vadd.f32 %v3479_v33, %v3478_v27  ;;  %v2385_v46 = vadd.f32 %v3477_v10, %v4497_v47  ;;  %v3573_v21 = vpop.permute.xlu1 %3572 }
 0x1a7   : > { %v3574_v27 = vunpack.i.l.bf16 %v3573_v21 }
 0x1a8   : > { %v2583_v32 = vmax.f32 %v2567_v31, 0.0  ;;  %v2710_v38 = vmul.f32 %v3563_v26, %v2582_v41  ;;  %v2482_v4 = vadd.f32 %v2481_v25, %v2385_v46  ;;  %v2388_v16 = vadd.f32 %v3480_v8, %v4499_v48 }
 0x1a9   : > { %v3575_v26 = vunpack.i.h.bf16 %v3573_v21 }
 0x1aa   : > { %v2711_v39 = vmul.f32 %v3564_v1, %v2583_v32  ;;  %2726 = vst [vmem:[%s4558_s6] sm:$0xff] %v2710_v38  ;;  %v2545_v23 = vmul.f32 %v4541_v6, %v2482_v4  ;;  %v2485_v24 = vadd.f32 %v2484_v0, %v2388_v16  ;;  %v3481_v45 = vpop.f32.mrb[88].mxu1  ;;  %v2489_v47 = vpop.f32.mrb[88].mxu0 }
 0x1ab   : > { %v3482_v2 = vpop.f32.mrb[89].mxu1  ;;  %v2491_v28 = vpop.f32.mrb[89].mxu0 }
 0x1ac   : > { %2727 = vst [vmem:[%s4558_s6 + $0x8] sm:$0xff] %v2711_v39  ;;  %v2568_v51 = vadd.f32 %v4547_v53, %v2545_v23  ;;  %v2546_v30 = vmul.f32 %v4541_v6, %v2485_v24  ;;  %v3483_v9 = vadd.f32 %v3482_v2, %v3481_v45  ;;  %v3484_v52 = vpop.f32.mrb[90].mxu1  ;;  %v2492_v48 = vpop.f32.mrb[90].mxu0 }
 0x1ad   : > { %v3485_v37 = vpop.f32.mrb[91].mxu1  ;;  %v2494_v56 = vpop.f32.mrb[91].mxu0 }
 0x1ae   : > { %v2584_v5 = vmax.f32 %v2568_v51, 0.0  ;;  %v2569_v43 = vadd.f32 %v4547_v53, %v2546_v30  ;;  %v3486_v44 = vadd.f32 %v3485_v37, %v3484_v52  ;;  %v2393_v61 = vadd.f32 %v3483_v9, %v4503_v62  ;;  %v3578_v4 = vpop.permute.xlu1 %3577 }
 0x1af   : > { %v3579_v30 = vunpack.i.l.bf16 %v3578_v4  ;;  %v3580_v9 = vunpack.i.h.bf16 %v3578_v4 }
 0x1b0   : > { %v2585_v15 = vmax.f32 %v2569_v43, 0.0  ;;  %v2712_v49 = vmul.f32 %v3568_v34, %v2584_v5  ;;  %v2490_v3 = vadd.f32 %v2489_v47, %v2393_v61  ;;  %v2396_v50 = vadd.f32 %v3486_v44, %v4505_v63 }
 0x1b2   : > { %v2713_v29 = vmul.f32 %v3569_v17, %v2585_v15  ;;  %2728 = vst [vmem:[%s4558_s6 + $0x10] sm:$0xff] %v2712_v49  ;;  %v2547_v11 = vmul.f32 %v4541_v6, %v2490_v3  ;;  %v2493_v54 = vadd.f32 %v2492_v48, %v2396_v50  ;;  %v3487_v55 = vpop.f32.mrb[92].mxu1  ;;  %v2497_v25 = vpop.f32.mrb[92].mxu0 }
 0x1b3   : > { %v3488_v12 = vpop.f32.mrb[93].mxu1  ;;  %v2499_v18 = vpop.f32.mrb[93].mxu0 }
 0x1b4   : > { %2729 = vst [vmem:[%s4558_s6 + $0x18] sm:$0xff] %v2713_v29  ;;  %v2570_v59 = vadd.f32 %v4547_v53, %v2547_v11  ;;  %v2548_v62 = vmul.f32 %v4541_v6, %v2493_v54  ;;  %v3489_v60 = vadd.f32 %v3488_v12, %v3487_v55  ;;  %v3490_v10 = vpop.f32.mrb[94].mxu1  ;;  %v2500_v63 = vpop.f32.mrb[94].mxu0 }
 0x1b5   : > { %v3491_v0 = vpop.f32.mrb[95].mxu1  ;;  %v2502_v1 = vpop.f32.mrb[95].mxu0 }
 0x1b6   : > { %v2586_v33 = vmax.f32 %v2570_v59, 0.0  ;;  %v2571_v7 = vadd.f32 %v4547_v53, %v2548_v62  ;;  %v3492_v41 = vadd.f32 %v3491_v0, %v3490_v10  ;;  %v2401_v31 = vadd.f32 %v3489_v60, %v4509_v19  ;;  %v3583_v15 = vpop.permute.xlu0 %3582 }
 0x1b7   : > { %v3584_v18 = vunpack.i.l.bf16 %v3583_v15  ;;  %v3585_v59 = vunpack.i.h.bf16 %v3583_v15 }
 0x1b8   : > { %v2587_v8 = vmax.f32 %v2571_v7, 0.0  ;;  %v2714_v46 = vmul.f32 %v3574_v27, %v2586_v33  ;;  %v2498_v32 = vadd.f32 %v2497_v25, %v2401_v31  ;;  %v2404_v38 = vadd.f32 %v3492_v41, %v4511_v20  ;;  %v3588_v41 = vpop.permute.xlu1 %3587 }
 0x1ba   : > { %v2715_v16 = vmul.f32 %v3575_v26, %v2587_v8  ;;  %2730 = vst [vmem:[%s4558_s6 + $0x20] sm:$0xff] %v2714_v46  ;;  %v2549_v22 = vmul.f32 %v4541_v6, %v2498_v32  ;;  %v2501_v39 = vadd.f32 %v2500_v63, %v2404_v38  ;;  %v3493_v23 = vpop.f32.mrb[96].mxu1  ;;  %v2505_v24 = vpop.f32.mrb[96].mxu0 }
 0x1bb   : > { %v3494_v45 = vpop.f32.mrb[97].mxu1  ;;  %v2507_v47 = vpop.f32.mrb[97].mxu0 }
 0x1bc   : > { %2731 = vst [vmem:[%s4558_s6 + $0x28] sm:$0xff] %v2715_v16  ;;  %v2572_v2 = vadd.f32 %v4547_v53, %v2549_v22  ;;  %v2550_v19 = vmul.f32 %v4541_v6, %v2501_v39  ;;  %v3495_v28 = vadd.f32 %v3494_v45, %v3493_v23  ;;  %v3496_v51 = vpop.f32.mrb[98].mxu1  ;;  %v2508_v20 = vpop.f32.mrb[98].mxu0  ;;  %v3590_v45 = vunpack.i.h.bf16 %v3588_v41 }
 0x1bd   : > { %v3497_v52 = vpop.f32.mrb[99].mxu1  ;;  %v2510_v34 = vpop.f32.mrb[99].mxu0 }
 0x1be   : > { %v2588_v48 = vmax.f32 %v2572_v2, 0.0  ;;  %v2573_v17 = vadd.f32 %v4547_v53, %v2550_v19  ;;  %v3498_v37 = vadd.f32 %v3497_v52, %v3496_v51  ;;  %v2409_v56 = vadd.f32 %v3495_v28, %v4515_v40 }
 0x1c0   : > { %v2589_v5 = vmax.f32 %v2573_v17, 0.0  ;;  %v2716_v43 = vmul.f32 %v3579_v30, %v2588_v48  ;;  %v2506_v44 = vadd.f32 %v2505_v24, %v2409_v56  ;;  %v2412_v61 = vadd.f32 %v3498_v37, %v4517_v42  ;;  %v3593_v48 = vpop.permute.xlu0 %3592 }
 0x1c1   : > { %v3589_v24 = vunpack.i.l.bf16 %v3588_v41 }
 0x1c2   : > { %v2717_v49 = vmul.f32 %v3580_v9, %v2589_v5  ;;  %2732 = vst [vmem:[%s4558_s6 + $0x30] sm:$0xff] %v2716_v43  ;;  %v2551_v3 = vmul.f32 %v4541_v6, %v2506_v44  ;;  %v2509_v50 = vadd.f32 %v2508_v20, %v2412_v61  ;;  %v3499_v21 = vpop.f32.mrb[100].mxu1  ;;  %v2513_v29 = vpop.f32.mrb[100].mxu0 }
 0x1c3   : > { %v3500_v11 = vpop.f32.mrb[101].mxu1  ;;  %v2515_v54 = vpop.f32.mrb[101].mxu0 }
 0x1c4   : > { %2733 = vst [vmem:[%s4558_s6 + $0x38] sm:$0xff] %v2717_v49  ;;  %v2574_v55 = vadd.f32 %v4547_v53, %v2551_v3  ;;  %v2552_v40 = vmul.f32 %v4541_v6, %v2509_v50  ;;  %v3501_v25 = vadd.f32 %v3500_v11, %v3499_v21  ;;  %v3502_v12 = vpop.f32.mrb[102].mxu1  ;;  %v2516_v42 = vpop.f32.mrb[102].mxu0 }
 0x1c5   : > { %v3503_v62 = vpop.f32.mrb[103].mxu1  ;;  %v2518_v60 = vpop.f32.mrb[103].mxu0 }
 0x1c6   : > { %v2590_v10 = vmax.f32 %v2574_v55, 0.0  ;;  %v2575_v27 = vadd.f32 %v4547_v53, %v2552_v40  ;;  %v3504_v63 = vadd.f32 %v3503_v62, %v3502_v12  ;;  %v2417_v26 = vadd.f32 %v3501_v25, %v4521_v57 }
 0x1c7   : > { %v3595_v25 = vunpack.i.h.bf16 %v3593_v48 }
 0x1c8   : > { %v2591_v0 = vmax.f32 %v2575_v27, 0.0  ;;  %v2718_v1 = vmul.f32 %v3584_v18, %v2590_v10  ;;  %v2514_v33 = vadd.f32 %v2513_v29, %v2417_v26  ;;  %v2420_v7 = vadd.f32 %v3504_v63, %v4523_v58  ;;  %v3598_v27 = vpop.permute.xlu1 %3597 }
 0x1ca   : > { %v2719_v31 = vmul.f32 %v3585_v59, %v2591_v0  ;;  %2734 = vst [vmem:[%s4558_s6 + $0x40] sm:$0xff] %v2718_v1  ;;  %v2553_v8 = vmul.f32 %v4541_v6, %v2514_v33  ;;  %v2517_v46 = vadd.f32 %v2516_v42, %v2420_v7  ;;  %v3505_v32 = vpop.f32.mrb[104].mxu1  ;;  %v2521_v38 = vpop.f32.mrb[104].mxu0  ;;  %v3600_v33 = vunpack.i.h.bf16 %v3598_v27 }
 0x1cb   : > { %v3506_v4 = vpop.f32.mrb[105].mxu1  ;;  %v2523_v16 = vpop.f32.mrb[105].mxu0 }
 0x1cc   : > { %2735 = vst [vmem:[%s4558_s6 + $0x48] sm:$0xff] %v2719_v31  ;;  %v2576_v22 = vadd.f32 %v4547_v53, %v2553_v8  ;;  %v2554_v57 = vmul.f32 %v4541_v6, %v2517_v46  ;;  %v3507_v39 = vadd.f32 %v3506_v4, %v3505_v32  ;;  %v3508_v23 = vpop.f32.mrb[106].mxu1  ;;  %v2524_v58 = vpop.f32.mrb[106].mxu0 }
 0x1cd   : > { %v3509_v47 = vpop.f32.mrb[107].mxu1  ;;  %v2526_v2 = vpop.f32.mrb[107].mxu0 }
 0x1ce   : > { %v2592_v19 = vmax.f32 %v2576_v22, 0.0  ;;  %v2577_v28 = vadd.f32 %v4547_v53, %v2554_v57  ;;  %v3510_v51 = vadd.f32 %v3509_v47, %v3508_v23  ;;  %v2425_v30 = vadd.f32 %v3507_v39, %v4527_v13 }
 0x1d0   : > { %v2593_v20 = vmax.f32 %v2577_v28, 0.0  ;;  %v2720_v9 = vmul.f32 %v3589_v24, %v2592_v19  ;;  %v2522_v52 = vadd.f32 %v2521_v38, %v2425_v30  ;;  %v2428_v34 = vadd.f32 %v3510_v51, %v4529_v14 }
 0x1d1   : > { %v3594_v14 = vunpack.i.l.bf16 %v3593_v48 }
 0x1d2   : > { %v2721_v17 = vmul.f32 %v3590_v45, %v2593_v20  ;;  %2736 = vst [vmem:[%s4558_s6 + $0x50] sm:$0xff] %v2720_v9  ;;  %v2555_v37 = vmul.f32 %v4541_v6, %v2522_v52  ;;  %v2525_v56 = vadd.f32 %v2524_v58, %v2428_v34  ;;  %v3511_v5 = vpop.f32.mrb[108].mxu1  ;;  %v2529_v43 = vpop.f32.mrb[108].mxu0 }
 0x1d3   : > { %v3512_v44 = vpop.f32.mrb[109].mxu1  ;;  %v2531_v61 = vpop.f32.mrb[109].mxu0 }
 0x1d4   : > { %2737 = vst [vmem:[%s4558_s6 + $0x58] sm:$0xff] %v2721_v17  ;;  %v2578_v15 = vadd.f32 %v4547_v53, %v2555_v37  ;;  %v2556_v13 = vmul.f32 %v4541_v6, %v2525_v56  ;;  %v3513_v49 = vadd.f32 %v3512_v44, %v3511_v5  ;;  %v3514_v3 = vpop.f32.mrb[110].mxu1  ;;  %v2532_v50 = vpop.f32.mrb[110].mxu0 }
 0x1d5   : > { %v3515_v21 = vpop.f32.mrb[111].mxu1  ;;  %v2534_v29 = vpop.f32.mrb[111].mxu0 }
 0x1d6   : > { %v2579_v11 = vadd.f32 %v4547_v53, %v2556_v13  ;;  %v2594_v54 = vmax.f32 %v2578_v15, 0.0  ;;  %v3516_v55 = vadd.f32 %v3515_v21, %v3514_v3  ;;  %v2433_v40 = vadd.f32 %v3513_v49, %v4533_v35 }
 0x1d7   : > { %v3599_v35 = vunpack.i.l.bf16 %v3598_v27 }
 0x1d8   : > { %v2595_v12 = vmax.f32 %v2579_v11, 0.0  ;;  %v2722_v18 = vmul.f32 %v3594_v14, %v2594_v54  ;;  %v2530_v42 = vadd.f32 %v2529_v43, %v2433_v40  ;;  %v2436_v59 = vadd.f32 %v3516_v55, %v4535_v36 }
 0x1da   : > { %v2723_v62 = vmul.f32 %v3595_v25, %v2595_v12  ;;  %2738 = vst [vmem:[%s4558_s6 + $0x60] sm:$0xff] %v2722_v18  ;;  %v2557_v60 = vmul.f32 %v4541_v6, %v2530_v42  ;;  %v2533_v10 = vadd.f32 %v2532_v50, %v2436_v59 }
 0x1dc   : > { %2739 = vst [vmem:[%s4558_s6 + $0x68] sm:$0xff] %v2723_v62  ;;  %v2580_v63 = vadd.f32 %v4547_v53, %v2557_v60  ;;  %v2558_v26 = vmul.f32 %v4541_v6, %v2533_v10 }
 0x1de   : > { %v2596_v0 = vmax.f32 %v2580_v63, 0.0  ;;  %v2581_v1 = vadd.f32 %v4547_v53, %v2558_v26 }
 0x1e0   : > { %v2724_v7 = vmul.f32 %v3599_v35, %v2596_v0  ;;  %v2597_v41 = vmax.f32 %v2581_v1, 0.0 }
 0x1e2   : > { %2740 = vst [vmem:[%s4558_s6 + $0x70] sm:$0xff] %v2724_v7  ;;  %v2725_v36 = vmul.f32 %v3600_v33, %v2597_v41 }
 0x1e4   : > { %2741 = vst [vmem:[%s4558_s6 + $0x78] sm:$0xff] %v2725_v36 }
 0x1e5 PF: > { %s15_s20 = sadd.s32 1, %s3899_s20   ;;  %s4632_s18 = smov %s3895_s19 }
 0x1e6   : > { %p12_p5 = scmp.ge.s32.totalorder %s15_s20, 4   ;;  %s4633_s19 = smov %s4635_s21 }
 0x1e8   :  { %14 = sbr.rel (!%p12_p5) target bundleno = 2 (0x2), region = 73 }

</bundles_post_ra>
